<compile_context>
chip_gen: v7x
topology: tpu7x:2x2x1
jax: 0.10.0
libtpu: 0.0.40
codegen_flags: <defaults>
</compile_context>

<pallas_src>
import functools

import jax
import jax.numpy as jnp
from jax.experimental import pallas as pl
from jax.experimental.pallas import tpu as pltpu


# ----------------------------- configuration -----------------------------

IRREP_DIMS = (1, 3, 5)


def feat_channels(mults):
    return sum(m * d for m, d in zip(mults, IRREP_DIMS))


FEATURES = [(1, 0, 0), (10, 3, 0), (10, 3, 1),
            (16, 8, 1), (16, 8, 1), (16, 8, 1), (1, 0, 0)]
BLOCK_PARAMS = [
    {"stride": 2, "non_linearities": True},
    {"stride": 1, "non_linearities": True},
    {"stride": 1, "non_linearities": True},
    {"stride": 1, "non_linearities": True},
    {"stride": 2, "non_linearities": True},
    {"stride": 2, "non_linearities": False},
]
KSIZE = 3
PAD = 1
LANE = 128            # channel dims padded to a lane-dense multiple of 128


def _round_up(x, m):
    return (x + m - 1) // m * m


# ----------------------------- Pallas kernels -----------------------------

def _conv3d_s1_kernel(x_ref, w_ref, b_ref, o_ref, *, oh, ow, dchunk,
                      apply_relu):
    """Fused stride-1 3x3x3 conv + bias (+ReLU) for one (batch, d-chunk) tile.

    x_ref: (1, D+2, H+2, W+2, Cp)   f32  spatially padded, one batch element
    w_ref: (27, Cp, Np)             bf16 per-tap weight matrices (resident)
    b_ref: (1, Np)                  f32
    o_ref: (dchunk*H*W, Np)         f32  rows ordered (d, h, w)
    """
    cp = x_ref.shape[-1]
    ncol = w_ref.shape[-1]
    rows = dchunk * oh * ow
    d0 = pl.program_id(1) * dchunk
    acc = jnp.zeros((rows, ncol), jnp.float32)
    for kd in range(KSIZE):
        for kh in range(KSIZE):
            for kw in range(KSIZE):
                tap = (kd * KSIZE + kh) * KSIZE + kw
                win = x_ref[0, pl.ds(d0 + kd, dchunk),
                            kh:kh + oh, kw:kw + ow, :]
                a = win.reshape(rows, cp).astype(jnp.bfloat16)
                acc = acc + jnp.dot(a, w_ref[tap],
                                    preferred_element_type=jnp.float32)
    acc = acc + b_ref[...]
    if apply_relu:
        acc = jnp.maximum(acc, 0.0)
    o_ref[...] = acc.astype(o_ref.dtype)


def _matmul_bias_kernel(a_ref, w_ref, b_ref, o_ref, *, apply_relu,
                        reduce_groups):
    """(TM, K)bf16 @ (K, N)bf16 -> f32, + bias (+ReLU) (+ spatial-group sum)."""
    acc = jnp.dot(a_ref[...], w_ref[...], preferred_element_type=jnp.float32)
    acc = acc + b_ref[...]
    if apply_relu:
        acc = jnp.maximum(acc, 0.0)
    if reduce_groups is not None:
        m, n = acc.shape
        acc = acc.reshape(m // reduce_groups, reduce_groups, n).sum(axis=1)
    o_ref[...] = acc.astype(o_ref.dtype)


# ----------------------------- kernel wrappers -----------------------------

def conv3d_s1_fused(x, w_taps, b, apply_relu):
    """x: (N, D, H, W, Cp) f32; k=3 / pad=1 / stride=1 conv -> same spatial."""
    n, d, h, w, cp = x.shape
    ncol = w_taps.shape[-1]
    xp = jnp.pad(x, ((0, 0), (1, 1), (1, 1), (1, 1), (0, 0)))
    dchunk = 2 if d % 2 == 0 else 1
    nchunk = d // dchunk
    rows = dchunk * h * w
    assert rows % 8 == 0

    out = pl.pallas_call(
        functools.partial(_conv3d_s1_kernel, oh=h, ow=w, dchunk=dchunk,
                          apply_relu=apply_relu),
        out_shape=jax.ShapeDtypeStruct((n * d * h * w, ncol), jnp.float32),
        grid=(n, nchunk),
        in_specs=[
            pl.BlockSpec((1, d + 2, h + 2, w + 2, cp),
                         lambda i, j: (i, 0, 0, 0, 0)),
            pl.BlockSpec((KSIZE ** 3, cp, ncol), lambda i, j: (0, 0, 0)),
            pl.BlockSpec((1, ncol), lambda i, j: (0, 0)),
        ],
        out_specs=pl.BlockSpec((rows, ncol), lambda i, j: (i * nchunk + j, 0)),
        compiler_params=pltpu.CompilerParams(
            dimension_semantics=("parallel", "parallel")),
    )(xp, w_taps, b)
    return out.reshape(n, d, h, w, ncol)


def matmul_bias_pallas(patches, w_mat, b, apply_relu, reduce_groups=None):
    """patches: (M, K) bf16, w_mat: (K, Np) bf16, b: (1, Np) f32 -> f32."""
    m, k = patches.shape
    _, ncol = w_mat.shape
    tm = min(512, m)
    assert m % tm == 0
    grid_m = m // tm
    if reduce_groups is None:
        out_shape = jax.ShapeDtypeStruct((m, ncol), jnp.float32)
        out_spec = pl.BlockSpec((tm, ncol), lambda i: (i, 0))
    else:
        assert grid_m == 1 and m % reduce_groups == 0
        out_shape = jax.ShapeDtypeStruct((m // reduce_groups, ncol),
                                         jnp.float32)
        out_spec = pl.BlockSpec((m // reduce_groups, ncol), lambda i: (0, 0))

    return pl.pallas_call(
        functools.partial(_matmul_bias_kernel, apply_relu=apply_relu,
                          reduce_groups=reduce_groups),
        out_shape=out_shape,
        grid=(grid_m,),
        in_specs=[
            pl.BlockSpec((tm, k), lambda i: (i, 0)),
            pl.BlockSpec((k, ncol), lambda i: (0, 0)),
            pl.BlockSpec((1, ncol), lambda i: (0, 0)),
        ],
        out_specs=out_spec,
        compiler_params=pltpu.CompilerParams(
            dimension_semantics=("parallel",)),
    )(patches, w_mat, b)


# ----------------------------- JAX-side glue -----------------------------

def im2col_3d(x, k, stride, pad):
    """x: [N, D, H, W, C] -> ([M, k^3*C], (n, od, oh, ow)); used for s=2 only."""
    xp = jnp.pad(x, ((0, 0), (pad, pad), (pad, pad), (pad, pad), (0, 0)))
    n, dp, hp, wp, c = xp.shape
    od = (dp - k) // stride + 1
    oh = (hp - k) // stride + 1
    ow = (wp - k) // stride + 1
    cols = []
    for kd in range(k):
        for kh in range(k):
            for kw in range(k):
                sl = xp[:,
                        kd:kd + stride * (od - 1) + 1:stride,
                        kh:kh + stride * (oh - 1) + 1:stride,
                        kw:kw + stride * (ow - 1) + 1:stride, :]
                cols.append(sl)
    p = jnp.stack(cols, axis=-2)  # [N, OD, OH, OW, k^3, C]
    return p.reshape(n * od * oh * ow, k * k * k * c), (n, od, oh, ow)


def init_params(key):
    """Per-layer weights, pre-shaped / zero-padded / bf16-cast once at init."""
    params = []
    for i, bp in enumerate(BLOCK_PARAMS):
        cin = feat_channels(FEATURES[i])
        cout = feat_channels(FEATURES[i + 1])
        cout_p = _round_up(cout, LANE)
        # channel count actually seen at runtime (upstream layers pad to LANE)
        cin_rt = cin if i == 0 else _round_up(cin, LANE)

        key, k_w, k_b = jax.random.split(key, 3)
        fan_in = cin * KSIZE ** 3
        # PyTorch-like conv weight [Cout, Cin, kd, kh, kw]
        w = jax.random.normal(k_w, (cout, cin, KSIZE, KSIZE, KSIZE),
                              jnp.float32) * jnp.sqrt(2.0 / fan_in)
        b = jax.random.uniform(k_b, (cout,), jnp.float32,
                               -1.0, 1.0) / jnp.sqrt(float(fan_in))

        # (kd, kh, kw, Cin, Cout), zero-extended to padded channel counts
        w_perm = jnp.transpose(w, (2, 3, 4, 1, 0)).reshape(
            KSIZE ** 3, cin, cout)
        w_full = jnp.zeros((KSIZE ** 3, cin_rt, cout_p), jnp.float32)
        w_full = w_full.at[:, :cin, :cout].set(w_perm)

        if bp["stride"] == 1:
            w_arr = w_full.astype(jnp.bfloat16)            # (27, Cp, Np)
        else:
            k_real = KSIZE ** 3 * cin_rt
            k_pad = _round_up(k_real, LANE)
            w_mat = w_full.reshape(k_real, cout_p)
            if k_pad != k_real:
                w_mat = jnp.pad(w_mat, ((0, k_pad - k_real), (0, 0)))
            w_arr = w_mat.astype(jnp.bfloat16)             # (Kp, Np)

        b_pad = jnp.zeros((1, cout_p), jnp.float32).at[0, :cout].set(b)
        params.append({"w": w_arr, "b": b_pad})
    return params


def cnn_forward(params, inp_ncdhw):
    """inp_ncdhw: [batch, features, x, y, z] -> [batch, features_out]."""
    x = jnp.transpose(inp_ncdhw, (0, 2, 3, 4, 1)).astype(jnp.float32)  # NDHWC
    result = None
    n_layers = len(params)
    for i, layer in enumerate(params):
        stride = BLOCK_PARAMS[i]["stride"]
        relu = BLOCK_PARAMS[i]["non_linearities"]
        last = (i == n_layers - 1)
        if stride == 1:
            x = conv3d_s1_fused(x, layer["w"], layer["b"], relu)
            if last:
                # not hit with this config (last block has stride 2)
                n, d, h, w, c = x.shape
                result = jnp.sum(x.reshape(n, d * h * w, c), axis=1)
        else:
            patches, (n, od, oh, ow) = im2col_3d(x, KSIZE, stride, PAD)
            k = patches.shape[1]
            k_pad = _round_up(k, LANE)
            if k_pad != k:
                patches = jnp.pad(patches, ((0, 0), (0, k_pad - k)))
            patches = patches.astype(jnp.bfloat16)
            if last:
                # fuse the final spatial sum (x.view(N, C, -1).sum(-1))
                result = matmul_bias_pallas(patches, layer["w"], layer["b"],
                                            relu, reduce_groups=od * oh * ow)
            else:
                y = matmul_bias_pallas(patches, layer["w"], layer["b"], relu)
                x = y.reshape(n, od, oh, ow, -1)
    # strip the channel padding from the final result
    return result[:, :feat_channels(FEATURES[-1])]


# --------------------------------- main ----------------------------------

if __name__ == "__main__":
    key = jax.random.PRNGKey(0)
    k_param, k_in = jax.random.split(key)
    params = init_params(k_param)

    # batch=2, features=1 (first feature tuple (1,0,0)), spatial=16^3
    x = jax.random.normal(k_in, (2, 1, 16, 16, 16), jnp.float32)

    fwd = jax.jit(cnn_forward)
    out = jax.block_until_ready(fwd(params, x))
    assert out.shape == (2, feat_channels(FEATURES[-1]))  # (2, 1)
    print("KERNEL_OK")
</pallas_src>

<mosaic_0001>
module attributes {stable_mosaic.version = 11 : i64} {
  func.func @_matmul_bias_kernel(%arg0: i32, %arg1: memref<512x128xbf16, #tpu.memory_space<vmem>>, %arg2: memref<128x128xbf16, #tpu.memory_space<vmem>>, %arg3: memref<1x128xf32, #tpu.memory_space<vmem>>, %arg4: memref<512x128xf32, #tpu.memory_space<vmem>>) attributes {dimension_semantics = [#tpu.dimension_semantics<parallel>], iteration_bounds = array<i64: 2>, scalar_prefetch = 0 : i64, scratch_operands = 0 : i64, tpu.core_type = #tpu.core_type<tc>, window_params = [{transform_indices = @transform_0, window_bounds = array<i64: 512, 128>}, {pipeline_mode = #tpu.pipeline_mode<synchronous>, transform_indices = @transform_1, window_bounds = array<i64: 128, 128>}, {pipeline_mode = #tpu.pipeline_mode<synchronous>, transform_indices = @transform_2, window_bounds = array<i64: 1, 128>}, {transform_indices = @transform_3, window_bounds = array<i64: 512, 128>}]} {
    %c0 = arith.constant 0 : index
    %c0_0 = arith.constant 0 : index
    %0 = vector.load %arg1[%c0, %c0_0] : memref<512x128xbf16, #tpu.memory_space<vmem>>, vector<512x128xbf16>
    %c0_1 = arith.constant 0 : index
    %c0_2 = arith.constant 0 : index
    %1 = vector.load %arg2[%c0_1, %c0_2] : memref<128x128xbf16, #tpu.memory_space<vmem>>, vector<128x128xbf16>
    %cst = arith.constant dense<0.000000e+00> : vector<512x128xf32>
    %2 = tpu.matmul %0, %1, %cst {dimension_numbers = #tpu.dot_dimension_numbers<[1], [0], [0], [1], [0, 0, 1, 1], [], []>} : vector<512x128xbf16>, vector<128x128xbf16>, vector<512x128xf32> -> vector<512x128xf32>
    %c0_3 = arith.constant 0 : index
    %c0_4 = arith.constant 0 : index
    %3 = vector.load %arg3[%c0_3, %c0_4] : memref<1x128xf32, #tpu.memory_space<vmem>>, vector<1x128xf32>
    %4 = vector.broadcast %3 : vector<1x128xf32> to vector<512x128xf32>
    %5 = arith.addf %2, %4 : vector<512x128xf32>
    %cst_5 = arith.constant 0.000000e+00 : f32
    %6 = vector.broadcast %cst_5 : f32 to vector<512x128xf32>
    %7 = arith.maximumf %5, %6 : vector<512x128xf32>
    %c0_6 = arith.constant 0 : index
    %c0_7 = arith.constant 0 : index
    %8 = vector.load %arg4[%c0_6, %c0_7] : memref<512x128xf32, #tpu.memory_space<vmem>>, vector<512x128xf32>
    tpu.vector_store %arg4[%c0_6, %c0_7], %7 {strides = array<i32>} : memref<512x128xf32, #tpu.memory_space<vmem>>, vector<512x128xf32>,
    return
  }
  func.func @transform_0(%arg0: i32) -> (i32, i32) {
    %c0_i32 = arith.constant 0 : i32
    %c0_i32_0 = arith.constant 0 : i32
    return %arg0, %c0_i32 : i32, i32
  }
  func.func @transform_1(%arg0: i32) -> (i32, i32) {
    %c0_i32 = arith.constant 0 : i32
    %c0_i32_0 = arith.constant 0 : i32
    %c0_i32_1 = arith.constant 0 : i32
    return %c0_i32, %c0_i32_0 : i32, i32
  }
  func.func @transform_2(%arg0: i32) -> (i32, i32) {
    %c0_i32 = arith.constant 0 : i32
    %c0_i32_0 = arith.constant 0 : i32
    %c0_i32_1 = arith.constant 0 : i32
    return %c0_i32, %c0_i32_0 : i32, i32
  }
  func.func @transform_3(%arg0: i32) -> (i32, i32) {
    %c0_i32 = arith.constant 0 : i32
    %c0_i32_0 = arith.constant 0 : i32
    return %arg0, %c0_i32 : i32, i32
  }
}

module attributes {stable_mosaic.version = 11 : i64} {
  func.func @_conv3d_s1_kernel(%arg0: i32, %arg1: i32, %arg2: memref<1x10x10x10x128xf32, #tpu.memory_space<vmem>>, %arg3: memref<27x128x128xbf16, #tpu.memory_space<vmem>>, %arg4: memref<1x128xf32, #tpu.memory_space<vmem>>, %arg5: memref<128x128xf32, #tpu.memory_space<vmem>>) attributes {dimension_semantics = [#tpu.dimension_semantics<parallel>, #tpu.dimension_semantics<parallel>], iteration_bounds = array<i64: 2, 4>, scalar_prefetch = 0 : i64, scratch_operands = 0 : i64, tpu.core_type = #tpu.core_type<tc>, window_params = [{transform_indices = @transform_0, window_bounds = array<i64: 1, 10, 10, 10, 128>}, {pipeline_mode = #tpu.pipeline_mode<synchronous>, transform_indices = @transform_1, window_bounds = array<i64: 27, 128, 128>}, {pipeline_mode = #tpu.pipeline_mode<synchronous>, transform_indices = @transform_2, window_bounds = array<i64: 1, 128>}, {transform_indices = @transform_3, window_bounds = array<i64: 128, 128>}]} {
    %c2_i32 = arith.constant 2 : i32
    %0 = arith.muli %arg1, %c2_i32 : i32
    %cst = arith.constant 0.000000e+00 : f32
    %1 = vector.broadcast %cst : f32 to vector<128x128xf32>
    %c0_i32 = arith.constant 0 : i32
    %2 = arith.addi %0, %c0_i32 : i32
    %c0 = arith.constant 0 : index
    %3 = arith.index_cast %2 : i32 to index
    %c0_0 = arith.constant 0 : index
    %c0_1 = arith.constant 0 : index
    %c0_2 = arith.constant 0 : index
    %4 = vector.load %arg2[%c0, %3, %c0_0, %c0_1, %c0_2] : memref<1x10x10x10x128xf32, #tpu.memory_space<vmem>>, vector<1x2x8x8x128xf32>
    %5 = vector.shape_cast %4 : vector<1x2x8x8x128xf32> to vector<2x8x8x128xf32>
    %6 = vector.shape_cast %5 : vector<2x8x8x128xf32> to vector<128x128xf32>
    %7 = arith.truncf %6 : vector<128x128xf32> to vector<128x128xbf16>
    %c0_3 = arith.constant 0 : index
    %c0_4 = arith.constant 0 : index
    %c0_5 = arith.constant 0 : index
    %8 = vector.load %arg3[%c0_3, %c0_4, %c0_5] : memref<27x128x128xbf16, #tpu.memory_space<vmem>>, vector<1x128x128xbf16>
    %9 = vector.shape_cast %8 : vector<1x128x128xbf16> to vector<128x128xbf16>
    %cst_6 = arith.constant dense<0.000000e+00> : vector<128x128xf32>
    %10 = tpu.matmul %7, %9, %cst_6 {dimension_numbers = #tpu.dot_dimension_numbers<[1], [0], [0], [1], [0, 0, 1, 1], [], []>} : vector<128x128xbf16>, vector<128x128xbf16>, vector<128x128xf32> -> vector<128x128xf32>
    %11 = arith.addf %1, %10 : vector<128x128xf32>
    %c0_i32_7 = arith.constant 0 : i32
    %12 = arith.addi %0, %c0_i32_7 : i32
    %c0_8 = arith.constant 0 : index
    %13 = arith.index_cast %12 : i32 to index
    %c0_9 = arith.constant 0 : index
    %c1 = arith.constant 1 : index
    %c0_10 = arith.constant 0 : index
    %14 = vector.load %arg2[%c0_8, %13, %c0_9, %c1, %c0_10] : memref<1x10x10x10x128xf32, #tpu.memory_space<vmem>>, vector<1x2x8x8x128xf32>
    %15 = vector.shape_cast %14 : vector<1x2x8x8x128xf32> to vector<2x8x8x128xf32>
    %16 = vector.shape_cast %15 : vector<2x8x8x128xf32> to vector<128x128xf32>
    %17 = arith.truncf %16 : vector<128x128xf32> to vector<128x128xbf16>
    %c1_11 = arith.constant 1 : index
    %c0_12 = arith.constant 0 : index
    %c0_13 = arith.constant 0 : index
    %18 = vector.load %arg3[%c1_11, %c0_12, %c0_13] : memref<27x128x128xbf16, #tpu.memory_space<vmem>>, vector<1x128x128xbf16>
    %19 = vector.shape_cast %18 : vector<1x128x128xbf16> to vector<128x128xbf16>
    %cst_14 = arith.constant dense<0.000000e+00> : vector<128x128xf32>
    %20 = tpu.matmul %17, %19, %cst_14 {dimension_numbers = #tpu.dot_dimension_numbers<[1], [0], [0], [1], [0, 0, 1, 1], [], []>} : vector<128x128xbf16>, vector<128x128xbf16>, vector<128x128xf32> -> vector<128x128xf32>
    %21 = arith.addf %11, %20 : vector<128x128xf32>
    %c0_i32_15 = arith.constant 0 : i32
    %22 = arith.addi %0, %c0_i32_15 : i32
    %c0_16 = arith.constant 0 : index
    %23 = arith.index_cast %22 : i32 to index
    %c0_17 = arith.constant 0 : index
    %c2 = arith.constant 2 : index
    %c0_18 = arith.constant 0 : index
    %24 = vector.load %arg2[%c0_16, %23, %c0_17, %c2, %c0_18] : memref<1x10x10x10x128xf32, #tpu.memory_space<vmem>>, vector<1x2x8x8x128xf32>
    %25 = vector.shape_cast %24 : vector<1x2x8x8x128xf32> to vector<2x8x8x128xf32>
    %26 = vector.shape_cast %25 : vector<2x8x8x128xf32> to vector<128x128xf32>
    %27 = arith.truncf %26 : vector<128x128xf32> to vector<128x128xbf16>
    %c2_19 = arith.constant 2 : index
    %c0_20 = arith.constant 0 : index
    %c0_21 = arith.constant 0 : index
    %28 = vector.load %arg3[%c2_19, %c0_20, %c0_21] : memref<27x128x128xbf16, #tpu.memory_space<vmem>>, vector<1x128x128xbf16>
    %29 = vector.shape_cast %28 : vector<1x128x128xbf16> to vector<128x128xbf16>
    %cst_22 = arith.constant dense<0.000000e+00> : vector<128x128xf32>
    %30 = tpu.matmul %27, %29, %cst_22 {dimension_numbers = #tpu.dot_dimension_numbers<[1], [0], [0], [1], [0, 0, 1, 1], [], []>} : vector<128x128xbf16>, vector<128x128xbf16>, vector<128x128xf32> -> vector<128x128xf32>
    %31 = arith.addf %21, %30 : vector<128x128xf32>
    %c0_i32_23 = arith.constant 0 : i32
    %32 = arith.addi %0, %c0_i32_23 : i32
    %c0_24 = arith.constant 0 : index
    %33 = arith.index_cast %32 : i32 to index
    %c1_25 = arith.constant 1 : index
    %c0_26 = arith.constant 0 : index
    %c0_27 = arith.constant 0 : index
    %34 = vector.load %arg2[%c0_24, %33, %c1_25, %c0_26, %c0_27] : memref<1x10x10x10x128xf32, #tpu.memory_space<vmem>>, vector<1x2x8x8x128xf32>
    %35 = vector.shape_cast %34 : vector<1x2x8x8x128xf32> to vector<2x8x8x128xf32>
    %36 = vector.shape_cast %35 : vector<2x8x8x128xf32> to vector<128x128xf32>
    %37 = arith.truncf %36 : vector<128x128xf32> to vector<128x128xbf16>
    %c3 = arith.constant 3 : index
    %c0_28 = arith.constant 0 : index
    %c0_29 = arith.constant 0 : index
    %38 = vector.load %arg3[%c3, %c0_28, %c0_29] : memref<27x128x128xbf16, #tpu.memory_space<vmem>>, vector<1x128x128xbf16>
    %39 = vector.shape_cast %38 : vector<1x128x128xbf16> to vector<128x128xbf16>
    %cst_30 = arith.constant dense<0.000000e+00> : vector<128x128xf32>
    %40 = tpu.matmul %37, %39, %cst_30 {dimension_numbers = #tpu.dot_dimension_numbers<[1], [0], [0], [1], [0, 0, 1, 1], [], []>} : vector<128x128xbf16>, vector<128x128xbf16>, vector<128x128xf32> -> vector<128x128xf32>
    %41 = arith.addf %31, %40 : vector<128x128xf32>
    %c0_i32_31 = arith.constant 0 : i32
    %42 = arith.addi %0, %c0_i32_31 : i32
    %c0_32 = arith.constant 0 : index
    %43 = arith.index_cast %42 : i32 to index
    %c1_33 = arith.constant 1 : index
    %c1_34 = arith.constant 1 : index
    %c0_35 = arith.constant 0 : index
    %44 = vector.load %arg2[%c0_32, %43, %c1_33, %c1_34, %c0_35] : memref<1x10x10x10x128xf32, #tpu.memory_space<vmem>>, vector<1x2x8x8x128xf32>
    %45 = vector.shape_cast %44 : vector<1x2x8x8x128xf32> to vector<2x8x8x128xf32>
    %46 = vector.shape_cast %45 : vector<2x8x8x128xf32> to vector<128x128xf32>
    %47 = arith.truncf %46 : vector<128x128xf32> to vector<128x128xbf16>
    %c4 = arith.constant 4 : index
    %c0_36 = arith.constant 0 : index
    %c0_37 = arith.constant 0 : index
    %48 = vector.load %arg3[%c4, %c0_36, %c0_37] : memref<27x128x128xbf16, #tpu.memory_space<vmem>>, vector<1x128x128xbf16>
    %49 = vector.shape_cast %48 : vector<1x128x128xbf16> to vector<128x128xbf16>
    %cst_38 = arith.constant dense<0.000000e+00> : vector<128x128xf32>
    %50 = tpu.matmul %47, %49, %cst_38 {dimension_numbers = #tpu.dot_dimension_numbers<[1], [0], [0], [1], [0, 0, 1, 1], [], []>} : vector<128x128xbf16>, vector<128x128xbf16>, vector<128x128xf32> -> vector<128x128xf32>
    %51 = arith.addf %41, %50 : vector<128x128xf32>
    %c0_i32_39 = arith.constant 0 : i32
    %52 = arith.addi %0, %c0_i32_39 : i32
    %c0_40 = arith.constant 0 : index
    %53 = arith.index_cast %52 : i32 to index
    %c1_41 = arith.constant 1 : index
    %c2_42 = arith.constant 2 : index
    %c0_43 = arith.constant 0 : index
    %54 = vector.load %arg2[%c0_40, %53, %c1_41, %c2_42, %c0_43] : memref<1x10x10x10x128xf32, #tpu.memory_space<vmem>>, vector<1x2x8x8x128xf32>
    %55 = vector.shape_cast %54 : vector<1x2x8x8x128xf32> to vector<2x8x8x128xf32>
    %56 = vector.shape_cast %55 : vector<2x8x8x128xf32> to vector<128x128xf32>
    %57 = arith.truncf %56 : vector<128x128xf32> to vector<128x128xbf16>
    %c5 = arith.constant 5 : index
    %c0_44 = arith.constant 0 : index
    %c0_45 = arith.constant 0 : index
    %58 = vector.load %arg3[%c5, %c0_44, %c0_45] : memref<27x128x128xbf16, #tpu.memory_space<vmem>>, vector<1x128x128xbf16>
    %59 = vector.shape_cast %58 : vector<1x128x128xbf16> to vector<128x128xbf16>
    %cst_46 = arith.constant dense<0.000000e+00> : vector<128x128xf32>
    %60 = tpu.matmul %57, %59, %cst_46 {dimension_numbers = #tpu.dot_dimension_numbers<[1], [0], [0], [1], [0, 0, 1, 1], [], []>} : vector<128x128xbf16>, vector<128x128xbf16>, vector<128x128xf32> -> vector<128x128xf32>
    %61 = arith.addf %51, %60 : vector<128x128xf32>
    %c0_i32_47 = arith.constant 0 : i32
    %62 = arith.addi %0, %c0_i32_47 : i32
    %c0_48 = arith.constant 0 : index
    %63 = arith.index_cast %62 : i32 to index
    %c2_49 = arith.constant 2 : index
    %c0_50 = arith.constant 0 : index
    %c0_51 = arith.constant 0 : index
    %64 = vector.load %arg2[%c0_48, %63, %c2_49, %c0_50, %c0_51] : memref<1x10x10x10x128xf32, #tpu.memory_space<vmem>>, vector<1x2x8x8x128xf32>
    %65 = vector.shape_cast %64 : vector<1x2x8x8x128xf32> to vector<2x8x8x128xf32>
    %66 = vector.shape_cast %65 : vector<2x8x8x128xf32> to vector<128x128xf32>
    %67 = arith.truncf %66 : vector<128x128xf32> to vector<128x128xbf16>
    %c6 = arith.constant 6 : index
    %c0_52 = arith.constant 0 : index
    %c0_53 = arith.constant 0 : index
    %68 = vector.load %arg3[%c6, %c0_52, %c0_53] : memref<27x128x128xbf16, #tpu.memory_space<vmem>>, vector<1x128x128xbf16>
    %69 = vector.shape_cast %68 : vector<1x128x128xbf16> to vector<128x128xbf16>
    %cst_54 = arith.constant dense<0.000000e+00> : vector<128x128xf32>
    %70 = tpu.matmul %67, %69, %cst_54 {dimension_numbers = #tpu.dot_dimension_numbers<[1], [0], [0], [1], [0, 0, 1, 1], [], []>} : vector<128x128xbf16>, vector<128x128xbf16>, vector<128x128xf32> -> vector<128x128xf32>
    %71 = arith.addf %61, %70 : vector<128x128xf32>
    %c0_i32_55 = arith.constant 0 : i32
    %72 = arith.addi %0, %c0_i32_55 : i32
    %c0_56 = arith.constant 0 : index
    %73 = arith.index_cast %72 : i32 to index
    %c2_57 = arith.constant 2 : index
    %c1_58 = arith.constant 1 : index
    %c0_59 = arith.constant 0 : index
    %74 = vector.load %arg2[%c0_56, %73, %c2_57, %c1_58, %c0_59] : memref<1x10x10x10x128xf32, #tpu.memory_space<vmem>>, vector<1x2x8x8x128xf32>
    %75 = vector.shape_cast %74 : vector<1x2x8x8x128xf32> to vector<2x8x8x128xf32>
    %76 = vector.shape_cast %75 : vector<2x8x8x128xf32> to vector<128x128xf32>
    %77 = arith.truncf %76 : vector<128x128xf32> to vector<128x128xbf16>
    %c7 = arith.constant 7 : index
    %c0_60 = arith.constant 0 : index
    %c0_61 = arith.constant 0 : index
    %78 = vector.load %arg3[%c7, %c0_60, %c0_61] : memref<27x128x128xbf16, #tpu.memory_space<vmem>>, vector<1x128x128xbf16>
    %79 = vector.shape_cast %78 : vector<1x128x128xbf16> to vector<128x128xbf16>
    %cst_62 = arith.constant dense<0.000000e+00> : vector<128x128xf32>
    %80 = tpu.matmul %77, %79, %cst_62 {dimension_numbers = #tpu.dot_dimension_numbers<[1], [0], [0], [1], [0, 0, 1, 1], [], []>} : vector<128x128xbf16>, vector<128x128xbf16>, vector<128x128xf32> -> vector<128x128xf32>
    %81 = arith.addf %71, %80 : vector<128x128xf32>
    %c0_i32_63 = arith.constant 0 : i32
    %82 = arith.addi %0, %c0_i32_63 : i32
    %c0_64 = arith.constant 0 : index
    %83 = arith.index_cast %82 : i32 to index
    %c2_65 = arith.constant 2 : index
    %c2_66 = arith.constant 2 : index
    %c0_67 = arith.constant 0 : index
    %84 = vector.load %arg2[%c0_64, %83, %c2_65, %c2_66, %c0_67] : memref<1x10x10x10x128xf32, #tpu.memory_space<vmem>>, vector<1x2x8x8x128xf32>
    %85 = vector.shape_cast %84 : vector<1x2x8x8x128xf32> to vector<2x8x8x128xf32>
    %86 = vector.shape_cast %85 : vector<2x8x8x128xf32> to vector<128x128xf32>
    %87 = arith.truncf %86 : vector<128x128xf32> to vector<128x128xbf16>
    %c8 = arith.constant 8 : index
    %c0_68 = arith.constant 0 : index
    %c0_69 = arith.constant 0 : index
    %88 = vector.load %arg3[%c8, %c0_68, %c0_69] : memref<27x128x128xbf16, #tpu.memory_space<vmem>>, vector<1x128x128xbf16>
    %89 = vector.shape_cast %88 : vector<1x128x128xbf16> to vector<128x128xbf16>
    %cst_70 = arith.constant dense<0.000000e+00> : vector<128x128xf32>
    %90 = tpu.matmul %87, %89, %cst_70 {dimension_numbers = #tpu.dot_dimension_numbers<[1], [0], [0], [1], [0, 0, 1, 1], [], []>} : vector<128x128xbf16>, vector<128x128xbf16>, vector<128x128xf32> -> vector<128x128xf32>
    %91 = arith.addf %81, %90 : vector<128x128xf32>
    %c1_i32 = arith.constant 1 : i32
    %92 = arith.addi %0, %c1_i32 : i32
    %c0_71 = arith.constant 0 : index
    %93 = arith.index_cast %92 : i32 to index
    %c0_72 = arith.constant 0 : index
    %c0_73 = arith.constant 0 : index
    %c0_74 = arith.constant 0 : index
    %94 = vector.load %arg2[%c0_71, %93, %c0_72, %c0_73, %c0_74] : memref<1x10x10x10x128xf32, #tpu.memory_space<vmem>>, vector<1x2x8x8x128xf32>
    %95 = vector.shape_cast %94 : vector<1x2x8x8x128xf32> to vector<2x8x8x128xf32>
    %96 = vector.shape_cast %95 : vector<2x8x8x128xf32> to vector<128x128xf32>
    %97 = arith.truncf %96 : vector<128x128xf32> to vector<128x128xbf16>
    %c9 = arith.constant 9 : index
    %c0_75 = arith.constant 0 : index
    %c0_76 = arith.constant 0 : index
    %98 = vector.load %arg3[%c9, %c0_75, %c0_76] : memref<27x128x128xbf16, #tpu.memory_space<vmem>>, vector<1x128x128xbf16>
    %99 = vector.shape_cast %98 : vector<1x128x128xbf16> to vector<128x128xbf16>
    %cst_77 = arith.constant dense<0.000000e+00> : vector<128x128xf32>
    %100 = tpu.matmul %97, %99, %cst_77 {dimension_numbers = #tpu.dot_dimension_numbers<[1], [0], [0], [1], [0, 0, 1, 1], [], []>} : vector<128x128xbf16>, vector<128x128xbf16>, vector<128x128xf32> -> vector<128x128xf32>
    %101 = arith.addf %91, %100 : vector<128x128xf32>
    %c1_i32_78 = arith.constant 1 : i32
    %102 = arith.addi %0, %c1_i32_78 : i32
    %c0_79 = arith.constant 0 : index
    %103 = arith.index_cast %102 : i32 to index
    %c0_80 = arith.constant 0 : index
    %c1_81 = arith.constant 1 : index
    %c0_82 = arith.constant 0 : index
    %104 = vector.load %arg2[%c0_79, %103, %c0_80, %c1_81, %c0_82] : memref<1x10x10x10x128xf32, #tpu.memory_space<vmem>>, vector<1x2x8x8x128xf32>
    %105 = vector.shape_cast %104 : vector<1x2x8x8x128xf32> to vector<2x8x8x128xf32>
    %106 = vector.shape_cast %105 : vector<2x8x8x128xf32> to vector<128x128xf32>
    %107 = arith.truncf %106 : vector<128x128xf32> to vector<128x128xbf16>
    %c10 = arith.constant 10 : index
    %c0_83 = arith.constant 0 : index
    %c0_84 = arith.constant 0 : index
    %108 = vector.load %arg3[%c10, %c0_83, %c0_84] : memref<27x128x128xbf16, #tpu.memory_space<vmem>>, vector<1x128x128xbf16>
    %109 = vector.shape_cast %108 : vector<1x128x128xbf16> to vector<128x128xbf16>
    %cst_85 = arith.constant dense<0.000000e+00> : vector<128x128xf32>
    %110 = tpu.matmul %107, %109, %cst_85 {dimension_numbers = #tpu.dot_dimension_numbers<[1], [0], [0], [1], [0, 0, 1, 1], [], []>} : vector<128x128xbf16>, vector<128x128xbf16>, vector<128x128xf32> -> vector<128x128xf32>
    %111 = arith.addf %101, %110 : vector<128x128xf32>
    %c1_i32_86 = arith.constant 1 : i32
    %112 = arith.addi %0, %c1_i32_86 : i32
    %c0_87 = arith.constant 0 : index
    %113 = arith.index_cast %112 : i32 to index
    %c0_88 = arith.constant 0 : index
    %c2_89 = arith.constant 2 : index
    %c0_90 = arith.constant 0 : index
    %114 = vector.load %arg2[%c0_87, %113, %c0_88, %c2_89, %c0_90] : memref<1x10x10x10x128xf32, #tpu.memory_space<vmem>>, vector<1x2x8x8x128xf32>
    %115 = vector.shape_cast %114 : vector<1x2x8x8x128xf32> to vector<2x8x8x128xf32>
    %116 = vector.shape_cast %115 : vector<2x8x8x128xf32> to vector<128x128xf32>
    %117 = arith.truncf %116 : vector<128x128xf32> to vector<128x128xbf16>
    %c11 = arith.constant 11 : index
    %c0_91 = arith.constant 0 : index
    %c0_92 = arith.constant 0 : index
    %118 = vector.load %arg3[%c11, %c0_91, %c0_92] : memref<27x128x128xbf16, #tpu.memory_space<vmem>>, vector<1x128x128xbf16>
    %119 = vector.shape_cast %118 : vector<1x128x128xbf16> to vector<128x128xbf16>
    %cst_93 = arith.constant dense<0.000000e+00> : vector<128x128xf32>
    %120 = tpu.matmul %117, %119, %cst_93 {dimension_numbers = #tpu.dot_dimension_numbers<[1], [0], [0], [1], [0, 0, 1, 1], [], []>} : vector<128x128xbf16>, vector<128x128xbf16>, vector<128x128xf32> -> vector<128x128xf32>
    %121 = arith.addf %111, %120 : vector<128x128xf32>
    %c1_i32_94 = arith.constant 1 : i32
    %122 = arith.addi %0, %c1_i32_94 : i32
    %c0_95 = arith.constant 0 : index
    %123 = arith.index_cast %122 : i32 to index
    %c1_96 = arith.constant 1 : index
    %c0_97 = arith.constant 0 : index
    %c0_98 = arith.constant 0 : index
    %124 = vector.load %arg2[%c0_95, %123, %c1_96, %c0_97, %c0_98] : memref<1x10x10x10x128xf32, #tpu.memory_space<vmem>>, vector<1x2x8x8x128xf32>
    %125 = vector.shape_cast %124 : vector<1x2x8x8x128xf32> to vector<2x8x8x128xf32>
    %126 = vector.shape_cast %125 : vector<2x8x8x128xf32> to vector<128x128xf32>
    %127 = arith.truncf %126 : vector<128x128xf32> to vector<128x128xbf16>
    %c12 = arith.constant 12 : index
    %c0_99 = arith.constant 0 : index
    %c0_100 = arith.constant 0 : index
    %128 = vector.load %arg3[%c12, %c0_99, %c0_100] : memref<27x128x128xbf16, #tpu.memory_space<vmem>>, vector<1x128x128xbf16>
    %129 = vector.shape_cast %128 : vector<1x128x128xbf16> to vector<128x128xbf16>
    %cst_101 = arith.constant dense<0.000000e+00> : vector<128x128xf32>
    %130 = tpu.matmul %127, %129, %cst_101 {dimension_numbers = #tpu.dot_dimension_numbers<[1], [0], [0], [1], [0, 0, 1, 1], [], []>} : vector<128x128xbf16>, vector<128x128xbf16>, vector<128x128xf32> -> vector<128x128xf32>
    %131 = arith.addf %121, %130 : vector<128x128xf32>
    %c1_i32_102 = arith.constant 1 : i32
    %132 = arith.addi %0, %c1_i32_102 : i32
    %c0_103 = arith.constant 0 : index
    %133 = arith.index_cast %132 : i32 to index
    %c1_104 = arith.constant 1 : index
    %c1_105 = arith.constant 1 : index
    %c0_106 = arith.constant 0 : index
    %134 = vector.load %arg2[%c0_103, %133, %c1_104, %c1_105, %c0_106] : memref<1x10x10x10x128xf32, #tpu.memory_space<vmem>>, vector<1x2x8x8x128xf32>
    %135 = vector.shape_cast %134 : vector<1x2x8x8x128xf32> to vector<2x8x8x128xf32>
    %136 = vector.shape_cast %135 : vector<2x8x8x128xf32> to vector<128x128xf32>
    %137 = arith.truncf %136 : vector<128x128xf32> to vector<128x128xbf16>
    %c13 = arith.constant 13 : index
    %c0_107 = arith.constant 0 : index
    %c0_108 = arith.constant 0 : index
    %138 = vector.load %arg3[%c13, %c0_107, %c0_108] : memref<27x128x128xbf16, #tpu.memory_space<vmem>>, vector<1x128x128xbf16>
    %139 = vector.shape_cast %138 : vector<1x128x128xbf16> to vector<128x128xbf16>
    %cst_109 = arith.constant dense<0.000000e+00> : vector<128x128xf32>
    %140 = tpu.matmul %137, %139, %cst_109 {dimension_numbers = #tpu.dot_dimension_numbers<[1], [0], [0], [1], [0, 0, 1, 1], [], []>} : vector<128x128xbf16>, vector<128x128xbf16>, vector<128x128xf32> -> vector<128x128xf32>
    %141 = arith.addf %131, %140 : vector<128x128xf32>
    %c1_i32_110 = arith.constant 1 : i32
    %142 = arith.addi %0, %c1_i32_110 : i32
    %c0_111 = arith.constant 0 : index
    %143 = arith.index_cast %142 : i32 to index
    %c1_112 = arith.constant 1 : index
    %c2_113 = arith.constant 2 : index
    %c0_114 = arith.constant 0 : index
    %144 = vector.load %arg2[%c0_111, %143, %c1_112, %c2_113, %c0_114] : memref<1x10x10x10x128xf32, #tpu.memory_space<vmem>>, vector<1x2x8x8x128xf32>
    %145 = vector.shape_cast %144 : vector<1x2x8x8x128xf32> to vector<2x8x8x128xf32>
    %146 = vector.shape_cast %145 : vector<2x8x8x128xf32> to vector<128x128xf32>
    %147 = arith.truncf %146 : vector<128x128xf32> to vector<128x128xbf16>
    %c14 = arith.constant 14 : index
    %c0_115 = arith.constant 0 : index
    %c0_116 = arith.constant 0 : index
    %148 = vector.load %arg3[%c14, %c0_115, %c0_116] : memref<27x128x128xbf16, #tpu.memory_space<vmem>>, vector<1x128x128xbf16>
    %149 = vector.shape_cast %148 : vector<1x128x128xbf16> to vector<128x128xbf16>
    %cst_117 = arith.constant dense<0.000000e+00> : vector<128x128xf32>
    %150 = tpu.matmul %147, %149, %cst_117 {dimension_numbers = #tpu.dot_dimension_numbers<[1], [0], [0], [1], [0, 0, 1, 1], [], []>} : vector<128x128xbf16>, vector<128x128xbf16>, vector<128x128xf32> -> vector<128x128xf32>
    %151 = arith.addf %141, %150 : vector<128x128xf32>
    %c1_i32_118 = arith.constant 1 : i32
    %152 = arith.addi %0, %c1_i32_118 : i32
    %c0_119 = arith.constant 0 : index
    %153 = arith.index_cast %152 : i32 to index
    %c2_120 = arith.constant 2 : index
    %c0_121 = arith.constant 0 : index
    %c0_122 = arith.constant 0 : index
    %154 = vector.load %arg2[%c0_119, %153, %c2_120, %c0_121, %c0_122] : memref<1x10x10x10x128xf32, #tpu.memory_space<vmem>>, vector<1x2x8x8x128xf32>
    %155 = vector.shape_cast %154 : vector<1x2x8x8x128xf32> to vector<2x8x8x128xf32>
    %156 = vector.shape_cast %155 : vector<2x8x8x128xf32> to vector<128x128xf32>
    %157 = arith.truncf %156 : vector<128x128xf32> to vector<128x128xbf16>
    %c15 = arith.constant 15 : index
    %c0_123 = arith.constant 0 : index
    %c0_124 = arith.constant 0 : index
    %158 = vector.load %arg3[%c15, %c0_123, %c0_124] : memref<27x128x128xbf16, #tpu.memory_space<vmem>>, vector<1x128x128xbf16>
    %159 = vector.shape_cast %158 : vector<1x128x128xbf16> to vector<128x128xbf16>
    %cst_125 = arith.constant dense<0.000000e+00> : vector<128x128xf32>
    %160 = tpu.matmul %157, %159, %cst_125 {dimension_numbers = #tpu.dot_dimension_numbers<[1], [0], [0], [1], [0, 0, 1, 1], [], []>} : vector<128x128xbf16>, vector<128x128xbf16>, vector<128x128xf32> -> vector<128x128xf32>
    %161 = arith.addf %151, %160 : vector<128x128xf32>
    %c1_i32_126 = arith.constant 1 : i32
    %162 = arith.addi %0, %c1_i32_126 : i32
    %c0_127 = arith.constant 0 : index
    %163 = arith.index_cast %162 : i32 to index
    %c2_128 = arith.constant 2 : index
    %c1_129 = arith.constant 1 : index
    %c0_130 = arith.constant 0 : index
    %164 = vector.load %arg2[%c0_127, %163, %c2_128, %c1_129, %c0_130] : memref<1x10x10x10x128xf32, #tpu.memory_space<vmem>>, vector<1x2x8x8x128xf32>
    %165 = vector.shape_cast %164 : vector<1x2x8x8x128xf32> to vector<2x8x8x128xf32>
    %166 = vector.shape_cast %165 : vector<2x8x8x128xf32> to vector<128x128xf32>
    %167 = arith.truncf %166 : vector<128x128xf32> to vector<128x128xbf16>
    %c16 = arith.constant 16 : index
    %c0_131 = arith.constant 0 : index
    %c0_132 = arith.constant 0 : index
    %168 = vector.load %arg3[%c16, %c0_131, %c0_132] : memref<27x128x128xbf16, #tpu.memory_space<vmem>>, vector<1x128x128xbf16>
    %169 = vector.shape_cast %168 : vector<1x128x128xbf16> to vector<128x128xbf16>
    %cst_133 = arith.constant dense<0.000000e+00> : vector<128x128xf32>
    %170 = tpu.matmul %167, %169, %cst_133 {dimension_numbers = #tpu.dot_dimension_numbers<[1], [0], [0], [1], [0, 0, 1, 1], [], []>} : vector<128x128xbf16>, vector<128x128xbf16>, vector<128x128xf32> -> vector<128x128xf32>
    %171 = arith.addf %161, %170 : vector<128x128xf32>
    %c1_i32_134 = arith.constant 1 : i32
    %172 = arith.addi %0, %c1_i32_134 : i32
    %c0_135 = arith.constant 0 : index
    %173 = arith.index_cast %172 : i32 to index
    %c2_136 = arith.constant 2 : index
    %c2_137 = arith.constant 2 : index
    %c0_138 = arith.constant 0 : index
    %174 = vector.load %arg2[%c0_135, %173, %c2_136, %c2_137, %c0_138] : memref<1x10x10x10x128xf32, #tpu.memory_space<vmem>>, vector<1x2x8x8x128xf32>
    %175 = vector.shape_cast %174 : vector<1x2x8x8x128xf32> to vector<2x8x8x128xf32>
    %176 = vector.shape_cast %175 : vector<2x8x8x128xf32> to vector<128x128xf32>
    %177 = arith.truncf %176 : vector<128x128xf32> to vector<128x128xbf16>
    %c17 = arith.constant 17 : index
    %c0_139 = arith.constant 0 : index
    %c0_140 = arith.constant 0 : index
    %178 = vector.load %arg3[%c17, %c0_139, %c0_140] : memref<27x128x128xbf16, #tpu.memory_space<vmem>>, vector<1x128x128xbf16>
    %179 = vector.shape_cast %178 : vector<1x128x128xbf16> to vector<128x128xbf16>
    %cst_141 = arith.constant dense<0.000000e+00> : vector<128x128xf32>
    %180 = tpu.matmul %177, %179, %cst_141 {dimension_numbers = #tpu.dot_dimension_numbers<[1], [0], [0], [1], [0, 0, 1, 1], [], []>} : vector<128x128xbf16>, vector<128x128xbf16>, vector<128x128xf32> -> vector<128x128xf32>
    %181 = arith.addf %171, %180 : vector<128x128xf32>
    %c2_i32_142 = arith.constant 2 : i32
    %182 = arith.addi %0, %c2_i32_142 : i32
    %c0_143 = arith.constant 0 : index
    %183 = arith.index_cast %182 : i32 to index
    %c0_144 = arith.constant 0 : index
    %c0_145 = arith.constant 0 : index
    %c0_146 = arith.constant 0 : index
    %184 = vector.load %arg2[%c0_143, %183, %c0_144, %c0_145, %c0_146] : memref<1x10x10x10x128xf32, #tpu.memory_space<vmem>>, vector<1x2x8x8x128xf32>
    %185 = vector.shape_cast %184 : vector<1x2x8x8x128xf32> to vector<2x8x8x128xf32>
    %186 = vector.shape_cast %185 : vector<2x8x8x128xf32> to vector<128x128xf32>
    %187 = arith.truncf %186 : vector<128x128xf32> to vector<128x128xbf16>
    %c18 = arith.constant 18 : index
    %c0_147 = arith.constant 0 : index
    %c0_148 = arith.constant 0 : index
    %188 = vector.load %arg3[%c18, %c0_147, %c0_148] : memref<27x128x128xbf16, #tpu.memory_space<vmem>>, vector<1x128x128xbf16>
    %189 = vector.shape_cast %188 : vector<1x128x128xbf16> to vector<128x128xbf16>
    %cst_149 = arith.constant dense<0.000000e+00> : vector<128x128xf32>
    %190 = tpu.matmul %187, %189, %cst_149 {dimension_numbers = #tpu.dot_dimension_numbers<[1], [0], [0], [1], [0, 0, 1, 1], [], []>} : vector<128x128xbf16>, vector<128x128xbf16>, vector<128x128xf32> -> vector<128x128xf32>
    %191 = arith.addf %181, %190 : vector<128x128xf32>
    %c2_i32_150 = arith.constant 2 : i32
    %192 = arith.addi %0, %c2_i32_150 : i32
    %c0_151 = arith.constant 0 : index
    %193 = arith.index_cast %192 : i32 to index
    %c0_152 = arith.constant 0 : index
    %c1_153 = arith.constant 1 : index
    %c0_154 = arith.constant 0 : index
    %194 = vector.load %arg2[%c0_151, %193, %c0_152, %c1_153, %c0_154] : memref<1x10x10x10x128xf32, #tpu.memory_space<vmem>>, vector<1x2x8x8x128xf32>
    %195 = vector.shape_cast %194 : vector<1x2x8x8x128xf32> to vector<2x8x8x128xf32>
    %196 = vector.shape_cast %195 : vector<2x8x8x128xf32> to vector<128x128xf32>
    %197 = arith.truncf %196 : vector<128x128xf32> to vector<128x128xbf16>
    %c19 = arith.constant 19 : index
    %c0_155 = arith.constant 0 : index
    %c0_156 = arith.constant 0 : index
    %198 = vector.load %arg3[%c19, %c0_155, %c0_156] : memref<27x128x128xbf16, #tpu.memory_space<vmem>>, vector<1x128x128xbf16>
    %199 = vector.shape_cast %198 : vector<1x128x128xbf16> to vector<128x128xbf16>
    %cst_157 = arith.constant dense<0.000000e+00> : vector<128x128xf32>
    %200 = tpu.matmul %197, %199, %cst_157 {dimension_numbers = #tpu.dot_dimension_numbers<[1], [0], [0], [1], [0, 0, 1, 1], [], []>} : vector<128x128xbf16>, vector<128x128xbf16>, vector<128x128xf32> -> vector<128x128xf32>
    %201 = arith.addf %191, %200 : vector<128x128xf32>
    %c2_i32_158 = arith.constant 2 : i32
    %202 = arith.addi %0, %c2_i32_158 : i32
    %c0_159 = arith.constant 0 : index
    %203 = arith.index_cast %202 : i32 to index
    %c0_160 = arith.constant 0 : index
    %c2_161 = arith.constant 2 : index
    %c0_162 = arith.constant 0 : index
    %204 = vector.load %arg2[%c0_159, %203, %c0_160, %c2_161, %c0_162] : memref<1x10x10x10x128xf32, #tpu.memory_space<vmem>>, vector<1x2x8x8x128xf32>
    %205 = vector.shape_cast %204 : vector<1x2x8x8x128xf32> to vector<2x8x8x128xf32>
    %206 = vector.shape_cast %205 : vector<2x8x8x128xf32> to vector<128x128xf32>
    %207 = arith.truncf %206 : vector<128x128xf32> to vector<128x128xbf16>
    %c20 = arith.constant 20 : index
    %c0_163 = arith.constant 0 : index
    %c0_164 = arith.constant 0 : index
    %208 = vector.load %arg3[%c20, %c0_163, %c0_164] : memref<27x128x128xbf16, #tpu.memory_space<vmem>>, vector<1x128x128xbf16>
    %209 = vector.shape_cast %208 : vector<1x128x128xbf16> to vector<128x128xbf16>
    %cst_165 = arith.constant dense<0.000000e+00> : vector<128x128xf32>
    %210 = tpu.matmul %207, %209, %cst_165 {dimension_numbers = #tpu.dot_dimension_numbers<[1], [0], [0], [1], [0, 0, 1, 1], [], []>} : vector<128x128xbf16>, vector<128x128xbf16>, vector<128x128xf32> -> vector<128x128xf32>
    %211 = arith.addf %201, %210 : vector<128x128xf32>
    %c2_i32_166 = arith.constant 2 : i32
    %212 = arith.addi %0, %c2_i32_166 : i32
    %c0_167 = arith.constant 0 : index
    %213 = arith.index_cast %212 : i32 to index
    %c1_168 = arith.constant 1 : index
    %c0_169 = arith.constant 0 : index
    %c0_170 = arith.constant 0 : index
    %214 = vector.load %arg2[%c0_167, %213, %c1_168, %c0_169, %c0_170] : memref<1x10x10x10x128xf32, #tpu.memory_space<vmem>>, vector<1x2x8x8x128xf32>
    %215 = vector.shape_cast %214 : vector<1x2x8x8x128xf32> to vector<2x8x8x128xf32>
    %216 = vector.shape_cast %215 : vector<2x8x8x128xf32> to vector<128x128xf32>
    %217 = arith.truncf %216 : vector<128x128xf32> to vector<128x128xbf16>
    %c21 = arith.constant 21 : index
    %c0_171 = arith.constant 0 : index
    %c0_172 = arith.constant 0 : index
    %218 = vector.load %arg3[%c21, %c0_171, %c0_172] : memref<27x128x128xbf16, #tpu.memory_space<vmem>>, vector<1x128x128xbf16>
    %219 = vector.shape_cast %218 : vector<1x128x128xbf16> to vector<128x128xbf16>
    %cst_173 = arith.constant dense<0.000000e+00> : vector<128x128xf32>
    %220 = tpu.matmul %217, %219, %cst_173 {dimension_numbers = #tpu.dot_dimension_numbers<[1], [0], [0], [1], [0, 0, 1, 1], [], []>} : vector<128x128xbf16>, vector<128x128xbf16>, vector<128x128xf32> -> vector<128x128xf32>
    %221 = arith.addf %211, %220 : vector<128x128xf32>
    %c2_i32_174 = arith.constant 2 : i32
    %222 = arith.addi %0, %c2_i32_174 : i32
    %c0_175 = arith.constant 0 : index
    %223 = arith.index_cast %222 : i32 to index
    %c1_176 = arith.constant 1 : index
    %c1_177 = arith.constant 1 : index
    %c0_178 = arith.constant 0 : index
    %224 = vector.load %arg2[%c0_175, %223, %c1_176, %c1_177, %c0_178] : memref<1x10x10x10x128xf32, #tpu.memory_space<vmem>>, vector<1x2x8x8x128xf32>
    %225 = vector.shape_cast %224 : vector<1x2x8x8x128xf32> to vector<2x8x8x128xf32>
    %226 = vector.shape_cast %225 : vector<2x8x8x128xf32> to vector<128x128xf32>
    %227 = arith.truncf %226 : vector<128x128xf32> to vector<128x128xbf16>
    %c22 = arith.constant 22 : index
    %c0_179 = arith.constant 0 : index
    %c0_180 = arith.constant 0 : index
    %228 = vector.load %arg3[%c22, %c0_179, %c0_180] : memref<27x128x128xbf16, #tpu.memory_space<vmem>>, vector<1x128x128xbf16>
    %229 = vector.shape_cast %228 : vector<1x128x128xbf16> to vector<128x128xbf16>
    %cst_181 = arith.constant dense<0.000000e+00> : vector<128x128xf32>
    %230 = tpu.matmul %227, %229, %cst_181 {dimension_numbers = #tpu.dot_dimension_numbers<[1], [0], [0], [1], [0, 0, 1, 1], [], []>} : vector<128x128xbf16>, vector<128x128xbf16>, vector<128x128xf32> -> vector<128x128xf32>
    %231 = arith.addf %221, %230 : vector<128x128xf32>
    %c2_i32_182 = arith.constant 2 : i32
    %232 = arith.addi %0, %c2_i32_182 : i32
    %c0_183 = arith.constant 0 : index
    %233 = arith.index_cast %232 : i32 to index
    %c1_184 = arith.constant 1 : index
    %c2_185 = arith.constant 2 : index
    %c0_186 = arith.constant 0 : index
    %234 = vector.load %arg2[%c0_183, %233, %c1_184, %c2_185, %c0_186] : memref<1x10x10x10x128xf32, #tpu.memory_space<vmem>>, vector<1x2x8x8x128xf32>
    %235 = vector.shape_cast %234 : vector<1x2x8x8x128xf32> to vector<2x8x8x128xf32>
    %236 = vector.shape_cast %235 : vector<2x8x8x128xf32> to vector<128x128xf32>
    %237 = arith.truncf %236 : vector<128x128xf32> to vector<128x128xbf16>
    %c23 = arith.constant 23 : index
    %c0_187 = arith.constant 0 : index
    %c0_188 = arith.constant 0 : index
    %238 = vector.load %arg3[%c23, %c0_187, %c0_188] : memref<27x128x128xbf16, #tpu.memory_space<vmem>>, vector<1x128x128xbf16>
    %239 = vector.shape_cast %238 : vector<1x128x128xbf16> to vector<128x128xbf16>
    %cst_189 = arith.constant dense<0.000000e+00> : vector<128x128xf32>
    %240 = tpu.matmul %237, %239, %cst_189 {dimension_numbers = #tpu.dot_dimension_numbers<[1], [0], [0], [1], [0, 0, 1, 1], [], []>} : vector<128x128xbf16>, vector<128x128xbf16>, vector<128x128xf32> -> vector<128x128xf32>
    %241 = arith.addf %231, %240 : vector<128x128xf32>
    %c2_i32_190 = arith.constant 2 : i32
    %242 = arith.addi %0, %c2_i32_190 : i32
    %c0_191 = arith.constant 0 : index
    %243 = arith.index_cast %242 : i32 to index
    %c2_192 = arith.constant 2 : index
    %c0_193 = arith.constant 0 : index
    %c0_194 = arith.constant 0 : index
    %244 = vector.load %arg2[%c0_191, %243, %c2_192, %c0_193, %c0_194] : memref<1x10x10x10x128xf32, #tpu.memory_space<vmem>>, vector<1x2x8x8x128xf32>
    %245 = vector.shape_cast %244 : vector<1x2x8x8x128xf32> to vector<2x8x8x128xf32>
    %246 = vector.shape_cast %245 : vector<2x8x8x128xf32> to vector<128x128xf32>
    %247 = arith.truncf %246 : vector<128x128xf32> to vector<128x128xbf16>
    %c24 = arith.constant 24 : index
    %c0_195 = arith.constant 0 : index
    %c0_196 = arith.constant 0 : index
    %248 = vector.load %arg3[%c24, %c0_195, %c0_196] : memref<27x128x128xbf16, #tpu.memory_space<vmem>>, vector<1x128x128xbf16>
    %249 = vector.shape_cast %248 : vector<1x128x128xbf16> to vector<128x128xbf16>
    %cst_197 = arith.constant dense<0.000000e+00> : vector<128x128xf32>
    %250 = tpu.matmul %247, %249, %cst_197 {dimension_numbers = #tpu.dot_dimension_numbers<[1], [0], [0], [1], [0, 0, 1, 1], [], []>} : vector<128x128xbf16>, vector<128x128xbf16>, vector<128x128xf32> -> vector<128x128xf32>
    %251 = arith.addf %241, %250 : vector<128x128xf32>
    %c2_i32_198 = arith.constant 2 : i32
    %252 = arith.addi %0, %c2_i32_198 : i32
    %c0_199 = arith.constant 0 : index
    %253 = arith.index_cast %252 : i32 to index
    %c2_200 = arith.constant 2 : index
    %c1_201 = arith.constant 1 : index
    %c0_202 = arith.constant 0 : index
    %254 = vector.load %arg2[%c0_199, %253, %c2_200, %c1_201, %c0_202] : memref<1x10x10x10x128xf32, #tpu.memory_space<vmem>>, vector<1x2x8x8x128xf32>
    %255 = vector.shape_cast %254 : vector<1x2x8x8x128xf32> to vector<2x8x8x128xf32>
    %256 = vector.shape_cast %255 : vector<2x8x8x128xf32> to vector<128x128xf32>
    %257 = arith.truncf %256 : vector<128x128xf32> to vector<128x128xbf16>
    %c25 = arith.constant 25 : index
    %c0_203 = arith.constant 0 : index
    %c0_204 = arith.constant 0 : index
    %258 = vector.load %arg3[%c25, %c0_203, %c0_204] : memref<27x128x128xbf16, #tpu.memory_space<vmem>>, vector<1x128x128xbf16>
    %259 = vector.shape_cast %258 : vector<1x128x128xbf16> to vector<128x128xbf16>
    %cst_205 = arith.constant dense<0.000000e+00> : vector<128x128xf32>
    %260 = tpu.matmul %257, %259, %cst_205 {dimension_numbers = #tpu.dot_dimension_numbers<[1], [0], [0], [1], [0, 0, 1, 1], [], []>} : vector<128x128xbf16>, vector<128x128xbf16>, vector<128x128xf32> -> vector<128x128xf32>
    %261 = arith.addf %251, %260 : vector<128x128xf32>
    %c2_i32_206 = arith.constant 2 : i32
    %262 = arith.addi %0, %c2_i32_206 : i32
    %c0_207 = arith.constant 0 : index
    %263 = arith.index_cast %262 : i32 to index
    %c2_208 = arith.constant 2 : index
    %c2_209 = arith.constant 2 : index
    %c0_210 = arith.constant 0 : index
    %264 = vector.load %arg2[%c0_207, %263, %c2_208, %c2_209, %c0_210] : memref<1x10x10x10x128xf32, #tpu.memory_space<vmem>>, vector<1x2x8x8x128xf32>
    %265 = vector.shape_cast %264 : vector<1x2x8x8x128xf32> to vector<2x8x8x128xf32>
    %266 = vector.shape_cast %265 : vector<2x8x8x128xf32> to vector<128x128xf32>
    %267 = arith.truncf %266 : vector<128x128xf32> to vector<128x128xbf16>
    %c26 = arith.constant 26 : index
    %c0_211 = arith.constant 0 : index
    %c0_212 = arith.constant 0 : index
    %268 = vector.load %arg3[%c26, %c0_211, %c0_212] : memref<27x128x128xbf16, #tpu.memory_space<vmem>>, vector<1x128x128xbf16>
    %269 = vector.shape_cast %268 : vector<1x128x128xbf16> to vector<128x128xbf16>
    %cst_213 = arith.constant dense<0.000000e+00> : vector<128x128xf32>
    %270 = tpu.matmul %267, %269, %cst_213 {dimension_numbers = #tpu.dot_dimension_numbers<[1], [0], [0], [1], [0, 0, 1, 1], [], []>} : vector<128x128xbf16>, vector<128x128xbf16>, vector<128x128xf32> -> vector<128x128xf32>
    %271 = arith.addf %261, %270 : vector<128x128xf32>
    %c0_214 = arith.constant 0 : index
    %c0_215 = arith.constant 0 : index
    %272 = vector.load %arg4[%c0_214, %c0_215] : memref<1x128xf32, #tpu.memory_space<vmem>>, vector<1x128xf32>
    %273 = vector.broadcast %272 : vector<1x128xf32> to vector<128x128xf32>
    %274 = arith.addf %271, %273 : vector<128x128xf32>
    %cst_216 = arith.constant 0.000000e+00 : f32
    %275 = vector.broadcast %cst_216 : f32 to vector<128x128xf32>
    %276 = arith.maximumf %274, %275 : vector<128x128xf32>
    %c0_217 = arith.constant 0 : index
    %c0_218 = arith.constant 0 : index
    %277 = vector.load %arg5[%c0_217, %c0_218] : memref<128x128xf32, #tpu.memory_space<vmem>>, vector<128x128xf32>
    tpu.vector_store %arg5[%c0_217, %c0_218], %276 {strides = array<i32>} : memref<128x128xf32, #tpu.memory_space<vmem>>, vector<128x128xf32>,
    return
  }
  func.func @transform_0(%arg0: i32, %arg1: i32) -> (i32, i32, i32, i32, i32) {
    %c0_i32 = arith.constant 0 : i32
    %c0_i32_0 = arith.constant 0 : i32
    %c0_i32_1 = arith.constant 0 : i32
    %c0_i32_2 = arith.constant 0 : i32
    %c0_i32_3 = arith.constant 0 : i32
    return %arg0, %c0_i32, %c0_i32_0, %c0_i32_1, %c0_i32_2 : i32, i32, i32, i32, i32
  }
  func.func @transform_1(%arg0: i32, %arg1: i32) -> (i32, i32, i32) {
    %c0_i32 = arith.constant 0 : i32
    %c0_i32_0 = arith.constant 0 : i32
    %c0_i32_1 = arith.constant 0 : i32
    %c0_i32_2 = arith.constant 0 : i32
    return %c0_i32, %c0_i32_0, %c0_i32_1 : i32, i32, i32
  }
  func.func @transform_2(%arg0: i32, %arg1: i32) -> (i32, i32) {
    %c0_i32 = arith.constant 0 : i32
    %c0_i32_0 = arith.constant 0 : i32
    %c0_i32_1 = arith.constant 0 : i32
    return %c0_i32, %c0_i32_0 : i32, i32
  }
  func.func @transform_3(%arg0: i32, %arg1: i32) -> (i32, i32) {
    %c4_i32 = arith.constant 4 : i32
    %0 = arith.muli %arg0, %c4_i32 : i32
    %1 = arith.addi %0, %arg1 : i32
    %c0_i32 = arith.constant 0 : i32
    %c0_i32_0 = arith.constant 0 : i32
    return %1, %c0_i32 : i32, i32
  }
}

module attributes {stable_mosaic.version = 11 : i64} {
  func.func @_matmul_bias_kernel(%arg0: i32, %arg1: memref<128x3456xbf16, #tpu.memory_space<vmem>>, %arg2: memref<3456x128xbf16, #tpu.memory_space<vmem>>, %arg3: memref<1x128xf32, #tpu.memory_space<vmem>>, %arg4: memref<128x128xf32, #tpu.memory_space<vmem>>) attributes {dimension_semantics = [#tpu.dimension_semantics<parallel>], iteration_bounds = array<i64: 1>, scalar_prefetch = 0 : i64, scratch_operands = 0 : i64, tpu.core_type = #tpu.core_type<tc>, window_params = [{transform_indices = @transform_0, window_bounds = array<i64: 128, 3456>}, {pipeline_mode = #tpu.pipeline_mode<synchronous>, transform_indices = @transform_1, window_bounds = array<i64: 3456, 128>}, {pipeline_mode = #tpu.pipeline_mode<synchronous>, transform_indices = @transform_2, window_bounds = array<i64: 1, 128>}, {transform_indices = @transform_3, window_bounds = array<i64: 128, 128>}]} {
    %c0 = arith.constant 0 : index
    %c0_0 = arith.constant 0 : index
    %0 = vector.load %arg1[%c0, %c0_0] : memref<128x3456xbf16, #tpu.memory_space<vmem>>, vector<128x3456xbf16>
    %c0_1 = arith.constant 0 : index
    %c0_2 = arith.constant 0 : index
    %1 = vector.load %arg2[%c0_1, %c0_2] : memref<3456x128xbf16, #tpu.memory_space<vmem>>, vector<3456x128xbf16>
    %cst = arith.constant dense<0.000000e+00> : vector<128x128xf32>
    %2 = tpu.matmul %0, %1, %cst {dimension_numbers = #tpu.dot_dimension_numbers<[1], [0], [0], [1], [0, 0, 1, 1], [], []>} : vector<128x3456xbf16>, vector<3456x128xbf16>, vector<128x128xf32> -> vector<128x128xf32>
    %c0_3 = arith.constant 0 : index
    %c0_4 = arith.constant 0 : index
    %3 = vector.load %arg3[%c0_3, %c0_4] : memref<1x128xf32, #tpu.memory_space<vmem>>, vector<1x128xf32>
    %4 = vector.broadcast %3 : vector<1x128xf32> to vector<128x128xf32>
    %5 = arith.addf %2, %4 : vector<128x128xf32>
    %cst_5 = arith.constant 0.000000e+00 : f32
    %6 = vector.broadcast %cst_5 : f32 to vector<128x128xf32>
    %7 = arith.maximumf %5, %6 : vector<128x128xf32>
    %c0_6 = arith.constant 0 : index
    %c0_7 = arith.constant 0 : index
    %8 = vector.load %arg4[%c0_6, %c0_7] : memref<128x128xf32, #tpu.memory_space<vmem>>, vector<128x128xf32>
    tpu.vector_store %arg4[%c0_6, %c0_7], %7 {strides = array<i32>} : memref<128x128xf32, #tpu.memory_space<vmem>>, vector<128x128xf32>,
    return
  }
  func.func @transform_0(%arg0: i32) -> (i32, i32) {
    %c0_i32 = arith.constant 0 : i32
    %c0_i32_0 = arith.constant 0 : i32
    return %arg0, %c0_i32 : i32, i32
  }
  func.func @transform_1(%arg0: i32) -> (i32, i32) {
    %c0_i32 = arith.constant 0 : i32
    %c0_i32_0 = arith.constant 0 : i32
    %c0_i32_1 = arith.constant 0 : i32
    return %c0_i32, %c0_i32_0 : i32, i32
  }
  func.func @transform_2(%arg0: i32) -> (i32, i32) {
    %c0_i32 = arith.constant 0 : i32
    %c0_i32_0 = arith.constant 0 : i32
    %c0_i32_1 = arith.constant 0 : i32
    return %c0_i32, %c0_i32_0 : i32, i32
  }
  func.func @transform_3(%arg0: i32) -> (i32, i32) {
    %c0_i32 = arith.constant 0 : i32
    %c0_i32_0 = arith.constant 0 : i32
    return %arg0, %c0_i32 : i32, i32
  }
}

module attributes {stable_mosaic.version = 11 : i64} {
  func.func @_matmul_bias_kernel(%arg0: i32, %arg1: memref<16x3456xbf16, #tpu.memory_space<vmem>>, %arg2: memref<3456x128xbf16, #tpu.memory_space<vmem>>, %arg3: memref<1x128xf32, #tpu.memory_space<vmem>>, %arg4: memref<2x128xf32, #tpu.memory_space<vmem>>) attributes {dimension_semantics = [#tpu.dimension_semantics<parallel>], iteration_bounds = array<i64: 1>, scalar_prefetch = 0 : i64, scratch_operands = 0 : i64, tpu.core_type = #tpu.core_type<tc>, window_params = [{transform_indices = @transform_0, window_bounds = array<i64: 16, 3456>}, {pipeline_mode = #tpu.pipeline_mode<synchronous>, transform_indices = @transform_1, window_bounds = array<i64: 3456, 128>}, {pipeline_mode = #tpu.pipeline_mode<synchronous>, transform_indices = @transform_2, window_bounds = array<i64: 1, 128>}, {pipeline_mode = #tpu.pipeline_mode<synchronous>, transform_indices = @transform_3, window_bounds = array<i64: 2, 128>}]} {
    %c0 = arith.constant 0 : index
    %c0_0 = arith.constant 0 : index
    %0 = vector.load %arg1[%c0, %c0_0] : memref<16x3456xbf16, #tpu.memory_space<vmem>>, vector<16x3456xbf16>
    %c0_1 = arith.constant 0 : index
    %c0_2 = arith.constant 0 : index
    %1 = vector.load %arg2[%c0_1, %c0_2] : memref<3456x128xbf16, #tpu.memory_space<vmem>>, vector<3456x128xbf16>
    %cst = arith.constant dense<0.000000e+00> : vector<16x128xf32>
    %2 = tpu.matmul %0, %1, %cst {dimension_numbers = #tpu.dot_dimension_numbers<[1], [0], [0], [1], [0, 0, 1, 1], [], []>} : vector<16x3456xbf16>, vector<3456x128xbf16>, vector<16x128xf32> -> vector<16x128xf32>
    %c0_3 = arith.constant 0 : index
    %c0_4 = arith.constant 0 : index
    %3 = vector.load %arg3[%c0_3, %c0_4] : memref<1x128xf32, #tpu.memory_space<vmem>>, vector<1x128xf32>
    %4 = vector.broadcast %3 : vector<1x128xf32> to vector<16x128xf32>
    %5 = arith.addf %2, %4 : vector<16x128xf32>
    %6 = vector.shape_cast %5 : vector<16x128xf32> to vector<2x8x128xf32>
    %cst_5 = arith.constant dense<0.000000e+00> : vector<2x128xf32>
    %7 = vector.multi_reduction <add>, %6, %cst_5 [1] : vector<2x8x128xf32> to vector<2x128xf32>
    %c0_6 = arith.constant 0 : index
    %c0_7 = arith.constant 0 : index
    %8 = vector.load %arg4[%c0_6, %c0_7] : memref<2x128xf32, #tpu.memory_space<vmem>>, vector<2x128xf32>
    tpu.vector_store %arg4[%c0_6, %c0_7], %7 {strides = array<i32>} : memref<2x128xf32, #tpu.memory_space<vmem>>, vector<2x128xf32>,
    return
  }
  func.func @transform_0(%arg0: i32) -> (i32, i32) {
    %c0_i32 = arith.constant 0 : i32
    %c0_i32_0 = arith.constant 0 : i32
    return %arg0, %c0_i32 : i32, i32
  }
  func.func @transform_1(%arg0: i32) -> (i32, i32) {
    %c0_i32 = arith.constant 0 : i32
    %c0_i32_0 = arith.constant 0 : i32
    %c0_i32_1 = arith.constant 0 : i32
    return %c0_i32, %c0_i32_0 : i32, i32
  }
  func.func @transform_2(%arg0: i32) -> (i32, i32) {
    %c0_i32 = arith.constant 0 : i32
    %c0_i32_0 = arith.constant 0 : i32
    %c0_i32_1 = arith.constant 0 : i32
    return %c0_i32, %c0_i32_0 : i32, i32
  }
  func.func @transform_3(%arg0: i32) -> (i32, i32) {
    %c0_i32 = arith.constant 0 : i32
    %c0_i32_0 = arith.constant 0 : i32
    %c0_i32_1 = arith.constant 0 : i32
    return %c0_i32, %c0_i32_0 : i32, i32
  }
}

</mosaic_0001>

<bundles_post_ra>
// kernel: cnn_forward.6
= control target key start
LH: loop header
LB: loop body
LE: loop exit
PB: predicated region body
PF: predicated region fallthrough
CT: control target
= control target key end

     0   :  { %s1239_s12 = smov 0   ;;  %s1453_s0 = inlined_call_operand.vmem [shape: bf16[1024,128], index: 0, kind: input, shape index: {}]   ;;  %s1454_s1 = inlined_call_operand.vmem [shape: bf16[128,128], index: 1, kind: input, shape index: {}]   ;;  %s1455_s2 = inlined_call_operand.vmem [shape: f32[1,128], index: 2, kind: input, shape index: {}]   ;;  %s1456_s3 = inlined_call_operand.vmem [shape: f32[1024,128], index: 3, kind: output, shape index: {}]  }
   0x1 LB: > { %s975_s13 = sadd.s32 4294967295, %s1217_s12   ;;  %p979_p0 = scmp.ge.s32.totalorder %s1217_s12, 1  ;;  %s1217_s12 = sphi %s1239_s12, %s13_s12  }
   0x2   : > { %p138_p1 = scmp.lt.s32.totalorder %s1217_s12, 3 }
   0x4   : > { %p139_p2 = pnand %p979_p0, %p138_p1 }
   0x5   : > { %v1171_v0 = vld [vmem:[%s1454_s1] sm:$0xff] (!%p139_p2)   ;;  %s980_s16 = sshll.u32 (!%p139_p2), %s975_s13, 6  ;;  %v1172_v1 = vld [vmem:[%s1454_s1 + $0x8] sm:$0xff] (!%p139_p2)   ;;  %v1173_v2 = vld [vmem:[%s1454_s1 + $0x10] sm:$0xff] (!%p139_p2)  }
   0x6   : > { %142 = sbr.rel (%p139_p2) target bundleno = 314 (0x13a), region = 32  ;;  %p163_p3 = scmp.lt.s32.totalorder (!%p139_p2), %s980_s16, 127  ;;  %1067 = vmatprep.subr.bf16.mxu0 (!%p139_p2), %v1171_v0  ;;  %1147 = vmatprep.subr.bf16.mxu1 (!%p139_p2), %v1171_v0  ;;  %v1174_v3 = vld [vmem:[%s1454_s1 + $0x18] sm:$0xff] (!%p139_p2)   ;;  %v1175_v6 = vld [vmem:[%s1454_s1 + $0x20] sm:$0xff] (!%p139_p2)   ;;  %v1176_v7 = vld [vmem:[%s1454_s1 + $0x28] sm:$0xff] (!%p139_p2)  }
   0x7   : > { %1068 = vmatpush3.bf16.msra.mxu0 (!%p139_p2), %v1171_v0  ;;  %1155 = vmatpush3.bf16.msra.mxu1 (!%p139_p2), %v1171_v0  ;;  %v1177_v8 = vld [vmem:[%s1454_s1 + $0x30] sm:$0xff] (!%p139_p2)   ;;  %v1178_v9 = vld [vmem:[%s1454_s1 + $0x38] sm:$0xff] (!%p139_p2)   ;;  %v1314_v40 = vld [vmem:[%s1455_s2] ss:$0 sm:$0xff] (!%p139_p2) }
   0x8   : > { %1069 = vmatprep.subr.bf16.mxu0 (!%p139_p2), %v1172_v1  ;;  %1148 = vmatprep.subr.bf16.mxu1 (!%p139_p2), %v1172_v1 }
   0xb   : > { %1070 = vmatpush3.bf16.msra.mxu0 (!%p139_p2), %v1172_v1  ;;  %1156 = vmatpush3.bf16.msra.mxu1 (!%p139_p2), %v1172_v1 }
   0xc   : > { %1071 = vmatprep.subr.bf16.mxu0 (!%p139_p2), %v1173_v2  ;;  %1149 = vmatprep.subr.bf16.mxu1 (!%p139_p2), %v1173_v2 }
   0xd   : > { %s1458_s16 = smov (!%p163_p3, %s980_s16), 127 }
   0xe   : > { %s981_s21 = sshll.u32 %s1458_s16, 2  ;;  %s983_s10 = sshll.u32 %s1458_s16, 3 }
   0xf   : > { %s1262_s24 = scalar_lea.vmem %s1453_s0, %s981_s21  ;;  %1072 = vmatpush3.bf16.msra.mxu0 %v1173_v2  ;;  %1157 = vmatpush3.bf16.msra.mxu1 %v1173_v2  ;;  %s1322_s14 = scalar_lea.vmem %s1456_s3, %s983_s10 }
  0x10   : > { %v1179_v4 = vld [vmem:[%s1262_s24] sm:$0xff]   ;;  %1073 = vmatprep.subr.bf16.mxu0 %v1174_v3  ;;  %1150 = vmatprep.subr.bf16.mxu1 %v1174_v3  ;;  %v1181_v10 = vld [vmem:[%s1262_s24 + $0x8] sm:$0xff]   ;;  %v1183_v12 = vld [vmem:[%s1262_s24 + $0x10] sm:$0xff]  }
  0x11   : > { %v1180_v5 = vld [vmem:[%s1262_s24 + $0x80] sm:$0xff]   ;;  %1083 = vmatprep.mubr.bf16.mxu0 %v1179_v4  ;;  %v1182_v11 = vld [vmem:[%s1262_s24 + $0x88] sm:$0xff]   ;;  %v1184_v13 = vld [vmem:[%s1262_s24 + $0x90] sm:$0xff]  }
  0x12   : > { %1115 = vmatprep.mubr.bf16.mxu1 %v1180_v5  ;;  %v1185_v14 = vld [vmem:[%s1262_s24 + $0x18] sm:$0xff]   ;;  %v1187_v16 = vld [vmem:[%s1262_s24 + $0x20] sm:$0xff]   ;;  %v1189_v18 = vld [vmem:[%s1262_s24 + $0x28] sm:$0xff]  }
  0x13   : > { %1074 = vmatpush3.bf16.msra.mxu0 %v1174_v3  ;;  %1158 = vmatpush3.bf16.msra.mxu1 %v1174_v3  ;;  %v1186_v15 = vld [vmem:[%s1262_s24 + $0x98] sm:$0xff]   ;;  %v1188_v17 = vld [vmem:[%s1262_s24 + $0xa0] sm:$0xff]   ;;  %v1190_v19 = vld [vmem:[%s1262_s24 + $0xa8] sm:$0xff]  }
  0x14   : > { %1075 = vmatprep.subr.bf16.mxu0 %v1175_v6  ;;  %1151 = vmatprep.subr.bf16.mxu1 %v1175_v6  ;;  %v1191_v20 = vld [vmem:[%s1262_s24 + $0x30] sm:$0xff]   ;;  %v1193_v22 = vld [vmem:[%s1262_s24 + $0x38] sm:$0xff]   ;;  %v1195_v24 = vld [vmem:[%s1262_s24 + $0x40] sm:$0xff]  }
  0x15   : > { %v1192_v21 = vld [vmem:[%s1262_s24 + $0xb0] sm:$0xff]   ;;  %v1194_v23 = vld [vmem:[%s1262_s24 + $0xb8] sm:$0xff]   ;;  %v1196_v25 = vld [vmem:[%s1262_s24 + $0xc0] sm:$0xff]  }
  0x16   : > { %v1197_v26 = vld [vmem:[%s1262_s24 + $0x48] sm:$0xff]   ;;  %v1199_v28 = vld [vmem:[%s1262_s24 + $0x50] sm:$0xff]   ;;  %v1201_v30 = vld [vmem:[%s1262_s24 + $0x58] sm:$0xff]  }
  0x17   : > { %1076 = vmatpush3.bf16.msra.mxu0 %v1175_v6  ;;  %1159 = vmatpush3.bf16.msra.mxu1 %v1175_v6  ;;  %v1198_v27 = vld [vmem:[%s1262_s24 + $0xc8] sm:$0xff]   ;;  %v1200_v29 = vld [vmem:[%s1262_s24 + $0xd0] sm:$0xff]   ;;  %v1202_v31 = vld [vmem:[%s1262_s24 + $0xd8] sm:$0xff]  }
  0x18   : > { %1077 = vmatprep.subr.bf16.mxu0 %v1176_v7  ;;  %1152 = vmatprep.subr.bf16.mxu1 %v1176_v7  ;;  %v1203_v32 = vld [vmem:[%s1262_s24 + $0x60] sm:$0xff]   ;;  %v1205_v34 = vld [vmem:[%s1262_s24 + $0x68] sm:$0xff]   ;;  %v1207_v36 = vld [vmem:[%s1262_s24 + $0x70] sm:$0xff]  }
  0x19   : > { %v1204_v33 = vld [vmem:[%s1262_s24 + $0xe0] sm:$0xff]   ;;  %v1206_v35 = vld [vmem:[%s1262_s24 + $0xe8] sm:$0xff]   ;;  %v1208_v37 = vld [vmem:[%s1262_s24 + $0xf0] sm:$0xff]  }
  0x1a   : > { %v1209_v38 = vld [vmem:[%s1262_s24 + $0x78] sm:$0xff]  }
  0x1b   : > { %1078 = vmatpush3.bf16.msra.mxu0 %v1176_v7  ;;  %1160 = vmatpush3.bf16.msra.mxu1 %v1176_v7  ;;  %v1210_v39 = vld [vmem:[%s1262_s24 + $0xf8] sm:$0xff]  }
  0x1c   : > { %1079 = vmatprep.subr.bf16.mxu0 %v1177_v8  ;;  %1153 = vmatprep.subr.bf16.mxu1 %v1177_v8 }
  0x1f   : > { %1080 = vmatpush3.bf16.msra.mxu0 %v1177_v8  ;;  %1161 = vmatpush3.bf16.msra.mxu1 %v1177_v8 }
  0x20   : > { %1081 = vmatprep.subr.bf16.mxu0 %v1178_v9  ;;  %1154 = vmatprep.subr.bf16.mxu1 %v1178_v9 }
  0x23   : > { %1082 = vmatpush3.bf16.msra.mxu0 %v1178_v9  ;;  %1162 = vmatpush3.bf16.msra.mxu1 %v1178_v9 }
  0x26   : > { %1084 = vmatmul.mubr.bf16.vlgmr.msra.gmra.mrb[0].mxu0 %v1181_v10  ;;  %1116 = vmatmul.mubr.bf16.vlgmr.msra.gmra.mrb[0].mxu1 %v1182_v11 }
  0x27   : > { %1087 = vmatprep.mubr.bf16.mxu0 %v1183_v12  ;;  %1119 = vmatprep.mubr.bf16.mxu1 %v1184_v13 }
  0x2e   : > { %1088 = vmatmul.mubr.bf16.gmra.mrb[4].mxu0 %v1185_v14  ;;  %1120 = vmatmul.mubr.bf16.gmra.mrb[4].mxu1 %v1186_v15 }
  0x2f   : > { %1091 = vmatprep.mubr.bf16.mxu0 %v1187_v16  ;;  %1123 = vmatprep.mubr.bf16.mxu1 %v1188_v17 }
  0x36   : > { %1092 = vmatmul.mubr.bf16.gmra.mrb[8].mxu0 %v1189_v18  ;;  %1124 = vmatmul.mubr.bf16.gmra.mrb[8].mxu1 %v1190_v19 }
  0x37   : > { %1095 = vmatprep.mubr.bf16.mxu0 %v1191_v20  ;;  %1127 = vmatprep.mubr.bf16.mxu1 %v1192_v21 }
  0x3e   : > { %1096 = vmatmul.mubr.bf16.gmra.mrb[12].mxu0 %v1193_v22  ;;  %1128 = vmatmul.mubr.bf16.gmra.mrb[12].mxu1 %v1194_v23 }
  0x3f   : > { %1099 = vmatprep.mubr.bf16.mxu0 %v1195_v24  ;;  %1131 = vmatprep.mubr.bf16.mxu1 %v1196_v25 }
  0x46   : > { %1100 = vmatmul.mubr.bf16.gmra.mrb[16].mxu0 %v1197_v26  ;;  %1132 = vmatmul.mubr.bf16.gmra.mrb[16].mxu1 %v1198_v27 }
  0x47   : > { %1103 = vmatprep.mubr.bf16.mxu0 %v1199_v28  ;;  %1135 = vmatprep.mubr.bf16.mxu1 %v1200_v29 }
  0x4e   : > { %1104 = vmatmul.mubr.bf16.gmra.mrb[20].mxu0 %v1201_v30  ;;  %1136 = vmatmul.mubr.bf16.gmra.mrb[20].mxu1 %v1202_v31 }
  0x4f   : > { %1107 = vmatprep.mubr.bf16.mxu0 %v1203_v32  ;;  %1139 = vmatprep.mubr.bf16.mxu1 %v1204_v33 }
  0x56   : > { %1108 = vmatmul.mubr.bf16.gmra.mrb[24].mxu0 %v1205_v34  ;;  %1140 = vmatmul.mubr.bf16.gmra.mrb[24].mxu1 %v1206_v35 }
  0x57   : > { %1111 = vmatprep.mubr.bf16.mxu0 %v1207_v36  ;;  %1143 = vmatprep.mubr.bf16.mxu1 %v1208_v37 }
  0x5e   : > { %1112 = vmatmul.mubr.bf16.gmra.mrb[28].mxu0 %v1209_v38  ;;  %1144 = vmatmul.mubr.bf16.gmra.mrb[28].mxu1 %v1210_v39 }
  0xf9   : > { %v1085_v41 = vpop.f32.mrb[0].mxu0  ;;  %v1117_v42 = vpop.f32.mrb[0].mxu1 }
  0xfa   : > { %v545_v43 = vadd.f32 %v1085_v41, %v1314_v40  ;;  %v673_v44 = vadd.f32 %v1117_v42, %v1314_v40  ;;  %v536_v45 = vpop.f32.mrb[1].mxu0  ;;  %v664_v46 = vpop.f32.mrb[1].mxu1 }
  0xfb   : > { %v537_v47 = vadd.f32 %v1314_v40, %v536_v45  ;;  %v665_v48 = vadd.f32 %v1314_v40, %v664_v46  ;;  %v1086_v49 = vpop.f32.mrb[2].mxu0  ;;  %v1118_v50 = vpop.f32.mrb[2].mxu1 }
  0xfc   : > { %v793_v51 = vmax.f32 %v545_v43, 0.0  ;;  %v825_v52 = vmax.f32 %v673_v44, 0.0  ;;  %v548_v53 = vadd.f32 %v1086_v49, %v1314_v40  ;;  %v676_v54 = vadd.f32 %v1118_v50, %v1314_v40  ;;  %v539_v55 = vpop.f32.mrb[3].mxu0  ;;  %v667_v56 = vpop.f32.mrb[3].mxu1 }
  0xfd   : > { %v791_v57 = vmax.f32 %v537_v47, 0.0  ;;  %v823_v58 = vmax.f32 %v665_v48, 0.0  ;;  %v540_v59 = vadd.f32 %v1314_v40, %v539_v55  ;;  %v668_v60 = vadd.f32 %v1314_v40, %v667_v56 }
  0xfe   : > { %857 = vst [vmem:[%s1322_s14 + $0x10] sm:$0xff] %v793_v51  ;;  %889 = vst [vmem:[%s1322_s14 + $0x110] sm:$0xff] %v825_v52  ;;  %v794_v61 = vmax.f32 %v548_v53, 0.0  ;;  %v826_v62 = vmax.f32 %v676_v54, 0.0 }
  0xff   : > { %855 = vst [vmem:[%s1322_s14] sm:$0xff] %v791_v57  ;;  %887 = vst [vmem:[%s1322_s14 + $0x100] sm:$0xff] %v823_v58  ;;  %v792_v63 = vmax.f32 %v540_v59, 0.0  ;;  %v824_v0 = vmax.f32 %v668_v60, 0.0 }
 0x100   : > { %858 = vst [vmem:[%s1322_s14 + $0x18] sm:$0xff] %v794_v61  ;;  %890 = vst [vmem:[%s1322_s14 + $0x118] sm:$0xff] %v826_v62 }
 0x101   : > { %856 = vst [vmem:[%s1322_s14 + $0x8] sm:$0xff] %v792_v63  ;;  %888 = vst [vmem:[%s1322_s14 + $0x108] sm:$0xff] %v824_v0  ;;  %v1089_v1 = vpop.f32.mrb[4].mxu0  ;;  %v1121_v2 = vpop.f32.mrb[4].mxu1 }
 0x102   : > { %v561_v3 = vadd.f32 %v1089_v1, %v1314_v40  ;;  %v689_v4 = vadd.f32 %v1121_v2, %v1314_v40  ;;  %v552_v5 = vpop.f32.mrb[5].mxu0  ;;  %v680_v6 = vpop.f32.mrb[5].mxu1 }
 0x103   : > { %v553_v7 = vadd.f32 %v1314_v40, %v552_v5  ;;  %v681_v8 = vadd.f32 %v1314_v40, %v680_v6  ;;  %v1090_v9 = vpop.f32.mrb[6].mxu0  ;;  %v1122_v10 = vpop.f32.mrb[6].mxu1 }
 0x104   : > { %v797_v11 = vmax.f32 %v561_v3, 0.0  ;;  %v829_v12 = vmax.f32 %v689_v4, 0.0  ;;  %v564_v13 = vadd.f32 %v1090_v9, %v1314_v40  ;;  %v692_v14 = vadd.f32 %v1122_v10, %v1314_v40  ;;  %v555_v15 = vpop.f32.mrb[7].mxu0  ;;  %v683_v16 = vpop.f32.mrb[7].mxu1 }
 0x105   : > { %v795_v17 = vmax.f32 %v553_v7, 0.0  ;;  %v827_v18 = vmax.f32 %v681_v8, 0.0  ;;  %v556_v19 = vadd.f32 %v1314_v40, %v555_v15  ;;  %v684_v20 = vadd.f32 %v1314_v40, %v683_v16 }
 0x106   : > { %861 = vst [vmem:[%s1322_s14 + $0x30] sm:$0xff] %v797_v11  ;;  %893 = vst [vmem:[%s1322_s14 + $0x130] sm:$0xff] %v829_v12  ;;  %v798_v21 = vmax.f32 %v564_v13, 0.0  ;;  %v830_v22 = vmax.f32 %v692_v14, 0.0 }
 0x107   : > { %859 = vst [vmem:[%s1322_s14 + $0x20] sm:$0xff] %v795_v17  ;;  %891 = vst [vmem:[%s1322_s14 + $0x120] sm:$0xff] %v827_v18  ;;  %v796_v23 = vmax.f32 %v556_v19, 0.0  ;;  %v828_v24 = vmax.f32 %v684_v20, 0.0 }
 0x108   : > { %862 = vst [vmem:[%s1322_s14 + $0x38] sm:$0xff] %v798_v21  ;;  %894 = vst [vmem:[%s1322_s14 + $0x138] sm:$0xff] %v830_v22 }
 0x109   : > { %860 = vst [vmem:[%s1322_s14 + $0x28] sm:$0xff] %v796_v23  ;;  %892 = vst [vmem:[%s1322_s14 + $0x128] sm:$0xff] %v828_v24  ;;  %v1093_v25 = vpop.f32.mrb[8].mxu0  ;;  %v1125_v26 = vpop.f32.mrb[8].mxu1 }
 0x10a   : > { %v577_v27 = vadd.f32 %v1093_v25, %v1314_v40  ;;  %v705_v28 = vadd.f32 %v1125_v26, %v1314_v40  ;;  %v568_v29 = vpop.f32.mrb[9].mxu0  ;;  %v696_v30 = vpop.f32.mrb[9].mxu1 }
 0x10b   : > { %v569_v31 = vadd.f32 %v1314_v40, %v568_v29  ;;  %v697_v32 = vadd.f32 %v1314_v40, %v696_v30  ;;  %v1094_v33 = vpop.f32.mrb[10].mxu0  ;;  %v1126_v34 = vpop.f32.mrb[10].mxu1 }
 0x10c   : > { %v801_v35 = vmax.f32 %v577_v27, 0.0  ;;  %v833_v36 = vmax.f32 %v705_v28, 0.0  ;;  %v580_v37 = vadd.f32 %v1094_v33, %v1314_v40  ;;  %v708_v38 = vadd.f32 %v1126_v34, %v1314_v40  ;;  %v571_v39 = vpop.f32.mrb[11].mxu0  ;;  %v699_v41 = vpop.f32.mrb[11].mxu1 }
 0x10d   : > { %v799_v42 = vmax.f32 %v569_v31, 0.0  ;;  %v831_v43 = vmax.f32 %v697_v32, 0.0  ;;  %v572_v44 = vadd.f32 %v1314_v40, %v571_v39  ;;  %v700_v45 = vadd.f32 %v1314_v40, %v699_v41 }
 0x10e   : > { %865 = vst [vmem:[%s1322_s14 + $0x50] sm:$0xff] %v801_v35  ;;  %897 = vst [vmem:[%s1322_s14 + $0x150] sm:$0xff] %v833_v36  ;;  %v802_v46 = vmax.f32 %v580_v37, 0.0  ;;  %v834_v47 = vmax.f32 %v708_v38, 0.0 }
 0x10f   : > { %863 = vst [vmem:[%s1322_s14 + $0x40] sm:$0xff] %v799_v42  ;;  %895 = vst [vmem:[%s1322_s14 + $0x140] sm:$0xff] %v831_v43  ;;  %v800_v48 = vmax.f32 %v572_v44, 0.0  ;;  %v832_v49 = vmax.f32 %v700_v45, 0.0 }
 0x110   : > { %866 = vst [vmem:[%s1322_s14 + $0x58] sm:$0xff] %v802_v46  ;;  %898 = vst [vmem:[%s1322_s14 + $0x158] sm:$0xff] %v834_v47 }
 0x111   : > { %864 = vst [vmem:[%s1322_s14 + $0x48] sm:$0xff] %v800_v48  ;;  %896 = vst [vmem:[%s1322_s14 + $0x148] sm:$0xff] %v832_v49  ;;  %v1097_v50 = vpop.f32.mrb[12].mxu0  ;;  %v1129_v51 = vpop.f32.mrb[12].mxu1 }
 0x112   : > { %v593_v52 = vadd.f32 %v1097_v50, %v1314_v40  ;;  %v721_v53 = vadd.f32 %v1129_v51, %v1314_v40  ;;  %v584_v54 = vpop.f32.mrb[13].mxu0  ;;  %v712_v55 = vpop.f32.mrb[13].mxu1 }
 0x113   : > { %v585_v56 = vadd.f32 %v1314_v40, %v584_v54  ;;  %v713_v57 = vadd.f32 %v1314_v40, %v712_v55  ;;  %v1098_v58 = vpop.f32.mrb[14].mxu0  ;;  %v1130_v59 = vpop.f32.mrb[14].mxu1 }
 0x114   : > { %v805_v60 = vmax.f32 %v593_v52, 0.0  ;;  %v837_v61 = vmax.f32 %v721_v53, 0.0  ;;  %v596_v62 = vadd.f32 %v1098_v58, %v1314_v40  ;;  %v724_v63 = vadd.f32 %v1130_v59, %v1314_v40  ;;  %v587_v0 = vpop.f32.mrb[15].mxu0  ;;  %v715_v1 = vpop.f32.mrb[15].mxu1 }
 0x115   : > { %v803_v2 = vmax.f32 %v585_v56, 0.0  ;;  %v835_v3 = vmax.f32 %v713_v57, 0.0  ;;  %v588_v4 = vadd.f32 %v1314_v40, %v587_v0  ;;  %v716_v5 = vadd.f32 %v1314_v40, %v715_v1 }
 0x116   : > { %869 = vst [vmem:[%s1322_s14 + $0x70] sm:$0xff] %v805_v60  ;;  %901 = vst [vmem:[%s1322_s14 + $0x170] sm:$0xff] %v837_v61  ;;  %v806_v6 = vmax.f32 %v596_v62, 0.0  ;;  %v838_v7 = vmax.f32 %v724_v63, 0.0 }
 0x117   : > { %867 = vst [vmem:[%s1322_s14 + $0x60] sm:$0xff] %v803_v2  ;;  %899 = vst [vmem:[%s1322_s14 + $0x160] sm:$0xff] %v835_v3  ;;  %v804_v8 = vmax.f32 %v588_v4, 0.0  ;;  %v836_v9 = vmax.f32 %v716_v5, 0.0 }
 0x118   : > { %870 = vst [vmem:[%s1322_s14 + $0x78] sm:$0xff] %v806_v6  ;;  %902 = vst [vmem:[%s1322_s14 + $0x178] sm:$0xff] %v838_v7 }
 0x119   : > { %868 = vst [vmem:[%s1322_s14 + $0x68] sm:$0xff] %v804_v8  ;;  %900 = vst [vmem:[%s1322_s14 + $0x168] sm:$0xff] %v836_v9  ;;  %v1101_v10 = vpop.f32.mrb[16].mxu0  ;;  %v1133_v11 = vpop.f32.mrb[16].mxu1 }
 0x11a   : > { %v609_v12 = vadd.f32 %v1101_v10, %v1314_v40  ;;  %v737_v13 = vadd.f32 %v1133_v11, %v1314_v40  ;;  %v600_v14 = vpop.f32.mrb[17].mxu0  ;;  %v728_v15 = vpop.f32.mrb[17].mxu1 }
 0x11b   : > { %v601_v16 = vadd.f32 %v1314_v40, %v600_v14  ;;  %v729_v17 = vadd.f32 %v1314_v40, %v728_v15  ;;  %v1102_v18 = vpop.f32.mrb[18].mxu0  ;;  %v1134_v19 = vpop.f32.mrb[18].mxu1 }
 0x11c   : > { %v809_v20 = vmax.f32 %v609_v12, 0.0  ;;  %v841_v21 = vmax.f32 %v737_v13, 0.0  ;;  %v612_v22 = vadd.f32 %v1102_v18, %v1314_v40  ;;  %v740_v23 = vadd.f32 %v1134_v19, %v1314_v40  ;;  %v603_v24 = vpop.f32.mrb[19].mxu0  ;;  %v731_v25 = vpop.f32.mrb[19].mxu1 }
 0x11d   : > { %v807_v26 = vmax.f32 %v601_v16, 0.0  ;;  %v839_v27 = vmax.f32 %v729_v17, 0.0  ;;  %v604_v28 = vadd.f32 %v1314_v40, %v603_v24  ;;  %v732_v29 = vadd.f32 %v1314_v40, %v731_v25 }
 0x11e   : > { %873 = vst [vmem:[%s1322_s14 + $0x90] sm:$0xff] %v809_v20  ;;  %905 = vst [vmem:[%s1322_s14 + $0x190] sm:$0xff] %v841_v21  ;;  %v810_v30 = vmax.f32 %v612_v22, 0.0  ;;  %v842_v31 = vmax.f32 %v740_v23, 0.0 }
 0x11f   : > { %871 = vst [vmem:[%s1322_s14 + $0x80] sm:$0xff] %v807_v26  ;;  %903 = vst [vmem:[%s1322_s14 + $0x180] sm:$0xff] %v839_v27  ;;  %v808_v32 = vmax.f32 %v604_v28, 0.0  ;;  %v840_v33 = vmax.f32 %v732_v29, 0.0 }
 0x120   : > { %874 = vst [vmem:[%s1322_s14 + $0x98] sm:$0xff] %v810_v30  ;;  %906 = vst [vmem:[%s1322_s14 + $0x198] sm:$0xff] %v842_v31 }
 0x121   : > { %872 = vst [vmem:[%s1322_s14 + $0x88] sm:$0xff] %v808_v32  ;;  %904 = vst [vmem:[%s1322_s14 + $0x188] sm:$0xff] %v840_v33  ;;  %v1105_v34 = vpop.f32.mrb[20].mxu0  ;;  %v1137_v35 = vpop.f32.mrb[20].mxu1 }
 0x122   : > { %v625_v36 = vadd.f32 %v1105_v34, %v1314_v40  ;;  %v753_v37 = vadd.f32 %v1137_v35, %v1314_v40  ;;  %v616_v38 = vpop.f32.mrb[21].mxu0  ;;  %v744_v39 = vpop.f32.mrb[21].mxu1 }
 0x123   : > { %v617_v41 = vadd.f32 %v1314_v40, %v616_v38  ;;  %v745_v42 = vadd.f32 %v1314_v40, %v744_v39  ;;  %v1106_v43 = vpop.f32.mrb[22].mxu0  ;;  %v1138_v44 = vpop.f32.mrb[22].mxu1 }
 0x124   : > { %v813_v45 = vmax.f32 %v625_v36, 0.0  ;;  %v845_v46 = vmax.f32 %v753_v37, 0.0  ;;  %v628_v47 = vadd.f32 %v1106_v43, %v1314_v40  ;;  %v756_v48 = vadd.f32 %v1138_v44, %v1314_v40  ;;  %v619_v49 = vpop.f32.mrb[23].mxu0  ;;  %v747_v50 = vpop.f32.mrb[23].mxu1 }
 0x125   : > { %v811_v51 = vmax.f32 %v617_v41, 0.0  ;;  %v843_v52 = vmax.f32 %v745_v42, 0.0  ;;  %v620_v53 = vadd.f32 %v1314_v40, %v619_v49  ;;  %v748_v54 = vadd.f32 %v1314_v40, %v747_v50 }
 0x126   : > { %877 = vst [vmem:[%s1322_s14 + $0xb0] sm:$0xff] %v813_v45  ;;  %909 = vst [vmem:[%s1322_s14 + $0x1b0] sm:$0xff] %v845_v46  ;;  %v814_v55 = vmax.f32 %v628_v47, 0.0  ;;  %v846_v56 = vmax.f32 %v756_v48, 0.0 }
 0x127   : > { %875 = vst [vmem:[%s1322_s14 + $0xa0] sm:$0xff] %v811_v51  ;;  %907 = vst [vmem:[%s1322_s14 + $0x1a0] sm:$0xff] %v843_v52  ;;  %v812_v57 = vmax.f32 %v620_v53, 0.0  ;;  %v844_v58 = vmax.f32 %v748_v54, 0.0 }
 0x128   : > { %878 = vst [vmem:[%s1322_s14 + $0xb8] sm:$0xff] %v814_v55  ;;  %910 = vst [vmem:[%s1322_s14 + $0x1b8] sm:$0xff] %v846_v56 }
 0x129   : > { %876 = vst [vmem:[%s1322_s14 + $0xa8] sm:$0xff] %v812_v57  ;;  %908 = vst [vmem:[%s1322_s14 + $0x1a8] sm:$0xff] %v844_v58  ;;  %v1109_v59 = vpop.f32.mrb[24].mxu0  ;;  %v1141_v60 = vpop.f32.mrb[24].mxu1 }
 0x12a   : > { %v641_v61 = vadd.f32 %v1109_v59, %v1314_v40  ;;  %v769_v62 = vadd.f32 %v1141_v60, %v1314_v40  ;;  %v632_v63 = vpop.f32.mrb[25].mxu0  ;;  %v760_v0 = vpop.f32.mrb[25].mxu1 }
 0x12b   : > { %v633_v1 = vadd.f32 %v1314_v40, %v632_v63  ;;  %v761_v2 = vadd.f32 %v1314_v40, %v760_v0  ;;  %v1110_v3 = vpop.f32.mrb[26].mxu0  ;;  %v1142_v4 = vpop.f32.mrb[26].mxu1 }
 0x12c   : > { %v817_v5 = vmax.f32 %v641_v61, 0.0  ;;  %v849_v6 = vmax.f32 %v769_v62, 0.0  ;;  %v644_v7 = vadd.f32 %v1110_v3, %v1314_v40  ;;  %v772_v8 = vadd.f32 %v1142_v4, %v1314_v40  ;;  %v635_v9 = vpop.f32.mrb[27].mxu0  ;;  %v763_v10 = vpop.f32.mrb[27].mxu1 }
 0x12d   : > { %v815_v11 = vmax.f32 %v633_v1, 0.0  ;;  %v847_v12 = vmax.f32 %v761_v2, 0.0  ;;  %v636_v13 = vadd.f32 %v1314_v40, %v635_v9  ;;  %v764_v14 = vadd.f32 %v1314_v40, %v763_v10 }
 0x12e   : > { %881 = vst [vmem:[%s1322_s14 + $0xd0] sm:$0xff] %v817_v5  ;;  %913 = vst [vmem:[%s1322_s14 + $0x1d0] sm:$0xff] %v849_v6  ;;  %v818_v15 = vmax.f32 %v644_v7, 0.0  ;;  %v850_v16 = vmax.f32 %v772_v8, 0.0 }
 0x12f   : > { %879 = vst [vmem:[%s1322_s14 + $0xc0] sm:$0xff] %v815_v11  ;;  %911 = vst [vmem:[%s1322_s14 + $0x1c0] sm:$0xff] %v847_v12  ;;  %v816_v17 = vmax.f32 %v636_v13, 0.0  ;;  %v848_v18 = vmax.f32 %v764_v14, 0.0 }
 0x130   : > { %882 = vst [vmem:[%s1322_s14 + $0xd8] sm:$0xff] %v818_v15  ;;  %914 = vst [vmem:[%s1322_s14 + $0x1d8] sm:$0xff] %v850_v16 }
 0x131   : > { %880 = vst [vmem:[%s1322_s14 + $0xc8] sm:$0xff] %v816_v17  ;;  %912 = vst [vmem:[%s1322_s14 + $0x1c8] sm:$0xff] %v848_v18  ;;  %v1113_v19 = vpop.f32.mrb[28].mxu0  ;;  %v1145_v20 = vpop.f32.mrb[28].mxu1 }
 0x132   : > { %v657_v21 = vadd.f32 %v1113_v19, %v1314_v40  ;;  %v785_v22 = vadd.f32 %v1145_v20, %v1314_v40  ;;  %v648_v23 = vpop.f32.mrb[29].mxu0  ;;  %v776_v24 = vpop.f32.mrb[29].mxu1 }
 0x133   : > { %v649_v25 = vadd.f32 %v1314_v40, %v648_v23  ;;  %v777_v26 = vadd.f32 %v1314_v40, %v776_v24  ;;  %v1114_v27 = vpop.f32.mrb[30].mxu0  ;;  %v1146_v28 = vpop.f32.mrb[30].mxu1 }
 0x134   : > { %v821_v29 = vmax.f32 %v657_v21, 0.0  ;;  %v853_v30 = vmax.f32 %v785_v22, 0.0  ;;  %v660_v31 = vadd.f32 %v1114_v27, %v1314_v40  ;;  %v788_v32 = vadd.f32 %v1146_v28, %v1314_v40  ;;  %v651_v33 = vpop.f32.mrb[31].mxu0  ;;  %v779_v34 = vpop.f32.mrb[31].mxu1 }
 0x135   : > { %v819_v35 = vmax.f32 %v649_v25, 0.0  ;;  %v851_v36 = vmax.f32 %v777_v26, 0.0  ;;  %v652_v37 = vadd.f32 %v1314_v40, %v651_v33  ;;  %v780_v38 = vadd.f32 %v1314_v40, %v779_v34 }
 0x136   : > { %885 = vst [vmem:[%s1322_s14 + $0xf0] sm:$0xff] %v821_v29  ;;  %917 = vst [vmem:[%s1322_s14 + $0x1f0] sm:$0xff] %v853_v30  ;;  %v822_v39 = vmax.f32 %v660_v31, 0.0  ;;  %v854_v41 = vmax.f32 %v788_v32, 0.0 }
 0x137   : > { %883 = vst [vmem:[%s1322_s14 + $0xe0] sm:$0xff] %v819_v35  ;;  %915 = vst [vmem:[%s1322_s14 + $0x1e0] sm:$0xff] %v851_v36  ;;  %v820_v42 = vmax.f32 %v652_v37, 0.0  ;;  %v852_v43 = vmax.f32 %v780_v38, 0.0 }
 0x138   : > { %886 = vst [vmem:[%s1322_s14 + $0xf8] sm:$0xff] %v822_v39  ;;  %918 = vst [vmem:[%s1322_s14 + $0x1f8] sm:$0xff] %v854_v41 }
 0x139   : > { %884 = vst [vmem:[%s1322_s14 + $0xe8] sm:$0xff] %v820_v42  ;;  %916 = vst [vmem:[%s1322_s14 + $0x1e8] sm:$0xff] %v852_v43 }
 0x13a PF: > { %s13_s12 = sadd.s32 1, %s1217_s12  }
 0x13b   : > { %p10_p4 = scmp.ge.s32.totalorder %s13_s12, 4  }
 0x13d   :  { %12 = sbr.rel (!%p10_p4) target bundleno = 1 (0x1), region = 62 }

// kernel: cnn_forward.7
= control target key start
LH: loop header
LB: loop body
LE: loop exit
PB: predicated region body
PF: predicated region fallthrough
CT: control target
= control target key end

     0   :  { %s8887_s12 = smov 0   ;;  %s8889_s13 = smov 0   ;;  %s10586_s0 = inlined_call_operand.vmem [shape: f32[2,10,10,10,128], index: 0, kind: input, shape index: {}]   ;;  %s10587_s1 = inlined_call_operand.vmem [shape: bf16[27,128,128], index: 1, kind: input, shape index: {}]   ;;  %s10588_s2 = inlined_call_operand.vmem [shape: f32[1,128], index: 2, kind: input, shape index: {}]   ;;  %s10589_s3 = inlined_call_operand.vmem [shape: f32[1024,128], index: 3, kind: output, shape index: {}]  }
   0x1   :  { %s8891_s14 = smov 0   ;;  %s8893_s15 = smov 0  }
   0x2   :  { %s8895_s16 = smov 0  }
   0x3 LB: > { %s22_s17 = sadd.s32 1, %s8857_s14  ;;  %s25_s18 = sadd.s32 1, %s8861_s15  ;;  %s8865_s16 = sphi %s8895_s16, %s13_s16   ;;  %s8861_s15 = sphi %s8893_s15, %s10644_s15   ;;  %s8857_s14 = sphi %s8891_s14, %s10643_s14   ;;  %s8853_s13 = sphi %s8889_s13, %s10642_s13   ;;  %s8849_s12 = sphi %s8887_s12, %s10641_s12  }
   0x4   : > { %p23_p0 = scmp.ge.s32.totalorder %s22_s17, 4  ;;  %p5804_p1 = scmp.ge.s32.totalorder %s8865_s16, 1 }
   0x5   : > { %p153_p2 = scmp.lt.s32.totalorder %s8865_s16, 9 }
   0x6   : > { %s10646_s17 = smov (%p23_p0, %s22_s17), 0  ;;  %s10648_s18 = smov (!%p23_p0, %s25_s18), %s8861_s15 }
   0x7   : > { %p154_p3 = pnand %p5804_p1, %p153_p2  ;;  %p27_p4 = scmp.ge.s32.totalorder %s10648_s18, 2 }
   0x9   : > { %s10650_s18 = smov (%p27_p4, %s10648_s18), 0  ;;  %157 = sbr.rel (%p154_p3) target bundleno = 696 (0x2b8), region = 32 }
  0x10   : > { %v8611_v0 = vld [vmem:[%s10587_s1 + $0x40] sm:$0xff]   ;;  %p179_p5 = scmp.lt.s32.totalorder %s8853_s13, 1  ;;  %v8613_v2 = vld [vmem:[%s10587_s1 + $0x48] sm:$0xff]   ;;  %v8615_v4 = vld [vmem:[%s10587_s1 + $0x50] sm:$0xff]   ;;  %s5810_s10 = smul.u32 320, %s8849_s12 }
  0x11   : > { %v8612_v1 = vld [vmem:[%s10587_s1 + $0x340] sm:$0xff]   ;;  %7274 = vmatprep.subr.bf16.mxu1 %v8611_v0  ;;  %v8614_v3 = vld [vmem:[%s10587_s1 + $0x348] sm:$0xff]   ;;  %v8616_v5 = vld [vmem:[%s10587_s1 + $0x350] sm:$0xff]  }
  0x12   : > { %s180_s25 = scalar_select %p179_p5, %s8853_s13, 1  ;;  %7690 = vmatprep.subr.bf16.mxu0 %v8612_v1  ;;  %7275 = vmatpush3.bf16.msra.mxu1 %v8611_v0  ;;  %v8617_v6 = vld [vmem:[%s10587_s1 + $0x58] sm:$0xff]   ;;  %v8619_v8 = vld [vmem:[%s10587_s1 + $0x60] sm:$0xff]   ;;  %v8621_v10 = vld [vmem:[%s10587_s1 + $0x68] sm:$0xff]  }
  0x13   : > { %7691 = vmatpush3.bf16.msra.mxu0 %v8612_v1  ;;  %7276 = vmatprep.subr.bf16.mxu1 %v8613_v2  ;;  %v8618_v7 = vld [vmem:[%s10587_s1 + $0x358] sm:$0xff]   ;;  %v8620_v9 = vld [vmem:[%s10587_s1 + $0x360] sm:$0xff]   ;;  %v8622_v14 = vld [vmem:[%s10587_s1 + $0x368] sm:$0xff]  }
  0x14   : > { %7692 = vmatprep.subr.bf16.mxu0 %v8614_v3  ;;  %s8570_s5 = smul.u32 1600, %s180_s25  ;;  %v8623_v18 = vld [vmem:[%s10587_s1 + $0x70] sm:$0xff]   ;;  %v8625_v20 = vld [vmem:[%s10587_s1 + $0x78] sm:$0xff]   ;;  %v8627_v24 = vld [vmem:[%s10587_s1] sm:$0xff]  }
  0x15   : > { %v8624_v19 = vld [vmem:[%s10587_s1 + $0x370] sm:$0xff]   ;;  %v8626_v21 = vld [vmem:[%s10587_s1 + $0x378] sm:$0xff]   ;;  %v8628_v27 = vld [vmem:[%s10587_s1 + $0x380] sm:$0xff]  }
  0x16   : > { %7277 = vmatpush3.bf16.msra.mxu1 %v8613_v2  ;;  %s183_s20 = scalar_lea.vmem %s10586_s0, %s8570_s5  ;;  %v8629_v31 = vld [vmem:[%s10587_s1 + $0x8] sm:$0xff]   ;;  %v8631_v43 = vld [vmem:[%s10587_s1 + $0x10] sm:$0xff]   ;;  %v8633_v57 = vld [vmem:[%s10587_s1 + $0x18] sm:$0xff]  }
  0x17   : > { %7693 = vmatpush3.bf16.msra.mxu0 %v8614_v3  ;;  %7278 = vmatprep.subr.bf16.mxu1 %v8615_v4  ;;  %s8957_s25 = scalar_lea.vmem %s183_s20, %s5810_s10  ;;  %v8630_v37 = vld [vmem:[%s10587_s1 + $0x388] sm:$0xff]   ;;  %v8632_v51 = vld [vmem:[%s10587_s1 + $0x390] sm:$0xff]   ;;  %v8634_v58 = vld [vmem:[%s10587_s1 + $0x398] sm:$0xff]  }
  0x18   : > { %7694 = vmatprep.subr.bf16.mxu0 %v8616_v5  ;;  %v238_v11 = vld [vmem:[%s8957_s25 + $0x1] sm:$0xff]  ;;  %v239_v12 = vld [vmem:[%s8957_s25 + $0x11] sm:$0xff] }
  0x19   : > { %v8965_v13 = vld [vmem:[%s8957_s25 + $0xb1] sm:$0xff]  ;;  %v254_v15 = vpack.c.bf16 %v239_v12, %v238_v11  ;;  %v8971_v16 = vld [vmem:[%s8957_s25 + $0xc1] sm:$0xff] }
  0x1a   : > { %7279 = vmatpush3.bf16.msra.mxu1 %v8615_v4  ;;  %v2816_v17 = vpack.c.bf16 %v8971_v16, %v8965_v13  ;;  %v240_v22 = vld [vmem:[%s8957_s25 + $0x21] sm:$0xff]  ;;  %v241_v23 = vld [vmem:[%s8957_s25 + $0x31] sm:$0xff] }
  0x1b   : > { %7695 = vmatpush3.bf16.msra.mxu0 %v8616_v5  ;;  %7280 = vmatprep.subr.bf16.mxu1 %v8617_v6  ;;  %v8993_v25 = vld [vmem:[%s8957_s25 + $0xd1] sm:$0xff]  ;;  %v8996_v26 = vld [vmem:[%s8957_s25 + $0xe1] sm:$0xff]  ;;  %v255_v30 = vpack.c.bf16 %v241_v23, %v240_v22 }
  0x1c   : > { %7696 = vmatprep.subr.bf16.mxu0 %v8618_v7  ;;  %7290 = vmatprep.mubr.bf16.mxu1 %v254_v15  ;;  %v242_v28 = vld [vmem:[%s8957_s25 + $0x41] sm:$0xff]  ;;  %v243_v29 = vld [vmem:[%s8957_s25 + $0x51] sm:$0xff]  ;;  %v2817_v33 = vpack.c.bf16 %v8996_v26, %v8993_v25  ;;  %v9074_v63 = vpack.c.bf16 %v8993_v25, %v8971_v16 }
  0x1d   : > { %7706 = vmatprep.mubr.bf16.mxu0 %v2816_v17  ;;  %v9007_v32 = vld [vmem:[%s8957_s25 + $0xf1] sm:$0xff]  ;;  %v9012_v34 = vld [vmem:[%s8957_s25 + $0x101] sm:$0xff]  ;;  %v256_v39 = vpack.c.bf16 %v243_v29, %v242_v28 }
  0x1e   : > { %7281 = vmatpush3.bf16.msra.mxu1 %v8617_v6  ;;  %v9015_v35 = vld [vmem:[%s8957_s25 + $0x161] sm:$0xff]  ;;  %v9018_v36 = vld [vmem:[%s8957_s25 + $0x171] sm:$0xff]  ;;  %v2818_v42 = vpack.c.bf16 %v9012_v34, %v9007_v32  ;;  %v9086_v3 = vpack.c.bf16 %v9007_v32, %v8996_v26 }
  0x1f   : > { %7697 = vmatpush3.bf16.msra.mxu0 %v8618_v7  ;;  %7282 = vmatprep.subr.bf16.mxu1 %v8619_v8  ;;  %v3428_v38 = vpack.c.bf16 %v9018_v36, %v9015_v35  ;;  %v244_v40 = vld [vmem:[%s8957_s25 + $0x61] sm:$0xff]  ;;  %v245_v41 = vld [vmem:[%s8957_s25 + $0x71] sm:$0xff] }
  0x20   : > { %7698 = vmatprep.subr.bf16.mxu0 %v8620_v9  ;;  %v6277_v44 = vld [vmem:[%s8957_s25 + $0x111] sm:$0xff]  ;;  %v9034_v45 = vld [vmem:[%s8957_s25 + $0x121] sm:$0xff]  ;;  %v257_v53 = vpack.c.bf16 %v245_v41, %v244_v40 }
  0x21   : > { %v9037_v46 = vld [vmem:[%s8957_s25 + $0x181] sm:$0xff]  ;;  %v9040_v47 = vld [vmem:[%s8957_s25 + $0x191] sm:$0xff]  ;;  %v2819_v55 = vpack.c.bf16 %v9034_v45, %v6277_v44 }
  0x22   : > { %7283 = vmatpush3.bf16.msra.mxu1 %v8619_v8  ;;  %v9043_v48 = vld [vmem:[%s8957_s25 + $0x1a1] sm:$0xff]  ;;  %v9046_v49 = vld [vmem:[%s8957_s25 + $0x1b1] sm:$0xff]  ;;  %v3429_v50 = vpack.c.bf16 %v9040_v47, %v9037_v46  ;;  %v2821_v0 = vpack.c.bf16 %v9037_v46, %v9018_v36  ;;  %v9102_v8 = vpack.c.bf16 %v6277_v44, %v9012_v34 }
  0x23   : > { %7699 = vmatpush3.bf16.msra.mxu0 %v8620_v9  ;;  %7284 = vmatprep.subr.bf16.mxu1 %v8621_v10  ;;  %v246_v54 = vld [vmem:[%s8957_s25 + $0xa1] sm:$0xff]  ;;  %v6279_v56 = vld [vmem:[%s8957_s25 + $0x151] sm:$0xff]  ;;  %v2822_v4 = vpack.c.bf16 %v9043_v48, %v9040_v47 }
  0x24   : > { %7700 = vmatprep.subr.bf16.mxu0 %v8622_v14  ;;  %v258_v59 = vpack.c.bf16 %v8965_v13, %v246_v54  ;;  %v2820_v60 = vpack.c.bf16 %v9015_v35, %v6279_v56  ;;  %v8635_v61 = vld [vmem:[%s10587_s1 + $0x20] sm:$0xff]   ;;  %v8637_v1 = vld [vmem:[%s10587_s1 + $0x28] sm:$0xff]   ;;  %v8639_v5 = vld [vmem:[%s10587_s1 + $0x30] sm:$0xff]  }
  0x25   : > { %v8636_v62 = vld [vmem:[%s10587_s1 + $0x3a0] sm:$0xff]   ;;  %v8638_v2 = vld [vmem:[%s10587_s1 + $0x3a8] sm:$0xff]   ;;  %v8640_v7 = vld [vmem:[%s10587_s1 + $0x3b0] sm:$0xff]  }
  0x26   : > { %7285 = vmatpush3.bf16.msra.mxu1 %v8621_v10  ;;  %v9095_v6 = vld [vmem:[%s8957_s25 + $0x1c1] sm:$0xff]  ;;  %v8641_v9 = vld [vmem:[%s10587_s1 + $0x38] sm:$0xff]   ;;  %v9109_v11 = vld [vmem:[%s8957_s25 + $0x10] sm:$0xff] }
  0x27   : > { %7701 = vmatpush3.bf16.msra.mxu0 %v8622_v14  ;;  %7286 = vmatprep.subr.bf16.mxu1 %v8623_v18  ;;  %v198_v10 = vld [vmem:[%s8957_s25] sm:$0xff]  ;;  %v2823_v12 = vpack.c.bf16 %v9095_v6, %v9046_v49  ;;  %v8642_v13 = vld [vmem:[%s10587_s1 + $0x3b8] sm:$0xff]   ;;  %v9156_v28 = vld [vmem:[%s8957_s25 + $0x50] sm:$0xff] }
  0x28   : > { %7702 = vmatprep.subr.bf16.mxu0 %v8624_v19  ;;  %v9117_v14 = vld [vmem:[%s8957_s25 + $0xb2] sm:$0xff]  ;;  %v9120_v15 = vld [vmem:[%s8957_s25 + $0xc2] sm:$0xff] }
  0x29   : > { %v9123_v16 = vld [vmem:[%s8957_s25 + $0x162] sm:$0xff]  ;;  %v9126_v17 = vld [vmem:[%s8957_s25 + $0x172] sm:$0xff]  ;;  %v3018_v22 = vpack.c.bf16 %v9120_v15, %v9117_v14 }
  0x2a   : > { %7287 = vmatpush3.bf16.msra.mxu1 %v8623_v18  ;;  %v214_v18 = vpack.c.bf16 %v9109_v11, %v198_v10  ;;  %v8643_v23 = vld [vmem:[%s10587_s1 + $0x80] sm:$0xff]   ;;  %v8645_v32 = vld [vmem:[%s10587_s1 + $0x88] sm:$0xff]   ;;  %v9183_v41 = vld [vmem:[%s8957_s25 + $0x1b2] sm:$0xff] }
  0x2b   : > { %7703 = vmatpush3.bf16.msra.mxu0 %v8624_v19  ;;  %7288 = vmatprep.subr.bf16.mxu1 %v8625_v20  ;;  %v9130_v19 = vld [vmem:[%s8957_s25 + $0x20] sm:$0xff]  ;;  %v9204_v56 = vld [vmem:[%s8957_s25 + $0x112] sm:$0xff]  ;;  %v8686_v36 = vld [vmem:[%s10587_s1 + $0x468] sm:$0xff]  }
  0x2c   : > { %7704 = vmatprep.subr.bf16.mxu0 %v8626_v21  ;;  %v9147_v25 = vld [vmem:[%s8957_s25 + $0xe2] sm:$0xff]  ;;  %v6364_v52 = vld [vmem:[%s8957_s25 + $0x190] sm:$0xff] }
  0x2d   : > { %v8644_v26 = vld [vmem:[%s10587_s1 + $0x3c0] sm:$0xff]   ;;  %v5907_v47 = vld [vmem:[%s8957_s25 + $0x11] sm:$0xff] }
  0x2e   : > { %7289 = vmatpush3.bf16.msra.mxu1 %v8625_v20  ;;  %v9133_v20 = vld [vmem:[%s8957_s25 + $0x30] sm:$0xff]  ;;  %v9159_v29 = vld [vmem:[%s8957_s25 + $0x182] sm:$0xff] }
  0x2f   : > { %7705 = vmatpush3.bf16.msra.mxu0 %v8626_v21  ;;  %7306 = vmatprep.subr.bf16.mxu1 %v8627_v24  ;;  %v9180_v40 = vld [vmem:[%s8957_s25 + $0x1a2] sm:$0xff] }
  0x30   : > { %7722 = vmatprep.subr.bf16.mxu0 %v8628_v27  ;;  %v9239_v10 = vld [vmem:[%s8957_s25 + $0x42] sm:$0xff] }
  0x31   : > { %7291 = vmatmul.mubr.bf16.vlgmr.msra.gmra.mrb[0].mxu1 %v255_v30  ;;  %v9162_v30 = vld [vmem:[%s8957_s25 + $0x192] sm:$0xff]  ;;  %v577_v34 = vld [vmem:[%s8957_s25 + $0xa2] sm:$0xff] }
  0x32   : > { %7707 = vmatmul.mubr.bf16.vlgmr.msra.gmra.mrb[0].mxu0 %v2817_v33  ;;  %7307 = vmatpush3.bf16.msra.mxu1 %v8627_v24  ;;  %v9144_v24 = vld [vmem:[%s8957_s25 + $0xd2] sm:$0xff]  ;;  %v6361_v21 = vld [vmem:[%s8957_s25 + $0x160] sm:$0xff] }
  0x33   : > { %7723 = vmatpush3.bf16.msra.mxu0 %v8628_v27  ;;  %7308 = vmatprep.subr.bf16.mxu1 %v8629_v31  ;;  %v9153_v27 = vld [vmem:[%s8957_s25 + $0x40] sm:$0xff]  ;;  %v9170_v33 = vld [vmem:[%s8957_s25 + $0xf2] sm:$0xff] }
  0x34   : > { %7724 = vmatprep.subr.bf16.mxu0 %v8630_v37  ;;  %7294 = vmatprep.mubr.bf16.mxu1 %v256_v39  ;;  %v9177_v39 = vld [vmem:[%s8957_s25 + $0x102] sm:$0xff]  ;;  %v216_v44 = vpack.c.bf16 %v9156_v28, %v9153_v27 }
  0x35   : > { %7710 = vmatprep.mubr.bf16.mxu0 %v2818_v42  ;;  %v8646_v42 = vld [vmem:[%s10587_s1 + $0x3c8] sm:$0xff]   ;;  %v3020_v54 = vpack.c.bf16 %v9177_v39, %v9170_v33 }
  0x36   : > { %7309 = vmatpush3.bf16.msra.mxu1 %v8629_v31  ;;  %v215_v31 = vpack.c.bf16 %v9133_v20, %v9130_v19  ;;  %v6523_v35 = vld [vmem:[%s8957_s25 + $0x1e1] sm:$0xff] }
  0x37   : > { %7725 = vmatpush3.bf16.msra.mxu0 %v8630_v37  ;;  %7310 = vmatprep.subr.bf16.mxu1 %v8631_v43  ;;  %v3019_v37 = vpack.c.bf16 %v9147_v25, %v9144_v24 }
  0x38   : > { %7726 = vmatprep.subr.bf16.mxu0 %v8632_v51 }
  0x39   : > { %7295 = vmatmul.mubr.bf16.gmra.mrb[4].mxu1 %v257_v53  ;;  %v9196_v53 = vld [vmem:[%s8957_s25 + $0x70] sm:$0xff] }
  0x3a   : > { %7711 = vmatmul.mubr.bf16.gmra.mrb[4].mxu0 %v2819_v55  ;;  %7311 = vmatpush3.bf16.msra.mxu1 %v8631_v43  ;;  %v8647_v55 = vld [vmem:[%s10587_s1 + $0x90] sm:$0xff]  }
  0x3b   : > { %7727 = vmatpush3.bf16.msra.mxu0 %v8632_v51  ;;  %7312 = vmatprep.subr.bf16.mxu1 %v8633_v57  ;;  %v9193_v51 = vld [vmem:[%s8957_s25 + $0x60] sm:$0xff]  ;;  %v8664_v43 = vld [vmem:[%s10587_s1 + $0x410] sm:$0xff]  }
  0x3c   : > { %7728 = vmatprep.subr.bf16.mxu0 %v8634_v58  ;;  %7298 = vmatprep.mubr.bf16.mxu1 %v258_v59  ;;  %v9213_v59 = vld [vmem:[%s8957_s25 + $0x22] sm:$0xff] }
  0x3d   : > { %7714 = vmatprep.mubr.bf16.mxu0 %v2820_v60  ;;  %v8648_v60 = vld [vmem:[%s10587_s1 + $0x3d0] sm:$0xff]  }
  0x3e   : > { %7313 = vmatpush3.bf16.msra.mxu1 %v8633_v57  ;;  %v9207_v57 = vld [vmem:[%s8957_s25 + $0x122] sm:$0xff] }
  0x3f   : > { %7729 = vmatpush3.bf16.msra.mxu0 %v8634_v58  ;;  %7314 = vmatprep.subr.bf16.mxu1 %v8635_v61  ;;  %v9210_v58 = vld [vmem:[%s8957_s25 + $0x12] sm:$0xff] }
  0x40   : > { %7730 = vmatprep.subr.bf16.mxu0 %v8636_v62 }
  0x41   : > { %7299 = vmatmul.mubr.bf16.gmra.mrb[8].mxu1 %v9074_v63 }
  0x42   : > { %7715 = vmatmul.mubr.bf16.gmra.mrb[8].mxu0 %v2821_v0  ;;  %7315 = vmatpush3.bf16.msra.mxu1 %v8635_v61  ;;  %v217_v0 = vpack.c.bf16 %v9196_v53, %v9193_v51  ;;  %v8658_v61 = vld [vmem:[%s10587_s1 + $0x3f8] sm:$0xff]  }
  0x43   : > { %7731 = vmatpush3.bf16.msra.mxu0 %v8636_v62  ;;  %7316 = vmatprep.subr.bf16.mxu1 %v8637_v1  ;;  %v206_v62 = vld [vmem:[%s8957_s25 + $0xa0] sm:$0xff] }
  0x44   : > { %7732 = vmatprep.subr.bf16.mxu0 %v8638_v2  ;;  %7302 = vmatprep.mubr.bf16.mxu1 %v9086_v3 }
  0x45   : > { %7718 = vmatprep.mubr.bf16.mxu0 %v2822_v4  ;;  %v3021_v4 = vpack.c.bf16 %v9207_v57, %v9204_v56 }
  0x46   : > { %7317 = vmatpush3.bf16.msra.mxu1 %v8637_v1  ;;  %v8649_v1 = vld [vmem:[%s10587_s1 + $0x98] sm:$0xff]  }
  0x47   : > { %7733 = vmatpush3.bf16.msra.mxu0 %v8638_v2  ;;  %7318 = vmatprep.subr.bf16.mxu1 %v8639_v5  ;;  %v9227_v2 = vld [vmem:[%s8957_s25 + $0xb0] sm:$0xff] }
  0x48   : > { %7734 = vmatprep.subr.bf16.mxu0 %v8640_v7 }
  0x49   : > { %7303 = vmatmul.mubr.bf16.gmra.mrb[12].mxu1 %v9102_v8 }
  0x4a   : > { %7719 = vmatmul.mubr.bf16.gmra.mrb[12].mxu0 %v2823_v12  ;;  %7319 = vmatpush3.bf16.msra.mxu1 %v8639_v5  ;;  %v6319_v5 = vld [vmem:[%s8957_s25 + $0x152] sm:$0xff]  ;;  %v218_v12 = vpack.c.bf16 %v9227_v2, %v206_v62  ;;  %v8653_v62 = vld [vmem:[%s10587_s1 + $0xa8] sm:$0xff]  }
  0x4b   : > { %7735 = vmatpush3.bf16.msra.mxu0 %v8640_v7  ;;  %7320 = vmatprep.subr.bf16.mxu1 %v8641_v9  ;;  %v8650_v7 = vld [vmem:[%s10587_s1 + $0x3d8] sm:$0xff]  }
  0x4c   : > { %7736 = vmatprep.subr.bf16.mxu0 %v8642_v13  ;;  %7322 = vmatprep.mubr.bf16.mxu1 %v214_v18  ;;  %v9246_v18 = vld [vmem:[%s8957_s25 + $0x62] sm:$0xff] }
  0x4d   : > { %7738 = vmatprep.mubr.bf16.mxu0 %v3018_v22  ;;  %v8657_v22 = vld [vmem:[%s10587_s1 + $0xb8] sm:$0xff]  }
  0x4e   : > { %7321 = vmatpush3.bf16.msra.mxu1 %v8641_v9  ;;  %v9236_v9 = vld [vmem:[%s8957_s25 + $0x32] sm:$0xff] }
  0x4f   : > { %7737 = vmatpush3.bf16.msra.mxu0 %v8642_v13  ;;  %7338 = vmatprep.subr.bf16.mxu1 %v8643_v23  ;;  %v9243_v13 = vld [vmem:[%s8957_s25 + $0x52] sm:$0xff] }
  0x50   : > { %7754 = vmatprep.subr.bf16.mxu0 %v8644_v26 }
  0x51   : > { %7323 = vmatmul.mubr.bf16.vlgmr.msra.gmra.mrb[0].mxu1 %v215_v31  ;;  %v8656_v31 = vld [vmem:[%s10587_s1 + $0x3f0] sm:$0xff]  }
  0x52   : > { %7739 = vmatmul.mubr.bf16.vlgmr.msra.gmra.mrb[0].mxu0 %v3019_v37  ;;  %7339 = vmatpush3.bf16.msra.mxu1 %v8643_v23  ;;  %v3022_v23 = vpack.c.bf16 %v9123_v16, %v6319_v5  ;;  %v8651_v37 = vld [vmem:[%s10587_s1 + $0xa0] sm:$0xff]  }
  0x53   : > { %7755 = vmatpush3.bf16.msra.mxu0 %v8644_v26  ;;  %7340 = vmatprep.subr.bf16.mxu1 %v8645_v32  ;;  %v9252_v26 = vld [vmem:[%s8957_s25 + $0xc0] sm:$0xff] }
  0x54   : > { %7756 = vmatprep.subr.bf16.mxu0 %v8646_v42  ;;  %7326 = vmatprep.mubr.bf16.mxu1 %v216_v44  ;;  %v9286_v5 = vld [vmem:[%s8957_s25 + $0x100] sm:$0xff] }
  0x55   : > { %7742 = vmatprep.mubr.bf16.mxu0 %v3020_v54  ;;  %v9268_v54 = vld [vmem:[%s8957_s25 + $0xe0] sm:$0xff] }
  0x56   : > { %7341 = vmatpush3.bf16.msra.mxu1 %v8645_v32  ;;  %v9257_v32 = vld [vmem:[%s8957_s25 + $0xd0] sm:$0xff] }
  0x57   : > { %7757 = vmatpush3.bf16.msra.mxu0 %v8646_v42  ;;  %7342 = vmatprep.subr.bf16.mxu1 %v8647_v55  ;;  %v8652_v42 = vld [vmem:[%s10587_s1 + $0x3e0] sm:$0xff]   ;;  %v219_v44 = vpack.c.bf16 %v9257_v32, %v9252_v26 }
  0x58   : > { %7758 = vmatprep.subr.bf16.mxu0 %v8648_v60 }
  0x59   : > { %7327 = vmatmul.mubr.bf16.gmra.mrb[4].mxu1 %v217_v0  ;;  %v8654_v0 = vld [vmem:[%s10587_s1 + $0x3e8] sm:$0xff]  }
  0x5a   : > { %7743 = vmatmul.mubr.bf16.gmra.mrb[4].mxu0 %v3021_v4  ;;  %7343 = vmatpush3.bf16.msra.mxu1 %v8647_v55  ;;  %v9271_v55 = vld [vmem:[%s8957_s25 + $0xf0] sm:$0xff] }
  0x5b   : > { %7759 = vmatpush3.bf16.msra.mxu0 %v8648_v60  ;;  %7344 = vmatprep.subr.bf16.mxu1 %v8649_v1  ;;  %v3023_v60 = vpack.c.bf16 %v9159_v29, %v9126_v17  ;;  %v220_v4 = vpack.c.bf16 %v9271_v55, %v9268_v54 }
  0x5c   : > { %7760 = vmatprep.subr.bf16.mxu0 %v8650_v7  ;;  %7330 = vmatprep.mubr.bf16.mxu1 %v218_v12  ;;  %v8655_v12 = vld [vmem:[%s10587_s1 + $0xb0] sm:$0xff]  }
  0x5d   : > { %7746 = vmatprep.mubr.bf16.mxu0 %v3022_v23  ;;  %v9295_v23 = vld [vmem:[%s8957_s25 + $0x1c2] sm:$0xff] }
  0x5e   : > { %7345 = vmatpush3.bf16.msra.mxu1 %v8649_v1  ;;  %v3024_v1 = vpack.c.bf16 %v9180_v40, %v9162_v30 }
  0x5f   : > { %7761 = vmatpush3.bf16.msra.mxu0 %v8650_v7  ;;  %7346 = vmatprep.subr.bf16.mxu1 %v8651_v37  ;;  %v9289_v7 = vld [vmem:[%s8957_s25 + $0x110] sm:$0xff] }
  0x60   : > { %7762 = vmatprep.subr.bf16.mxu0 %v8652_v42 }
  0x61   : > { %7331 = vmatmul.mubr.bf16.gmra.mrb[8].mxu1 %v219_v44 }
  0x62   : > { %7747 = vmatmul.mubr.bf16.gmra.mrb[8].mxu0 %v3023_v60  ;;  %7347 = vmatpush3.bf16.msra.mxu1 %v8651_v37  ;;  %v221_v37 = vpack.c.bf16 %v9289_v7, %v9286_v5  ;;  %v569_v60 = vld [vmem:[%s8957_s25 + $0x2] sm:$0xff] }
  0x63   : > { %7763 = vmatpush3.bf16.msra.mxu0 %v8652_v42  ;;  %7348 = vmatprep.subr.bf16.mxu1 %v8653_v62  ;;  %v3025_v42 = vpack.c.bf16 %v9295_v23, %v9183_v41 }
  0x64   : > { %7764 = vmatprep.subr.bf16.mxu0 %v8654_v0  ;;  %7334 = vmatprep.mubr.bf16.mxu1 %v220_v4 }
  0x65   : > { %7750 = vmatprep.mubr.bf16.mxu0 %v3024_v1  ;;  %v585_v1 = vpack.c.bf16 %v9210_v58, %v569_v60  ;;  %v586_v60 = vpack.c.bf16 %v9236_v9, %v9213_v59 }
  0x66   : > { %7349 = vmatpush3.bf16.msra.mxu1 %v8653_v62  ;;  %v8659_v62 = vld [vmem:[%s10587_s1 + $0xc0] sm:$0xff]  }
  0x67   : > { %7765 = vmatpush3.bf16.msra.mxu0 %v8654_v0  ;;  %7350 = vmatprep.subr.bf16.mxu1 %v8655_v12  ;;  %v8660_v0 = vld [vmem:[%s10587_s1 + $0x400] sm:$0xff]  }
  0x68   : > { %7766 = vmatprep.subr.bf16.mxu0 %v8656_v31 }
  0x69   : > { %7335 = vmatmul.mubr.bf16.gmra.mrb[12].mxu1 %v221_v37 }
  0x6a   : > { %7751 = vmatmul.mubr.bf16.gmra.mrb[12].mxu0 %v3025_v42  ;;  %7351 = vmatpush3.bf16.msra.mxu1 %v8655_v12  ;;  %v8662_v12 = vld [vmem:[%s10587_s1 + $0x408] sm:$0xff]   ;;  %v587_v42 = vpack.c.bf16 %v9243_v13, %v9239_v10 }
  0x6b   : > { %7767 = vmatpush3.bf16.msra.mxu0 %v8656_v31  ;;  %7352 = vmatprep.subr.bf16.mxu1 %v8657_v22  ;;  %v8661_v31 = vld [vmem:[%s10587_s1 + $0xc8] sm:$0xff]  }
  0x6c   : > { %7768 = vmatprep.subr.bf16.mxu0 %v8658_v61  ;;  %7354 = vmatprep.mubr.bf16.mxu1 %v585_v1  ;;  %v6360_v1 = vld [vmem:[%s8957_s25 + $0x130] sm:$0xff] }
  0x6d   : > { %7770 = vmatprep.mubr.bf16.mxu0 %v219_v44  ;;  %v9329_v44 = vld [vmem:[%s8957_s25 + $0x72] sm:$0xff] }
  0x6e   : > { %7353 = vmatpush3.bf16.msra.mxu1 %v8657_v22  ;;  %v8663_v22 = vld [vmem:[%s10587_s1 + $0xd0] sm:$0xff]  }
  0x6f   : > { %7769 = vmatpush3.bf16.msra.mxu0 %v8658_v61  ;;  %7370 = vmatprep.subr.bf16.mxu1 %v8659_v62  ;;  %v9335_v61 = vld [vmem:[%s8957_s25 + $0x120] sm:$0xff] }
  0x70   : > { %7786 = vmatprep.subr.bf16.mxu0 %v8660_v0  ;;  %v796_v46 = vpack.c.bf16 %v9335_v61, %v9289_v7  ;;  %v8691_v7 = vld [vmem:[%s10587_s1 + $0x140] sm:$0xff]  }
  0x71   : > { %7355 = vmatmul.mubr.bf16.vlgmr.msra.gmra.mrb[0].mxu1 %v586_v60  ;;  %v588_v60 = vpack.c.bf16 %v9329_v44, %v9246_v18 }
  0x72   : > { %7771 = vmatmul.mubr.bf16.vlgmr.msra.gmra.mrb[0].mxu0 %v220_v4  ;;  %7371 = vmatpush3.bf16.msra.mxu1 %v8659_v62  ;;  %v3225_v4 = vpack.c.bf16 %v6360_v1, %v9335_v61  ;;  %v6362_v62 = vld [vmem:[%s8957_s25 + $0x170] sm:$0xff]  ;;  %v6363_v1 = vld [vmem:[%s8957_s25 + $0x180] sm:$0xff] }
  0x73   : > { %7787 = vmatpush3.bf16.msra.mxu0 %v8660_v0  ;;  %7372 = vmatprep.subr.bf16.mxu1 %v8661_v31  ;;  %v8665_v0 = vld [vmem:[%s10587_s1 + $0xd8] sm:$0xff]   ;;  %v8692_v61 = vld [vmem:[%s10587_s1 + $0x480] sm:$0xff]  }
  0x74   : > { %7788 = vmatprep.subr.bf16.mxu0 %v8662_v12  ;;  %7358 = vmatprep.mubr.bf16.mxu1 %v587_v42  ;;  %v589_v42 = vpack.c.bf16 %v9117_v14, %v577_v34  ;;  %v8668_v14 = vld [vmem:[%s10587_s1 + $0x420] sm:$0xff]   ;;  %v9369_v34 = vpack.c.bf16 %v6364_v52, %v6363_v1 }
  0x75   : > { %7774 = vmatprep.mubr.bf16.mxu0 %v221_v37  ;;  %v8666_v37 = vld [vmem:[%s10587_s1 + $0x418] sm:$0xff]   ;;  %v8676_v1 = vld [vmem:[%s10587_s1 + $0x440] sm:$0xff]  }
  0x76   : > { %7373 = vmatpush3.bf16.msra.mxu1 %v8661_v31  ;;  %v9354_v31 = vpack.c.bf16 %v6362_v62, %v6361_v21  ;;  %v9367_v21 = vpack.c.bf16 %v9144_v24, %v9120_v15  ;;  %v9381_v15 = vpack.c.bf16 %v9170_v33, %v9147_v25  ;;  %v8671_v24 = vld [vmem:[%s10587_s1 + $0xf0] sm:$0xff]   ;;  %v6367_v62 = vld [vmem:[%s8957_s25 + $0x1c0] sm:$0xff]  ;;  %v9399_v33 = vpack.c.bf16 %v9204_v56, %v9177_v39 }
  0x77   : > { %7789 = vmatpush3.bf16.msra.mxu0 %v8662_v12  ;;  %7374 = vmatprep.subr.bf16.mxu1 %v8663_v22  ;;  %v8667_v12 = vld [vmem:[%s10587_s1 + $0xe0] sm:$0xff]   ;;  %v8672_v25 = vld [vmem:[%s10587_s1 + $0x430] sm:$0xff]   ;;  %v789_v39 = vpack.c.bf16 %v9130_v19, %v9109_v11  ;;  %v790_v19 = vpack.c.bf16 %v9153_v27, %v9133_v20  ;;  %v8678_v20 = vld [vmem:[%s10587_s1 + $0x448] sm:$0xff]   ;;  %v791_v27 = vpack.c.bf16 %v9193_v51, %v9156_v28 }
  0x78   : > { %7790 = vmatprep.subr.bf16.mxu0 %v8664_v43  ;;  %v8675_v56 = vld [vmem:[%s10587_s1 + $0x100] sm:$0xff]   ;;  %v9420_v11 = vld [vmem:[%s8957_s25 + $0x31] sm:$0xff] }
  0x79   : > { %7359 = vmatmul.mubr.bf16.gmra.mrb[4].mxu1 %v588_v60  ;;  %v8669_v60 = vld [vmem:[%s10587_s1 + $0xe8] sm:$0xff]   ;;  %v8680_v28 = vld [vmem:[%s10587_s1 + $0x450] sm:$0xff]  }
  0x7a   : > { %7775 = vmatmul.mubr.bf16.gmra.mrb[4].mxu0 %v3225_v4  ;;  %7375 = vmatpush3.bf16.msra.mxu1 %v8663_v22  ;;  %v6365_v22 = vld [vmem:[%s8957_s25 + $0x1a0] sm:$0xff]  ;;  %v8670_v4 = vld [vmem:[%s10587_s1 + $0x428] sm:$0xff]  }
  0x7b   : > { %7791 = vmatpush3.bf16.msra.mxu0 %v8664_v43  ;;  %7376 = vmatprep.subr.bf16.mxu1 %v8665_v0  ;;  %v6366_v43 = vld [vmem:[%s8957_s25 + $0x1b0] sm:$0xff] }
  0x7c   : > { %7792 = vmatprep.subr.bf16.mxu0 %v8666_v37  ;;  %7362 = vmatprep.mubr.bf16.mxu1 %v589_v42  ;;  %v9384_v52 = vpack.c.bf16 %v6366_v43, %v6365_v22  ;;  %v8673_v42 = vld [vmem:[%s10587_s1 + $0xf8] sm:$0xff]   ;;  %v9426_v22 = vld [vmem:[%s8957_s25 + $0x41] sm:$0xff] }
  0x7d   : > { %7778 = vmatprep.mubr.bf16.mxu0 %v9354_v31  ;;  %v9429_v43 = vld [vmem:[%s8957_s25 + $0x51] sm:$0xff] }
  0x7e   : > { %7377 = vmatpush3.bf16.msra.mxu1 %v8665_v0  ;;  %v6368_v0 = vld [vmem:[%s8957_s25 + $0x1d0] sm:$0xff] }
  0x7f   : > { %7793 = vmatpush3.bf16.msra.mxu0 %v8666_v37  ;;  %7378 = vmatprep.subr.bf16.mxu1 %v8667_v12  ;;  %v3229_v37 = vpack.c.bf16 %v6368_v0, %v6367_v62  ;;  %v8679_v62 = vld [vmem:[%s10587_s1 + $0x110] sm:$0xff]  }
  0x80   : > { %7794 = vmatprep.subr.bf16.mxu0 %v8668_v14  ;;  %v6400_v0 = vld [vmem:[%s8957_s25 + $0x131] sm:$0xff] }
  0x81   : > { %7363 = vmatmul.mubr.bf16.gmra.mrb[8].mxu1 %v9367_v21 }
  0x82   : > { %7779 = vmatmul.mubr.bf16.gmra.mrb[8].mxu0 %v9369_v34  ;;  %7379 = vmatpush3.bf16.msra.mxu1 %v8667_v12  ;;  %v8674_v12 = vld [vmem:[%s10587_s1 + $0x438] sm:$0xff]  }
  0x83   : > { %7795 = vmatpush3.bf16.msra.mxu0 %v8668_v14  ;;  %7380 = vmatprep.subr.bf16.mxu1 %v8669_v60  ;;  %v9417_v14 = vld [vmem:[%s8957_s25 + $0x21] sm:$0xff] }
  0x84   : > { %7796 = vmatprep.subr.bf16.mxu0 %v8670_v4  ;;  %7366 = vmatprep.mubr.bf16.mxu1 %v9381_v15 }
  0x85   : > { %7782 = vmatprep.mubr.bf16.mxu0 %v9384_v52 }
  0x86   : > { %7381 = vmatpush3.bf16.msra.mxu1 %v8669_v60  ;;  %v8677_v60 = vld [vmem:[%s10587_s1 + $0x108] sm:$0xff]  }
  0x87   : > { %7797 = vmatpush3.bf16.msra.mxu0 %v8670_v4  ;;  %7382 = vmatprep.subr.bf16.mxu1 %v8671_v24  ;;  %v9908_v4 = vld [vmem:[%s8957_s25 + $0x202] sm:$0xff] }
  0x88   : > { %7798 = vmatprep.subr.bf16.mxu0 %v8672_v25 }
  0x89   : > { %7367 = vmatmul.mubr.bf16.gmra.mrb[12].mxu1 %v9399_v33 }
  0x8a   : > { %7783 = vmatmul.mubr.bf16.gmra.mrb[12].mxu0 %v3229_v37  ;;  %7383 = vmatpush3.bf16.msra.mxu1 %v8671_v24  ;;  %v9444_v24 = vld [vmem:[%s8957_s25 + $0x80] sm:$0xff]  ;;  %v9462_v37 = vld [vmem:[%s8957_s25 + $0x71] sm:$0xff] }
  0x8b   : > { %7799 = vmatpush3.bf16.msra.mxu0 %v8672_v25  ;;  %7384 = vmatprep.subr.bf16.mxu1 %v8673_v42  ;;  %v792_v51 = vpack.c.bf16 %v9444_v24, %v9196_v53  ;;  %v3427_v25 = vpack.c.bf16 %v6400_v0, %v9034_v45  ;;  %v8682_v53 = vld [vmem:[%s10587_s1 + $0x458] sm:$0xff]   ;;  %v793_v45 = vpack.c.bf16 %v9252_v26, %v9227_v2  ;;  %v9492_v26 = vld [vmem:[%s8957_s25 + $0xe1] sm:$0xff] }
  0x8c   : > { %7800 = vmatprep.subr.bf16.mxu0 %v8674_v12  ;;  %7386 = vmatprep.mubr.bf16.mxu1 %v789_v39  ;;  %v8684_v39 = vld [vmem:[%s10587_s1 + $0x460] sm:$0xff]   ;;  %v794_v2 = vpack.c.bf16 %v9268_v54, %v9257_v32  ;;  %v8687_v32 = vld [vmem:[%s10587_s1 + $0x130] sm:$0xff]   ;;  %v8689_v0 = vld [vmem:[%s10587_s1 + $0x138] sm:$0xff]  }
  0x8d   : > { %7802 = vmatprep.mubr.bf16.mxu0 %v9074_v63  ;;  %v6408_v54 = vld [vmem:[%s8957_s25 + $0x1d1] sm:$0xff] }
  0x8e   : > { %7385 = vmatpush3.bf16.msra.mxu1 %v8673_v42  ;;  %v8681_v42 = vld [vmem:[%s10587_s1 + $0x118] sm:$0xff]   ;;  %v5998_v63 = vld [vmem:[%s8957_s25 + $0xf0] sm:$0xff] }
  0x8f   : > { %7801 = vmatpush3.bf16.msra.mxu0 %v8674_v12  ;;  %7402 = vmatprep.subr.bf16.mxu1 %v8675_v56  ;;  %v8683_v12 = vld [vmem:[%s10587_s1 + $0x120] sm:$0xff]  }
  0x90   : > { %7818 = vmatprep.subr.bf16.mxu0 %v8676_v1 }
  0x91   : > { %7387 = vmatmul.mubr.bf16.vlgmr.msra.gmra.mrb[0].mxu1 %v790_v19  ;;  %v9495_v19 = vld [vmem:[%s8957_s25 + $0xf1] sm:$0xff] }
  0x92   : > { %7803 = vmatmul.mubr.bf16.vlgmr.msra.gmra.mrb[0].mxu0 %v9086_v3  ;;  %7403 = vmatpush3.bf16.msra.mxu1 %v8675_v56  ;;  %v9458_v3 = vld [vmem:[%s8957_s25 + $0x61] sm:$0xff] }
  0x93   : > { %7819 = vmatpush3.bf16.msra.mxu0 %v8676_v1  ;;  %7404 = vmatprep.subr.bf16.mxu1 %v8677_v60  ;;  %v9481_v56 = vld [vmem:[%s8957_s25 + $0xc1] sm:$0xff]  ;;  %v9484_v1 = vld [vmem:[%s8957_s25 + $0xd1] sm:$0xff] }
  0x94   : > { %7820 = vmatprep.subr.bf16.mxu0 %v8678_v20  ;;  %7390 = vmatprep.mubr.bf16.mxu1 %v791_v27  ;;  %v9527_v27 = vld [vmem:[%s8957_s25 + $0x101] sm:$0xff] }
  0x95   : > { %7806 = vmatprep.mubr.bf16.mxu0 %v9102_v8 }
  0x96   : > { %7405 = vmatpush3.bf16.msra.mxu1 %v8677_v60  ;;  %v8685_v60 = vld [vmem:[%s10587_s1 + $0x128] sm:$0xff]  }
  0x97   : > { %7821 = vmatpush3.bf16.msra.mxu0 %v8678_v20  ;;  %7406 = vmatprep.subr.bf16.mxu1 %v8679_v62  ;;  %v8727_v20 = vld [vmem:[%s10587_s1 + $0x1d0] sm:$0xff]  }
  0x98   : > { %7822 = vmatprep.subr.bf16.mxu0 %v8680_v28 }
  0x99   : > { %7391 = vmatmul.mubr.bf16.gmra.mrb[4].mxu1 %v792_v51  ;;  %v8693_v51 = vld [vmem:[%s10587_s1 + $0x148] sm:$0xff]  }
  0x9a   : > { %7807 = vmatmul.mubr.bf16.gmra.mrb[4].mxu0 %v3427_v25  ;;  %7407 = vmatpush3.bf16.msra.mxu1 %v8679_v62  ;;  %v9530_v62 = vld [vmem:[%s8957_s25 + $0x111] sm:$0xff]  ;;  %v8694_v25 = vld [vmem:[%s10587_s1 + $0x488] sm:$0xff]  }
  0x9b   : > { %7823 = vmatpush3.bf16.msra.mxu0 %v8680_v28  ;;  %7408 = vmatprep.subr.bf16.mxu1 %v8681_v42  ;;  %v992_v28 = vpack.c.bf16 %v9426_v22, %v9420_v11 }
  0x9c   : > { %7824 = vmatprep.subr.bf16.mxu0 %v8682_v53  ;;  %7394 = vmatprep.mubr.bf16.mxu1 %v793_v45  ;;  %v6440_v45 = vld [vmem:[%s8957_s25 + $0x132] sm:$0xff] }
  0x9d   : > { %7810 = vmatprep.mubr.bf16.mxu0 %v3428_v38  ;;  %v795_v38 = vpack.c.bf16 %v9286_v5, %v9271_v55  ;;  %v8688_v55 = vld [vmem:[%s10587_s1 + $0x470] sm:$0xff]   ;;  %v10597_v5 = vpack.c.bf16 %v9046_v49, %v9043_v48  ;;  %v8690_v49 = vld [vmem:[%s10587_s1 + $0x478] sm:$0xff]  }
  0x9e   : > { %7409 = vmatpush3.bf16.msra.mxu1 %v8681_v42  ;;  %v9560_v42 = vld [vmem:[%s8957_s25 + $0x81] sm:$0xff]  ;;  %v9842_v48 = vld [vmem:[%s8957_s25 + $0x172] sm:$0xff] }
  0x9f   : > { %7825 = vmatpush3.bf16.msra.mxu0 %v8682_v53  ;;  %7410 = vmatprep.subr.bf16.mxu1 %v8683_v12  ;;  %v8695_v53 = vld [vmem:[%s10587_s1 + $0x150] sm:$0xff]  }
  0xa0   : > { %7826 = vmatprep.subr.bf16.mxu0 %v8684_v39 }
  0xa1   : > { %7395 = vmatmul.mubr.bf16.gmra.mrb[8].mxu1 %v794_v2  ;;  %v3629_v2 = vpack.c.bf16 %v6440_v45, %v9207_v57  ;;  %v8699_v57 = vld [vmem:[%s10587_s1 + $0x160] sm:$0xff]   ;;  %v10599_v45 = vpack.c.bf16 %v9162_v30, %v9159_v29 }
  0xa2   : > { %7811 = vmatmul.mubr.bf16.gmra.mrb[8].mxu0 %v3429_v50  ;;  %7411 = vmatpush3.bf16.msra.mxu1 %v8683_v12  ;;  %v3431_v50 = vpack.c.bf16 %v6408_v54, %v9095_v6  ;;  %v991_v6 = vpack.c.bf16 %v9417_v14, %v5907_v47  ;;  %v8696_v12 = vld [vmem:[%s10587_s1 + $0x490] sm:$0xff]   ;;  %v10598_v47 = vpack.c.bf16 %v9126_v17, %v9123_v16  ;;  %v9655_v30 = vld [vmem:[%s8957_s25 + $0x102] sm:$0xff] }
  0xa3   : > { %7827 = vmatpush3.bf16.msra.mxu0 %v8684_v39  ;;  %7412 = vmatprep.subr.bf16.mxu1 %v8685_v60  ;;  %v5915_v39 = vld [vmem:[%s8957_s25 + $0xb1] sm:$0xff] }
  0xa4   : > { %7828 = vmatprep.subr.bf16.mxu0 %v8686_v36  ;;  %7398 = vmatprep.mubr.bf16.mxu1 %v795_v38  ;;  %v8700_v38 = vld [vmem:[%s10587_s1 + $0x4a0] sm:$0xff]   ;;  %v9591_v54 = vld [vmem:[%s8957_s25 + $0x1f0] sm:$0xff] }
  0xa5   : > { %7814 = vmatprep.mubr.bf16.mxu0 %v10597_v5  ;;  %v9597_v5 = vld [vmem:[%s8957_s25 + $0xe2] sm:$0xff]  ;;  %v5990_v16 = vld [vmem:[%s8957_s25 + $0x50] sm:$0xff] }
  0xa6   : > { %7413 = vmatpush3.bf16.msra.mxu1 %v8685_v60  ;;  %v8697_v60 = vld [vmem:[%s10587_s1 + $0x158] sm:$0xff]  }
  0xa7   : > { %7829 = vmatpush3.bf16.msra.mxu0 %v8686_v36  ;;  %7414 = vmatprep.subr.bf16.mxu1 %v8687_v32  ;;  %v995_v36 = vpack.c.bf16 %v9481_v56, %v5915_v39  ;;  %v6475_v39 = vld [vmem:[%s8957_s25 + $0x140] sm:$0xff] }
  0xa8   : > { %7830 = vmatprep.subr.bf16.mxu0 %v8688_v55 }
  0xa9   : > { %7399 = vmatmul.mubr.bf16.gmra.mrb[12].mxu1 %v796_v46  ;;  %v9600_v46 = vld [vmem:[%s8957_s25 + $0x200] sm:$0xff] }
  0xaa   : > { %7815 = vmatmul.mubr.bf16.gmra.mrb[12].mxu0 %v3431_v50  ;;  %7415 = vmatpush3.bf16.msra.mxu1 %v8687_v32  ;;  %v9588_v32 = vld [vmem:[%s8957_s25 + $0xc2] sm:$0xff]  ;;  %v996_v50 = vpack.c.bf16 %v9492_v26, %v9484_v1 }
  0xab   : > { %7831 = vmatpush3.bf16.msra.mxu0 %v8688_v55  ;;  %7416 = vmatprep.subr.bf16.mxu1 %v8689_v0  ;;  %v9594_v55 = vld [vmem:[%s8957_s25 + $0xd2] sm:$0xff] }
  0xac   : > { %7832 = vmatprep.subr.bf16.mxu0 %v8690_v49  ;;  %7418 = vmatprep.mubr.bf16.mxu1 %v991_v6  ;;  %v9614_v6 = vld [vmem:[%s8957_s25 + $0xf2] sm:$0xff] }
  0xad   : > { %7834 = vmatprep.mubr.bf16.mxu0 %v9367_v21  ;;  %v993_v21 = vpack.c.bf16 %v9458_v3, %v9429_v43 }
  0xae   : > { %7417 = vmatpush3.bf16.msra.mxu1 %v8689_v0  ;;  %v8701_v0 = vld [vmem:[%s10587_s1 + $0x168] sm:$0xff]  }
  0xaf   : > { %7833 = vmatpush3.bf16.msra.mxu0 %v8690_v49  ;;  %7434 = vmatprep.subr.bf16.mxu1 %v8691_v7  ;;  %v9611_v49 = vld [vmem:[%s8957_s25 + $0x210] sm:$0xff] }
  0xb0   : > { %7850 = vmatprep.subr.bf16.mxu0 %v8692_v61 }
  0xb1   : > { %7419 = vmatmul.mubr.bf16.vlgmr.msra.gmra.mrb[0].mxu1 %v992_v28  ;;  %v8702_v28 = vld [vmem:[%s10587_s1 + $0x4a8] sm:$0xff]  }
  0xb2   : > { %7835 = vmatmul.mubr.bf16.vlgmr.msra.gmra.mrb[0].mxu0 %v9381_v15  ;;  %7435 = vmatpush3.bf16.msra.mxu1 %v8691_v7  ;;  %v994_v15 = vpack.c.bf16 %v9560_v42, %v9462_v37  ;;  %v9617_v7 = vld [vmem:[%s8957_s25 + $0x220] sm:$0xff] }
  0xb3   : > { %7851 = vmatpush3.bf16.msra.mxu0 %v8692_v61  ;;  %7436 = vmatprep.subr.bf16.mxu1 %v8693_v51  ;;  %v5989_v61 = vld [vmem:[%s8957_s25 + $0x40] sm:$0xff] }
  0xb4   : > { %7852 = vmatprep.subr.bf16.mxu0 %v8694_v25  ;;  %7422 = vmatprep.mubr.bf16.mxu1 %v993_v21  ;;  %v9633_v21 = vld [vmem:[%s8957_s25 + $0x121] sm:$0xff] }
  0xb5   : > { %7838 = vmatprep.mubr.bf16.mxu0 %v9399_v33  ;;  %v8698_v33 = vld [vmem:[%s10587_s1 + $0x498] sm:$0xff]   ;;  %v998_v29 = vpack.c.bf16 %v9633_v21, %v9530_v62 }
  0xb6   : > { %7437 = vmatpush3.bf16.msra.mxu1 %v8693_v51  ;;  %v997_v51 = vpack.c.bf16 %v9527_v27, %v9495_v19 }
  0xb7   : > { %7853 = vmatpush3.bf16.msra.mxu0 %v8694_v25  ;;  %7438 = vmatprep.subr.bf16.mxu1 %v8695_v53  ;;  %v9809_v25 = vld [vmem:[%s8957_s25 + $0x241] sm:$0xff] }
  0xb8   : > { %7854 = vmatprep.subr.bf16.mxu0 %v8696_v12 }
  0xb9   : > { %7423 = vmatmul.mubr.bf16.gmra.mrb[4].mxu1 %v994_v15  ;;  %v8704_v15 = vld [vmem:[%s10587_s1 + $0x4b0] sm:$0xff]  }
  0xba   : > { %7839 = vmatmul.mubr.bf16.gmra.mrb[4].mxu0 %v3629_v2  ;;  %7439 = vmatpush3.bf16.msra.mxu1 %v8695_v53  ;;  %v8703_v53 = vld [vmem:[%s10587_s1 + $0x170] sm:$0xff]  }
  0xbb   : > { %7855 = vmatpush3.bf16.msra.mxu0 %v8696_v12  ;;  %7440 = vmatprep.subr.bf16.mxu1 %v8697_v60  ;;  %v6448_v12 = vld [vmem:[%s8957_s25 + $0x1d2] sm:$0xff] }
  0xbc   : > { %7856 = vmatprep.subr.bf16.mxu0 %v8698_v33  ;;  %7426 = vmatprep.mubr.bf16.mxu1 %v995_v36  ;;  %v9647_v2 = vld [vmem:[%s8957_s25 + $0x150] sm:$0xff] }
  0xbd   : > { %7842 = vmatprep.mubr.bf16.mxu0 %v10598_v47  ;;  %v9661_v36 = vld [vmem:[%s8957_s25 + $0x112] sm:$0xff] }
  0xbe   : > { %7441 = vmatpush3.bf16.msra.mxu1 %v8697_v60  ;;  %v10600_v60 = vpack.c.bf16 %v9183_v41, %v9180_v40  ;;  %v8705_v40 = vld [vmem:[%s10587_s1 + $0x178] sm:$0xff]  }
  0xbf   : > { %7857 = vmatpush3.bf16.msra.mxu0 %v8698_v33  ;;  %7442 = vmatprep.subr.bf16.mxu1 %v8699_v57  ;;  %v9658_v33 = vld [vmem:[%s8957_s25 + $0x230] sm:$0xff] }
  0xc0   : > { %7858 = vmatprep.subr.bf16.mxu0 %v8700_v38  ;;  %v9806_v41 = vld [vmem:[%s8957_s25 + $0x231] sm:$0xff] }
  0xc1   : > { %7427 = vmatmul.mubr.bf16.gmra.mrb[8].mxu1 %v996_v50  ;;  %v3831_v50 = vpack.c.bf16 %v9647_v2, %v6475_v39  ;;  %v8710_v39 = vld [vmem:[%s10587_s1 + $0x4c8] sm:$0xff]   ;;  %10608 = vst [vmem:[#allocation6_spill] sm:$0xff] %v9806_v41 }
  0xc2   : > { %7843 = vmatmul.mubr.bf16.gmra.mrb[8].mxu0 %v10599_v45  ;;  %7443 = vmatpush3.bf16.msra.mxu1 %v8699_v57  ;;  %v3633_v57 = vpack.c.bf16 %v6448_v12, %v9295_v23  ;;  %v8706_v23 = vld [vmem:[%s10587_s1 + $0x4b8] sm:$0xff]   ;;  %v9694_v12 = vld [vmem:[%s8957_s25 + $0x161] sm:$0xff] }
  0xc3   : > { %7859 = vmatpush3.bf16.msra.mxu0 %v8700_v38  ;;  %7444 = vmatprep.subr.bf16.mxu1 %v8701_v0  ;;  %v9665_v38 = vld [vmem:[%s8957_s25 + $0x240] sm:$0xff]  ;;  %v9688_v45 = vld [vmem:[%s8957_s25 + $0x151] sm:$0xff] }
  0xc4   : > { %7860 = vmatprep.subr.bf16.mxu0 %v8702_v28  ;;  %7430 = vmatprep.mubr.bf16.mxu1 %v997_v51  ;;  %v8708_v51 = vld [vmem:[%s10587_s1 + $0x4c0] sm:$0xff]  }
  0xc5   : > { %7846 = vmatprep.mubr.bf16.mxu0 %v10600_v60  ;;  %v8719_v60 = vld [vmem:[%s10587_s1 + $0x1b0] sm:$0xff]  }
  0xc6   : > { %7445 = vmatpush3.bf16.msra.mxu1 %v8701_v0  ;;  %v8707_v0 = vld [vmem:[%s10587_s1 + $0x180] sm:$0xff]  }
  0xc7   : > { %7861 = vmatpush3.bf16.msra.mxu0 %v8702_v28  ;;  %7446 = vmatprep.subr.bf16.mxu1 %v8703_v53  ;;  %v10601_v28 = vpack.c.bf16 %v9213_v59, %v9210_v58  ;;  %v9700_v58 = vld [vmem:[%s8957_s25 + $0x181] sm:$0xff]  ;;  %v8720_v59 = vld [vmem:[%s10587_s1 + $0x4f0] sm:$0xff]  }
  0xc8   : > { %7862 = vmatprep.subr.bf16.mxu0 %v8704_v15 }
  0xc9   : > { %7431 = vmatmul.mubr.bf16.gmra.mrb[12].mxu1 %v998_v29  ;;  %v10602_v29 = vpack.c.bf16 %v9239_v10, %v9236_v9  ;;  %v8712_v9 = vld [vmem:[%s10587_s1 + $0x4d0] sm:$0xff]  }
  0xca   : > { %7847 = vmatmul.mubr.bf16.gmra.mrb[12].mxu0 %v3633_v57  ;;  %7447 = vmatpush3.bf16.msra.mxu1 %v8703_v53  ;;  %v8709_v53 = vld [vmem:[%s10587_s1 + $0x188] sm:$0xff]  }
  0xcb   : > { %7863 = vmatpush3.bf16.msra.mxu0 %v8704_v15  ;;  %7448 = vmatprep.subr.bf16.mxu1 %v8705_v40  ;;  %v9697_v15 = vld [vmem:[%s8957_s25 + $0x171] sm:$0xff]  ;;  %v9714_v57 = vld [vmem:[%s8957_s25 + $0x82] sm:$0xff] }
  0xcc   : > { %7864 = vmatprep.subr.bf16.mxu0 %v8706_v23  ;;  %7450 = vmatprep.mubr.bf16.mxu1 %v10601_v28  ;;  %v1196_v10 = vpack.c.bf16 %v9714_v57, %v9329_v44  ;;  %v9734_v28 = vld [vmem:[%s8957_s25 + $0x1a1] sm:$0xff]  ;;  %v8714_v44 = vld [vmem:[%s10587_s1 + $0x4d8] sm:$0xff]  }
  0xcd   : > { %7866 = vmatprep.mubr.bf16.mxu0 %v3831_v50  ;;  %v6483_v50 = vld [vmem:[%s8957_s25 + $0x1e0] sm:$0xff] }
  0xce   : > { %7449 = vmatpush3.bf16.msra.mxu1 %v8705_v40  ;;  %v8711_v40 = vld [vmem:[%s10587_s1 + $0x190] sm:$0xff]  }
  0xcf   : > { %7865 = vmatpush3.bf16.msra.mxu0 %v8706_v23  ;;  %7466 = vmatprep.subr.bf16.mxu1 %v8707_v0  ;;  %v10603_v23 = vpack.c.bf16 %v9246_v18, %v9243_v13  ;;  %v8713_v13 = vld [vmem:[%s10587_s1 + $0x198] sm:$0xff]   ;;  %v5988_v18 = vld [vmem:[%s8957_s25 + $0x30] sm:$0xff] }
  0xd0   : > { %7882 = vmatprep.subr.bf16.mxu0 %v8708_v51 }
  0xd1   : > { %7451 = vmatmul.mubr.bf16.vlgmr.msra.gmra.mrb[0].mxu1 %v10602_v29  ;;  %v8717_v29 = vld [vmem:[%s10587_s1 + $0x1a8] sm:$0xff]  }
  0xd2   : > { %7867 = vmatmul.mubr.bf16.vlgmr.msra.gmra.mrb[0].mxu0 %v9354_v31  ;;  %7467 = vmatpush3.bf16.msra.mxu1 %v8707_v0  ;;  %v5955_v31 = vld [vmem:[%s8957_s25 + $0xb2] sm:$0xff] }
  0xd3   : > { %7883 = vmatpush3.bf16.msra.mxu0 %v8708_v51  ;;  %7468 = vmatprep.subr.bf16.mxu1 %v8709_v53  ;;  %v9731_v0 = vld [vmem:[%s8957_s25 + $0x191] sm:$0xff]  ;;  %v3835_v51 = vpack.c.bf16 %v9591_v54, %v6483_v50  ;;  %v9773_v50 = vld [vmem:[%s8957_s25 + $0x221] sm:$0xff] }
  0xd4   : > { %7884 = vmatprep.subr.bf16.mxu0 %v8710_v39  ;;  %7454 = vmatprep.mubr.bf16.mxu1 %v10603_v23  ;;  %v3836_v23 = vpack.c.bf16 %v9611_v49, %v9600_v46  ;;  %10607 = vst [vmem:[#allocation5_spill] sm:$0xff] %v9773_v50 }
  0xd5   : > { %7870 = vmatprep.mubr.bf16.mxu0 %v9369_v34  ;;  %v1197_v34 = vpack.c.bf16 %v9588_v32, %v5955_v31  ;;  %v9770_v31 = vld [vmem:[%s8957_s25 + $0x211] sm:$0xff] }
  0xd6   : > { %7469 = vmatpush3.bf16.msra.mxu1 %v8709_v53  ;;  %v8715_v53 = vld [vmem:[%s10587_s1 + $0x1a0] sm:$0xff]   ;;  %10606 = vst [vmem:[#allocation4_spill] sm:$0xff] %v9770_v31 }
  0xd7   : > { %7885 = vmatpush3.bf16.msra.mxu0 %v8710_v39  ;;  %7470 = vmatprep.subr.bf16.mxu1 %v8711_v40  ;;  %v8716_v39 = vld [vmem:[%s10587_s1 + $0x4e0] sm:$0xff]  }
  0xd8   : > { %7886 = vmatprep.subr.bf16.mxu0 %v8712_v9 }
  0xd9   : > { %7455 = vmatmul.mubr.bf16.gmra.mrb[4].mxu1 %v1196_v10  ;;  %v9767_v10 = vld [vmem:[%s8957_s25 + $0x201] sm:$0xff] }
  0xda   : > { %7871 = vmatmul.mubr.bf16.gmra.mrb[4].mxu0 %v9384_v52  ;;  %7471 = vmatpush3.bf16.msra.mxu1 %v8711_v40  ;;  %v1198_v52 = vpack.c.bf16 %v9597_v5, %v9594_v55  ;;  %v9759_v40 = vld [vmem:[%s8957_s25 + $0x1f1] sm:$0xff]  ;;  %10605 = vst [vmem:[#allocation3_spill] sm:$0xff] %v9767_v10 }
  0xdb   : > { %7887 = vmatpush3.bf16.msra.mxu0 %v8712_v9  ;;  %7472 = vmatprep.subr.bf16.mxu1 %v8713_v13  ;;  %10604 = vst [vmem:[#allocation2_spill] sm:$0xff] %v9759_v40  ;;  %v8718_v9 = vld [vmem:[%s10587_s1 + $0x4e8] sm:$0xff]  }
  0xdc   : > { %7888 = vmatprep.subr.bf16.mxu0 %v8714_v44  ;;  %7458 = vmatprep.mubr.bf16.mxu1 %v1197_v34  ;;  %v1199_v34 = vpack.c.bf16 %v9655_v30, %v9614_v6 }
  0xdd   : > { %7874 = vmatprep.mubr.bf16.mxu0 %v3835_v51  ;;  %v9780_v51 = vld [vmem:[%s8957_s25 + $0x122] sm:$0xff] }
  0xde   : > { %7473 = vmatpush3.bf16.msra.mxu1 %v8713_v13  ;;  %v9790_v13 = vld [vmem:[%s8957_s25 + $0x250] sm:$0xff]  ;;  %v1200_v47 = vpack.c.bf16 %v9780_v51, %v9661_v36 }
  0xdf   : > { %7889 = vmatpush3.bf16.msra.mxu0 %v8714_v44  ;;  %7474 = vmatprep.subr.bf16.mxu1 %v8715_v53  ;;  %v3837_v44 = vpack.c.bf16 %v9658_v33, %v9617_v7 }
  0xe0   : > { %7890 = vmatprep.subr.bf16.mxu0 %v8716_v39 }
  0xe1   : > { %7459 = vmatmul.mubr.bf16.gmra.mrb[8].mxu1 %v1198_v52  ;;  %v5987_v52 = vld [vmem:[%s8957_s25 + $0x20] sm:$0xff] }
  0xe2   : > { %7875 = vmatmul.mubr.bf16.gmra.mrb[8].mxu0 %v3836_v23  ;;  %7475 = vmatpush3.bf16.msra.mxu1 %v8715_v53  ;;  %v8721_v53 = vld [vmem:[%s10587_s1 + $0x1b8] sm:$0xff]   ;;  %v6515_v23 = vld [vmem:[%s8957_s25 + $0x141] sm:$0xff] }
  0xe3   : > { %7891 = vmatpush3.bf16.msra.mxu0 %v8716_v39  ;;  %7476 = vmatprep.subr.bf16.mxu1 %v8717_v29  ;;  %v3838_v39 = vpack.c.bf16 %v9790_v13, %v9665_v38  ;;  %v4033_v17 = vpack.c.bf16 %v9688_v45, %v6515_v23  ;;  %v8725_v23 = vld [vmem:[%s10587_s1 + $0x1c8] sm:$0xff]  }
  0xe4   : > { %7892 = vmatprep.subr.bf16.mxu0 %v8718_v9  ;;  %7462 = vmatprep.mubr.bf16.mxu1 %v1199_v34  ;;  %v8722_v34 = vld [vmem:[%s10587_s1 + $0x4f8] sm:$0xff]  }
  0xe5   : > { %7878 = vmatprep.mubr.bf16.mxu0 %v3837_v44  ;;  %v8724_v44 = vld [vmem:[%s10587_s1 + $0x500] sm:$0xff]  }
  0xe6   : > { %7477 = vmatpush3.bf16.msra.mxu1 %v8717_v29  ;;  %v1397_v29 = vpack.c.bf16 %v5988_v18, %v5987_v52  ;;  %v5991_v18 = vld [vmem:[%s8957_s25 + $0x60] sm:$0xff]  ;;  %v9828_v52 = vld [vmem:[%s8957_s25 + $0x152] sm:$0xff] }
  0xe7   : > { %7893 = vmatpush3.bf16.msra.mxu0 %v8718_v9  ;;  %7478 = vmatprep.subr.bf16.mxu1 %v8719_v60  ;;  %v8723_v9 = vld [vmem:[%s10587_s1 + $0x1c0] sm:$0xff]  }
  0xe8   : > { %7894 = vmatprep.subr.bf16.mxu0 %v8720_v59 }
  0xe9   : > { %7463 = vmatmul.mubr.bf16.gmra.mrb[12].mxu1 %v1200_v47  ;;  %v5992_v47 = vld [vmem:[%s8957_s25 + $0x70] sm:$0xff] }
  0xea   : > { %7879 = vmatmul.mubr.bf16.gmra.mrb[12].mxu0 %v3838_v39  ;;  %7479 = vmatpush3.bf16.msra.mxu1 %v8719_v60  ;;  %v1398_v60 = vpack.c.bf16 %v5990_v16, %v5989_v61  ;;  %v4034_v39 = vpack.c.bf16 %v9697_v15, %v9694_v12  ;;  %v9845_v16 = vld [vmem:[%s8957_s25 + $0x182] sm:$0xff]  ;;  %v1399_v61 = vpack.c.bf16 %v5992_v47, %v5991_v18  ;;  %v8728_v18 = vld [vmem:[%s10587_s1 + $0x510] sm:$0xff]  }
  0xeb   : > { %7895 = vmatpush3.bf16.msra.mxu0 %v8720_v59  ;;  %7480 = vmatprep.subr.bf16.mxu1 %v8721_v53  ;;  %v9834_v59 = vld [vmem:[%s8957_s25 + $0x162] sm:$0xff] }
  0xec   : > { %7896 = vmatprep.subr.bf16.mxu0 %v8722_v34  ;;  %7482 = vmatprep.mubr.bf16.mxu1 %v1397_v29  ;;  %v8726_v29 = vld [vmem:[%s10587_s1 + $0x508] sm:$0xff]   ;;  %v5995_v47 = vld [vmem:[%s8957_s25 + $0xc0] sm:$0xff] }
  0xed   : > { %7898 = vmatprep.mubr.bf16.mxu0 %v4033_v17  ;;  %v9858_v17 = vld [vmem:[%s8957_s25 + $0x1b1] sm:$0xff] }
  0xee   : > { %7481 = vmatpush3.bf16.msra.mxu1 %v8721_v53  ;;  %v5994_v53 = vld [vmem:[%s8957_s25 + $0x90] sm:$0xff]  ;;  %10609 = vst [vmem:[#allocation7_spill] sm:$0xff] %v9858_v17 }
  0xef   : > { %7897 = vmatpush3.bf16.msra.mxu0 %v8722_v34  ;;  %7498 = vmatprep.subr.bf16.mxu1 %v8723_v9  ;;  %v4035_v34 = vpack.c.bf16 %v9731_v0, %v9700_v58  ;;  %v1400_v8 = vpack.c.bf16 %v5994_v53, %v9444_v24  ;;  %v8730_v24 = vld [vmem:[%s10587_s1 + $0x518] sm:$0xff]   ;;  %v5997_v53 = vld [vmem:[%s8957_s25 + $0xe0] sm:$0xff] }
  0xf0   : > { %7914 = vmatprep.subr.bf16.mxu0 %v8724_v44 }
  0xf1   : > { %7483 = vmatmul.mubr.bf16.vlgmr.msra.gmra.mrb[0].mxu1 %v1398_v60  ;;  %v5996_v60 = vld [vmem:[%s8957_s25 + $0xd0] sm:$0xff] }
  0xf2   : > { %7899 = vmatmul.mubr.bf16.vlgmr.msra.gmra.mrb[0].mxu0 %v4034_v39  ;;  %7499 = vmatpush3.bf16.msra.mxu1 %v8723_v9  ;;  %v9868_v39 = vld [vmem:[%s8957_s25 + $0x192] sm:$0xff]  ;;  %v9873_v9 = vld [vmem:[%s8957_s25 + $0x1a2] sm:$0xff] }
  0xf3   : > { %7915 = vmatpush3.bf16.msra.mxu0 %v8724_v44  ;;  %7500 = vmatprep.subr.bf16.mxu1 %v8725_v23  ;;  %v4036_v44 = vpack.c.bf16 %v9858_v17, %v9734_v28  ;;  %v8737_v17 = vld [vmem:[%s10587_s1 + $0x1f8] sm:$0xff]  }
  0xf4   : > { %7916 = vmatprep.subr.bf16.mxu0 %v8726_v29  ;;  %7486 = vmatprep.mubr.bf16.mxu1 %v1399_v61  ;;  %v8729_v61 = vld [vmem:[%s10587_s1 + $0x1d8] sm:$0xff]  }
  0xf5   : > { %7902 = vmatprep.mubr.bf16.mxu0 %v4035_v34  ;;  %v8731_v34 = vld [vmem:[%s10587_s1 + $0x1e0] sm:$0xff]  }
  0xf6   : > { %7501 = vmatpush3.bf16.msra.mxu1 %v8725_v23  ;;  %v9883_v23 = vpack.c.bf16 %v5996_v60, %v5995_v47  ;;  %v6000_v47 = vld [vmem:[%s8957_s25 + $0x110] sm:$0xff] }
  0xf7   : > { %7917 = vmatpush3.bf16.msra.mxu0 %v8726_v29  ;;  %7502 = vmatprep.subr.bf16.mxu1 %v8727_v20  ;;  %v4037_v29 = vpack.c.bf16 %v9759_v40, %v6523_v35  ;;  %v9895_v35 = vpack.c.bf16 %v5998_v63, %v5997_v53  ;;  %v9903_v60 = vld [vmem:[%s8957_s25 + $0x1f2] sm:$0xff]  ;;  %v9914_v63 = vld [vmem:[%s8957_s25 + $0x222] sm:$0xff] }
  0xf8   : > { %7918 = vmatprep.subr.bf16.mxu0 %v8728_v18  ;;  %v9911_v40 = vld [vmem:[%s8957_s25 + $0x212] sm:$0xff] }
  0xf9   : > { %7487 = vmatmul.mubr.bf16.gmra.mrb[4].mxu1 %v1400_v8  ;;  %v8732_v8 = vld [vmem:[%s10587_s1 + $0x520] sm:$0xff]  }
  0xfa   : > { %7903 = vmatmul.mubr.bf16.gmra.mrb[4].mxu0 %v4036_v44  ;;  %7503 = vmatpush3.bf16.msra.mxu1 %v8727_v20  ;;  %v8733_v20 = vld [vmem:[%s10587_s1 + $0x1e8] sm:$0xff]   ;;  %v4038_v44 = vpack.c.bf16 %v9770_v31, %v9767_v10  ;;  %v6002_v10 = vld [vmem:[%s8957_s25 + $0x130] sm:$0xff] }
  0xfb   : > { %7919 = vmatpush3.bf16.msra.mxu0 %v8728_v18  ;;  %7504 = vmatprep.subr.bf16.mxu1 %v8729_v61  ;;  %v5999_v18 = vld [vmem:[%s8957_s25 + $0x100] sm:$0xff]  ;;  %v8736_v31 = vld [vmem:[%s10587_s1 + $0x530] sm:$0xff]  }
  0xfc   : > { %7920 = vmatprep.subr.bf16.mxu0 %v8730_v24  ;;  %7490 = vmatprep.mubr.bf16.mxu1 %v9883_v23  ;;  %v9921_v53 = vpack.c.bf16 %v6000_v47, %v5999_v18  ;;  %v8735_v18 = vld [vmem:[%s10587_s1 + $0x1f0] sm:$0xff]  }
  0xfd   : > { %7906 = vmatprep.mubr.bf16.mxu0 %v4037_v29  ;;  %v6001_v29 = vld [vmem:[%s8957_s25 + $0x120] sm:$0xff]  ;;  %v9934_v47 = vld [vmem:[%s8957_s25 + $0x251] sm:$0xff] }
  0xfe   : > { %7505 = vmatpush3.bf16.msra.mxu1 %v8729_v61  ;;  %v8734_v61 = vld [vmem:[%s10587_s1 + $0x528] sm:$0xff]   ;;  %10610 = vst [vmem:[#allocation8_spill] sm:$0xff] %v9921_v53 }
  0xff   : > { %7921 = vmatpush3.bf16.msra.mxu0 %v8730_v24  ;;  %7506 = vmatprep.subr.bf16.mxu1 %v8731_v34  ;;  %v4039_v24 = vpack.c.bf16 %v9806_v41, %v9773_v50  ;;  %v9942_v41 = vld [vmem:[%s8957_s25 + $0x232] sm:$0xff]  ;;  %v9947_v50 = vld [vmem:[%s8957_s25 + $0x242] sm:$0xff] }
 0x100   : > { %7922 = vmatprep.subr.bf16.mxu0 %v8732_v8 }
 0x101   : > { %7491 = vmatmul.mubr.bf16.gmra.mrb[8].mxu1 %v9895_v35 }
 0x102   : > { %7907 = vmatmul.mubr.bf16.gmra.mrb[8].mxu0 %v4038_v44  ;;  %7507 = vmatpush3.bf16.msra.mxu1 %v8731_v34  ;;  %v6555_v44 = vld [vmem:[%s8957_s25 + $0x142] sm:$0xff]  ;;  %v1404_v34 = vpack.c.bf16 %v6002_v10, %v6001_v29  ;;  %v8738_v10 = vld [vmem:[%s10587_s1 + $0x538] sm:$0xff]  }
 0x103   : > { %7923 = vmatpush3.bf16.msra.mxu0 %v8732_v8  ;;  %7508 = vmatprep.subr.bf16.mxu1 %v8733_v20  ;;  %v4040_v8 = vpack.c.bf16 %v9934_v47, %v9809_v25  ;;  %v8739_v29 = vld [vmem:[%s10587_s1 + $0x200] sm:$0xff]  }
 0x104   : > { %7924 = vmatprep.subr.bf16.mxu0 %v8734_v61  ;;  %7494 = vmatprep.mubr.bf16.mxu1 %v9921_v53  ;;  %v4849_v53 = vpack.c.bf16 %v9947_v50, %v9942_v41 }
 0x105   : > { %7910 = vmatprep.mubr.bf16.mxu0 %v4039_v24  ;;  %v8740_v24 = vld [vmem:[%s10587_s1 + $0x540] sm:$0xff]  }
 0x106   : > { %7509 = vmatpush3.bf16.msra.mxu1 %v8733_v20  ;;  %v4235_v20 = vpack.c.bf16 %v9828_v52, %v6555_v44  ;;  %v6034_v44 = vld [vmem:[%s8957_s25 + $0x91] sm:$0xff] }
 0x107   : > { %7925 = vmatpush3.bf16.msra.mxu0 %v8734_v61  ;;  %7510 = vmatprep.subr.bf16.mxu1 %v8735_v18  ;;  %v10611_v61 = vpack.c.bf16 %v9420_v11, %v9417_v14  ;;  %v8742_v14 = vld [vmem:[%s10587_s1 + $0x548] sm:$0xff]   ;;  %v10612_v11 = vpack.c.bf16 %v9429_v43, %v9426_v22  ;;  %v10613_v22 = vpack.c.bf16 %v9462_v37, %v9458_v3  ;;  %v8744_v43 = vld [vmem:[%s10587_s1 + $0x550] sm:$0xff]   ;;  %v8746_v3 = vld [vmem:[%s10587_s1 + $0x558] sm:$0xff]  }
 0x108   : > { %7926 = vmatprep.subr.bf16.mxu0 %v8736_v31 }
 0x109   : > { %7495 = vmatmul.mubr.bf16.gmra.mrb[12].mxu1 %v1404_v34  ;;  %v8743_v34 = vld [vmem:[%s10587_s1 + $0x210] sm:$0xff]  }
 0x10a   : > { %7911 = vmatmul.mubr.bf16.gmra.mrb[12].mxu0 %v4040_v8  ;;  %7511 = vmatpush3.bf16.msra.mxu1 %v8735_v18  ;;  %v8741_v18 = vld [vmem:[%s10587_s1 + $0x208] sm:$0xff]   ;;  %v9985_v8 = vld [vmem:[%s8957_s25 + $0x1b2] sm:$0xff] }
 0x10b   : > { %7927 = vmatpush3.bf16.msra.mxu0 %v8736_v31  ;;  %7512 = vmatprep.subr.bf16.mxu1 %v8737_v17  ;;  %v4236_v31 = vpack.c.bf16 %v9842_v48, %v9834_v59 }
 0x10c   : > { %7928 = vmatprep.subr.bf16.mxu0 %v8738_v10  ;;  %7514 = vmatprep.mubr.bf16.mxu1 %v10611_v61  ;;  %v8745_v61 = vld [vmem:[%s10587_s1 + $0x218] sm:$0xff]  }
 0x10d   : > { %7930 = vmatprep.mubr.bf16.mxu0 %v4235_v20  ;;  %v4238_v20 = vpack.c.bf16 %v9985_v8, %v9873_v9 }
 0x10e   : > { %7513 = vmatpush3.bf16.msra.mxu1 %v8737_v17  ;;  %v4237_v17 = vpack.c.bf16 %v9868_v39, %v9845_v16 }
 0x10f   : > { %7929 = vmatpush3.bf16.msra.mxu0 %v8738_v10  ;;  %7530 = vmatprep.subr.bf16.mxu1 %v8739_v29  ;;  %v1602_v10 = vpack.c.bf16 %v6034_v44, %v9560_v42  ;;  %v8747_v42 = vld [vmem:[%s10587_s1 + $0x220] sm:$0xff]   ;;  %v8751_v44 = vld [vmem:[%s10587_s1 + $0x230] sm:$0xff]  }
 0x110   : > { %7946 = vmatprep.subr.bf16.mxu0 %v8740_v24 }
 0x111   : > { %7515 = vmatmul.mubr.bf16.vlgmr.msra.gmra.mrb[0].mxu1 %v10612_v11  ;;  %v4241_v11 = vpack.c.bf16 %v9942_v41, %v9914_v63  ;;  %v8802_v41 = vld [vmem:[%s10587_s1 + $0x638] sm:$0xff]  }
 0x112   : > { %7931 = vmatmul.mubr.bf16.vlgmr.msra.gmra.mrb[0].mxu0 %v4236_v31  ;;  %7531 = vmatpush3.bf16.msra.mxu1 %v8739_v29  ;;  %v6563_v29 = vld [vmem:[%s8957_s25 + $0x1e2] sm:$0xff] }
 0x113   : > { %7947 = vmatpush3.bf16.msra.mxu0 %v8740_v24  ;;  %7532 = vmatprep.subr.bf16.mxu1 %v8741_v18  ;;  %v4239_v37 = vpack.c.bf16 %v9903_v60, %v6563_v29  ;;  %v10614_v24 = vpack.c.bf16 %v9484_v1, %v9481_v56  ;;  %v8748_v31 = vld [vmem:[%s10587_s1 + $0x560] sm:$0xff]   ;;  %v8750_v56 = vld [vmem:[%s10587_s1 + $0x568] sm:$0xff]   ;;  %v10615_v1 = vpack.c.bf16 %v9495_v19, %v9492_v26 }
 0x114   : > { %7948 = vmatprep.subr.bf16.mxu0 %v8742_v14  ;;  %7518 = vmatprep.mubr.bf16.mxu1 %v10613_v22  ;;  %v8752_v22 = vld [vmem:[%s10587_s1 + $0x570] sm:$0xff]   ;;  %v6067_v26 = vld [vmem:[%s8957_s25 + $0x22] sm:$0xff]  ;;  %v10616_v19 = vpack.c.bf16 %v9530_v62, %v9527_v27  ;;  %v8754_v27 = vld [vmem:[%s10587_s1 + $0x578] sm:$0xff]  }
 0x115   : > { %7934 = vmatprep.mubr.bf16.mxu0 %v4237_v17  ;;  %v6042_v17 = vld [vmem:[%s8957_s25 + $0x131] sm:$0xff]  ;;  %v10045_v29 = vld [vmem:[%s8957_s25 + $0x160] sm:$0xff] }
 0x116   : > { %7533 = vmatpush3.bf16.msra.mxu1 %v8741_v18  ;;  %v4240_v18 = vpack.c.bf16 %v9911_v40, %v9908_v4 }
 0x117   : > { %7949 = vmatpush3.bf16.msra.mxu0 %v8742_v14  ;;  %7534 = vmatprep.subr.bf16.mxu1 %v8743_v34  ;;  %v8749_v14 = vld [vmem:[%s10587_s1 + $0x228] sm:$0xff]  }
 0x118   : > { %7950 = vmatprep.subr.bf16.mxu0 %v8744_v43 }
 0x119   : > { %7519 = vmatmul.mubr.bf16.gmra.mrb[4].mxu1 %v1602_v10  ;;  %v1606_v10 = vpack.c.bf16 %v6042_v17, %v9633_v21  ;;  %v6069_v21 = vld [vmem:[%s8957_s25 + $0x42] sm:$0xff] }
 0x11a   : > { %7935 = vmatmul.mubr.bf16.gmra.mrb[4].mxu0 %v4238_v20  ;;  %7535 = vmatpush3.bf16.msra.mxu1 %v8743_v34  ;;  %v10031_v34 = vld [vmem:[%s8957_s25 + $0x252] sm:$0xff]  ;;  %v10077_v17 = vld [vmem:[%s8957_s25 + $0x1a0] sm:$0xff] }
 0x11b   : > { %7951 = vmatpush3.bf16.msra.mxu0 %v8744_v43  ;;  %7536 = vmatprep.subr.bf16.mxu1 %v8745_v61  ;;  %v6068_v43 = vld [vmem:[%s8957_s25 + $0x32] sm:$0xff]  ;;  %v4242_v20 = vpack.c.bf16 %v10031_v34, %v9947_v50 }
 0x11c   : > { %7952 = vmatprep.subr.bf16.mxu0 %v8746_v3  ;;  %7522 = vmatprep.mubr.bf16.mxu1 %v10614_v24  ;;  %v1801_v62 = vpack.c.bf16 %v6068_v43, %v6067_v26  ;;  %v10061_v24 = vld [vmem:[%s8957_s25 + $0x170] sm:$0xff] }
 0x11d   : > { %7938 = vmatprep.mubr.bf16.mxu0 %v4239_v37  ;;  %v4439_v37 = vpack.c.bf16 %v10045_v29, %v9647_v2  ;;  %v10072_v2 = vld [vmem:[%s8957_s25 + $0x190] sm:$0xff] }
 0x11e   : > { %7537 = vmatpush3.bf16.msra.mxu1 %v8745_v61  ;;  %v8753_v61 = vld [vmem:[%s10587_s1 + $0x238] sm:$0xff]  }
 0x11f   : > { %7953 = vmatpush3.bf16.msra.mxu0 %v8746_v3  ;;  %7538 = vmatprep.subr.bf16.mxu1 %v8747_v42  ;;  %v6070_v3 = vld [vmem:[%s8957_s25 + $0x52] sm:$0xff] }
 0x120   : > { %7954 = vmatprep.subr.bf16.mxu0 %v8748_v31  ;;  %v6074_v43 = vld [vmem:[%s8957_s25 + $0x92] sm:$0xff] }
 0x121   : > { %7523 = vmatmul.mubr.bf16.gmra.mrb[8].mxu1 %v10615_v1  ;;  %v1802_v1 = vpack.c.bf16 %v6070_v3, %v6069_v21  ;;  %v8761_v3 = vld [vmem:[%s10587_s1 + $0x258] sm:$0xff]  }
 0x122   : > { %7939 = vmatmul.mubr.bf16.gmra.mrb[8].mxu0 %v4240_v18  ;;  %7539 = vmatpush3.bf16.msra.mxu1 %v8747_v42  ;;  %v8755_v42 = vld [vmem:[%s10587_s1 + $0x240] sm:$0xff]  }
 0x123   : > { %7955 = vmatpush3.bf16.msra.mxu0 %v8748_v31  ;;  %7540 = vmatprep.subr.bf16.mxu1 %v8749_v14  ;;  %v10064_v31 = vld [vmem:[%s8957_s25 + $0x180] sm:$0xff] }
 0x124   : > { %7956 = vmatprep.subr.bf16.mxu0 %v8750_v56  ;;  %7526 = vmatprep.mubr.bf16.mxu1 %v10616_v19  ;;  %v8756_v18 = vld [vmem:[%s10587_s1 + $0x580] sm:$0xff]   ;;  %v4441_v19 = vpack.c.bf16 %v10077_v17, %v10072_v2 }
 0x125   : > { %7942 = vmatprep.mubr.bf16.mxu0 %v4241_v11  ;;  %v4440_v11 = vpack.c.bf16 %v10064_v31, %v10061_v24 }
 0x126   : > { %7541 = vmatpush3.bf16.msra.mxu1 %v8749_v14  ;;  %v6071_v14 = vld [vmem:[%s8957_s25 + $0x62] sm:$0xff] }
 0x127   : > { %7957 = vmatpush3.bf16.msra.mxu0 %v8750_v56  ;;  %7542 = vmatprep.subr.bf16.mxu1 %v8751_v44  ;;  %v6072_v56 = vld [vmem:[%s8957_s25 + $0x72] sm:$0xff] }
 0x128   : > { %7958 = vmatprep.subr.bf16.mxu0 %v8752_v22  ;;  %v1803_v26 = vpack.c.bf16 %v6072_v56, %v6071_v14  ;;  %v10618_v14 = vpack.c.bf16 %v9600_v46, %v9591_v54  ;;  %v8765_v56 = vld [vmem:[%s10587_s1 + $0x268] sm:$0xff]   ;;  %v10620_v54 = vpack.c.bf16 %v9617_v7, %v9611_v49  ;;  %v6082_v46 = vld [vmem:[%s8957_s25 + $0x132] sm:$0xff]  ;;  %v10622_v49 = vpack.c.bf16 %v9665_v38, %v9658_v33  ;;  %v6109_v7 = vld [vmem:[%s8957_s25 + $0xa0] sm:$0xff] }
 0x129   : > { %7527 = vmatmul.mubr.bf16.gmra.mrb[12].mxu1 %v1606_v10  ;;  %v8759_v10 = vld [vmem:[%s10587_s1 + $0x250] sm:$0xff]   ;;  %v8770_v33 = vld [vmem:[%s10587_s1 + $0x5b8] sm:$0xff]   ;;  %v8771_v38 = vld [vmem:[%s10587_s1 + $0x280] sm:$0xff]  }
 0x12a   : > { %7943 = vmatmul.mubr.bf16.gmra.mrb[12].mxu0 %v4242_v20  ;;  %7543 = vmatpush3.bf16.msra.mxu1 %v8751_v44  ;;  %v8757_v44 = vld [vmem:[%s10587_s1 + $0x248] sm:$0xff]   ;;  %v10092_v20 = vld [vmem:[%s8957_s25 + $0x1b0] sm:$0xff] }
 0x12b   : > { %7959 = vmatpush3.bf16.msra.mxu0 %v8752_v22  ;;  %7544 = vmatprep.subr.bf16.mxu1 %v8753_v61  ;;  %v8758_v22 = vld [vmem:[%s10587_s1 + $0x588] sm:$0xff]  }
 0x12c   : > { %7960 = vmatprep.subr.bf16.mxu0 %v8754_v27  ;;  %7546 = vmatprep.mubr.bf16.mxu1 %v1801_v62  ;;  %v1804_v62 = vpack.c.bf16 %v6074_v43, %v9714_v57  ;;  %v8763_v57 = vld [vmem:[%s10587_s1 + $0x260] sm:$0xff]   ;;  %v8774_v43 = vld [vmem:[%s10587_s1 + $0x5c8] sm:$0xff]  }
 0x12d   : > { %7962 = vmatprep.mubr.bf16.mxu0 %v4439_v37  ;;  %v8762_v37 = vld [vmem:[%s10587_s1 + $0x598] sm:$0xff]  }
 0x12e   : > { %7545 = vmatpush3.bf16.msra.mxu1 %v8753_v61  ;;  %v10095_v61 = vld [vmem:[%s8957_s25 + $0x1c0] sm:$0xff] }
 0x12f   : > { %7961 = vmatpush3.bf16.msra.mxu0 %v8754_v27  ;;  %7562 = vmatprep.subr.bf16.mxu1 %v8755_v42  ;;  %v8760_v27 = vld [vmem:[%s10587_s1 + $0x590] sm:$0xff]   ;;  %v4442_v21 = vpack.c.bf16 %v10095_v61, %v10092_v20 }
 0x130   : > { %7978 = vmatprep.subr.bf16.mxu0 %v8756_v18 }
 0x131   : > { %7547 = vmatmul.mubr.bf16.vlgmr.msra.gmra.mrb[0].mxu1 %v1802_v1  ;;  %v8767_v1 = vld [vmem:[%s10587_s1 + $0x270] sm:$0xff]  }
 0x132   : > { %7963 = vmatmul.mubr.bf16.vlgmr.msra.gmra.mrb[0].mxu0 %v4440_v11  ;;  %7563 = vmatpush3.bf16.msra.mxu1 %v8755_v42  ;;  %v10617_v42 = vpack.c.bf16 %v9594_v55, %v9588_v32  ;;  %v8766_v32 = vld [vmem:[%s10587_s1 + $0x5a8] sm:$0xff]   ;;  %v10619_v55 = vpack.c.bf16 %v9614_v6, %v9597_v5  ;;  %v10138_v11 = vld [vmem:[%s8957_s25 + $0x260] sm:$0xff]  ;;  %v8768_v5 = vld [vmem:[%s10587_s1 + $0x5b0] sm:$0xff]   ;;  %v1808_v6 = vpack.c.bf16 %v6082_v46, %v9780_v51 }
 0x133   : > { %7979 = vmatpush3.bf16.msra.mxu0 %v8756_v18  ;;  %7564 = vmatprep.subr.bf16.mxu1 %v8757_v44  ;;  %v8764_v18 = vld [vmem:[%s10587_s1 + $0x5a0] sm:$0xff]   ;;  %v10623_v51 = vpack.c.bf16 %v9694_v12, %v9688_v45  ;;  %v10624_v45 = vpack.c.bf16 %v9700_v58, %v9697_v15  ;;  %v8775_v12 = vld [vmem:[%s10587_s1 + $0x290] sm:$0xff]   ;;  %v10625_v15 = vpack.c.bf16 %v9734_v28, %v9731_v0 }
 0x134   : > { %7980 = vmatprep.subr.bf16.mxu0 %v8758_v22  ;;  %7550 = vmatprep.mubr.bf16.mxu1 %v1803_v26  ;;  %v4446_v26 = vpack.c.bf16 %v10138_v11, %v9790_v13  ;;  %v8772_v13 = vld [vmem:[%s10587_s1 + $0x5c0] sm:$0xff]   ;;  %v10627_v28 = vld [vmem:[#allocation8_spill] sm:$0xff] }
 0x135   : > { %7966 = vmatprep.mubr.bf16.mxu0 %v4441_v19  ;;  %v8773_v19 = vld [vmem:[%s10587_s1 + $0x288] sm:$0xff]   ;;  %v6117_v58 = vld [vmem:[%s8957_s25 + $0x140] sm:$0xff] }
 0x136   : > { %7565 = vmatpush3.bf16.msra.mxu1 %v8757_v44  ;;  %v10621_v44 = vpack.c.bf16 %v9661_v36, %v9655_v30  ;;  %v8769_v30 = vld [vmem:[%s10587_s1 + $0x278] sm:$0xff]  }
 0x137   : > { %7981 = vmatpush3.bf16.msra.mxu0 %v8758_v22  ;;  %7566 = vmatprep.subr.bf16.mxu1 %v8759_v10  ;;  %v10152_v22 = vld [vmem:[%s8957_s25 + $0xb0] sm:$0xff] }
 0x138   : > { %7982 = vmatprep.subr.bf16.mxu0 %v8760_v27  ;;  %v2006_v36 = vpack.c.bf16 %v10152_v22, %v6109_v7  ;;  %v6150_v7 = vld [vmem:[%s8957_s25 + $0xb1] sm:$0xff] }
 0x139   : > { %7551 = vmatmul.mubr.bf16.gmra.mrb[4].mxu1 %v1804_v62  ;;  %v10626_v62 = vld [vmem:[#allocation7_spill] sm:$0xff] }
 0x13a   : > { %7967 = vmatmul.mubr.bf16.gmra.mrb[4].mxu0 %v4442_v21  ;;  %7567 = vmatpush3.bf16.msra.mxu1 %v8759_v10  ;;  %v10186_v10 = vld [vmem:[%s8957_s25 + $0x1c1] sm:$0xff] }
 0x13b   : > { %7983 = vmatpush3.bf16.msra.mxu0 %v8760_v27  ;;  %7568 = vmatprep.subr.bf16.mxu1 %v8761_v3  ;;  %v10197_v27 = vld [vmem:[%s8957_s25 + $0x150] sm:$0xff]  ;;  %v4644_v21 = vpack.c.bf16 %v10186_v10, %v10626_v62 }
 0x13c   : > { %7984 = vmatprep.subr.bf16.mxu0 %v8762_v37  ;;  %7554 = vmatprep.mubr.bf16.mxu1 %v10617_v42  ;;  %v2010_v0 = vpack.c.bf16 %v10197_v27, %v6117_v58  ;;  %v10628_v42 = vld [vmem:[#allocation3_spill] sm:$0xff]  ;;  %v8792_v62 = vld [vmem:[%s10587_s1 + $0x610] sm:$0xff]  }
 0x13d   : > { %7970 = vmatprep.mubr.bf16.mxu0 %v10618_v14  ;;  %v10292_v58 = vld [vmem:[%s8957_s25 + $0x1c2] sm:$0xff] }
 0x13e   : > { %7569 = vmatpush3.bf16.msra.mxu1 %v8761_v3  ;;  %v8778_v3 = vld [vmem:[%s10587_s1 + $0x5d8] sm:$0xff]  }
 0x13f   : > { %7985 = vmatpush3.bf16.msra.mxu0 %v8762_v37  ;;  %7570 = vmatprep.subr.bf16.mxu1 %v8763_v57  ;;  %v8779_v37 = vld [vmem:[%s10587_s1 + $0x2a0] sm:$0xff]  }
 0x140   : > { %7986 = vmatprep.subr.bf16.mxu0 %v8764_v18 }
 0x141   : > { %7555 = vmatmul.mubr.bf16.gmra.mrb[8].mxu1 %v10619_v55  ;;  %v8782_v55 = vld [vmem:[%s10587_s1 + $0x5e8] sm:$0xff]  }
 0x142   : > { %7971 = vmatmul.mubr.bf16.gmra.mrb[8].mxu0 %v10620_v54  ;;  %7571 = vmatpush3.bf16.msra.mxu1 %v8763_v57  ;;  %v8780_v57 = vld [vmem:[%s10587_s1 + $0x5e0] sm:$0xff]   ;;  %v10230_v54 = vpack.c.bf16 %v10072_v2, %v10064_v31  ;;  %v8784_v31 = vld [vmem:[%s10587_s1 + $0x5f0] sm:$0xff]  }
 0x143   : > { %7987 = vmatpush3.bf16.msra.mxu0 %v8764_v18  ;;  %7572 = vmatprep.subr.bf16.mxu1 %v8765_v56  ;;  %v10629_v18 = vld [vmem:[#allocation2_spill] sm:$0xff] }
 0x144   : > { %7988 = vmatprep.subr.bf16.mxu0 %v8766_v32  ;;  %7558 = vmatprep.mubr.bf16.mxu1 %v10621_v44  ;;  %v10630_v14 = vpack.c.bf16 %v10628_v42, %v10629_v18  ;;  %v10240_v44 = vld [vmem:[%s8957_s25 + $0x261] sm:$0xff]  ;;  %v10639_v42 = vpack.c.bf16 %v9908_v4, %v9903_v60  ;;  %v10640_v60 = vpack.c.bf16 %v9914_v63, %v9911_v40 }
 0x145   : > { %7974 = vmatprep.mubr.bf16.mxu0 %v10622_v49  ;;  %v10634_v2 = vld [vmem:[#allocation6_spill] sm:$0xff]  ;;  %v10251_v49 = vpack.c.bf16 %v10092_v20, %v10077_v17 }
 0x146   : > { %7573 = vmatpush3.bf16.msra.mxu1 %v8765_v56  ;;  %v10220_v56 = vpack.c.bf16 %v10061_v24, %v10045_v29  ;;  %v10631_v29 = vld [vmem:[#allocation5_spill] sm:$0xff]  ;;  %v10632_v24 = vld [vmem:[#allocation4_spill] sm:$0xff]  ;;  %v6151_v20 = vld [vmem:[%s8957_s25 + $0xc1] sm:$0xff] }
 0x147   : > { %7989 = vmatpush3.bf16.msra.mxu0 %v8766_v32  ;;  %7574 = vmatprep.subr.bf16.mxu1 %v8767_v1  ;;  %v8781_v32 = vld [vmem:[%s10587_s1 + $0x2a8] sm:$0xff]   ;;  %v10633_v46 = vpack.c.bf16 %v10631_v29, %v10632_v24 }
 0x148   : > { %7990 = vmatprep.subr.bf16.mxu0 %v8768_v5  ;;  %v8798_v29 = vld [vmem:[%s10587_s1 + $0x628] sm:$0xff]  }
 0x149   : > { %7559 = vmatmul.mubr.bf16.gmra.mrb[12].mxu1 %v1808_v6  ;;  %v6149_v6 = vld [vmem:[%s8957_s25 + $0xa1] sm:$0xff] }
 0x14a   : > { %7975 = vmatmul.mubr.bf16.gmra.mrb[12].mxu0 %v4446_v26  ;;  %7575 = vmatpush3.bf16.msra.mxu1 %v8767_v1  ;;  %v8783_v1 = vld [vmem:[%s10587_s1 + $0x2b0] sm:$0xff]   ;;  %v4648_v26 = vpack.c.bf16 %v10240_v44, %v9934_v47  ;;  %v2208_v17 = vpack.c.bf16 %v6150_v7, %v6149_v6  ;;  %v6163_v24 = vld [vmem:[%s8957_s25 + $0x1a1] sm:$0xff]  ;;  %v8801_v7 = vld [vmem:[%s10587_s1 + $0x2f8] sm:$0xff]  }
 0x14b   : > { %7991 = vmatpush3.bf16.msra.mxu0 %v8768_v5  ;;  %7576 = vmatprep.subr.bf16.mxu1 %v8769_v30  ;;  %v10635_v5 = vpack.c.bf16 %v9809_v25, %v10634_v2  ;;  %v8786_v25 = vld [vmem:[%s10587_s1 + $0x5f8] sm:$0xff]   ;;  %v8800_v2 = vld [vmem:[%s10587_s1 + $0x630] sm:$0xff]   ;;  %v6189_v63 = vld [vmem:[%s8957_s25 + $0xa2] sm:$0xff] }
 0x14c   : > { %7992 = vmatprep.subr.bf16.mxu0 %v8770_v33  ;;  %7578 = vmatprep.mubr.bf16.mxu1 %v2006_v36  ;;  %v6152_v47 = vld [vmem:[%s8957_s25 + $0xd1] sm:$0xff]  ;;  %v8788_v36 = vld [vmem:[%s10587_s1 + $0x600] sm:$0xff]  }
 0x14d   : > { %7994 = vmatprep.mubr.bf16.mxu0 %v10623_v51  ;;  %v6153_v51 = vld [vmem:[%s8957_s25 + $0xe1] sm:$0xff] }
 0x14e   : > { %7577 = vmatpush3.bf16.msra.mxu1 %v8769_v30  ;;  %v8785_v30 = vld [vmem:[%s10587_s1 + $0x2b8] sm:$0xff]  }
 0x14f   : > { %7993 = vmatpush3.bf16.msra.mxu0 %v8770_v33  ;;  %7594 = vmatprep.subr.bf16.mxu1 %v8771_v38  ;;  %v8787_v33 = vld [vmem:[%s10587_s1 + $0x2c0] sm:$0xff]  }
 0x150   : > { %8010 = vmatprep.subr.bf16.mxu0 %v8772_v13 }
 0x151   : > { %7579 = vmatmul.mubr.bf16.vlgmr.msra.gmra.mrb[0].mxu1 %v9883_v23  ;;  %v8776_v23 = vld [vmem:[%s10587_s1 + $0x5d0] sm:$0xff]  }
 0x152   : > { %7995 = vmatmul.mubr.bf16.vlgmr.msra.gmra.mrb[0].mxu0 %v10624_v45  ;;  %7595 = vmatpush3.bf16.msra.mxu1 %v8771_v38  ;;  %v10636_v38 = vpack.c.bf16 %v9834_v59, %v9828_v52  ;;  %v8790_v45 = vld [vmem:[%s10587_s1 + $0x608] sm:$0xff]   ;;  %v10637_v59 = vpack.c.bf16 %v9845_v16, %v9842_v48  ;;  %v10638_v48 = vpack.c.bf16 %v9873_v9, %v9868_v39  ;;  %v8794_v39 = vld [vmem:[%s10587_s1 + $0x618] sm:$0xff]  }
 0x153   : > { %8011 = vmatpush3.bf16.msra.mxu0 %v8772_v13  ;;  %7596 = vmatprep.subr.bf16.mxu1 %v8773_v19  ;;  %v2209_v13 = vpack.c.bf16 %v6152_v47, %v6151_v20  ;;  %v6194_v20 = vld [vmem:[%s8957_s25 + $0xf2] sm:$0xff]  ;;  %v8805_v47 = vld [vmem:[%s10587_s1 + $0x308] sm:$0xff]  }
 0x154   : > { %8012 = vmatprep.subr.bf16.mxu0 %v8774_v43  ;;  %7582 = vmatprep.mubr.bf16.mxu1 %v9895_v35  ;;  %v8777_v35 = vld [vmem:[%s10587_s1 + $0x298] sm:$0xff]  }
 0x155   : > { %7998 = vmatprep.mubr.bf16.mxu0 %v10625_v15  ;;  %v8791_v15 = vld [vmem:[%s10587_s1 + $0x2d0] sm:$0xff]  }
 0x156   : > { %7597 = vmatpush3.bf16.msra.mxu1 %v8773_v19  ;;  %v6154_v19 = vld [vmem:[%s8957_s25 + $0xf1] sm:$0xff] }
 0x157   : > { %8013 = vmatpush3.bf16.msra.mxu0 %v8774_v43  ;;  %7598 = vmatprep.subr.bf16.mxu1 %v8775_v12  ;;  %v8789_v43 = vld [vmem:[%s10587_s1 + $0x2c8] sm:$0xff]   ;;  %v2210_v52 = vpack.c.bf16 %v6154_v19, %v6153_v51  ;;  %v6726_v51 = vld [vmem:[%s8957_s25 + $0x1d0] sm:$0xff] }
 0x158   : > { %8014 = vmatprep.subr.bf16.mxu0 %v8776_v23  ;;  %v8808_v19 = vld [vmem:[%s10587_s1 + $0x650] sm:$0xff]  }
 0x159   : > { %7583 = vmatmul.mubr.bf16.gmra.mrb[4].mxu1 %v10627_v28  ;;  %v6159_v28 = vld [vmem:[%s8957_s25 + $0x161] sm:$0xff] }
 0x15a   : > { %7999 = vmatmul.mubr.bf16.gmra.mrb[4].mxu0 %v4644_v21  ;;  %7599 = vmatpush3.bf16.msra.mxu1 %v8775_v12  ;;  %v6155_v12 = vld [vmem:[%s8957_s25 + $0x101] sm:$0xff] }
 0x15b   : > { %8015 = vmatpush3.bf16.msra.mxu0 %v8776_v23  ;;  %7600 = vmatprep.subr.bf16.mxu1 %v8777_v35  ;;  %v6156_v23 = vld [vmem:[%s8957_s25 + $0x111] sm:$0xff]  ;;  %v6157_v21 = vld [vmem:[%s8957_s25 + $0x141] sm:$0xff] }
 0x15c   : > { %8016 = vmatprep.subr.bf16.mxu0 %v8778_v3  ;;  %7586 = vmatprep.mubr.bf16.mxu1 %v2010_v0  ;;  %v2211_v16 = vpack.c.bf16 %v6156_v23, %v6155_v12  ;;  %v8793_v0 = vld [vmem:[%s10587_s1 + $0x2d8] sm:$0xff]   ;;  %v6728_v12 = vld [vmem:[%s8957_s25 + $0x210] sm:$0xff] }
 0x15d   : > { %8002 = vmatprep.mubr.bf16.mxu0 %v10630_v14  ;;  %v6161_v14 = vld [vmem:[%s8957_s25 + $0x181] sm:$0xff]  ;;  %v8809_v23 = vld [vmem:[%s10587_s1 + $0x318] sm:$0xff]  }
 0x15e   : > { %7601 = vmatpush3.bf16.msra.mxu1 %v8777_v35  ;;  %v6158_v35 = vld [vmem:[%s8957_s25 + $0x151] sm:$0xff] }
 0x15f   : > { %8017 = vmatpush3.bf16.msra.mxu0 %v8778_v3  ;;  %7602 = vmatprep.subr.bf16.mxu1 %v8779_v37  ;;  %v4846_v3 = vpack.c.bf16 %v10292_v58, %v9985_v8  ;;  %v2212_v9 = vpack.c.bf16 %v6158_v35, %v6157_v21  ;;  %v8795_v8 = vld [vmem:[%s10587_s1 + $0x2e0] sm:$0xff]   ;;  %v6730_v35 = vld [vmem:[%s8957_s25 + $0x230] sm:$0xff] }
 0x160   : > { %8018 = vmatprep.subr.bf16.mxu0 %v8780_v57  ;;  %v6729_v21 = vld [vmem:[%s8957_s25 + $0x220] sm:$0xff] }
 0x161   : > { %7587 = vmatmul.mubr.bf16.gmra.mrb[8].mxu1 %v10220_v56 }
 0x162   : > { %8003 = vmatmul.mubr.bf16.gmra.mrb[8].mxu0 %v10633_v46  ;;  %7603 = vmatpush3.bf16.msra.mxu1 %v8779_v37  ;;  %v6160_v37 = vld [vmem:[%s8957_s25 + $0x171] sm:$0xff] }
 0x163   : > { %8019 = vmatpush3.bf16.msra.mxu0 %v8780_v57  ;;  %7604 = vmatprep.subr.bf16.mxu1 %v8781_v32  ;;  %v8796_v57 = vld [vmem:[%s10587_s1 + $0x620] sm:$0xff]   ;;  %v10321_v18 = vpack.c.bf16 %v6160_v37, %v6159_v28  ;;  %v6164_v46 = vld [vmem:[%s8957_s25 + $0x1b1] sm:$0xff]  ;;  %v5052_v28 = vpack.c.bf16 %v6730_v35, %v6729_v21 }
 0x164   : > { %8020 = vmatprep.subr.bf16.mxu0 %v8782_v55  ;;  %7590 = vmatprep.mubr.bf16.mxu1 %v10230_v54  ;;  %v10352_v40 = vpack.c.bf16 %v6164_v46, %v6163_v24  ;;  %v6731_v37 = vld [vmem:[%s8957_s25 + $0x240] sm:$0xff]  ;;  %v6734_v24 = vld [vmem:[%s8957_s25 + $0x270] sm:$0xff] }
 0x165   : > { %8006 = vmatprep.mubr.bf16.mxu0 %v10635_v5  ;;  %v6190_v5 = vld [vmem:[%s8957_s25 + $0xb2] sm:$0xff] }
 0x166   : > { %7605 = vmatpush3.bf16.msra.mxu1 %v8781_v32  ;;  %v6162_v32 = vld [vmem:[%s8957_s25 + $0x191] sm:$0xff]  ;;  %v2410_v50 = vpack.c.bf16 %v6190_v5, %v6189_v63  ;;  %v5054_v63 = vpack.c.bf16 %v6734_v24, %v10138_v11 }
 0x167   : > { %8021 = vmatpush3.bf16.msra.mxu0 %v8782_v55  ;;  %7606 = vmatprep.subr.bf16.mxu1 %v8783_v1  ;;  %v8797_v55 = vld [vmem:[%s10587_s1 + $0x2e8] sm:$0xff]   ;;  %v10331_v4 = vpack.c.bf16 %v6162_v32, %v6161_v14  ;;  %v8816_v46 = vld [vmem:[%s10587_s1 + $0x670] sm:$0xff]   ;;  %v8817_v5 = vld [vmem:[%s10587_s1 + $0x338] sm:$0xff]  }
 0x168   : > { %8022 = vmatprep.subr.bf16.mxu0 %v8784_v31  ;;  %v6233_v11 = vld [vmem:[%s8957_s25 + $0xd0] sm:$0xff] }
 0x169   : > { %7591 = vmatmul.mubr.bf16.gmra.mrb[12].mxu1 %v10251_v49  ;;  %v8825_v21 = vld [vmem:[%s10587_s1 + $0x6b0] sm:$0xff]  }
 0x16a   : > { %8007 = vmatmul.mubr.bf16.gmra.mrb[12].mxu0 %v4648_v26  ;;  %7607 = vmatpush3.bf16.msra.mxu1 %v8783_v1  ;;  %v8799_v1 = vld [vmem:[%s10587_s1 + $0x2f0] sm:$0xff]   ;;  %v8803_v26 = vld [vmem:[%s10587_s1 + $0x300] sm:$0xff]  }
 0x16b   : > { %8023 = vmatpush3.bf16.msra.mxu0 %v8784_v31  ;;  %7608 = vmatprep.subr.bf16.mxu1 %v8785_v30  ;;  %v10343_v31 = vld [vmem:[%s8957_s25 + $0x262] sm:$0xff] }
 0x16c   : > { %8024 = vmatprep.subr.bf16.mxu0 %v8786_v25  ;;  %7610 = vmatprep.mubr.bf16.mxu1 %v2208_v17  ;;  %v4850_v6 = vpack.c.bf16 %v10343_v31, %v10031_v34  ;;  %v6192_v34 = vld [vmem:[%s8957_s25 + $0xd2] sm:$0xff]  ;;  %v6193_v17 = vld [vmem:[%s8957_s25 + $0xe2] sm:$0xff] }
 0x16d   : > { %8026 = vmatprep.mubr.bf16.mxu0 %v10636_v38  ;;  %v6196_v38 = vld [vmem:[%s8957_s25 + $0x112] sm:$0xff] }
 0x16e   : > { %7609 = vmatpush3.bf16.msra.mxu1 %v8785_v30  ;;  %v8804_v30 = vld [vmem:[%s10587_s1 + $0x640] sm:$0xff]  }
 0x16f   : > { %8025 = vmatpush3.bf16.msra.mxu0 %v8786_v25  ;;  %7626 = vmatprep.subr.bf16.mxu1 %v8787_v33 }
 0x170   : > { %8042 = vmatprep.subr.bf16.mxu0 %v8788_v36 }
 0x171   : > { %7611 = vmatmul.mubr.bf16.vlgmr.msra.gmra.mrb[0].mxu1 %v2209_v13  ;;  %v8807_v13 = vld [vmem:[%s10587_s1 + $0x310] sm:$0xff]  }
 0x172   : > { %8027 = vmatmul.mubr.bf16.vlgmr.msra.gmra.mrb[0].mxu0 %v10637_v59  ;;  %7627 = vmatpush3.bf16.msra.mxu1 %v8787_v33  ;;  %v8806_v33 = vld [vmem:[%s10587_s1 + $0x648] sm:$0xff]   ;;  %v6727_v59 = vld [vmem:[%s8957_s25 + $0x200] sm:$0xff] }
 0x173   : > { %8043 = vmatpush3.bf16.msra.mxu0 %v8788_v36  ;;  %7628 = vmatprep.subr.bf16.mxu1 %v8789_v43  ;;  %v2412_v36 = vpack.c.bf16 %v6194_v20, %v6193_v17  ;;  %v6766_v17 = vld [vmem:[%s8957_s25 + $0x1d1] sm:$0xff] }
 0x174   : > { %8044 = vmatprep.subr.bf16.mxu0 %v8790_v45  ;;  %7614 = vmatprep.mubr.bf16.mxu1 %v2210_v52  ;;  %v5050_v52 = vpack.c.bf16 %v6726_v51, %v10095_v61  ;;  %v6199_v61 = vld [vmem:[%s8957_s25 + $0x162] sm:$0xff]  ;;  %v8821_v20 = vld [vmem:[%s10587_s1 + $0x690] sm:$0xff]  }
 0x175   : > { %8030 = vmatprep.mubr.bf16.mxu0 %v10638_v48  ;;  %v6200_v48 = vld [vmem:[%s8957_s25 + $0x172] sm:$0xff]  ;;  %v6242_v51 = vld [vmem:[%s8957_s25 + $0x180] sm:$0xff] }
 0x176   : > { %7629 = vmatpush3.bf16.msra.mxu1 %v8789_v43  ;;  %v6197_v43 = vld [vmem:[%s8957_s25 + $0x142] sm:$0xff] }
 0x177   : > { %8045 = vmatpush3.bf16.msra.mxu0 %v8790_v45  ;;  %7630 = vmatprep.subr.bf16.mxu1 %v8791_v15  ;;  %v6198_v45 = vld [vmem:[%s8957_s25 + $0x152] sm:$0xff] }
 0x178   : > { %8046 = vmatprep.subr.bf16.mxu0 %v8792_v62 }
 0x179   : > { %7615 = vmatmul.mubr.bf16.gmra.mrb[4].mxu1 %v2211_v16  ;;  %v8811_v16 = vld [vmem:[%s10587_s1 + $0x320] sm:$0xff]  }
 0x17a   : > { %8031 = vmatmul.mubr.bf16.gmra.mrb[4].mxu0 %v4846_v3  ;;  %7631 = vmatpush3.bf16.msra.mxu1 %v8791_v15  ;;  %v2414_v15 = vpack.c.bf16 %v6198_v45, %v6197_v43  ;;  %v8812_v3 = vld [vmem:[%s10587_s1 + $0x660] sm:$0xff]   ;;  %v6243_v45 = vld [vmem:[%s8957_s25 + $0x190] sm:$0xff] }
 0x17b   : > { %8047 = vmatpush3.bf16.msra.mxu0 %v8792_v62  ;;  %7632 = vmatprep.subr.bf16.mxu1 %v8793_v0  ;;  %v5051_v62 = vpack.c.bf16 %v6728_v12, %v6727_v59  ;;  %v8823_v43 = vld [vmem:[%s10587_s1 + $0x6a0] sm:$0xff]  }
 0x17c   : > { %8048 = vmatprep.subr.bf16.mxu0 %v8794_v39  ;;  %7618 = vmatprep.mubr.bf16.mxu1 %v2212_v9  ;;  %v6202_v9 = vld [vmem:[%s8957_s25 + $0x192] sm:$0xff]  ;;  %v6771_v12 = vld [vmem:[%s8957_s25 + $0x241] sm:$0xff] }
 0x17d   : > { %8034 = vmatprep.mubr.bf16.mxu0 %v10639_v42  ;;  %v8814_v42 = vld [vmem:[%s10587_s1 + $0x668] sm:$0xff]  }
 0x17e   : > { %7633 = vmatpush3.bf16.msra.mxu1 %v8793_v0  ;;  %v10414_v0 = vpack.c.bf16 %v6200_v48, %v6199_v61  ;;  %v6245_v61 = vld [vmem:[%s8957_s25 + $0x1b0] sm:$0xff]  ;;  %v6246_v48 = vld [vmem:[%s8957_s25 + $0x1c0] sm:$0xff] }
 0x17f   : > { %8049 = vmatpush3.bf16.msra.mxu0 %v8794_v39  ;;  %7634 = vmatprep.subr.bf16.mxu1 %v8795_v8  ;;  %v6201_v39 = vld [vmem:[%s8957_s25 + $0x182] sm:$0xff]  ;;  %v2621_v35 = vpack.c.bf16 %v6246_v48, %v6245_v61 }
 0x180   : > { %8050 = vmatprep.subr.bf16.mxu0 %v8796_v57  ;;  %v10426_v14 = vpack.c.bf16 %v6202_v9, %v6201_v39  ;;  %v6807_v39 = vld [vmem:[%s8957_s25 + $0x202] sm:$0xff]  ;;  %v6808_v9 = vld [vmem:[%s8957_s25 + $0x212] sm:$0xff] }
 0x181   : > { %7619 = vmatmul.mubr.bf16.gmra.mrb[8].mxu1 %v10321_v18 }
 0x182   : > { %8035 = vmatmul.mubr.bf16.gmra.mrb[8].mxu0 %v10640_v60  ;;  %7635 = vmatpush3.bf16.msra.mxu1 %v8795_v8  ;;  %v6732_v8 = vld [vmem:[%s8957_s25 + $0x250] sm:$0xff] }
 0x183   : > { %8051 = vmatpush3.bf16.msra.mxu0 %v8796_v57  ;;  %7636 = vmatprep.subr.bf16.mxu1 %v8797_v55  ;;  %v8813_v57 = vld [vmem:[%s10587_s1 + $0x328] sm:$0xff]   ;;  %v5053_v32 = vpack.c.bf16 %v6732_v8, %v6731_v37  ;;  %v8815_v60 = vld [vmem:[%s10587_s1 + $0x330] sm:$0xff]   ;;  %v5455_v37 = vpack.c.bf16 %v6808_v9, %v6807_v39 }
 0x184   : > { %8052 = vmatprep.subr.bf16.mxu0 %v8798_v29  ;;  %7622 = vmatprep.mubr.bf16.mxu1 %v10331_v4  ;;  %v6809_v8 = vld [vmem:[%s8957_s25 + $0x222] sm:$0xff] }
 0x185   : > { %8038 = vmatprep.mubr.bf16.mxu0 %v4849_v53  ;;  %v6191_v53 = vld [vmem:[%s8957_s25 + $0xc2] sm:$0xff] }
 0x186   : > { %7637 = vmatpush3.bf16.msra.mxu1 %v8797_v55  ;;  %v2411_v25 = vpack.c.bf16 %v6192_v34, %v6191_v53  ;;  %v6203_v55 = vld [vmem:[%s8957_s25 + $0x1a2] sm:$0xff] }
 0x187   : > { %8053 = vmatpush3.bf16.msra.mxu0 %v8798_v29  ;;  %7638 = vmatprep.subr.bf16.mxu1 %v8799_v1  ;;  %v6204_v29 = vld [vmem:[%s8957_s25 + $0x1b2] sm:$0xff]  ;;  %v6236_v34 = vld [vmem:[%s8957_s25 + $0x100] sm:$0xff] }
 0x188   : > { %8054 = vmatprep.subr.bf16.mxu0 %v8800_v2 }
 0x189   : > { %7623 = vmatmul.mubr.bf16.gmra.mrb[12].mxu1 %v10352_v40 }
 0x18a   : > { %8039 = vmatmul.mubr.bf16.gmra.mrb[12].mxu0 %v4850_v6  ;;  %7639 = vmatpush3.bf16.msra.mxu1 %v8799_v1  ;;  %v10439_v1 = vpack.c.bf16 %v6204_v29, %v6203_v55  ;;  %v8818_v6 = vld [vmem:[%s10587_s1 + $0x678] sm:$0xff]  }
 0x18b   : > { %8055 = vmatpush3.bf16.msra.mxu0 %v8800_v2  ;;  %7640 = vmatprep.subr.bf16.mxu1 %v8801_v7  ;;  %v6232_v2 = vld [vmem:[%s8957_s25 + $0xc0] sm:$0xff]  ;;  %v6814_v29 = vld [vmem:[%s8957_s25 + $0x272] sm:$0xff] }
 0x18c   : > { %8056 = vmatprep.subr.bf16.mxu0 %v8802_v41  ;;  %7642 = vmatprep.mubr.bf16.mxu1 %v2410_v50  ;;  %v8819_v50 = vld [vmem:[%s10587_s1 + $0x680] sm:$0xff]   ;;  %v5458_v24 = vpack.c.bf16 %v6814_v29, %v10343_v31 }
 0x18d   : > { %8058 = vmatprep.mubr.bf16.mxu0 %v10220_v56  ;;  %v6195_v56 = vld [vmem:[%s8957_s25 + $0x102] sm:$0xff] }
 0x18e   : > { %7641 = vmatpush3.bf16.msra.mxu1 %v8801_v7  ;;  %v2614_v7 = vpack.c.bf16 %v6232_v2, %v10152_v22  ;;  %v6235_v22 = vld [vmem:[%s8957_s25 + $0xf0] sm:$0xff] }
 0x18f   : > { %8057 = vmatpush3.bf16.msra.mxu0 %v8802_v41  ;;  %7658 = vmatprep.subr.bf16.mxu1 %v8803_v26  ;;  %v6234_v41 = vld [vmem:[%s8957_s25 + $0xe0] sm:$0xff] }
 0x190   : > { %8074 = vmatprep.subr.bf16.mxu0 %v8804_v30  ;;  %v2615_v53 = vpack.c.bf16 %v6234_v41, %v6233_v11 }
 0x191   : > { %7643 = vmatmul.mubr.bf16.vlgmr.msra.gmra.mrb[0].mxu1 %v2411_v25  ;;  %v6238_v25 = vld [vmem:[%s8957_s25 + $0x120] sm:$0xff] }
 0x192   : > { %8059 = vmatmul.mubr.bf16.vlgmr.msra.gmra.mrb[0].mxu0 %v10230_v54  ;;  %7659 = vmatpush3.bf16.msra.mxu1 %v8803_v26  ;;  %v2413_v54 = vpack.c.bf16 %v6196_v38, %v6195_v56  ;;  %v8820_v26 = vld [vmem:[%s10587_s1 + $0x688] sm:$0xff]   ;;  %v6768_v56 = vld [vmem:[%s8957_s25 + $0x211] sm:$0xff] }
 0x193   : > { %8075 = vmatpush3.bf16.msra.mxu0 %v8804_v30  ;;  %7660 = vmatprep.subr.bf16.mxu1 %v8805_v47  ;;  %v2616_v30 = vpack.c.bf16 %v6236_v34, %v6235_v22  ;;  %v8822_v38 = vld [vmem:[%s10587_s1 + $0x698] sm:$0xff]  }
 0x194   : > { %8076 = vmatprep.subr.bf16.mxu0 %v8806_v33  ;;  %7646 = vmatprep.mubr.bf16.mxu1 %v2412_v36  ;;  %v6767_v36 = vld [vmem:[%s8957_s25 + $0x201] sm:$0xff] }
 0x195   : > { %8062 = vmatprep.mubr.bf16.mxu0 %v10251_v49  ;;  %v8810_v49 = vld [vmem:[%s10587_s1 + $0x658] sm:$0xff]  }
 0x196   : > { %7661 = vmatpush3.bf16.msra.mxu1 %v8805_v47 }
 0x197   : > { %8077 = vmatpush3.bf16.msra.mxu0 %v8806_v33  ;;  %7662 = vmatprep.subr.bf16.mxu1 %v8807_v13  ;;  %v6240_v33 = vld [vmem:[%s8957_s25 + $0x160] sm:$0xff] }
 0x198   : > { %8078 = vmatprep.subr.bf16.mxu0 %v8808_v19 }
 0x199   : > { %7647 = vmatmul.mubr.bf16.gmra.mrb[4].mxu1 %v2413_v54  ;;  %v6770_v54 = vld [vmem:[%s8957_s25 + $0x231] sm:$0xff] }
 0x19a   : > { %8063 = vmatmul.mubr.bf16.gmra.mrb[4].mxu0 %v5050_v52  ;;  %7663 = vmatpush3.bf16.msra.mxu1 %v8807_v13  ;;  %v5253_v13 = vpack.c.bf16 %v6768_v56, %v6767_v36  ;;  %v6244_v52 = vld [vmem:[%s8957_s25 + $0x1a0] sm:$0xff] }
 0x19b   : > { %8079 = vmatpush3.bf16.msra.mxu0 %v8808_v19  ;;  %7664 = vmatprep.subr.bf16.mxu1 %v8809_v23  ;;  %v6769_v19 = vld [vmem:[%s8957_s25 + $0x221] sm:$0xff] }
 0x19c   : > { %8080 = vmatprep.subr.bf16.mxu0 %v8810_v49  ;;  %7650 = vmatprep.mubr.bf16.mxu1 %v2414_v15  ;;  %v5254_v59 = vpack.c.bf16 %v6770_v54, %v6769_v19  ;;  %v2620_v15 = vpack.c.bf16 %v6244_v52, %v6243_v45  ;;  %v10528_v19 = vld [vmem:[%s10588_s2] ss:$0 sm:$0xff] }
 0x19d   : > { %8066 = vmatprep.mubr.bf16.mxu0 %v5051_v62 }
 0x19e   : > { %7665 = vmatpush3.bf16.msra.mxu1 %v8809_v23  ;;  %v6772_v23 = vld [vmem:[%s8957_s25 + $0x251] sm:$0xff] }
 0x19f   : > { %8081 = vmatpush3.bf16.msra.mxu0 %v8810_v49  ;;  %7666 = vmatprep.subr.bf16.mxu1 %v8811_v16  ;;  %v8824_v49 = vld [vmem:[%s10587_s1 + $0x6a8] sm:$0xff]   ;;  %v5255_v62 = vpack.c.bf16 %v6772_v23, %v6771_v12 }
 0x1a0   : > { %8082 = vmatprep.subr.bf16.mxu0 %v8812_v3 }
 0x1a1   : > { %7651 = vmatmul.mubr.bf16.gmra.mrb[8].mxu1 %v10414_v0 }
 0x1a2   : > { %8067 = vmatmul.mubr.bf16.gmra.mrb[8].mxu0 %v5052_v28  ;;  %7667 = vmatpush3.bf16.msra.mxu1 %v8811_v16  ;;  %v6774_v16 = vld [vmem:[%s8957_s25 + $0x271] sm:$0xff] }
 0x1a3   : > { %8083 = vmatpush3.bf16.msra.mxu0 %v8812_v3  ;;  %7668 = vmatprep.subr.bf16.mxu1 %v8813_v57  ;;  %v5256_v3 = vpack.c.bf16 %v6774_v16, %v10240_v44  ;;  %v8826_v28 = vld [vmem:[%s10587_s1 + $0x6b8] sm:$0xff]   ;;  %v6811_v44 = vld [vmem:[%s8957_s25 + $0x242] sm:$0xff] }
 0x1a4   : > { %8084 = vmatprep.subr.bf16.mxu0 %v8814_v42  ;;  %7654 = vmatprep.mubr.bf16.mxu1 %v10426_v14 }
 0x1a5   : > { %8070 = vmatprep.mubr.bf16.mxu0 %v5053_v32 }
 0x1a6   : > { %7669 = vmatpush3.bf16.msra.mxu1 %v8813_v57  ;;  %v6810_v57 = vld [vmem:[%s8957_s25 + $0x232] sm:$0xff] }
 0x1a7   : > { %8085 = vmatpush3.bf16.msra.mxu0 %v8814_v42  ;;  %7670 = vmatprep.subr.bf16.mxu1 %v8815_v60  ;;  %v6812_v42 = vld [vmem:[%s8957_s25 + $0x252] sm:$0xff]  ;;  %v5456_v32 = vpack.c.bf16 %v6810_v57, %v6809_v8 }
 0x1a8   : > { %8086 = vmatprep.subr.bf16.mxu0 %v8816_v46  ;;  %v5457_v55 = vpack.c.bf16 %v6812_v42, %v6811_v44 }
 0x1a9   : > { %7655 = vmatmul.mubr.bf16.gmra.mrb[12].mxu1 %v10439_v1 }
 0x1aa   : > { %8071 = vmatmul.mubr.bf16.gmra.mrb[12].mxu0 %v5054_v63  ;;  %7671 = vmatpush3.bf16.msra.mxu1 %v8815_v60  ;;  %v6806_v60 = vld [vmem:[%s8957_s25 + $0x1d2] sm:$0xff] }
 0x1ab   : > { %8087 = vmatpush3.bf16.msra.mxu0 %v8816_v46  ;;  %7672 = vmatprep.subr.bf16.mxu1 %v8817_v5  ;;  %v5454_v46 = vpack.c.bf16 %v6806_v60, %v10292_v58 }
 0x1ac   : > { %8088 = vmatprep.subr.bf16.mxu0 %v8818_v6  ;;  %7674 = vmatprep.mubr.bf16.mxu1 %v2614_v7 }
 0x1ad   : > { %8090 = vmatprep.mubr.bf16.mxu0 %v10321_v18  ;;  %v6237_v18 = vld [vmem:[%s8957_s25 + $0x110] sm:$0xff] }
 0x1ae   : > { %7673 = vmatpush3.bf16.msra.mxu1 %v8817_v5  ;;  %v2617_v47 = vpack.c.bf16 %v6238_v25, %v6237_v18 }
 0x1af   : > { %8089 = vmatpush3.bf16.msra.mxu0 %v8818_v6  ;;  %8138 = vmatprep.subr.bf16.mxu1 %v8819_v50 }
 0x1b0   : > { %8106 = vmatprep.subr.bf16.mxu0 %v8819_v50 }
 0x1b1   : > { %7675 = vmatmul.mubr.bf16.vlgmr.msra.gmra.mrb[0].mxu1 %v2615_v53 }
 0x1b2   : > { %8091 = vmatmul.mubr.bf16.vlgmr.msra.gmra.mrb[0].mxu0 %v10331_v4  ;;  %8146 = vmatpush3.bf16.msra.mxu1 %v8819_v50  ;;  %v5252_v4 = vpack.c.bf16 %v6766_v17, %v10186_v10  ;;  %v6241_v10 = vld [vmem:[%s8957_s25 + $0x170] sm:$0xff]  ;;  %s5806_s25 = sshll.u32 %s8853_s13, 2 }
 0x1b3   : > { %8107 = vmatpush3.bf16.msra.mxu0 %v8819_v50  ;;  %8139 = vmatprep.subr.bf16.mxu1 %v8820_v26  ;;  %s185_s19 = sadd.s32 %s8849_s12, %s5806_s25 }
 0x1b4   : > { %8108 = vmatprep.subr.bf16.mxu0 %v8820_v26  ;;  %7678 = vmatprep.mubr.bf16.mxu1 %v2616_v30  ;;  %s5807_s20 = sshll.u32 %s185_s19, 4 }
 0x1b5   : > { %8094 = vmatprep.mubr.bf16.mxu0 %v10352_v40  ;;  %v2618_v40 = vpack.c.bf16 %v6240_v33, %v10197_v27  ;;  %v2619_v27 = vpack.c.bf16 %v6242_v51, %v6241_v10  ;;  %p187_p6 = scmp.lt.s32.totalorder %s5807_s20, 127 }
 0x1b6   : > { %8147 = vmatpush3.bf16.msra.mxu1 %v8820_v26 }
 0x1b7   : > { %8109 = vmatpush3.bf16.msra.mxu0 %v8820_v26  ;;  %8140 = vmatprep.subr.bf16.mxu1 %v8821_v20  ;;  %s10652_s20 = smov (!%p187_p6, %s5807_s20), 127 }
 0x1b8   : > { %8110 = vmatprep.subr.bf16.mxu0 %v8821_v20  ;;  %s5808_s21 = sshll.u32 %s10652_s20, 3 }
 0x1b9   : > { %7679 = vmatmul.mubr.bf16.gmra.mrb[4].mxu1 %v2617_v47  ;;  %s10534_s24 = scalar_lea.vmem %s10589_s3, %s5808_s21 }
 0x1ba   : > { %8095 = vmatmul.mubr.bf16.gmra.mrb[4].mxu0 %v5252_v4  ;;  %8148 = vmatpush3.bf16.msra.mxu1 %v8821_v20 }
 0x1bb   : > { %8111 = vmatpush3.bf16.msra.mxu0 %v8821_v20  ;;  %8141 = vmatprep.subr.bf16.mxu1 %v8822_v38 }
 0x1bc   : > { %8112 = vmatprep.subr.bf16.mxu0 %v8822_v38  ;;  %7682 = vmatprep.mubr.bf16.mxu1 %v2618_v40 }
 0x1bd   : > { %8098 = vmatprep.mubr.bf16.mxu0 %v5253_v13 }
 0x1be   : > { %8149 = vmatpush3.bf16.msra.mxu1 %v8822_v38 }
 0x1bf   : > { %8113 = vmatpush3.bf16.msra.mxu0 %v8822_v38  ;;  %8142 = vmatprep.subr.bf16.mxu1 %v8823_v43 }
 0x1c0   : > { %8114 = vmatprep.subr.bf16.mxu0 %v8823_v43 }
 0x1c1   : > { %7683 = vmatmul.mubr.bf16.gmra.mrb[8].mxu1 %v2619_v27 }
 0x1c2   : > { %8099 = vmatmul.mubr.bf16.gmra.mrb[8].mxu0 %v5254_v59  ;;  %8150 = vmatpush3.bf16.msra.mxu1 %v8823_v43 }
 0x1c3   : > { %8115 = vmatpush3.bf16.msra.mxu0 %v8823_v43  ;;  %8143 = vmatprep.subr.bf16.mxu1 %v8824_v49 }
 0x1c4   : > { %8116 = vmatprep.subr.bf16.mxu0 %v8824_v49  ;;  %7686 = vmatprep.mubr.bf16.mxu1 %v2620_v15 }
 0x1c5   : > { %8102 = vmatprep.mubr.bf16.mxu0 %v5255_v62 }
 0x1c6   : > { %8151 = vmatpush3.bf16.msra.mxu1 %v8824_v49 }
 0x1c7   : > { %8117 = vmatpush3.bf16.msra.mxu0 %v8824_v49  ;;  %8144 = vmatprep.subr.bf16.mxu1 %v8825_v21 }
 0x1c8   : > { %8118 = vmatprep.subr.bf16.mxu0 %v8825_v21 }
 0x1c9   : > { %7687 = vmatmul.mubr.bf16.gmra.mrb[12].mxu1 %v2621_v35 }
 0x1ca   : > { %8103 = vmatmul.mubr.bf16.gmra.mrb[12].mxu0 %v5256_v3  ;;  %8152 = vmatpush3.bf16.msra.mxu1 %v8825_v21 }
 0x1cb   : > { %8119 = vmatpush3.bf16.msra.mxu0 %v8825_v21  ;;  %8145 = vmatprep.subr.bf16.mxu1 %v8826_v28 }
 0x1cc   : > { %8120 = vmatprep.subr.bf16.mxu0 %v8826_v28  ;;  %8122 = vmatprep.mubr.bf16.mxu0 %v10414_v0 }
 0x1cd   : > { %8130 = vmatprep.mubr.bf16.mxu1 %v5455_v37 }
 0x1ce   : > { %8153 = vmatpush3.bf16.msra.mxu1 %v8826_v28 }
 0x1cf   : > { %8121 = vmatpush3.bf16.msra.mxu0 %v8826_v28 }
 0x1d1   : > { %8131 = vmatmul.mubr.bf16.vlgmr.msra.gmra.mrb[16].mxu1 %v5456_v32 }
 0x1d2   : > { %8123 = vmatmul.mubr.bf16.vlgmr.msra.gmra.mrb[0].mxu0 %v10426_v14  ;;  %8134 = vmatprep.mubr.bf16.mxu1 %v5457_v55 }
 0x1d3   : > { %8126 = vmatprep.mubr.bf16.mxu0 %v10439_v1 }
 0x1d9   : > { %8135 = vmatmul.mubr.bf16.gmra.mrb[20].mxu1 %v5458_v24 }
 0x1da   : > { %8127 = vmatmul.mubr.bf16.gmra.mrb[4].mxu0 %v5454_v46 }
 0x284   : > { %v7676_v0 = vpop.f32.mrb[0].mxu1 }
 0x285   : > { %v2721_v2 = vpop.f32.mrb[1].mxu1 }
 0x286   : > { %v7677_v63 = vpop.f32.mrb[2].mxu1 }
 0x287   : > { %v2724_v5 = vpop.f32.mrb[3].mxu1 }
 0x28c   : > { %v10515_v6 = vpop.f32.mrb[4].mxu1 }
 0x28d   : > { %v10517_v14 = vpop.f32.mrb[5].mxu1 }
 0x28e   : > { %v10519_v7 = vpop.f32.mrb[6].mxu1 }
 0x28f   : > { %v10521_v11 = vpop.f32.mrb[7].mxu1 }
 0x294   : > { %v7684_v1 = vpop.f32.mrb[8].mxu1 }
 0x295   : > { %v8100_v31 = vpop.f32.mrb[8].mxu0  ;;  %v2753_v41 = vpop.f32.mrb[9].mxu1 }
 0x296   : > { %v8162_v58 = vadd.f32 %v8100_v31, %v7684_v1  ;;  %v5388_v50 = vpop.f32.mrb[9].mxu0  ;;  %v7685_v53 = vpop.f32.mrb[10].mxu1 }
 0x297   : > { %v8164_v22 = vadd.f32 %v5388_v50, %v2753_v41  ;;  %v8101_v34 = vpop.f32.mrb[10].mxu0  ;;  %v2756_v26 = vpop.f32.mrb[11].mxu1 }
 0x298   : > { %v8166_v30 = vadd.f32 %v8101_v34, %v7685_v53  ;;  %v5391_v18 = vpop.f32.mrb[11].mxu0 }
 0x299   : > { %v8168_v25 = vadd.f32 %v5391_v18, %v2756_v26 }
 0x29c   : > { %v7688_v17 = vpop.f32.mrb[12].mxu1 }
 0x29d   : > { %v8104_v20 = vpop.f32.mrb[12].mxu0  ;;  %v2769_v47 = vpop.f32.mrb[13].mxu1 }
 0x29e   : > { %v8170_v33 = vadd.f32 %v8104_v20, %v7688_v17  ;;  %v5404_v4 = vpop.f32.mrb[13].mxu0  ;;  %v7689_v36 = vpop.f32.mrb[14].mxu1 }
 0x29f   : > { %v8172_v56 = vadd.f32 %v5404_v4, %v2769_v47  ;;  %v8105_v38 = vpop.f32.mrb[14].mxu0  ;;  %v2772_v40 = vpop.f32.mrb[15].mxu1 }
 0x2a0   : > { %v8174_v13 = vadd.f32 %v8105_v38, %v7689_v36  ;;  %v5407_v10 = vpop.f32.mrb[15].mxu0 }
 0x2a1   : > { %v8176_v51 = vadd.f32 %v5407_v10, %v2772_v40 }
 0x2a4   : > { %v8132_v54 = vpop.f32.mrb[16].mxu1 }
 0x2a5   : > { %v8124_v43 = vpop.f32.mrb[0].mxu0  ;;  %v8163_v27 = vadd.f32 %v8162_v58, %v8132_v54  ;;  %v5590_v45 = vpop.f32.mrb[17].mxu1 }
 0x2a6   : > { %v8154_v52 = vadd.f32 %v8124_v43, %v7676_v0  ;;  %v5558_v59 = vpop.f32.mrb[1].mxu0  ;;  %v8165_v12 = vadd.f32 %v8164_v22, %v5590_v45  ;;  %v8133_v23 = vpop.f32.mrb[18].mxu1 }
 0x2a7   : > { %v5654_v49 = vadd.f32 %v8163_v27, %v10528_v19  ;;  %v8155_v15 = vadd.f32 %v5558_v59, %v2721_v2  ;;  %v8125_v62 = vpop.f32.mrb[2].mxu0  ;;  %v8167_v61 = vadd.f32 %v8166_v30, %v8133_v23  ;;  %v5593_v48 = vpop.f32.mrb[19].mxu1 }
 0x2a8   : > { %v5646_v16 = vadd.f32 %v8154_v52, %v10528_v19  ;;  %v5652_v21 = vadd.f32 %v8165_v12, %v10528_v19  ;;  %v8156_v35 = vadd.f32 %v8125_v62, %v7677_v63  ;;  %v5561_v3 = vpop.f32.mrb[3].mxu0  ;;  %v8169_v39 = vadd.f32 %v8168_v25, %v5593_v48 }
 0x2a9   : > { %v5670_v9 = vmax.f32 %v5654_v49, 0.0  ;;  %v5644_v28 = vadd.f32 %v8155_v15, %v10528_v19  ;;  %v5655_v37 = vadd.f32 %v8167_v61, %v10528_v19  ;;  %v8157_v8 = vadd.f32 %v5561_v3, %v2724_v5 }
 0x2aa   : > { %v5662_v57 = vmax.f32 %v5646_v16, 0.0  ;;  %v5668_v44 = vmax.f32 %v5652_v21, 0.0  ;;  %v5647_v42 = vadd.f32 %v8156_v35, %v10528_v19  ;;  %v5653_v32 = vadd.f32 %v8169_v39, %v10528_v19 }
 0x2ab   : > { %5686 = vst [vmem:[%s10534_s24 + $0x50] sm:$0xff] %v5670_v9  ;;  %v5660_v55 = vmax.f32 %v5644_v28, 0.0  ;;  %v5671_v29 = vmax.f32 %v5655_v37, 0.0  ;;  %v5645_v60 = vadd.f32 %v8157_v8, %v10528_v19 }
 0x2ac   : > { %5678 = vst [vmem:[%s10534_s24 + $0x10] sm:$0xff] %v5662_v57  ;;  %5684 = vst [vmem:[%s10534_s24 + $0x40] sm:$0xff] %v5668_v44  ;;  %v5663_v24 = vmax.f32 %v5647_v42, 0.0  ;;  %v5669_v46 = vmax.f32 %v5653_v32, 0.0  ;;  %v8136_v0 = vpop.f32.mrb[20].mxu1 }
 0x2ad   : > { %5676 = vst [vmem:[%s10534_s24] sm:$0xff] %v5660_v55  ;;  %5687 = vst [vmem:[%s10534_s24 + $0x58] sm:$0xff] %v5671_v29  ;;  %v5661_v2 = vmax.f32 %v5645_v60, 0.0  ;;  %v8128_v63 = vpop.f32.mrb[4].mxu0  ;;  %v8171_v5 = vadd.f32 %v8170_v33, %v8136_v0  ;;  %v5606_v1 = vpop.f32.mrb[21].mxu1 }
 0x2ae   : > { %5679 = vst [vmem:[%s10534_s24 + $0x18] sm:$0xff] %v5663_v24  ;;  %5685 = vst [vmem:[%s10534_s24 + $0x48] sm:$0xff] %v5669_v46  ;;  %v8158_v31 = vadd.f32 %v8128_v63, %v10515_v6  ;;  %v5574_v41 = vpop.f32.mrb[5].mxu0  ;;  %v8173_v58 = vadd.f32 %v8172_v56, %v5606_v1  ;;  %v8137_v50 = vpop.f32.mrb[22].mxu1 }
 0x2af   : > { %5677 = vst [vmem:[%s10534_s24 + $0x8] sm:$0xff] %v5661_v2  ;;  %v5658_v53 = vadd.f32 %v8171_v5, %v10528_v19  ;;  %v8159_v22 = vadd.f32 %v5574_v41, %v10517_v14  ;;  %v8129_v34 = vpop.f32.mrb[6].mxu0  ;;  %v8175_v26 = vadd.f32 %v8174_v13, %v8137_v50  ;;  %v5609_v30 = vpop.f32.mrb[23].mxu1 }
 0x2b0   : > { %v5650_v18 = vadd.f32 %v8158_v31, %v10528_v19  ;;  %v5656_v25 = vadd.f32 %v8173_v58, %v10528_v19  ;;  %v8160_v17 = vadd.f32 %v8129_v34, %v10519_v7  ;;  %v5577_v6 = vpop.f32.mrb[7].mxu0  ;;  %v8177_v20 = vadd.f32 %v8176_v51, %v5609_v30 }
 0x2b1   : > { %v5674_v47 = vmax.f32 %v5658_v53, 0.0  ;;  %v5648_v33 = vadd.f32 %v8159_v22, %v10528_v19  ;;  %v5659_v14 = vadd.f32 %v8175_v26, %v10528_v19  ;;  %v8161_v4 = vadd.f32 %v5577_v6, %v10521_v11 }
 0x2b2   : > { %v5666_v36 = vmax.f32 %v5650_v18, 0.0  ;;  %v5672_v56 = vmax.f32 %v5656_v25, 0.0  ;;  %v5651_v38 = vadd.f32 %v8160_v17, %v10528_v19  ;;  %v5657_v7 = vadd.f32 %v8177_v20, %v10528_v19 }
 0x2b3   : > { %5690 = vst [vmem:[%s10534_s24 + $0x70] sm:$0xff] %v5674_v47  ;;  %v5664_v40 = vmax.f32 %v5648_v33, 0.0  ;;  %v5675_v13 = vmax.f32 %v5659_v14, 0.0  ;;  %v5649_v10 = vadd.f32 %v8161_v4, %v10528_v19 }
 0x2b4   : > { %5682 = vst [vmem:[%s10534_s24 + $0x30] sm:$0xff] %v5666_v36  ;;  %5688 = vst [vmem:[%s10534_s24 + $0x60] sm:$0xff] %v5672_v56  ;;  %v5667_v51 = vmax.f32 %v5651_v38, 0.0  ;;  %v5673_v54 = vmax.f32 %v5657_v7, 0.0 }
 0x2b5   : > { %5680 = vst [vmem:[%s10534_s24 + $0x20] sm:$0xff] %v5664_v40  ;;  %5691 = vst [vmem:[%s10534_s24 + $0x78] sm:$0xff] %v5675_v13  ;;  %v5665_v11 = vmax.f32 %v5649_v10, 0.0 }
 0x2b6   : > { %5683 = vst [vmem:[%s10534_s24 + $0x38] sm:$0xff] %v5667_v51  ;;  %5689 = vst [vmem:[%s10534_s24 + $0x68] sm:$0xff] %v5673_v54 }
 0x2b7   : > { %5681 = vst [vmem:[%s10534_s24 + $0x28] sm:$0xff] %v5665_v11 }
 0x2b8 PF: > { %s13_s16 = sadd.s32 1, %s8865_s16   ;;  %s10641_s12 = smov %s8857_s14 }
 0x2b9   : > { %p10_p7 = scmp.ge.s32.totalorder %s13_s16, 10   ;;  %s10642_s13 = smov %s8861_s15 }
 0x2ba   : > { %s10643_s14 = smov %s10646_s17  ;;  %s10644_s15 = smov %s10650_s18 }
 0x2bb   :  { %12 = sbr.rel (!%p10_p7) target bundleno = 3 (0x3), region = 97 }

// kernel: cnn_forward.10
= control target key start
LH: loop header
LB: loop body
LE: loop exit
PB: predicated region body
PF: predicated region fallthrough
CT: control target
= control target key end

     0   :  { %s7985_s1 = inlined_call_operand.vmem [shape: bf16[3456,128], index: 1, kind: input, shape index: {}]   ;;  %s7986_s0 = inlined_call_operand.vmem [shape: bf16[128,3456], index: 0, kind: input, shape index: {}]   ;;  %s7987_s2 = inlined_call_operand.vmem [shape: f32[1,128], index: 2, kind: input, shape index: {}]   ;;  %s7988_s3 = inlined_call_operand.vmem [shape: f32[128,128], index: 3, kind: output, shape index: {}]  }
   0x1   :  { %v5769_v0 = vld [vmem:[%s7985_s1 + $0x40] sm:$0xff]   ;;  %v5773_v4 = vld [vmem:[%s7985_s1 + $0x48] sm:$0xff]   ;;  %v5777_v8 = vld [vmem:[%s7985_s1 + $0x50] sm:$0xff]  }
   0x2   :  { %v5770_v1 = vld [vmem:[%s7985_s1] sm:$0xff]   ;;  %4889 = vmatprep.subr.bf16.mxu0 %v5769_v0  ;;  %v5774_v5 = vld [vmem:[%s7985_s1 + $0x8] sm:$0xff]   ;;  %v5778_v9 = vld [vmem:[%s7985_s1 + $0x10] sm:$0xff]  }
   0x3   :  { %v5771_v2 = vld [vmem:[%s7985_s1 + $0xc0] sm:$0xff]   ;;  %4890 = vmatpush3.bf16.msra.mxu0 %v5770_v1  ;;  %v5775_v6 = vld [vmem:[%s7985_s1 + $0xc8] sm:$0xff]   ;;  %v5779_v10 = vld [vmem:[%s7985_s1 + $0xd0] sm:$0xff]  }
   0x4   :  { %v5772_v3 = vld [vmem:[%s7985_s1 + $0x80] sm:$0xff]   ;;  %4953 = vmatprep.subr.bf16.mxu1 %v5771_v2  ;;  %4891 = vmatprep.subr.bf16.mxu0 %v5773_v4  ;;  %v5776_v7 = vld [vmem:[%s7985_s1 + $0x88] sm:$0xff]   ;;  %v5780_v11 = vld [vmem:[%s7985_s1 + $0x90] sm:$0xff]  }
   0x5   :  { %4954 = vmatpush3.bf16.msra.mxu1 %v5772_v3  ;;  %v5781_v12 = vld [vmem:[%s7985_s1 + $0x58] sm:$0xff]   ;;  %v5785_v16 = vld [vmem:[%s7985_s1 + $0x60] sm:$0xff]   ;;  %v5789_v20 = vld [vmem:[%s7985_s1 + $0x68] sm:$0xff]  }
   0x6   :  { %4955 = vmatprep.subr.bf16.mxu1 %v5775_v6  ;;  %v5782_v13 = vld [vmem:[%s7985_s1 + $0x18] sm:$0xff]   ;;  %v5786_v17 = vld [vmem:[%s7985_s1 + $0x20] sm:$0xff]   ;;  %v5790_v21 = vld [vmem:[%s7985_s1 + $0x28] sm:$0xff]  }
   0x7   :  { %4892 = vmatpush3.bf16.msra.mxu0 %v5774_v5  ;;  %v5783_v14 = vld [vmem:[%s7985_s1 + $0xd8] sm:$0xff]   ;;  %v5787_v18 = vld [vmem:[%s7985_s1 + $0xe0] sm:$0xff]   ;;  %v5791_v22 = vld [vmem:[%s7985_s1 + $0xe8] sm:$0xff]  }
   0x8   :  { %4893 = vmatprep.subr.bf16.mxu0 %v5777_v8  ;;  %v5784_v15 = vld [vmem:[%s7985_s1 + $0x98] sm:$0xff]   ;;  %v5788_v19 = vld [vmem:[%s7985_s1 + $0xa0] sm:$0xff]   ;;  %v5792_v23 = vld [vmem:[%s7985_s1 + $0xa8] sm:$0xff]  }
   0x9   :  { %4956 = vmatpush3.bf16.msra.mxu1 %v5776_v7  ;;  %v5793_v24 = vld [vmem:[%s7985_s1 + $0x70] sm:$0xff]   ;;  %v5797_v28 = vld [vmem:[%s7985_s1 + $0x78] sm:$0xff]   ;;  %v5800_v31 = vld [vmem:[%s7986_s0] ss:$108 sps:$4 sm:$0xff]  }
   0xa   :  { %4957 = vmatprep.subr.bf16.mxu1 %v5779_v10  ;;  %v5794_v25 = vld [vmem:[%s7985_s1 + $0x30] sm:$0xff]   ;;  %v5798_v29 = vld [vmem:[%s7985_s1 + $0x38] sm:$0xff]   ;;  %v5804_v34 = vld [vmem:[%s7985_s1 + $0x140] sm:$0xff]  }
   0xb   :  { %4894 = vmatpush3.bf16.msra.mxu0 %v5778_v9  ;;  %v5795_v26 = vld [vmem:[%s7985_s1 + $0xf0] sm:$0xff]   ;;  %v5799_v30 = vld [vmem:[%s7985_s1 + $0xf8] sm:$0xff]   ;;  %v5808_v37 = vld [vmem:[%s7985_s1 + $0x100] sm:$0xff]  }
   0xc   :  { %4895 = vmatprep.subr.bf16.mxu0 %v5781_v12  ;;  %v5796_v27 = vld [vmem:[%s7985_s1 + $0xb0] sm:$0xff]   ;;  %v5803_v33 = vld [vmem:[%s7985_s1 + $0xb8] sm:$0xff]   ;;  %v5812_v40 = vld [vmem:[%s7985_s1 + $0x148] sm:$0xff]  }
   0xd   :  { %4958 = vmatpush3.bf16.msra.mxu1 %v5780_v11  ;;  %v5802_v32 = vld [vmem:[%s7986_s0 + $0x4] ss:$108 sps:$4 sm:$0xff]   ;;  %v5805_v35 = vld [vmem:[%s7986_s0 + $0x8] ss:$108 sps:$4 sm:$0xff]   ;;  %v5807_v36 = vld [vmem:[%s7986_s0 + $0xc] ss:$108 sps:$4 sm:$0xff]  }
   0xe   :  { %4959 = vmatprep.subr.bf16.mxu1 %v5783_v14  ;;  %3094 = vmatprep.mubr.bf16.mxu0 %v5802_v32  ;;  %v5809_v38 = vld [vmem:[%s7986_s0 + $0xdc] ss:$108 sps:$4 sm:$0xff]   ;;  %v5811_v39 = vld [vmem:[%s7986_s0 + $0xd8] ss:$108 sps:$4 sm:$0xff]   ;;  %v5816_v43 = vld [vmem:[%s7986_s0 + $0xe0] ss:$108 sps:$4 sm:$0xff]  }
   0xf   :  { %4896 = vmatpush3.bf16.msra.mxu0 %v5782_v13  ;;  %3191 = vmatprep.mubr.bf16.mxu1 %v5807_v36  ;;  %v5813_v41 = vld [vmem:[%s7986_s0 + $0xe4] ss:$108 sps:$4 sm:$0xff]   ;;  %v5815_v42 = vld [vmem:[%s7985_s1 + $0x108] sm:$0xff]   ;;  %v5817_v44 = vld [vmem:[%s7986_s0 + $0x1b4] ss:$108 sps:$4 sm:$0xff]  }
  0x10   :  { %4897 = vmatprep.subr.bf16.mxu0 %v5785_v16  ;;  %v5820_v45 = vld [vmem:[%s7985_s1 + $0x150] sm:$0xff]   ;;  %v5821_v46 = vld [vmem:[%s7986_s0 + $0x1bc] ss:$108 sps:$4 sm:$0xff]   ;;  %v5825_v49 = vld [vmem:[%s7986_s0 + $0x28c] ss:$108 sps:$4 sm:$0xff]  }
  0x11   :  { %4960 = vmatpush3.bf16.msra.mxu1 %v5784_v15  ;;  %v5823_v47 = vld [vmem:[%s7985_s1 + $0x110] sm:$0xff]   ;;  %v5828_v50 = vld [vmem:[%s7985_s1 + $0x158] sm:$0xff]   ;;  %v5836_v54 = vld [vmem:[%s7985_s1 + $0x160] sm:$0xff]  }
  0x12   :  { %4961 = vmatprep.subr.bf16.mxu1 %v5787_v18  ;;  %v5819_v48 = vld [vmem:[%s7986_s0 + $0x1b0] ss:$108 sps:$4 sm:$0xff]   ;;  %v5824_v51 = vld [vmem:[%s7986_s0 + $0x1b8] ss:$108 sps:$4 sm:$0xff]   ;;  %v5829_v53 = vld [vmem:[%s7986_s0 + $0x294] ss:$108 sps:$4 sm:$0xff]  }
  0x13   :  { %4898 = vmatpush3.bf16.msra.mxu0 %v5786_v17  ;;  %v5831_v52 = vld [vmem:[%s7985_s1 + $0x118] sm:$0xff]   ;;  %v5827_v55 = vld [vmem:[%s7986_s0 + $0x288] ss:$108 sps:$4 sm:$0xff]   ;;  %v5839_v56 = vld [vmem:[%s7985_s1 + $0x120] sm:$0xff]  }
  0x14   :  { %4899 = vmatprep.subr.bf16.mxu0 %v5789_v20  ;;  %v5833_v57 = vld [vmem:[%s7986_s0 + $0x364] ss:$108 sps:$4 sm:$0xff]   ;;  %v5843_v61 = vld [vmem:[%s7985_s1 + $0x1c8] sm:$0xff]   ;;  %v5855_v7 = vld [vmem:[%s7985_s1 + $0x1d8] sm:$0xff]  }
  0x15   :  { %4962 = vmatpush3.bf16.msra.mxu1 %v5788_v19  ;;  %v5832_v58 = vld [vmem:[%s7986_s0 + $0x290] ss:$108 sps:$4 sm:$0xff]   ;;  %v5841_v59 = vld [vmem:[%s7985_s1 + $0x1c0] sm:$0xff]   ;;  %v5837_v62 = vld [vmem:[%s7986_s0 + $0x36c] ss:$108 sps:$4 sm:$0xff]  }
  0x16   :  { %4963 = vmatprep.subr.bf16.mxu1 %v5791_v22  ;;  %v5842_v60 = vld [vmem:[%s7985_s1 + $0x180] sm:$0xff]   ;;  %v5846_v63 = vld [vmem:[%s7985_s1 + $0x188] sm:$0xff]   ;;  %v5853_v5 = vld [vmem:[%s7985_s1 + $0x1d0] sm:$0xff]  }
  0x17   :  { %4900 = vmatpush3.bf16.msra.mxu0 %v5790_v21  ;;  %v5848_v0 = vld [vmem:[%s7985_s1 + $0x168] sm:$0xff]   ;;  %v5854_v6 = vld [vmem:[%s7985_s1 + $0x190] sm:$0xff]   ;;  %v5858_v9 = vld [vmem:[%s7985_s1 + $0x198] sm:$0xff]  }
  0x18   :  { %4901 = vmatprep.subr.bf16.mxu0 %v5793_v24  ;;  %v5835_v1 = vld [vmem:[%s7986_s0 + $0x360] ss:$108 sps:$4 sm:$0xff]   ;;  %v5844_v2 = vld [vmem:[%s7986_s0 + $0x43c] ss:$108 sps:$4 sm:$0xff]   ;;  %v5849_v8 = vld [vmem:[%s7986_s0 + $0x444] ss:$108 sps:$4 sm:$0xff]  }
  0x19   :  { %4964 = vmatpush3.bf16.msra.mxu1 %v5792_v23  ;;  %v5851_v3 = vld [vmem:[%s7985_s1 + $0x128] sm:$0xff]   ;;  %v5860_v10 = vld [vmem:[%s7985_s1 + $0x170] sm:$0xff]   ;;  %v5847_v11 = vld [vmem:[%s7986_s0 + $0x438] ss:$108 sps:$4 sm:$0xff]  }
  0x1a   :  { %4965 = vmatprep.subr.bf16.mxu1 %v5795_v26  ;;  %v5840_v4 = vld [vmem:[%s7986_s0 + $0x368] ss:$108 sps:$4 sm:$0xff]   ;;  %v5852_v12 = vld [vmem:[%s7986_s0 + $0x440] ss:$108 sps:$4 sm:$0xff]   ;;  %v5859_v19 = vld [vmem:[%s7986_s0 + $0x510] ss:$108 sps:$4 sm:$0xff]  }
  0x1b   :  { %4902 = vmatpush3.bf16.msra.mxu0 %v5794_v25  ;;  %v5856_v13 = vld [vmem:[%s7986_s0 + $0x514] ss:$108 sps:$4 sm:$0xff]   ;;  %v5861_v15 = vld [vmem:[%s7986_s0 + $0x51c] ss:$108 sps:$4 sm:$0xff]   ;;  %v5868_v22 = vld [vmem:[%s7986_s0 + $0x5ec] ss:$108 sps:$4 sm:$0xff]  }
  0x1c   :  { %4903 = vmatprep.subr.bf16.mxu0 %v5797_v28  ;;  %v5863_v14 = vld [vmem:[%s7985_s1 + $0x130] sm:$0xff]   ;;  %v5865_v16 = vld [vmem:[%s7985_s1 + $0x1e0] sm:$0xff]   ;;  %v5867_v18 = vld [vmem:[%s7985_s1 + $0x1e8] sm:$0xff]  }
  0x1d   :  { %4966 = vmatpush3.bf16.msra.mxu1 %v5796_v27  ;;  %v5866_v17 = vld [vmem:[%s7985_s1 + $0x1a0] sm:$0xff]   ;;  %v5870_v20 = vld [vmem:[%s7985_s1 + $0x1a8] sm:$0xff]   ;;  %v5872_v21 = vld [vmem:[%s7985_s1 + $0x178] sm:$0xff]  }
  0x1e   :  { %4967 = vmatprep.subr.bf16.mxu1 %v5799_v30  ;;  %v5864_v23 = vld [vmem:[%s7986_s0 + $0x518] ss:$108 sps:$4 sm:$0xff]   ;;  %v5873_v25 = vld [vmem:[%s7986_s0 + $0x5f4] ss:$108 sps:$4 sm:$0xff]  }
  0x1f   :  { %4904 = vmatpush3.bf16.msra.mxu0 %v5798_v29  ;;  %v5875_v24 = vld [vmem:[%s7985_s1 + $0x138] sm:$0xff]   ;;  %v5877_v26 = vld [vmem:[%s7985_s1 + $0x1f0] sm:$0xff]   ;;  %v5888_v36 = vld [vmem:[%s7985_s1 + $0x200] sm:$0xff]  }
  0x20   :  { %5017 = vmatprep.subr.bf16.mxu0 %v5804_v34  ;;  %v5878_v27 = vld [vmem:[%s7985_s1 + $0x1b0] sm:$0xff]   ;;  %v5879_v28 = vld [vmem:[%s7985_s1 + $0x1f8] sm:$0xff]  }
  0x21   :  { %4968 = vmatpush3.bf16.msra.mxu1 %v5803_v33  ;;  %v5871_v29 = vld [vmem:[%s7986_s0 + $0x5e8] ss:$108 sps:$4 sm:$0xff]   ;;  %v5883_v30 = vld [vmem:[%s7985_s1 + $0x1b8] sm:$0xff]  }
  0x22   :  { %3095 = vmatmul.mubr.bf16.vlgmr.msra.gmra.mrb[0].mxu0 %v5800_v31  ;;  %5081 = vmatprep.subr.bf16.mxu1 %v5841_v59  ;;  %v5884_v31 = vld [vmem:[%s7985_s1 + $0x240] sm:$0xff]   ;;  %v5876_v33 = vld [vmem:[%s7986_s0 + $0x5f0] ss:$108 sps:$4 sm:$0xff]   ;;  %v5928_v59 = vld [vmem:[%s7985_s1 + $0x268] sm:$0xff]  }
  0x23   :  { %5018 = vmatpush3.bf16.msra.mxu0 %v5808_v37  ;;  %3102 = vmatprep.mubr.bf16.mxu0 %v5809_v38  ;;  %v5882_v32 = vld [vmem:[%s7986_s0 + $0x14] ss:$108 sps:$4 sm:$0xff]   ;;  %v5887_v34 = vld [vmem:[%s7986_s0 + $0x1c] ss:$108 sps:$4 sm:$0xff]   ;;  %v5889_v37 = vld [vmem:[%s7986_s0 + $0xec] ss:$108 sps:$4 sm:$0xff]  }
  0x24   :  { %3192 = vmatmul.mubr.bf16.vlgmr.msra.gmra.mrb[0].mxu1 %v5805_v35  ;;  %5019 = vmatprep.subr.bf16.mxu0 %v5812_v40  ;;  %v5880_v35 = vld [vmem:[%s7986_s0 + $0x10] ss:$108 sps:$4 sm:$0xff]   ;;  %v5892_v38 = vld [vmem:[%s7985_s1 + $0x248] sm:$0xff]   ;;  %v5893_v40 = vld [vmem:[%s7986_s0 + $0xf4] ss:$108 sps:$4 sm:$0xff]  }
  0x25   :  { %3199 = vmatprep.mubr.bf16.mxu1 %v5813_v41  ;;  %5082 = vmatpush3.bf16.msra.mxu1 %v5842_v60  ;;  %v5895_v41 = vld [vmem:[%s7985_s1 + $0x208] sm:$0xff]   ;;  %v5909_v60 = vld [vmem:[%s7986_s0 + $0x2a4] ss:$108 sps:$4 sm:$0xff]  }
  0x26   :  { %5083 = vmatprep.subr.bf16.mxu1 %v5843_v61  ;;  %v5931_v61 = vld [vmem:[%s7985_s1 + $0x228] sm:$0xff]  }
  0x27   :  { %5020 = vmatpush3.bf16.msra.mxu0 %v5815_v42  ;;  %v5900_v42 = vld [vmem:[%s7985_s1 + $0x250] sm:$0xff]  }
  0x28   :  { %5021 = vmatprep.subr.bf16.mxu0 %v5820_v45  ;;  %v5903_v45 = vld [vmem:[%s7985_s1 + $0x210] sm:$0xff]  }
  0x29   :  { %5084 = vmatpush3.bf16.msra.mxu1 %v5846_v63  ;;  %v5913_v63 = vld [vmem:[%s7986_s0 + $0x374] ss:$108 sps:$4 sm:$0xff]  }
  0x2a   :  { %3103 = vmatmul.mubr.bf16.gmra.mrb[4].mxu0 %v5811_v39  ;;  %5085 = vmatprep.subr.bf16.mxu1 %v5853_v5  ;;  %v5885_v39 = vld [vmem:[%s7986_s0 + $0x18] ss:$108 sps:$4 sm:$0xff]  }
  0x2b   :  { %3110 = vmatprep.mubr.bf16.mxu0 %v5817_v44  ;;  %5022 = vmatpush3.bf16.msra.mxu0 %v5823_v47  ;;  %v5897_v44 = vld [vmem:[%s7986_s0 + $0x1c4] ss:$108 sps:$4 sm:$0xff]   ;;  %v5938_v5 = vld [vmem:[%s7985_s1 + $0x298] sm:$0xff]  }
  0x2c   :  { %3200 = vmatmul.mubr.bf16.gmra.mrb[4].mxu1 %v5816_v43  ;;  %5023 = vmatprep.subr.bf16.mxu0 %v5828_v50  ;;  %v5891_v43 = vld [vmem:[%s7986_s0 + $0xe8] ss:$108 sps:$4 sm:$0xff]   ;;  %v5896_v47 = vld [vmem:[%s7986_s0 + $0xf0] ss:$108 sps:$4 sm:$0xff]   ;;  %v5916_v50 = vld [vmem:[%s7985_s1 + $0x260] sm:$0xff]  }
  0x2d   :  { %3207 = vmatprep.mubr.bf16.mxu1 %v5821_v46  ;;  %5086 = vmatpush3.bf16.msra.mxu1 %v5854_v6  ;;  %v5908_v46 = vld [vmem:[%s7985_s1 + $0x258] sm:$0xff]   ;;  %v5940_v6 = vld [vmem:[%s7985_s1 + $0x270] sm:$0xff]  }
  0x2e   :  { %5087 = vmatprep.subr.bf16.mxu1 %v5855_v7  ;;  %v5915_v7 = vld [vmem:[%s7986_s0 + $0x370] ss:$108 sps:$4 sm:$0xff]  }
  0x2f   :  { %5024 = vmatpush3.bf16.msra.mxu0 %v5831_v52  ;;  %v5921_v52 = vld [vmem:[%s7985_s1 + $0x2c0] sm:$0xff]  }
  0x30   :  { %5025 = vmatprep.subr.bf16.mxu0 %v5836_v54  ;;  %v5922_v54 = vld [vmem:[%s7985_s1 + $0x280] sm:$0xff]  }
  0x31   :  { %5088 = vmatpush3.bf16.msra.mxu1 %v5858_v9  ;;  %v5924_v9 = vld [vmem:[%s7986_s0 + $0x44c] ss:$108 sps:$4 sm:$0xff]  }
  0x32   :  { %3111 = vmatmul.mubr.bf16.gmra.mrb[8].mxu0 %v5819_v48  ;;  %5089 = vmatprep.subr.bf16.mxu1 %v5865_v16  ;;  %v5901_v48 = vld [vmem:[%s7986_s0 + $0x1cc] ss:$108 sps:$4 sm:$0xff]  }
  0x33   :  { %3118 = vmatprep.mubr.bf16.mxu0 %v5825_v49  ;;  %5026 = vmatpush3.bf16.msra.mxu0 %v5839_v56  ;;  %v5911_v49 = vld [vmem:[%s7985_s1 + $0x218] sm:$0xff]   ;;  %v5919_v56 = vld [vmem:[%s7985_s1 + $0x220] sm:$0xff]  }
  0x34   :  { %3208 = vmatmul.mubr.bf16.gmra.mrb[8].mxu1 %v5824_v51  ;;  %5027 = vmatprep.subr.bf16.mxu0 %v5848_v0  ;;  %v5899_v51 = vld [vmem:[%s7986_s0 + $0x1c0] ss:$108 sps:$4 sm:$0xff]   ;;  %v5933_v0 = vld [vmem:[%s7985_s1 + $0x2d0] sm:$0xff]   ;;  %v5952_v16 = vld [vmem:[%s7985_s1 + $0x278] sm:$0xff]  }
  0x35   :  { %3215 = vmatprep.mubr.bf16.mxu1 %v5829_v53  ;;  %5090 = vmatpush3.bf16.msra.mxu1 %v5866_v17  ;;  %v5905_v53 = vld [vmem:[%s7986_s0 + $0x29c] ss:$108 sps:$4 sm:$0xff]  }
  0x36   :  { %5091 = vmatprep.subr.bf16.mxu1 %v5867_v18  ;;  %v5927_v17 = vld [vmem:[%s7986_s0 + $0x448] ss:$108 sps:$4 sm:$0xff]   ;;  %v5936_v18 = vld [vmem:[%s7986_s0 + $0x524] ss:$108 sps:$4 sm:$0xff]  }
  0x37   :  { %5028 = vmatpush3.bf16.msra.mxu0 %v5851_v3  ;;  %v5912_v3 = vld [vmem:[%s7986_s0 + $0x2a0] ss:$108 sps:$4 sm:$0xff]  }
  0x38   :  { %5029 = vmatprep.subr.bf16.mxu0 %v5860_v10  ;;  %v5945_v10 = vld [vmem:[%s7985_s1 + $0x2e0] sm:$0xff]  }
  0x39   :  { %5092 = vmatpush3.bf16.msra.mxu1 %v5870_v20  ;;  %v5957_v20 = vld [vmem:[%s7985_s1 + $0x2f0] sm:$0xff]  }
  0x3a   :  { %3119 = vmatmul.mubr.bf16.gmra.mrb[12].mxu0 %v5827_v55  ;;  %5093 = vmatprep.subr.bf16.mxu1 %v5877_v26  ;;  %v5923_v55 = vld [vmem:[%s7985_s1 + $0x2c8] sm:$0xff]   ;;  %v5964_v26 = vld [vmem:[%s7985_s1 + $0x340] sm:$0xff]  }
  0x3b   :  { %3126 = vmatprep.mubr.bf16.mxu0 %v5833_v57  ;;  %5030 = vmatpush3.bf16.msra.mxu0 %v5863_v14  ;;  %v5904_v57 = vld [vmem:[%s7986_s0 + $0x1c8] ss:$108 sps:$4 sm:$0xff]  }
  0x3c   :  { %3216 = vmatmul.mubr.bf16.gmra.mrb[12].mxu1 %v5832_v58  ;;  %5031 = vmatprep.subr.bf16.mxu0 %v5872_v21  ;;  %v5926_v58 = vld [vmem:[%s7985_s1 + $0x288] sm:$0xff]   ;;  %v5958_v21 = vld [vmem:[%s7985_s1 + $0x2b0] sm:$0xff]  }
  0x3d   :  { %3223 = vmatprep.mubr.bf16.mxu1 %v5837_v62  ;;  %5094 = vmatpush3.bf16.msra.mxu1 %v5878_v27  ;;  %v5907_v62 = vld [vmem:[%s7986_s0 + $0x298] ss:$108 sps:$4 sm:$0xff]   ;;  %v5950_v14 = vld [vmem:[%s7985_s1 + $0x2a8] sm:$0xff]  }
  0x3e   :  { %5095 = vmatprep.subr.bf16.mxu1 %v5879_v28  ;;  %v5939_v27 = vld [vmem:[%s7986_s0 + $0x520] ss:$108 sps:$4 sm:$0xff]   ;;  %v5948_v28 = vld [vmem:[%s7986_s0 + $0x5fc] ss:$108 sps:$4 sm:$0xff]  }
  0x3f   :  { %5032 = vmatpush3.bf16.msra.mxu0 %v5875_v24  ;;  %v5941_v24 = vld [vmem:[%s7986_s0 + $0x52c] ss:$108 sps:$4 sm:$0xff]  }
  0x40   :  { %5145 = vmatprep.subr.bf16.mxu0 %v5884_v31  ;;  %v5951_v31 = vld [vmem:[%s7986_s0 + $0x5f8] ss:$108 sps:$4 sm:$0xff]  }
  0x41   :  { %5096 = vmatpush3.bf16.msra.mxu1 %v5883_v30  ;;  %v5953_v30 = vld [vmem:[%s7986_s0 + $0x604] ss:$108 sps:$4 sm:$0xff]  }
  0x42   :  { %3127 = vmatmul.mubr.bf16.gmra.mrb[16].mxu0 %v5835_v1  ;;  %5209 = vmatprep.subr.bf16.mxu1 %v5921_v52  ;;  %v5934_v1 = vld [vmem:[%s7985_s1 + $0x290] sm:$0xff]   ;;  %v5981_v52 = vld [vmem:[%s7986_s0 + $0x1dc] ss:$108 sps:$4 sm:$0xff]  }
  0x43   :  { %3134 = vmatprep.mubr.bf16.mxu0 %v5844_v2  ;;  %v5935_v2 = vld [vmem:[%s7985_s1 + $0x2d8] sm:$0xff]  }
  0x44   :  { %3224 = vmatmul.mubr.bf16.gmra.mrb[16].mxu1 %v5840_v4  ;;  %v5917_v4 = vld [vmem:[%s7986_s0 + $0x37c] ss:$108 sps:$4 sm:$0xff]  }
  0x45   :  { %3231 = vmatprep.mubr.bf16.mxu1 %v5849_v8  ;;  %v5943_v8 = vld [vmem:[%s7985_s1 + $0x230] sm:$0xff]  }
  0x4a   :  { %3135 = vmatmul.mubr.bf16.gmra.mrb[20].mxu0 %v5847_v11  ;;  %v5946_v11 = vld [vmem:[%s7985_s1 + $0x2a0] sm:$0xff]  }
  0x4b   :  { %3142 = vmatprep.mubr.bf16.mxu0 %v5856_v13  ;;  %v5920_v13 = vld [vmem:[%s7986_s0 + $0x378] ss:$108 sps:$4 sm:$0xff]  }
  0x4c   :  { %3232 = vmatmul.mubr.bf16.gmra.mrb[20].mxu1 %v5852_v12  ;;  %v5947_v12 = vld [vmem:[%s7985_s1 + $0x2e8] sm:$0xff]  }
  0x4d   :  { %3239 = vmatprep.mubr.bf16.mxu1 %v5861_v15  ;;  %v5929_v15 = vld [vmem:[%s7986_s0 + $0x454] ss:$108 sps:$4 sm:$0xff]  }
  0x52   :  { %3143 = vmatmul.mubr.bf16.gmra.mrb[24].mxu0 %v5859_v19  ;;  %v5955_v19 = vld [vmem:[%s7985_s1 + $0x238] sm:$0xff]  }
  0x53   :  { %3150 = vmatprep.mubr.bf16.mxu0 %v5868_v22  ;;  %v5959_v22 = vld [vmem:[%s7985_s1 + $0x2f8] sm:$0xff]  }
  0x54   :  { %3240 = vmatmul.mubr.bf16.gmra.mrb[24].mxu1 %v5864_v23  ;;  %v5932_v23 = vld [vmem:[%s7986_s0 + $0x450] ss:$108 sps:$4 sm:$0xff]  }
  0x55   :  { %3247 = vmatprep.mubr.bf16.mxu1 %v5873_v25  ;;  %v5963_v25 = vld [vmem:[%s7985_s1 + $0x2b8] sm:$0xff]  }
  0x5a   :  { %3151 = vmatmul.mubr.bf16.gmra.mrb[28].mxu0 %v5871_v29  ;;  %v5944_v29 = vld [vmem:[%s7986_s0 + $0x528] ss:$108 sps:$4 sm:$0xff]  }
  0x5b   :  { %3288 = vmatprep.mubr.bf16.mxu0 %v5882_v32  ;;  %v5962_v32 = vld [vmem:[%s7986_s0 + $0x24] ss:$108 sps:$4 sm:$0xff]  }
  0x5c   :  { %3248 = vmatmul.mubr.bf16.gmra.mrb[28].mxu1 %v5876_v33  ;;  %v5956_v33 = vld [vmem:[%s7986_s0 + $0x600] ss:$108 sps:$4 sm:$0xff]  }
  0x5d   :  { %3385 = vmatprep.mubr.bf16.mxu1 %v5887_v34  ;;  %v5967_v34 = vld [vmem:[%s7986_s0 + $0x2c] ss:$108 sps:$4 sm:$0xff]  }
  0x62   :  { %3289 = vmatmul.mubr.bf16.vlgmr.msra.gmra.mrb[32].mxu0 %v5880_v35  ;;  %v5960_v35 = vld [vmem:[%s7986_s0 + $0x20] ss:$108 sps:$4 sm:$0xff]  }
  0x63   :  { %5146 = vmatpush3.bf16.msra.mxu0 %v5888_v36  ;;  %3296 = vmatprep.mubr.bf16.mxu0 %v5889_v37  ;;  %v5968_v36 = vld [vmem:[%s7985_s1 + $0x300] sm:$0xff]   ;;  %v5965_v37 = vld [vmem:[%s7986_s0 + $0x28] ss:$108 sps:$4 sm:$0xff]  }
  0x64   :  { %5147 = vmatprep.subr.bf16.mxu0 %v5892_v38  ;;  %3386 = vmatmul.mubr.bf16.vlgmr.msra.gmra.mrb[32].mxu1 %v5885_v39  ;;  %v5969_v38 = vld [vmem:[%s7986_s0 + $0xfc] ss:$108 sps:$4 sm:$0xff]  }
  0x65   :  { %3393 = vmatprep.mubr.bf16.mxu1 %v5893_v40  ;;  %5210 = vmatpush3.bf16.msra.mxu1 %v5922_v54  ;;  %v5972_v39 = vld [vmem:[%s7985_s1 + $0x348] sm:$0xff]   ;;  %v5973_v40 = vld [vmem:[%s7986_s0 + $0x104] ss:$108 sps:$4 sm:$0xff]  }
  0x66   :  { %5211 = vmatprep.subr.bf16.mxu1 %v5923_v55  ;;  %v5996_v54 = vld [vmem:[%s7985_s1 + $0x360] sm:$0xff]   ;;  %v6013_v55 = vld [vmem:[%s7985_s1 + $0x3d0] sm:$0xff]  }
  0x67   :  { %5148 = vmatpush3.bf16.msra.mxu0 %v5895_v41  ;;  %v5975_v41 = vld [vmem:[%s7985_s1 + $0x308] sm:$0xff]  }
  0x68   :  { %5149 = vmatprep.subr.bf16.mxu0 %v5900_v42  ;;  %v6001_v42 = vld [vmem:[%s7985_s1 + $0x3c0] sm:$0xff]  }
  0x69   :  { %5212 = vmatpush3.bf16.msra.mxu1 %v5926_v58  ;;  %v5979_v58 = vld [vmem:[%s7986_s0 + $0x1d0] ss:$108 sps:$4 sm:$0xff]  }
  0x6a   :  { %3297 = vmatmul.mubr.bf16.gmra.mrb[36].mxu0 %v5891_v43  ;;  %5213 = vmatprep.subr.bf16.mxu1 %v5933_v0  ;;  %v6002_v43 = vld [vmem:[%s7985_s1 + $0x380] sm:$0xff]   ;;  %v6008_v0 = vld [vmem:[%s7985_s1 + $0x368] sm:$0xff]  }
  0x6b   :  { %3304 = vmatprep.mubr.bf16.mxu0 %v5897_v44  ;;  %5150 = vmatpush3.bf16.msra.mxu0 %v5903_v45  ;;  %v6003_v44 = vld [vmem:[%s7985_s1 + $0x3c8] sm:$0xff]   ;;  %v5971_v45 = vld [vmem:[%s7986_s0 + $0xf8] ss:$108 sps:$4 sm:$0xff]  }
  0x6c   :  { %5151 = vmatprep.subr.bf16.mxu0 %v5908_v46  ;;  %3394 = vmatmul.mubr.bf16.gmra.mrb[36].mxu1 %v5896_v47  ;;  %v5980_v46 = vld [vmem:[%s7985_s1 + $0x350] sm:$0xff]  }
  0x6d   :  { %3401 = vmatprep.mubr.bf16.mxu1 %v5901_v48  ;;  %5214 = vmatpush3.bf16.msra.mxu1 %v5934_v1  ;;  %v5977_v47 = vld [vmem:[%s7986_s0 + $0x1d4] ss:$108 sps:$4 sm:$0xff]   ;;  %v6006_v48 = vld [vmem:[%s7985_s1 + $0x388] sm:$0xff]  }
  0x6e   :  { %5215 = vmatprep.subr.bf16.mxu1 %v5935_v2  ;;  %v6011_v1 = vld [vmem:[%s7985_s1 + $0x328] sm:$0xff]   ;;  %v6020_v2 = vld [vmem:[%s7985_s1 + $0x370] sm:$0xff]  }
  0x6f   :  { %5152 = vmatpush3.bf16.msra.mxu0 %v5911_v49  ;;  %v5976_v49 = vld [vmem:[%s7986_s0 + $0x100] ss:$108 sps:$4 sm:$0xff]  }
  0x70   :  { %5153 = vmatprep.subr.bf16.mxu0 %v5916_v50  ;;  %v5983_v50 = vld [vmem:[%s7985_s1 + $0x310] sm:$0xff]  }
  0x71   :  { %5216 = vmatpush3.bf16.msra.mxu1 %v5938_v5  ;;  %v6026_v5 = vld [vmem:[%s7985_s1 + $0x3a0] sm:$0xff]  }
  0x72   :  { %3305 = vmatmul.mubr.bf16.gmra.mrb[40].mxu0 %v5899_v51  ;;  %5217 = vmatprep.subr.bf16.mxu1 %v5945_v10  ;;  %v5988_v51 = vld [vmem:[%s7985_s1 + $0x358] sm:$0xff]  }
  0x73   :  { %3312 = vmatprep.mubr.bf16.mxu0 %v5905_v53  ;;  %5154 = vmatpush3.bf16.msra.mxu0 %v5919_v56  ;;  %v5991_v53 = vld [vmem:[%s7985_s1 + $0x318] sm:$0xff]   ;;  %v6014_v56 = vld [vmem:[%s7985_s1 + $0x390] sm:$0xff]  }
  0x74   :  { %5155 = vmatprep.subr.bf16.mxu0 %v5928_v59  ;;  %3402 = vmatmul.mubr.bf16.gmra.mrb[40].mxu1 %v5904_v57  ;;  %v6015_v57 = vld [vmem:[%s7985_s1 + $0x3d8] sm:$0xff]  }
  0x75   :  { %3409 = vmatprep.mubr.bf16.mxu1 %v5909_v60  ;;  %5218 = vmatpush3.bf16.msra.mxu1 %v5946_v11  ;;  %v5985_v59 = vld [vmem:[%s7986_s0 + $0x2ac] ss:$108 sps:$4 sm:$0xff]   ;;  %v5992_v11 = vld [vmem:[%s7986_s0 + $0x2b0] ss:$108 sps:$4 sm:$0xff]  }
  0x76   :  { %5219 = vmatprep.subr.bf16.mxu1 %v5947_v12  ;;  %v6018_v60 = vld [vmem:[%s7985_s1 + $0x398] sm:$0xff]  }
  0x77   :  { %5156 = vmatpush3.bf16.msra.mxu0 %v5931_v61  ;;  %v5984_v61 = vld [vmem:[%s7986_s0 + $0x1d8] ss:$108 sps:$4 sm:$0xff]  }
  0x78   :  { %5157 = vmatprep.subr.bf16.mxu0 %v5940_v6  ;;  %v6027_v6 = vld [vmem:[%s7985_s1 + $0x3e8] sm:$0xff]   ;;  %v6032_v10 = vld [vmem:[%s7985_s1 + $0x378] sm:$0xff]  }
  0x79   :  { %5220 = vmatpush3.bf16.msra.mxu1 %v5950_v14  ;;  %v5997_v12 = vld [vmem:[%s7986_s0 + $0x38c] ss:$108 sps:$4 sm:$0xff]   ;;  %v6037_v14 = vld [vmem:[%s7985_s1 + $0x3f0] sm:$0xff]  }
  0x7a   :  { %3313 = vmatmul.mubr.bf16.gmra.mrb[44].mxu0 %v5907_v62  ;;  %5221 = vmatprep.subr.bf16.mxu1 %v5957_v20  ;;  %v5999_v62 = vld [vmem:[%s7985_s1 + $0x320] sm:$0xff]   ;;  %v6043_v20 = vld [vmem:[%s7985_s1 + $0x3b8] sm:$0xff]  }
  0x7b   :  { %3320 = vmatprep.mubr.bf16.mxu0 %v5913_v63  ;;  %5158 = vmatpush3.bf16.msra.mxu0 %v5943_v8  ;;  %v5989_v63 = vld [vmem:[%s7986_s0 + $0x2b4] ss:$108 sps:$4 sm:$0xff]  }
  0x7c   :  { %3410 = vmatmul.mubr.bf16.gmra.mrb[44].mxu1 %v5912_v3  ;;  %5159 = vmatprep.subr.bf16.mxu0 %v5952_v16  ;;  %v6025_v3 = vld [vmem:[%s7985_s1 + $0x3e0] sm:$0xff]   ;;  %v6023_v8 = vld [vmem:[%s7985_s1 + $0x330] sm:$0xff]   ;;  %v6039_v16 = vld [vmem:[%s7985_s1 + $0x3f8] sm:$0xff]  }
  0x7d   :  { %3417 = vmatprep.mubr.bf16.mxu1 %v5917_v4  ;;  %5222 = vmatpush3.bf16.msra.mxu1 %v5958_v21  ;;  %v5987_v4 = vld [vmem:[%s7986_s0 + $0x2a8] ss:$108 sps:$4 sm:$0xff]   ;;  %v6044_v21 = vld [vmem:[%s7985_s1 + $0x440] sm:$0xff]  }
  0x7e   :  { %5223 = vmatprep.subr.bf16.mxu1 %v5959_v22  ;;  %v6009_v22 = vld [vmem:[%s7986_s0 + $0x464] ss:$108 sps:$4 sm:$0xff]  }
  0x7f   :  { %5160 = vmatpush3.bf16.msra.mxu0 %v5955_v19  ;;  %v6004_v19 = vld [vmem:[%s7986_s0 + $0x45c] ss:$108 sps:$4 sm:$0xff]  }
  0x80   :  { %5273 = vmatprep.subr.bf16.mxu0 %v5964_v26  ;;  %v6021_v26 = vld [vmem:[%s7986_s0 + $0x53c] ss:$108 sps:$4 sm:$0xff]  }
  0x81   :  { %5224 = vmatpush3.bf16.msra.mxu1 %v5963_v25  ;;  %v6012_v25 = vld [vmem:[%s7986_s0 + $0x460] ss:$108 sps:$4 sm:$0xff]  }
  0x82   :  { %3321 = vmatmul.mubr.bf16.gmra.mrb[48].mxu0 %v5915_v7  ;;  %5337 = vmatprep.subr.bf16.mxu1 %v6001_v42  ;;  %v5993_v7 = vld [vmem:[%s7986_s0 + $0x384] ss:$108 sps:$4 sm:$0xff]   ;;  %v6055_v42 = vld [vmem:[%s7985_s1 + $0x408] sm:$0xff]  }
  0x83   :  { %3328 = vmatprep.mubr.bf16.mxu0 %v5924_v9  ;;  %v6030_v9 = vld [vmem:[%s7985_s1 + $0x3a8] sm:$0xff]  }
  0x84   :  { %3418 = vmatmul.mubr.bf16.gmra.mrb[48].mxu1 %v5920_v13  ;;  %v6035_v13 = vld [vmem:[%s7985_s1 + $0x338] sm:$0xff]  }
  0x85   :  { %3425 = vmatprep.mubr.bf16.mxu1 %v5929_v15  ;;  %v6038_v15 = vld [vmem:[%s7985_s1 + $0x3b0] sm:$0xff]  }
  0x8a   :  { %3329 = vmatmul.mubr.bf16.gmra.mrb[52].mxu0 %v5927_v17  ;;  %v5995_v17 = vld [vmem:[%s7986_s0 + $0x380] ss:$108 sps:$4 sm:$0xff]  }
  0x8b   :  { %3336 = vmatprep.mubr.bf16.mxu0 %v5936_v18  ;;  %v6000_v18 = vld [vmem:[%s7986_s0 + $0x388] ss:$108 sps:$4 sm:$0xff]  }
  0x8c   :  { %3426 = vmatmul.mubr.bf16.gmra.mrb[52].mxu1 %v5932_v23  ;;  %v6007_v23 = vld [vmem:[%s7986_s0 + $0x458] ss:$108 sps:$4 sm:$0xff]  }
  0x8d   :  { %3433 = vmatprep.mubr.bf16.mxu1 %v5941_v24  ;;  %v6016_v24 = vld [vmem:[%s7986_s0 + $0x534] ss:$108 sps:$4 sm:$0xff]  }
  0x92   :  { %3337 = vmatmul.mubr.bf16.gmra.mrb[56].mxu0 %v5939_v27  ;;  %v6019_v27 = vld [vmem:[%s7986_s0 + $0x530] ss:$108 sps:$4 sm:$0xff]  }
  0x93   :  { %3344 = vmatprep.mubr.bf16.mxu0 %v5948_v28  ;;  %v6028_v28 = vld [vmem:[%s7986_s0 + $0x60c] ss:$108 sps:$4 sm:$0xff]  }
  0x94   :  { %3434 = vmatmul.mubr.bf16.gmra.mrb[56].mxu1 %v5944_v29  ;;  %v6024_v29 = vld [vmem:[%s7986_s0 + $0x538] ss:$108 sps:$4 sm:$0xff]  }
  0x95   :  { %3441 = vmatprep.mubr.bf16.mxu1 %v5953_v30  ;;  %v6033_v30 = vld [vmem:[%s7986_s0 + $0x614] ss:$108 sps:$4 sm:$0xff]  }
  0x9a   :  { %3345 = vmatmul.mubr.bf16.gmra.mrb[60].mxu0 %v5951_v31  ;;  %v6031_v31 = vld [vmem:[%s7986_s0 + $0x608] ss:$108 sps:$4 sm:$0xff]  }
  0x9b   :  { %3482 = vmatprep.mubr.bf16.mxu0 %v5962_v32  ;;  %v6042_v32 = vld [vmem:[%s7986_s0 + $0x34] ss:$108 sps:$4 sm:$0xff]  }
  0x9c   :  { %3442 = vmatmul.mubr.bf16.gmra.mrb[60].mxu1 %v5956_v33  ;;  %v6081_v33 = vld [vmem:[%s7985_s1 + $0x4c0] sm:$0xff]  }
  0x9d   :  { %3579 = vmatprep.mubr.bf16.mxu1 %v5967_v34  ;;  %v6036_v34 = vld [vmem:[%s7986_s0 + $0x610] ss:$108 sps:$4 sm:$0xff]  }
  0xa2   :  { %3483 = vmatmul.mubr.bf16.vlgmr.msra.gmra.mrb[64].mxu0 %v5960_v35  ;;  %v6047_v35 = vld [vmem:[%s7986_s0 + $0x3c] ss:$108 sps:$4 sm:$0xff]  }
  0xa3   :  { %5274 = vmatpush3.bf16.msra.mxu0 %v5968_v36  ;;  %3490 = vmatprep.mubr.bf16.mxu0 %v5969_v38  ;;  %v6040_v36 = vld [vmem:[%s7986_s0 + $0x30] ss:$108 sps:$4 sm:$0xff]   ;;  %v6049_v38 = vld [vmem:[%s7986_s0 + $0x10c] ss:$108 sps:$4 sm:$0xff]  }
  0xa4   :  { %5275 = vmatprep.subr.bf16.mxu0 %v5972_v39  ;;  %3580 = vmatmul.mubr.bf16.vlgmr.msra.gmra.mrb[64].mxu1 %v5965_v37  ;;  %v6048_v37 = vld [vmem:[%s7985_s1 + $0x400] sm:$0xff]  }
  0xa5   :  { %3587 = vmatprep.mubr.bf16.mxu1 %v5973_v40  ;;  %5338 = vmatpush3.bf16.msra.mxu1 %v6002_v43  ;;  %v6045_v39 = vld [vmem:[%s7986_s0 + $0x38] ss:$108 sps:$4 sm:$0xff]   ;;  %v6052_v40 = vld [vmem:[%s7985_s1 + $0x448] sm:$0xff]  }
  0xa6   :  { %5339 = vmatprep.subr.bf16.mxu1 %v6003_v44  ;;  %v6082_v43 = vld [vmem:[%s7985_s1 + $0x480] sm:$0xff]   ;;  %v6083_v44 = vld [vmem:[%s7985_s1 + $0x4c8] sm:$0xff]  }
  0xa7   :  { %5276 = vmatpush3.bf16.msra.mxu0 %v5975_v41  ;;  %v6053_v41 = vld [vmem:[%s7986_s0 + $0x114] ss:$108 sps:$4 sm:$0xff]  }
  0xa8   :  { %5277 = vmatprep.subr.bf16.mxu0 %v5980_v46  ;;  %v6060_v46 = vld [vmem:[%s7985_s1 + $0x450] sm:$0xff]  }
  0xa9   :  { %5340 = vmatpush3.bf16.msra.mxu1 %v6006_v48  ;;  %v6086_v48 = vld [vmem:[%s7985_s1 + $0x488] sm:$0xff]  }
  0xaa   :  { %3491 = vmatmul.mubr.bf16.gmra.mrb[68].mxu0 %v5971_v45  ;;  %5341 = vmatprep.subr.bf16.mxu1 %v6013_v55  ;;  %v6051_v45 = vld [vmem:[%s7986_s0 + $0x108] ss:$108 sps:$4 sm:$0xff]  }
  0xab   :  { %3498 = vmatprep.mubr.bf16.mxu0 %v5977_v47  ;;  %5278 = vmatpush3.bf16.msra.mxu0 %v5983_v50  ;;  %v6057_v47 = vld [vmem:[%s7986_s0 + $0x1e4] ss:$108 sps:$4 sm:$0xff]  }
  0xac   :  { %5279 = vmatprep.subr.bf16.mxu0 %v5988_v51  ;;  %3588 = vmatmul.mubr.bf16.gmra.mrb[68].mxu1 %v5976_v49  ;;  %v6056_v49 = vld [vmem:[%s7986_s0 + $0x110] ss:$108 sps:$4 sm:$0xff]  }
  0xad   :  { %3595 = vmatprep.mubr.bf16.mxu1 %v5981_v52  ;;  %5342 = vmatpush3.bf16.msra.mxu1 %v6014_v56  ;;  %v6063_v50 = vld [vmem:[%s7985_s1 + $0x410] sm:$0xff]   ;;  %v6068_v51 = vld [vmem:[%s7985_s1 + $0x458] sm:$0xff]  }
  0xae   :  { %5343 = vmatprep.subr.bf16.mxu1 %v6015_v57  ;;  %v6061_v52 = vld [vmem:[%s7986_s0 + $0x1ec] ss:$108 sps:$4 sm:$0xff]   ;;  %v6094_v55 = vld [vmem:[%s7985_s1 + $0x490] sm:$0xff]  }
  0xaf   :  { %5280 = vmatpush3.bf16.msra.mxu0 %v5991_v53  ;;  %v6093_v53 = vld [vmem:[%s7985_s1 + $0x4d0] sm:$0xff]   ;;  %v6095_v56 = vld [vmem:[%s7985_s1 + $0x4d8] sm:$0xff]   ;;  %v6059_v57 = vld [vmem:[%s7986_s0 + $0x1e0] ss:$108 sps:$4 sm:$0xff]  }
  0xb0   :  { %5281 = vmatprep.subr.bf16.mxu0 %v5996_v54  ;;  %v6071_v54 = vld [vmem:[%s7985_s1 + $0x418] sm:$0xff]  }
  0xb1   :  { %5344 = vmatpush3.bf16.msra.mxu1 %v6018_v60  ;;  %v6098_v60 = vld [vmem:[%s7985_s1 + $0x498] sm:$0xff]  }
  0xb2   :  { %3499 = vmatmul.mubr.bf16.gmra.mrb[72].mxu0 %v5979_v58  ;;  %5345 = vmatprep.subr.bf16.mxu1 %v6025_v3  ;;  %v6076_v58 = vld [vmem:[%s7985_s1 + $0x460] sm:$0xff]  }
  0xb3   :  { %3506 = vmatprep.mubr.bf16.mxu0 %v5985_v59  ;;  %5282 = vmatpush3.bf16.msra.mxu0 %v5999_v62  ;;  %v6065_v59 = vld [vmem:[%s7986_s0 + $0x2bc] ss:$108 sps:$4 sm:$0xff]   ;;  %v6079_v62 = vld [vmem:[%s7985_s1 + $0x420] sm:$0xff]  }
  0xb4   :  { %5283 = vmatprep.subr.bf16.mxu0 %v6008_v0  ;;  %3596 = vmatmul.mubr.bf16.gmra.mrb[72].mxu1 %v5984_v61  ;;  %v6064_v61 = vld [vmem:[%s7986_s0 + $0x1e8] ss:$108 sps:$4 sm:$0xff]   ;;  %v6106_v3 = vld [vmem:[%s7985_s1 + $0x4a0] sm:$0xff]  }
  0xb5   :  { %3603 = vmatprep.mubr.bf16.mxu1 %v5989_v63  ;;  %5346 = vmatpush3.bf16.msra.mxu1 %v6026_v5  ;;  %v6069_v63 = vld [vmem:[%s7986_s0 + $0x2c4] ss:$108 sps:$4 sm:$0xff]   ;;  %v6088_v0 = vld [vmem:[%s7985_s1 + $0x468] sm:$0xff]   ;;  %v7111_v5 = vld [vmem:[%s7987_s2] ss:$0 sm:$0xff] }
  0xb6   :  { %5347 = vmatprep.subr.bf16.mxu1 %v6027_v6  ;;  %v6067_v6 = vld [vmem:[%s7986_s0 + $0x2b8] ss:$108 sps:$4 sm:$0xff]  }
  0xb7   :  { %5284 = vmatpush3.bf16.msra.mxu0 %v6011_v1  ;;  %v6105_v1 = vld [vmem:[%s7985_s1 + $0x4e0] sm:$0xff]  }
  0xb8   :  { %5285 = vmatprep.subr.bf16.mxu0 %v6020_v2  ;;  %v6091_v2 = vld [vmem:[%s7985_s1 + $0x428] sm:$0xff]  }
  0xb9   :  { %5348 = vmatpush3.bf16.msra.mxu1 %v6030_v9  ;;  %v6073_v9 = vld [vmem:[%s7986_s0 + $0x394] ss:$108 sps:$4 sm:$0xff]  }
  0xba   :  { %3507 = vmatmul.mubr.bf16.gmra.mrb[76].mxu0 %v5987_v4  ;;  %5349 = vmatprep.subr.bf16.mxu1 %v6037_v14  ;;  %v6107_v4 = vld [vmem:[%s7985_s1 + $0x4e8] sm:$0xff]  }
  0xbb   :  { %3514 = vmatprep.mubr.bf16.mxu0 %v5993_v7  ;;  %5286 = vmatpush3.bf16.msra.mxu0 %v6023_v8  ;;  %v6100_v7 = vld [vmem:[%s7985_s1 + $0x470] sm:$0xff]   ;;  %v6072_v14 = vld [vmem:[%s7986_s0 + $0x2c0] ss:$108 sps:$4 sm:$0xff]  }
  0xbc   :  { %5287 = vmatprep.subr.bf16.mxu0 %v6032_v10  ;;  %3604 = vmatmul.mubr.bf16.gmra.mrb[76].mxu1 %v5992_v11  ;;  %v6110_v11 = vld [vmem:[%s7985_s1 + $0x4a8] sm:$0xff]  }
  0xbd   :  { %3611 = vmatprep.mubr.bf16.mxu1 %v5997_v12  ;;  %5350 = vmatpush3.bf16.msra.mxu1 %v6038_v15  ;;  %v6103_v15 = vld [vmem:[%s7985_s1 + $0x430] sm:$0xff]  }
  0xbe   :  { %5351 = vmatprep.subr.bf16.mxu1 %v6039_v16 }
  0xbf   :  { %5288 = vmatpush3.bf16.msra.mxu0 %v6035_v13 }
  0xc0   :  { %5401 = vmatprep.subr.bf16.mxu0 %v6044_v21 }
  0xc1   :  { %5352 = vmatpush3.bf16.msra.mxu1 %v6043_v20 }
  0xc2   :  { %3515 = vmatmul.mubr.bf16.gmra.mrb[80].mxu0 %v5995_v17  ;;  %5465 = vmatprep.subr.bf16.mxu1 %v6081_v33  ;;  %v6075_v33 = vld [vmem:[%s7986_s0 + $0x390] ss:$108 sps:$4 sm:$0xff]  }
  0xc3   :  { %3522 = vmatprep.mubr.bf16.mxu0 %v6004_v19  ;;  %v6117_v19 = vld [vmem:[%s7985_s1 + $0x4f0] sm:$0xff]  }
  0xc4   :  { %3612 = vmatmul.mubr.bf16.gmra.mrb[80].mxu1 %v6000_v18  ;;  %v6112_v18 = vld [vmem:[%s7985_s1 + $0x478] sm:$0xff]  }
  0xc5   :  { %3619 = vmatprep.mubr.bf16.mxu1 %v6009_v22 }
  0xca   :  { %3523 = vmatmul.mubr.bf16.gmra.mrb[84].mxu0 %v6007_v23  ;;  %v6077_v23 = vld [vmem:[%s7986_s0 + $0x39c] ss:$108 sps:$4 sm:$0xff]  }
  0xcb   :  { %3530 = vmatprep.mubr.bf16.mxu0 %v6016_v24 }
  0xcc   :  { %3620 = vmatmul.mubr.bf16.gmra.mrb[84].mxu1 %v6012_v25 }
  0xcd   :  { %3627 = vmatprep.mubr.bf16.mxu1 %v6021_v26  ;;  %v6115_v26 = vld [vmem:[%s7985_s1 + $0x438] sm:$0xff]  }
  0xd2   :  { %3531 = vmatmul.mubr.bf16.gmra.mrb[88].mxu0 %v6019_v27  ;;  %v6118_v27 = vld [vmem:[%s7985_s1 + $0x4b0] sm:$0xff]  }
  0xd3   :  { %3538 = vmatprep.mubr.bf16.mxu0 %v6028_v28 }
  0xd4   :  { %3628 = vmatmul.mubr.bf16.gmra.mrb[88].mxu1 %v6024_v29 }
  0xd5   :  { %3635 = vmatprep.mubr.bf16.mxu1 %v6033_v30  ;;  %v6119_v30 = vld [vmem:[%s7985_s1 + $0x4f8] sm:$0xff]  }
  0xda   :  { %3539 = vmatmul.mubr.bf16.gmra.mrb[92].mxu0 %v6031_v31 }
  0xdb   :  { %3676 = vmatprep.mubr.bf16.mxu0 %v6042_v32 }
  0xdc   :  { %3636 = vmatmul.mubr.bf16.gmra.mrb[92].mxu1 %v6036_v34  ;;  %v6124_v34 = vld [vmem:[%s7985_s1 + $0x540] sm:$0xff]  }
  0xdd   :  { %3773 = vmatprep.mubr.bf16.mxu1 %v6047_v35 }
  0xe2   :  { %3677 = vmatmul.mubr.bf16.vlgmr.msra.gmra.mrb[96].mxu0 %v6040_v36 }
  0xe3   :  { %5402 = vmatpush3.bf16.msra.mxu0 %v6048_v37  ;;  %3684 = vmatprep.mubr.bf16.mxu0 %v6049_v38  ;;  %v6123_v38 = vld [vmem:[%s7985_s1 + $0x4b8] sm:$0xff]  }
  0xe4   :  { %5403 = vmatprep.subr.bf16.mxu0 %v6052_v40  ;;  %3774 = vmatmul.mubr.bf16.vlgmr.msra.gmra.mrb[96].mxu1 %v6045_v39 }
  0xe5   :  { %3781 = vmatprep.mubr.bf16.mxu1 %v6053_v41  ;;  %5466 = vmatpush3.bf16.msra.mxu1 %v6082_v43  ;;  %v6080_v41 = vld [vmem:[%s7986_s0 + $0x398] ss:$108 sps:$4 sm:$0xff]  }
  0xe6   :  { %5467 = vmatprep.subr.bf16.mxu1 %v6083_v44 }
  0xe7   :  { %5404 = vmatpush3.bf16.msra.mxu0 %v6055_v42  ;;  %v6084_v42 = vld [vmem:[%s7986_s0 + $0x46c] ss:$108 sps:$4 sm:$0xff]  }
  0xe8   :  { %5405 = vmatprep.subr.bf16.mxu0 %v6060_v46 }
  0xe9   :  { %5468 = vmatpush3.bf16.msra.mxu1 %v6086_v48  ;;  %v6089_v48 = vld [vmem:[%s7986_s0 + $0x474] ss:$108 sps:$4 sm:$0xff]  }
  0xea   :  { %3685 = vmatmul.mubr.bf16.gmra.mrb[100].mxu0 %v6051_v45  ;;  %5469 = vmatprep.subr.bf16.mxu1 %v6093_v53 }
  0xeb   :  { %3692 = vmatprep.mubr.bf16.mxu0 %v6057_v47  ;;  %5406 = vmatpush3.bf16.msra.mxu0 %v6063_v50 }
  0xec   :  { %5407 = vmatprep.subr.bf16.mxu0 %v6068_v51  ;;  %3782 = vmatmul.mubr.bf16.gmra.mrb[100].mxu1 %v6056_v49 }
  0xed   :  { %3789 = vmatprep.mubr.bf16.mxu1 %v6061_v52  ;;  %5470 = vmatpush3.bf16.msra.mxu1 %v6094_v55 }
  0xee   :  { %5471 = vmatprep.subr.bf16.mxu1 %v6095_v56 }
  0xef   :  { %5408 = vmatpush3.bf16.msra.mxu0 %v6071_v54 }
  0xf0   :  { %5409 = vmatprep.subr.bf16.mxu0 %v6076_v58  ;;  %v6087_v58 = vld [vmem:[%s7986_s0 + $0x468] ss:$108 sps:$4 sm:$0xff]  }
  0xf1   :  { %5472 = vmatpush3.bf16.msra.mxu1 %v6098_v60 }
  0xf2   :  { %3693 = vmatmul.mubr.bf16.gmra.mrb[104].mxu0 %v6059_v57  ;;  %5473 = vmatprep.subr.bf16.mxu1 %v6105_v1 }
  0xf3   :  { %3700 = vmatprep.mubr.bf16.mxu0 %v6065_v59  ;;  %5410 = vmatpush3.bf16.msra.mxu0 %v6079_v62 }
  0xf4   :  { %5411 = vmatprep.subr.bf16.mxu0 %v6088_v0  ;;  %3790 = vmatmul.mubr.bf16.gmra.mrb[104].mxu1 %v6064_v61  ;;  %v6096_v61 = vld [vmem:[%s7986_s0 + $0x544] ss:$108 sps:$4 sm:$0xff]  }
  0xf5   :  { %v4905_v8 = vpop.f32.mrb[0].mxu0  ;;  %3797 = vmatprep.mubr.bf16.mxu1 %v6069_v63  ;;  %5474 = vmatpush3.bf16.msra.mxu1 %v6106_v3  ;;  %v6092_v0 = vld [vmem:[%s7986_s0 + $0x470] ss:$108 sps:$4 sm:$0xff]  }
  0xf6   :  { %v4906_v10 = vpop.f32.mrb[1].mxu0  ;;  %5475 = vmatprep.subr.bf16.mxu1 %v6107_v4  ;;  %v6101_v4 = vld [vmem:[%s7986_s0 + $0x54c] ss:$108 sps:$4 sm:$0xff]  }
  0xf7   :  { %v4907_v12 = vadd.f32 %v4906_v10, %v4905_v8  ;;  %v4908_v13 = vpop.f32.mrb[2].mxu0  ;;  %5412 = vmatpush3.bf16.msra.mxu0 %v6091_v2  ;;  %v4969_v16 = vpop.f32.mrb[0].mxu1 }
  0xf8   :  { %v4909_v17 = vpop.f32.mrb[3].mxu0  ;;  %5413 = vmatprep.subr.bf16.mxu0 %v6100_v7  ;;  %v4970_v22 = vpop.f32.mrb[1].mxu1 }
  0xf9   :  { %v3097_v20 = vadd.f32 %v4907_v12, %v7111_v5  ;;  %v4910_v21 = vadd.f32 %v4909_v17, %v4908_v13  ;;  %v4971_v24 = vadd.f32 %v4970_v22, %v4969_v16  ;;  %v4972_v25 = vpop.f32.mrb[2].mxu1  ;;  %5476 = vmatpush3.bf16.msra.mxu1 %v6110_v11  ;;  %v6099_v12 = vld [vmem:[%s7986_s0 + $0x540] ss:$108 sps:$4 sm:$0xff]   ;;  %v6104_v22 = vld [vmem:[%s7986_s0 + $0x548] ss:$108 sps:$4 sm:$0xff]  }
  0xfa   :  { %3701 = vmatmul.mubr.bf16.gmra.mrb[108].mxu0 %v6067_v6  ;;  %v4973_v29 = vpop.f32.mrb[3].mxu1  ;;  %5477 = vmatprep.subr.bf16.mxu1 %v6117_v19  ;;  %v6108_v19 = vld [vmem:[%s7986_s0 + $0x61c] ss:$108 sps:$4 sm:$0xff]  }
  0xfb   :  { %v3100_v28 = vadd.f32 %v4910_v21, %v7111_v5  ;;  %3708 = vmatprep.mubr.bf16.mxu0 %v6073_v9  ;;  %5414 = vmatpush3.bf16.msra.mxu0 %v6103_v15  ;;  %v7151_v31 = vadd.f32 %v4971_v24, %v3097_v20  ;;  %v4974_v32 = vadd.f32 %v4973_v29, %v4972_v25 }
  0xfc   :  { %5415 = vmatprep.subr.bf16.mxu0 %v6112_v18  ;;  %3798 = vmatmul.mubr.bf16.gmra.mrb[108].mxu1 %v6072_v14  ;;  %v6161_v14 = vld [vmem:[%s7985_s1 + $0x5c0] sm:$0xff]  }
  0xfd   :  { %v4911_v35 = vpop.f32.mrb[4].mxu0  ;;  %v7159_v36 = vadd.f32 %v4974_v32, %v3100_v28  ;;  %3805 = vmatprep.mubr.bf16.mxu1 %v6077_v23  ;;  %5478 = vmatpush3.bf16.msra.mxu1 %v6118_v27  ;;  %v6113_v28 = vld [vmem:[%s7986_s0 + $0x624] ss:$108 sps:$4 sm:$0xff]  }
  0xfe   :  { %v4912_v37 = vpop.f32.mrb[5].mxu0  ;;  %5479 = vmatprep.subr.bf16.mxu1 %v6119_v30 }
  0xff   :  { %v4913_v39 = vadd.f32 %v4912_v37, %v4911_v35  ;;  %v4914_v40 = vpop.f32.mrb[6].mxu0  ;;  %5416 = vmatpush3.bf16.msra.mxu0 %v6115_v26  ;;  %v4975_v43 = vpop.f32.mrb[4].mxu1  ;;  %v6122_v37 = vld [vmem:[%s7986_s0 + $0x44] ss:$108 sps:$4 sm:$0xff]  }
 0x100   :  { %v4915_v44 = vpop.f32.mrb[7].mxu0  ;;  %5529 = vmatprep.subr.bf16.mxu0 %v6124_v34  ;;  %v4976_v47 = vpop.f32.mrb[5].mxu1  ;;  %v6111_v34 = vld [vmem:[%s7986_s0 + $0x618] ss:$108 sps:$4 sm:$0xff]  }
 0x101   :  { %v3105_v45 = vadd.f32 %v4913_v39, %v7111_v5  ;;  %v4916_v46 = vadd.f32 %v4915_v44, %v4914_v40  ;;  %v4977_v49 = vadd.f32 %v4976_v47, %v4975_v43  ;;  %v4978_v50 = vpop.f32.mrb[6].mxu1  ;;  %5480 = vmatpush3.bf16.msra.mxu1 %v6123_v38  ;;  %v6116_v47 = vld [vmem:[%s7986_s0 + $0x620] ss:$108 sps:$4 sm:$0xff]  }
 0x102   :  { %3709 = vmatmul.mubr.bf16.gmra.mrb[112].mxu0 %v6075_v33  ;;  %v4979_v52 = vpop.f32.mrb[7].mxu1  ;;  %5593 = vmatprep.subr.bf16.mxu1 %v6161_v14  ;;  %v6162_v14 = vld [vmem:[%s7985_s1 + $0x580] sm:$0xff]  }
 0x103   :  { %v3108_v51 = vadd.f32 %v4916_v46, %v7111_v5  ;;  %3716 = vmatprep.mubr.bf16.mxu0 %v6084_v42  ;;  %v7175_v53 = vadd.f32 %v4977_v49, %v3105_v45  ;;  %v4980_v54 = vadd.f32 %v4979_v52, %v4978_v50  ;;  %v6127_v50 = vld [vmem:[%s7986_s0 + $0x4c] ss:$108 sps:$4 sm:$0xff]  }
 0x104   :  { %3806 = vmatmul.mubr.bf16.gmra.mrb[112].mxu1 %v6080_v41 }
 0x105   :  { %v4917_v55 = vpop.f32.mrb[8].mxu0  ;;  %v7177_v56 = vadd.f32 %v4980_v54, %v3108_v51  ;;  %3813 = vmatprep.mubr.bf16.mxu1 %v6089_v48 }
 0x106   :  { %v4918_v57 = vpop.f32.mrb[9].mxu0 }
 0x107   :  { %v4919_v59 = vadd.f32 %v4918_v57, %v4917_v55  ;;  %v4920_v60 = vpop.f32.mrb[10].mxu0  ;;  %v4981_v62 = vpop.f32.mrb[8].mxu1  ;;  %v6120_v57 = vld [vmem:[%s7986_s0 + $0x40] ss:$108 sps:$4 sm:$0xff]  }
 0x108   :  { %v4921_v63 = vpop.f32.mrb[11].mxu0  ;;  %v4982_v3 = vpop.f32.mrb[9].mxu1 }
 0x109   :  { %v3113_v1 = vadd.f32 %v4919_v59, %v7111_v5  ;;  %v4922_v2 = vadd.f32 %v4921_v63, %v4920_v60  ;;  %v4983_v6 = vadd.f32 %v4982_v3, %v4981_v62  ;;  %v4984_v7 = vpop.f32.mrb[10].mxu1  ;;  %v6129_v59 = vld [vmem:[%s7986_s0 + $0x11c] ss:$108 sps:$4 sm:$0xff]   ;;  %v6128_v62 = vld [vmem:[%s7985_s1 + $0x500] sm:$0xff]  }
 0x10a   :  { %3717 = vmatmul.mubr.bf16.gmra.mrb[116].mxu0 %v6087_v58  ;;  %v4985_v9 = vpop.f32.mrb[11].mxu1 }
 0x10b   :  { %v3116_v8 = vadd.f32 %v4922_v2, %v7111_v5  ;;  %3724 = vmatprep.mubr.bf16.mxu0 %v6096_v61  ;;  %v7193_v10 = vadd.f32 %v4983_v6, %v3113_v1  ;;  %v4986_v11 = vadd.f32 %v4985_v9, %v4984_v7  ;;  %v6125_v1 = vld [vmem:[%s7986_s0 + $0x48] ss:$108 sps:$4 sm:$0xff]   ;;  %v6133_v9 = vld [vmem:[%s7986_s0 + $0x124] ss:$108 sps:$4 sm:$0xff]  }
 0x10c   :  { %3814 = vmatmul.mubr.bf16.gmra.mrb[116].mxu1 %v6092_v0  ;;  %v6132_v2 = vld [vmem:[%s7985_s1 + $0x548] sm:$0xff]  }
 0x10d   :  { %v4923_v13 = vpop.f32.mrb[12].mxu0  ;;  %v7201_v15 = vadd.f32 %v4986_v11, %v3116_v8  ;;  %3821 = vmatprep.mubr.bf16.mxu1 %v6101_v4 }
 0x10e   :  { %v4924_v16 = vpop.f32.mrb[13].mxu0 }
 0x10f   :  { %v4925_v17 = vadd.f32 %v4924_v16, %v4923_v13  ;;  %v4926_v18 = vpop.f32.mrb[14].mxu0  ;;  %v4987_v20 = vpop.f32.mrb[12].mxu1  ;;  %v6135_v13 = vld [vmem:[%s7985_s1 + $0x508] sm:$0xff]  }
 0x110   :  { %v4927_v21 = vpop.f32.mrb[15].mxu0  ;;  %v4988_v25 = vpop.f32.mrb[13].mxu1 }
 0x111   :  { %v3121_v23 = vadd.f32 %v4925_v17, %v7111_v5  ;;  %v4928_v24 = vadd.f32 %v4927_v21, %v4926_v18  ;;  %v4989_v26 = vadd.f32 %v4988_v25, %v4987_v20  ;;  %v4990_v27 = vpop.f32.mrb[14].mxu1  ;;  %v6140_v18 = vld [vmem:[%s7985_s1 + $0x550] sm:$0xff]  }
 0x112   :  { %3725 = vmatmul.mubr.bf16.gmra.mrb[120].mxu0 %v6099_v12  ;;  %v4991_v30 = vpop.f32.mrb[15].mxu1  ;;  %v6143_v25 = vld [vmem:[%s7985_s1 + $0x510] sm:$0xff]  }
 0x113   :  { %v3124_v29 = vadd.f32 %v4928_v24, %v7111_v5  ;;  %3732 = vmatprep.mubr.bf16.mxu0 %v6108_v19  ;;  %v7214_v32 = vadd.f32 %v4989_v26, %v3121_v23  ;;  %v4992_v33 = vadd.f32 %v4991_v30, %v4990_v27  ;;  %v6163_v19 = vld [vmem:[%s7985_s1 + $0x5c8] sm:$0xff]   ;;  %v6137_v24 = vld [vmem:[%s7986_s0 + $0x1f4] ss:$108 sps:$4 sm:$0xff]  }
 0x114   :  { %3822 = vmatmul.mubr.bf16.gmra.mrb[120].mxu1 %v6104_v22  ;;  %v6131_v22 = vld [vmem:[%s7986_s0 + $0x118] ss:$108 sps:$4 sm:$0xff]  }
 0x115   :  { %v4929_v35 = vpop.f32.mrb[16].mxu0  ;;  %v7222_v38 = vadd.f32 %v4992_v33, %v3124_v29  ;;  %3829 = vmatprep.mubr.bf16.mxu1 %v6113_v28  ;;  %v6148_v28 = vld [vmem:[%s7985_s1 + $0x558] sm:$0xff]   ;;  %v6166_v29 = vld [vmem:[%s7985_s1 + $0x588] sm:$0xff]  }
 0x116   :  { %v4930_v39 = vpop.f32.mrb[17].mxu0 }
 0x117   :  { %v4931_v40 = vadd.f32 %v4930_v39, %v4929_v35  ;;  %v4932_v41 = vpop.f32.mrb[18].mxu0  ;;  %v4993_v42 = vpop.f32.mrb[16].mxu1  ;;  %v6173_v35 = vld [vmem:[%s7985_s1 + $0x5d0] sm:$0xff]  }
 0x118   :  { %v4933_v43 = vpop.f32.mrb[19].mxu0  ;;  %v4994_v46 = vpop.f32.mrb[17].mxu1 }
 0x119   :  { %v3129_v44 = vadd.f32 %v4931_v40, %v7111_v5  ;;  %v4934_v45 = vadd.f32 %v4933_v43, %v4932_v41  ;;  %v4995_v48 = vadd.f32 %v4994_v46, %v4993_v42  ;;  %v4996_v49 = vpop.f32.mrb[18].mxu1  ;;  %v6141_v40 = vld [vmem:[%s7986_s0 + $0x1fc] ss:$108 sps:$4 sm:$0xff]   ;;  %v6174_v46 = vld [vmem:[%s7985_s1 + $0x590] sm:$0xff]  }
 0x11a   :  { %3733 = vmatmul.mubr.bf16.gmra.mrb[124].mxu0 %v6111_v34  ;;  %v4997_v52 = vpop.f32.mrb[19].mxu1  ;;  %v6136_v34 = vld [vmem:[%s7986_s0 + $0x120] ss:$108 sps:$4 sm:$0xff]  }
 0x11b   :  { %v3132_v51 = vadd.f32 %v4934_v45, %v7111_v5  ;;  %3870 = vmatprep.mubr.bf16.mxu0 %v6122_v37  ;;  %v7232_v54 = vadd.f32 %v4995_v48, %v3129_v44  ;;  %v4998_v55 = vadd.f32 %v4997_v52, %v4996_v49  ;;  %v6151_v49 = vld [vmem:[%s7985_s1 + $0x518] sm:$0xff]  }
 0x11c   :  { %3830 = vmatmul.mubr.bf16.gmra.mrb[124].mxu1 %v6116_v47 }
 0x11d   :  { %v4935_v58 = vpop.f32.mrb[20].mxu0  ;;  %v7240_v60 = vadd.f32 %v4998_v55, %v3132_v51  ;;  %3967 = vmatprep.mubr.bf16.mxu1 %v6127_v50  ;;  %v6156_v50 = vld [vmem:[%s7985_s1 + $0x560] sm:$0xff]   ;;  %v6175_v51 = vld [vmem:[%s7985_s1 + $0x5d8] sm:$0xff]  }
 0x11e   :  { %v4936_v61 = vpop.f32.mrb[21].mxu0 }
 0x11f   :  { %v4937_v63 = vadd.f32 %v4936_v61, %v4935_v58  ;;  %v4938_v0 = vpop.f32.mrb[22].mxu0  ;;  %v4999_v3 = vpop.f32.mrb[20].mxu1 }
 0x120   :  { %v4939_v4 = vpop.f32.mrb[23].mxu0  ;;  %v5000_v8 = vpop.f32.mrb[21].mxu1 }
 0x121   :  { %v3137_v6 = vadd.f32 %v4937_v63, %v7111_v5  ;;  %v4940_v7 = vadd.f32 %v4939_v4, %v4938_v0  ;;  %v5001_v11 = vadd.f32 %v5000_v8, %v4999_v3  ;;  %v5002_v12 = vpop.f32.mrb[22].mxu1  ;;  %v6159_v63 = vld [vmem:[%s7985_s1 + $0x520] sm:$0xff]   ;;  %v6178_v0 = vld [vmem:[%s7985_s1 + $0x598] sm:$0xff]   ;;  %v6168_v4 = vld [vmem:[%s7985_s1 + $0x568] sm:$0xff]  }
 0x122   :  { %3871 = vmatmul.mubr.bf16.vlgmr.msra.gmra.mrb[128].mxu0 %v6120_v57  ;;  %v5003_v17 = vpop.f32.mrb[23].mxu1  ;;  %v6139_v57 = vld [vmem:[%s7986_s0 + $0x1f0] ss:$108 sps:$4 sm:$0xff]   ;;  %v6144_v3 = vld [vmem:[%s7986_s0 + $0x1f8] ss:$108 sps:$4 sm:$0xff]  }
 0x123   :  { %v3140_v16 = vadd.f32 %v4940_v7, %v7111_v5  ;;  %5530 = vmatpush3.bf16.msra.mxu0 %v6128_v62  ;;  %3878 = vmatprep.mubr.bf16.mxu0 %v6129_v59  ;;  %v7268_v20 = vadd.f32 %v5001_v11, %v3137_v6  ;;  %v5004_v21 = vadd.f32 %v5003_v17, %v5002_v12  ;;  %v6145_v59 = vld [vmem:[%s7986_s0 + $0x2cc] ss:$108 sps:$4 sm:$0xff]   ;;  %v6185_v8 = vld [vmem:[%s7985_s1 + $0x5e0] sm:$0xff]  }
 0x124   :  { %5531 = vmatprep.subr.bf16.mxu0 %v6132_v2  ;;  %3968 = vmatmul.mubr.bf16.vlgmr.msra.gmra.mrb[128].mxu1 %v6125_v1 }
 0x125   :  { %v4941_v23 = vpop.f32.mrb[24].mxu0  ;;  %v7279_v26 = vadd.f32 %v5004_v21, %v3140_v16  ;;  %3975 = vmatprep.mubr.bf16.mxu1 %v6133_v9  ;;  %5594 = vmatpush3.bf16.msra.mxu1 %v6162_v14  ;;  %v6186_v14 = vld [vmem:[%s7985_s1 + $0x5a0] sm:$0xff]   ;;  %v6171_v21 = vld [vmem:[%s7985_s1 + $0x528] sm:$0xff]  }
 0x126   :  { %v4942_v27 = vpop.f32.mrb[25].mxu0  ;;  %5595 = vmatprep.subr.bf16.mxu1 %v6163_v19 }
 0x127   :  { %v4943_v30 = vadd.f32 %v4942_v27, %v4941_v23  ;;  %v4944_v33 = vpop.f32.mrb[26].mxu0  ;;  %5532 = vmatpush3.bf16.msra.mxu0 %v6135_v13  ;;  %v5005_v37 = vpop.f32.mrb[24].mxu1  ;;  %v6149_v13 = vld [vmem:[%s7986_s0 + $0x2d4] ss:$108 sps:$4 sm:$0xff]  }
 0x128   :  { %v4945_v39 = vpop.f32.mrb[27].mxu0  ;;  %5533 = vmatprep.subr.bf16.mxu0 %v6140_v18  ;;  %v5006_v43 = vpop.f32.mrb[25].mxu1 }
 0x129   :  { %v3145_v41 = vadd.f32 %v4943_v30, %v7111_v5  ;;  %v4946_v42 = vadd.f32 %v4945_v39, %v4944_v33  ;;  %v5007_v44 = vadd.f32 %v5006_v43, %v5005_v37  ;;  %v5008_v45 = vpop.f32.mrb[26].mxu1  ;;  %5596 = vmatpush3.bf16.msra.mxu1 %v6166_v29  ;;  %v6183_v29 = vld [vmem:[%s7985_s1 + $0x530] sm:$0xff]   ;;  %v6190_v30 = vld [vmem:[%s7985_s1 + $0x5a8] sm:$0xff]  }
 0x12a   :  { %3879 = vmatmul.mubr.bf16.gmra.mrb[132].mxu0 %v6131_v22  ;;  %v5009_v48 = vpop.f32.mrb[27].mxu1  ;;  %5597 = vmatprep.subr.bf16.mxu1 %v6173_v35  ;;  %v6187_v22 = vld [vmem:[%s7985_s1 + $0x5e8] sm:$0xff]   ;;  %v6192_v35 = vld [vmem:[%s7985_s1 + $0x578] sm:$0xff]  }
 0x12b   :  { %v3148_v47 = vadd.f32 %v4946_v42, %v7111_v5  ;;  %3886 = vmatprep.mubr.bf16.mxu0 %v6137_v24  ;;  %5534 = vmatpush3.bf16.msra.mxu0 %v6143_v25  ;;  %v7310_v52 = vadd.f32 %v5007_v44, %v3145_v41  ;;  %v5010_v55 = vadd.f32 %v5009_v48, %v5008_v45  ;;  %v6147_v25 = vld [vmem:[%s7986_s0 + $0x2c8] ss:$108 sps:$4 sm:$0xff]  }
 0x12c   :  { %5535 = vmatprep.subr.bf16.mxu0 %v6148_v28  ;;  %3976 = vmatmul.mubr.bf16.gmra.mrb[132].mxu1 %v6136_v34  ;;  %v6153_v28 = vld [vmem:[%s7986_s0 + $0x3a4] ss:$108 sps:$4 sm:$0xff]  }
 0x12d   :  { %v4947_v58 = vpop.f32.mrb[28].mxu0  ;;  %v7318_v61 = vadd.f32 %v5010_v55, %v3148_v47  ;;  %3983 = vmatprep.mubr.bf16.mxu1 %v6141_v40  ;;  %5598 = vmatpush3.bf16.msra.mxu1 %v6174_v46  ;;  %v6197_v40 = vld [vmem:[%s7985_s1 + $0x5f0] sm:$0xff]   ;;  %v6157_v47 = vld [vmem:[%s7986_s0 + $0x3ac] ss:$108 sps:$4 sm:$0xff]  }
 0x12e   :  { %v4948_v62 = vpop.f32.mrb[29].mxu0  ;;  %5599 = vmatprep.subr.bf16.mxu1 %v6175_v51  ;;  %v6152_v46 = vld [vmem:[%s7986_s0 + $0x2d0] ss:$108 sps:$4 sm:$0xff]  }
 0x12f   :  { %v4949_v1 = vadd.f32 %v4948_v62, %v4947_v58  ;;  %v4950_v2 = vpop.f32.mrb[30].mxu0  ;;  %5536 = vmatpush3.bf16.msra.mxu0 %v6151_v49  ;;  %v5011_v6 = vpop.f32.mrb[28].mxu1  ;;  %v6155_v62 = vld [vmem:[%s7986_s0 + $0x3a0] ss:$108 sps:$4 sm:$0xff]  }
 0x130   :  { %v4951_v7 = vpop.f32.mrb[31].mxu0  ;;  %5537 = vmatprep.subr.bf16.mxu0 %v6156_v50  ;;  %v5012_v12 = vpop.f32.mrb[29].mxu1  ;;  %v6195_v50 = vld [vmem:[%s7985_s1 + $0x538] sm:$0xff]  }
 0x131   :  { %v3153_v9 = vadd.f32 %v4949_v1, %v7111_v5  ;;  %v4952_v11 = vadd.f32 %v4951_v7, %v4950_v2  ;;  %v5013_v16 = vadd.f32 %v5012_v12, %v5011_v6  ;;  %v5014_v17 = vpop.f32.mrb[30].mxu1  ;;  %5600 = vmatpush3.bf16.msra.mxu1 %v6178_v0  ;;  %v6203_v2 = vld [vmem:[%s7985_s1 + $0x5b8] sm:$0xff]   ;;  %v6160_v6 = vld [vmem:[%s7986_s0 + $0x3a8] ss:$108 sps:$4 sm:$0xff]  }
 0x132   :  { %3887 = vmatmul.mubr.bf16.gmra.mrb[136].mxu0 %v6139_v57  ;;  %v5015_v19 = vpop.f32.mrb[31].mxu1  ;;  %5601 = vmatprep.subr.bf16.mxu1 %v6185_v8  ;;  %v6199_v57 = vld [vmem:[%s7985_s1 + $0x5f8] sm:$0xff]  }
 0x133   :  { %v3156_v18 = vadd.f32 %v4952_v11, %v7111_v5  ;;  %3894 = vmatprep.mubr.bf16.mxu0 %v6145_v59  ;;  %5538 = vmatpush3.bf16.msra.mxu0 %v6159_v63  ;;  %v7349_v23 = vadd.f32 %v5013_v16, %v3153_v9  ;;  %v5016_v24 = vadd.f32 %v5015_v19, %v5014_v17  ;;  %v6180_v5 = vld [vmem:[%s7985_s1 + $0x570] sm:$0xff]   ;;  %v6164_v7 = vld [vmem:[%s7986_s0 + $0x47c] ss:$108 sps:$4 sm:$0xff]  }
 0x134   :  { %5539 = vmatprep.subr.bf16.mxu0 %v6168_v4  ;;  %3984 = vmatmul.mubr.bf16.gmra.mrb[136].mxu1 %v6144_v3 }
 0x135   :  { %v5033_v27 = vpop.f32.mrb[32].mxu0  ;;  %v7366_v33 = vadd.f32 %v5016_v24, %v3156_v18  ;;  %3991 = vmatprep.mubr.bf16.mxu1 %v6149_v13  ;;  %5602 = vmatpush3.bf16.msra.mxu1 %v6186_v14  ;;  %v6169_v14 = vld [vmem:[%s7986_s0 + $0x484] ss:$108 sps:$4 sm:$0xff]  }
 0x136   :  { %v5034_v34 = vpop.f32.mrb[33].mxu0  ;;  %5603 = vmatprep.subr.bf16.mxu1 %v6187_v22 }
 0x137   :  { %v5035_v37 = vadd.f32 %v5034_v34, %v5033_v27  ;;  %v5036_v39 = vpop.f32.mrb[34].mxu0  ;;  %5540 = vmatpush3.bf16.msra.mxu0 %v6171_v21  ;;  %v5097_v41 = vpop.f32.mrb[32].mxu1  ;;  %v7418_v21 = vld [vmem:[%s7985_s1 + $0x680] sm:$0xff]  }
 0x138   :  { %v5037_v42 = vpop.f32.mrb[35].mxu0  ;;  %5541 = vmatprep.subr.bf16.mxu0 %v6180_v5  ;;  %v5098_v45 = vpop.f32.mrb[33].mxu1 }
 0x139   :  { %v3291_v43 = vadd.f32 %v5035_v37, %v7151_v31  ;;  %v5038_v44 = vadd.f32 %v5037_v42, %v5036_v39  ;;  %v5099_v48 = vadd.f32 %v5098_v45, %v5097_v41  ;;  %v5100_v49 = vpop.f32.mrb[34].mxu1  ;;  %5604 = vmatpush3.bf16.msra.mxu1 %v6190_v30  ;;  %v6198_v31 = vld [vmem:[%s7985_s1 + $0x5b0] sm:$0xff]  }
 0x13a   :  { %3895 = vmatmul.mubr.bf16.gmra.mrb[140].mxu0 %v6147_v25  ;;  %v5101_v55 = vpop.f32.mrb[35].mxu1  ;;  %5605 = vmatprep.subr.bf16.mxu1 %v6197_v40  ;;  %v6167_v25 = vld [vmem:[%s7986_s0 + $0x478] ss:$108 sps:$4 sm:$0xff]  }
 0x13b   :  { %v3294_v51 = vadd.f32 %v5038_v44, %v7159_v36  ;;  %3902 = vmatprep.mubr.bf16.mxu0 %v6153_v28  ;;  %5542 = vmatpush3.bf16.msra.mxu0 %v6183_v29  ;;  %v7391_v58 = vadd.f32 %v5099_v48, %v3291_v43  ;;  %v5102_v59 = vadd.f32 %v5101_v55, %v5100_v49  ;;  %v6204_v36 = vld [vmem:[%s7985_s1 + $0x640] sm:$0xff]   ;;  %v6181_v43 = vld [vmem:[%s7986_s0 + $0x55c] ss:$108 sps:$4 sm:$0xff]  }
 0x13c   :  { %5543 = vmatprep.subr.bf16.mxu0 %v6192_v35  ;;  %3992 = vmatmul.mubr.bf16.gmra.mrb[140].mxu1 %v6152_v46  ;;  %v6172_v35 = vld [vmem:[%s7986_s0 + $0x480] ss:$108 sps:$4 sm:$0xff]  }
 0x13d   :  { %v5039_v63 = vpop.f32.mrb[36].mxu0  ;;  %v7399_v0 = vadd.f32 %v5102_v59, %v3294_v51  ;;  %3999 = vmatprep.mubr.bf16.mxu1 %v6157_v47  ;;  %5606 = vmatpush3.bf16.msra.mxu1 %v6198_v31  ;;  %v6184_v59 = vld [vmem:[%s7986_s0 + $0x558] ss:$108 sps:$4 sm:$0xff]  }
 0x13e   :  { %v5040_v1 = vpop.f32.mrb[37].mxu0  ;;  %5607 = vmatprep.subr.bf16.mxu1 %v6199_v57 }
 0x13f   :  { %v5041_v3 = vadd.f32 %v5040_v1, %v5039_v63  ;;  %v5042_v4 = vpop.f32.mrb[38].mxu0  ;;  %5544 = vmatpush3.bf16.msra.mxu0 %v6195_v50  ;;  %v5103_v8 = vpop.f32.mrb[36].mxu1  ;;  %v6179_v50 = vld [vmem:[%s7986_s0 + $0x550] ss:$108 sps:$4 sm:$0xff]  }
 0x140   :  { %v5043_v9 = vpop.f32.mrb[39].mxu0  ;;  %5657 = vmatprep.subr.bf16.mxu0 %v6204_v36  ;;  %v5104_v13 = vpop.f32.mrb[37].mxu1 }
 0x141   :  { %v3299_v11 = vadd.f32 %v5041_v3, %v7175_v53  ;;  %v5044_v12 = vadd.f32 %v5043_v9, %v5042_v4  ;;  %v5105_v16 = vadd.f32 %v5104_v13, %v5103_v8  ;;  %v5106_v17 = vpop.f32.mrb[38].mxu1  ;;  %5608 = vmatpush3.bf16.msra.mxu1 %v6203_v2  ;;  %v6193_v3 = vld [vmem:[%s7986_s0 + $0x634] ss:$108 sps:$4 sm:$0xff]  }
 0x142   :  { %3903 = vmatmul.mubr.bf16.gmra.mrb[144].mxu0 %v6155_v62  ;;  %v5107_v19 = vpop.f32.mrb[39].mxu1  ;;  %5737 = vmatprep.subr.bf16.mxu1 %v7418_v21 }
 0x143   :  { %v3302_v18 = vadd.f32 %v5044_v12, %v7177_v56  ;;  %3910 = vmatprep.mubr.bf16.mxu0 %v6164_v7  ;;  %v7420_v53 = vadd.f32 %v5105_v16, %v3299_v11  ;;  %v5108_v22 = vadd.f32 %v5107_v19, %v5106_v17  ;;  %v6176_v56 = vld [vmem:[%s7986_s0 + $0x554] ss:$108 sps:$4 sm:$0xff]  }
 0x144   :  { %4000 = vmatmul.mubr.bf16.gmra.mrb[144].mxu1 %v6160_v6  ;;  %v6191_v12 = vld [vmem:[%s7986_s0 + $0x628] ss:$108 sps:$4 sm:$0xff]  }
 0x145   :  { %v5045_v24 = vpop.f32.mrb[40].mxu0  ;;  %v7429_v5 = vadd.f32 %v5108_v22, %v3302_v18  ;;  %4007 = vmatprep.mubr.bf16.mxu1 %v6169_v14 }
 0x146   :  { %v5046_v27 = vpop.f32.mrb[41].mxu0 }
 0x147   :  { %v5047_v28 = vadd.f32 %v5046_v27, %v5045_v24  ;;  %v5048_v29 = vpop.f32.mrb[42].mxu0  ;;  %v5109_v30 = vpop.f32.mrb[40].mxu1  ;;  %v6196_v24 = vld [vmem:[%s7986_s0 + $0x630] ss:$108 sps:$4 sm:$0xff]  }
 0x148   :  { %v5049_v34 = vpop.f32.mrb[43].mxu0  ;;  %v5110_v40 = vpop.f32.mrb[41].mxu1  ;;  %v6207_v27 = vld [vmem:[%s7986_s0 + $0x5c] ss:$108 sps:$4 sm:$0xff]  }
 0x149   :  { %v3307_v37 = vadd.f32 %v5047_v28, %v7193_v10  ;;  %v5050_v39 = vadd.f32 %v5049_v34, %v5048_v29  ;;  %v5111_v41 = vadd.f32 %v5110_v40, %v5109_v30  ;;  %v5112_v42 = vpop.f32.mrb[42].mxu1  ;;  %v6208_v40 = vld [vmem:[%s7985_s1 + $0x600] sm:$0xff]  }
 0x14a   :  { %3911 = vmatmul.mubr.bf16.gmra.mrb[148].mxu0 %v6167_v25  ;;  %v5113_v45 = vpop.f32.mrb[43].mxu1 }
 0x14b   :  { %v3310_v44 = vadd.f32 %v5050_v39, %v7201_v15  ;;  %3918 = vmatprep.mubr.bf16.mxu0 %v6176_v56  ;;  %v7439_v46 = vadd.f32 %v5111_v41, %v3307_v37  ;;  %v5114_v47 = vadd.f32 %v5113_v45, %v5112_v42  ;;  %v6188_v15 = vld [vmem:[%s7986_s0 + $0x62c] ss:$108 sps:$4 sm:$0xff]   ;;  %v6200_v39 = vld [vmem:[%s7986_s0 + $0x50] ss:$108 sps:$4 sm:$0xff]  }
 0x14c   :  { %4008 = vmatmul.mubr.bf16.gmra.mrb[148].mxu1 %v6172_v35  ;;  %v6209_v42 = vld [vmem:[%s7986_s0 + $0x12c] ss:$108 sps:$4 sm:$0xff]  }
 0x14d   :  { %v5051_v48 = vpop.f32.mrb[44].mxu0  ;;  %v7441_v49 = vadd.f32 %v5114_v47, %v3310_v44  ;;  %4015 = vmatprep.mubr.bf16.mxu1 %v6181_v43  ;;  %v6212_v43 = vld [vmem:[%s7985_s1 + $0x648] sm:$0xff]  }
 0x14e   :  { %v5052_v10 = vpop.f32.mrb[45].mxu0 }
 0x14f   :  { %v5053_v31 = vadd.f32 %v5052_v10, %v5051_v48  ;;  %v5054_v51 = vpop.f32.mrb[46].mxu0  ;;  %v5115_v55 = vpop.f32.mrb[44].mxu1 }
 0x150   :  { %v5055_v57 = vpop.f32.mrb[47].mxu0  ;;  %v5116_v63 = vpop.f32.mrb[45].mxu1 }
 0x151   :  { %v3315_v62 = vadd.f32 %v5053_v31, %v7214_v32  ;;  %v5056_v36 = vadd.f32 %v5055_v57, %v5054_v51  ;;  %v5117_v1 = vadd.f32 %v5116_v63, %v5115_v55  ;;  %v5118_v2 = vpop.f32.mrb[46].mxu1  ;;  %v6211_v63 = vld [vmem:[%s7986_s0 + $0x128] ss:$108 sps:$4 sm:$0xff]  }
 0x152   :  { %3919 = vmatmul.mubr.bf16.gmra.mrb[152].mxu0 %v6179_v50  ;;  %v5119_v6 = vpop.f32.mrb[47].mxu1  ;;  %v6205_v50 = vld [vmem:[%s7986_s0 + $0x58] ss:$108 sps:$4 sm:$0xff]  }
 0x153   :  { %v3318_v4 = vadd.f32 %v5056_v36, %v7222_v38  ;;  %3926 = vmatprep.mubr.bf16.mxu0 %v6188_v15  ;;  %v7457_v7 = vadd.f32 %v5117_v1, %v3315_v62  ;;  %v5120_v8 = vadd.f32 %v5119_v6, %v5118_v2  ;;  %v6202_v38 = vld [vmem:[%s7986_s0 + $0x54] ss:$108 sps:$4 sm:$0xff]  }
 0x154   :  { %4016 = vmatmul.mubr.bf16.gmra.mrb[152].mxu1 %v6184_v59  ;;  %v6213_v15 = vld [vmem:[%s7986_s0 + $0x134] ss:$108 sps:$4 sm:$0xff]   ;;  %v6246_v59 = vld [vmem:[%s7985_s1 + $0x688] sm:$0xff]  }
 0x155   :  { %v5057_v9 = vpop.f32.mrb[48].mxu0  ;;  %v7459_v11 = vadd.f32 %v5120_v8, %v3318_v4  ;;  %4023 = vmatprep.mubr.bf16.mxu1 %v6193_v3  ;;  %v6217_v4 = vld [vmem:[%s7986_s0 + $0x204] ss:$108 sps:$4 sm:$0xff]  }
 0x156   :  { %v5058_v32 = vpop.f32.mrb[49].mxu0 }
 0x157   :  { %v5059_v13 = vadd.f32 %v5058_v32, %v5057_v9  ;;  %v5060_v14 = vpop.f32.mrb[50].mxu0  ;;  %v5121_v16 = vpop.f32.mrb[48].mxu1  ;;  %v6223_v9 = vld [vmem:[%s7985_s1 + $0x610] sm:$0xff]  }
 0x158   :  { %v5061_v17 = vpop.f32.mrb[51].mxu0  ;;  %v5122_v22 = vpop.f32.mrb[49].mxu1 }
 0x159   :  { %v3323_v18 = vadd.f32 %v5059_v13, %v7232_v54  ;;  %v5062_v19 = vadd.f32 %v5061_v17, %v5060_v14  ;;  %v5123_v25 = vadd.f32 %v5122_v22, %v5121_v16  ;;  %v5124_v56 = vpop.f32.mrb[50].mxu1  ;;  %v6216_v13 = vld [vmem:[%s7986_s0 + $0x130] ss:$108 sps:$4 sm:$0xff]  }
 0x15a   :  { %3927 = vmatmul.mubr.bf16.gmra.mrb[156].mxu0 %v6191_v12  ;;  %v5125_v29 = vpop.f32.mrb[51].mxu1  ;;  %v6228_v14 = vld [vmem:[%s7985_s1 + $0x658] sm:$0xff]  }
 0x15b   :  { %v3326_v28 = vadd.f32 %v5062_v19, %v7240_v60  ;;  %4064 = vmatprep.mubr.bf16.mxu0 %v6202_v38  ;;  %v7475_v30 = vadd.f32 %v5123_v25, %v3323_v18  ;;  %v5126_v54 = vadd.f32 %v5125_v29, %v5124_v56  ;;  %v6221_v18 = vld [vmem:[%s7986_s0 + $0x20c] ss:$108 sps:$4 sm:$0xff]   ;;  %v6236_v29 = vld [vmem:[%s7985_s1 + $0x660] sm:$0xff]  }
 0x15c   :  { %4024 = vmatmul.mubr.bf16.gmra.mrb[156].mxu1 %v6196_v24  ;;  %v6231_v19 = vld [vmem:[%s7985_s1 + $0x618] sm:$0xff]  }
 0x15d   :  { %v5063_v34 = vpop.f32.mrb[52].mxu0  ;;  %v7477_v35 = vadd.f32 %v5126_v54, %v3326_v28  ;;  %4161 = vmatprep.mubr.bf16.mxu1 %v6207_v27 }
 0x15e   :  { %v5064_v37 = vpop.f32.mrb[53].mxu0 }
 0x15f   :  { %v5065_v60 = vadd.f32 %v5064_v37, %v5063_v34  ;;  %v5066_v41 = vpop.f32.mrb[54].mxu0  ;;  %v5127_v44 = vpop.f32.mrb[52].mxu1  ;;  %v6219_v37 = vld [vmem:[%s7986_s0 + $0x200] ss:$108 sps:$4 sm:$0xff]  }
 0x160   :  { %v5067_v45 = vpop.f32.mrb[55].mxu0  ;;  %v5128_v10 = vpop.f32.mrb[53].mxu1 }
 0x161   :  { %v3331_v47 = vadd.f32 %v5065_v60, %v7268_v20  ;;  %v5068_v48 = vadd.f32 %v5067_v45, %v5066_v41  ;;  %v5129_v31 = vadd.f32 %v5128_v10, %v5127_v44  ;;  %v5130_v51 = vpop.f32.mrb[54].mxu1  ;;  %v6215_v20 = vld [vmem:[%s7985_s1 + $0x608] sm:$0xff]   ;;  %v6239_v41 = vld [vmem:[%s7985_s1 + $0x620] sm:$0xff]  }
 0x162   :  { %4065 = vmatmul.mubr.bf16.vlgmr.msra.gmra.mrb[160].mxu0 %v6200_v39  ;;  %v5131_v57 = vpop.f32.mrb[55].mxu1  ;;  %v6225_v60 = vld [vmem:[%s7986_s0 + $0x2dc] ss:$108 sps:$4 sm:$0xff]   ;;  %v6261_v45 = vld [vmem:[%s7985_s1 + $0x6a0] sm:$0xff]  }
 0x163   :  { %v3334_v55 = vadd.f32 %v5068_v48, %v7279_v26  ;;  %5658 = vmatpush3.bf16.msra.mxu0 %v6208_v40  ;;  %4072 = vmatprep.mubr.bf16.mxu0 %v6209_v42  ;;  %v7505_v62 = vadd.f32 %v5129_v31, %v3331_v47  ;;  %v5132_v36 = vadd.f32 %v5131_v57, %v5130_v51  ;;  %v6220_v26 = vld [vmem:[%s7985_s1 + $0x650] sm:$0xff]   ;;  %v6245_v44 = vld [vmem:[%s7985_s1 + $0x668] sm:$0xff]  }
 0x164   :  { %5659 = vmatprep.subr.bf16.mxu0 %v6212_v43  ;;  %4162 = vmatmul.mubr.bf16.vlgmr.msra.gmra.mrb[160].mxu1 %v6205_v50  ;;  %v6224_v50 = vld [vmem:[%s7986_s0 + $0x208] ss:$108 sps:$4 sm:$0xff]  }
 0x165   :  { %v5069_v1 = vpop.f32.mrb[56].mxu0  ;;  %v7513_v2 = vadd.f32 %v5132_v36, %v3334_v55  ;;  %4169 = vmatprep.mubr.bf16.mxu1 %v6213_v15  ;;  %5738 = vmatpush3.bf16.msra.mxu1 %v7418_v21  ;;  %v6251_v21 = vld [vmem:[%s7985_s1 + $0x690] sm:$0xff]  }
 0x166   :  { %v5070_v3 = vpop.f32.mrb[57].mxu0  ;;  %5739 = vmatprep.subr.bf16.mxu1 %v6246_v59  ;;  %v6229_v15 = vld [vmem:[%s7986_s0 + $0x2e4] ss:$108 sps:$4 sm:$0xff]  }
 0x167   :  { %v5071_v6 = vadd.f32 %v5070_v3, %v5069_v1  ;;  %v5072_v8 = vpop.f32.mrb[58].mxu0  ;;  %5660 = vmatpush3.bf16.msra.mxu0 %v6215_v20  ;;  %v5133_v32 = vpop.f32.mrb[56].mxu1  ;;  %v6266_v20 = vld [vmem:[%s7985_s1 + $0x6a8] sm:$0xff]   ;;  %v6227_v3 = vld [vmem:[%s7986_s0 + $0x2d8] ss:$108 sps:$4 sm:$0xff]  }
 0x168   :  { %v5073_v12 = vpop.f32.mrb[59].mxu0  ;;  %5661 = vmatprep.subr.bf16.mxu0 %v6220_v26  ;;  %v5134_v17 = vpop.f32.mrb[57].mxu1 }
 0x169   :  { %v3339_v38 = vadd.f32 %v5071_v6, %v7310_v52  ;;  %v5074_v16 = vadd.f32 %v5073_v12, %v5072_v8  ;;  %v5135_v22 = vadd.f32 %v5134_v17, %v5133_v32  ;;  %v5136_v24 = vpop.f32.mrb[58].mxu1  ;;  %5740 = vmatpush3.bf16.msra.mxu1 %v6246_v59  ;;  %v6256_v52 = vld [vmem:[%s7985_s1 + $0x698] sm:$0xff]   ;;  %v6233_v8 = vld [vmem:[%s7986_s0 + $0x3b4] ss:$108 sps:$4 sm:$0xff]  }
 0x16a   :  { %4073 = vmatmul.mubr.bf16.gmra.mrb[164].mxu0 %v6211_v63  ;;  %v5137_v56 = vpop.f32.mrb[59].mxu1  ;;  %5741 = vmatprep.subr.bf16.mxu1 %v6251_v21  ;;  %v6255_v63 = vld [vmem:[%s7985_s1 + $0x670] sm:$0xff]   ;;  %v6232_v17 = vld [vmem:[%s7986_s0 + $0x2e0] ss:$108 sps:$4 sm:$0xff]  }
 0x16b   :  { %v3342_v25 = vadd.f32 %v5074_v16, %v7318_v61  ;;  %4080 = vmatprep.mubr.bf16.mxu0 %v6217_v4  ;;  %5662 = vmatpush3.bf16.msra.mxu0 %v6223_v9  ;;  %v7542_v27 = vadd.f32 %v5135_v22, %v3339_v38  ;;  %v5138_v28 = vadd.f32 %v5137_v56, %v5136_v24  ;;  %v6259_v9 = vld [vmem:[%s7985_s1 + $0x630] sm:$0xff]   ;;  %v6237_v22 = vld [vmem:[%s7986_s0 + $0x3bc] ss:$108 sps:$4 sm:$0xff]  }
 0x16c   :  { %5663 = vmatprep.subr.bf16.mxu0 %v6228_v14  ;;  %4170 = vmatmul.mubr.bf16.gmra.mrb[164].mxu1 %v6216_v13  ;;  %v6265_v13 = vld [vmem:[%s7985_s1 + $0x678] sm:$0xff]   ;;  %v6271_v14 = vld [vmem:[%s7985_s1 + $0x6b0] sm:$0xff]  }
 0x16d   :  { %v5075_v54 = vpop.f32.mrb[60].mxu0  ;;  %v7547_v34 = vadd.f32 %v5138_v28, %v3342_v25  ;;  %4177 = vmatprep.mubr.bf16.mxu1 %v6221_v18  ;;  %5742 = vmatpush3.bf16.msra.mxu1 %v6251_v21  ;;  %v6275_v56 = vld [vmem:[%s7985_s1 + $0x6b8] sm:$0xff]  }
 0x16e   :  { %v5076_v61 = vpop.f32.mrb[61].mxu0  ;;  %5743 = vmatprep.subr.bf16.mxu1 %v6256_v52 }
 0x16f   :  { %v5077_v39 = vadd.f32 %v5076_v61, %v5075_v54  ;;  %v5078_v40 = vpop.f32.mrb[62].mxu0  ;;  %5664 = vmatpush3.bf16.msra.mxu0 %v6231_v19  ;;  %v5139_v42 = vpop.f32.mrb[60].mxu1  ;;  %v6235_v61 = vld [vmem:[%s7986_s0 + $0x3b0] ss:$108 sps:$4 sm:$0xff]  }
 0x170   :  { %v5079_v43 = vpop.f32.mrb[63].mxu0  ;;  %5665 = vmatprep.subr.bf16.mxu0 %v6236_v29  ;;  %v5140_v10 = vpop.f32.mrb[61].mxu1 }
 0x171   :  { %v3347_v47 = vadd.f32 %v5077_v39, %v7349_v23  ;;  %v5080_v48 = vadd.f32 %v5079_v43, %v5078_v40  ;;  %v5141_v31 = vadd.f32 %v5140_v10, %v5139_v42  ;;  %v5142_v51 = vpop.f32.mrb[62].mxu1  ;;  %5744 = vmatpush3.bf16.msra.mxu1 %v6256_v52  ;;  %v6249_v23 = vld [vmem:[%s7985_s1 + $0x628] sm:$0xff]   ;;  %v6247_v10 = vld [vmem:[%s7986_s0 + $0x494] ss:$108 sps:$4 sm:$0xff]  }
 0x172   :  { %4081 = vmatmul.mubr.bf16.gmra.mrb[168].mxu0 %v6219_v37  ;;  %v5143_v57 = vpop.f32.mrb[63].mxu1  ;;  %5745 = vmatprep.subr.bf16.mxu1 %v6261_v45  ;;  %v6242_v40 = vld [vmem:[%s7986_s0 + $0x48c] ss:$108 sps:$4 sm:$0xff]  }
 0x173   :  { %v3350_v55 = vadd.f32 %v5080_v48, %v7366_v33  ;;  %4088 = vmatprep.mubr.bf16.mxu0 %v6225_v60  ;;  %5666 = vmatpush3.bf16.msra.mxu0 %v6239_v41  ;;  %v7578_v59 = vadd.f32 %v5141_v31, %v3347_v47  ;;  %v5144_v36 = vadd.f32 %v5143_v57, %v5142_v51 }
 0x174   :  { %5667 = vmatprep.subr.bf16.mxu0 %v6245_v44  ;;  %4178 = vmatmul.mubr.bf16.gmra.mrb[168].mxu1 %v6224_v50 }
 0x175   :  { %v5161_v33 = vpop.f32.mrb[64].mxu0  ;;  %v7583_v26 = vadd.f32 %v5144_v36, %v3350_v55  ;;  %4185 = vmatprep.mubr.bf16.mxu1 %v6229_v15  ;;  %5746 = vmatpush3.bf16.msra.mxu1 %v6261_v45  ;;  %v6240_v45 = vld [vmem:[%s7986_s0 + $0x3b8] ss:$108 sps:$4 sm:$0xff]  }
 0x176   :  { %v5162_v1 = vpop.f32.mrb[65].mxu0  ;;  %5747 = vmatprep.subr.bf16.mxu1 %v6266_v20 }
 0x177   :  { %v5163_v4 = vadd.f32 %v5162_v1, %v5161_v33  ;;  %v5164_v6 = vpop.f32.mrb[66].mxu0  ;;  %5668 = vmatpush3.bf16.msra.mxu0 %v6249_v23  ;;  %v5225_v32 = vpop.f32.mrb[64].mxu1  ;;  %v6244_v23 = vld [vmem:[%s7986_s0 + $0x488] ss:$108 sps:$4 sm:$0xff]  }
 0x178   :  { %v5165_v12 = vpop.f32.mrb[67].mxu0  ;;  %5669 = vmatprep.subr.bf16.mxu0 %v6255_v63  ;;  %v5226_v16 = vpop.f32.mrb[65].mxu1 }
 0x179   :  { %v3485_v21 = vadd.f32 %v5163_v4, %v7391_v58  ;;  %v5166_v38 = vadd.f32 %v5165_v12, %v5164_v6  ;;  %v5227_v18 = vadd.f32 %v5226_v16, %v5225_v32  ;;  %v5228_v19 = vpop.f32.mrb[66].mxu1  ;;  %5748 = vmatpush3.bf16.msra.mxu1 %v6266_v20  ;;  %v6269_v58 = vld [vmem:[%s7985_s1 + $0x638] sm:$0xff]  }
 0x17a   :  { %4089 = vmatmul.mubr.bf16.gmra.mrb[172].mxu0 %v6227_v3  ;;  %v5229_v25 = vpop.f32.mrb[67].mxu1  ;;  %5749 = vmatprep.subr.bf16.mxu1 %v6271_v14  ;;  %v6250_v6 = vld [vmem:[%s7986_s0 + $0x490] ss:$108 sps:$4 sm:$0xff]   ;;  %v6257_v32 = vld [vmem:[%s7986_s0 + $0x56c] ss:$108 sps:$4 sm:$0xff]  }
 0x17b   :  { %v3488_v24 = vadd.f32 %v5166_v38, %v7399_v0  ;;  %4096 = vmatprep.mubr.bf16.mxu0 %v6233_v8  ;;  %5670 = vmatpush3.bf16.msra.mxu0 %v6259_v9  ;;  %v7614_v52 = vadd.f32 %v5227_v18, %v3485_v21  ;;  %v5230_v28 = vadd.f32 %v5229_v25, %v5228_v19 }
 0x17c   :  { %5671 = vmatprep.subr.bf16.mxu0 %v6265_v13  ;;  %4186 = vmatmul.mubr.bf16.gmra.mrb[172].mxu1 %v6232_v17  ;;  %v6254_v17 = vld [vmem:[%s7986_s0 + $0x560] ss:$108 sps:$4 sm:$0xff]  }
 0x17d   :  { %v5167_v29 = vpop.f32.mrb[68].mxu0  ;;  %v7616_v54 = vadd.f32 %v5230_v28, %v3488_v24  ;;  %4193 = vmatprep.mubr.bf16.mxu1 %v6237_v22  ;;  %5750 = vmatpush3.bf16.msra.mxu1 %v6271_v14  ;;  %v6260_v28 = vld [vmem:[%s7986_s0 + $0x568] ss:$108 sps:$4 sm:$0xff]  }
 0x17e   :  { %v5168_v0 = vpop.f32.mrb[69].mxu0  ;;  %5751 = vmatprep.subr.bf16.mxu1 %v6275_v56 }
 0x17f   :  { %v5169_v37 = vadd.f32 %v5168_v0, %v5167_v29  ;;  %v5170_v39 = vpop.f32.mrb[70].mxu0  ;;  %5672 = vmatpush3.bf16.msra.mxu0 %v6269_v58  ;;  %v5231_v60 = vpop.f32.mrb[68].mxu1 }
 0x180   :  { %v5171_v41 = vpop.f32.mrb[71].mxu0  ;;  %v5232_v44 = vpop.f32.mrb[69].mxu1 }
 0x181   :  { %v3493_v42 = vadd.f32 %v5169_v37, %v7420_v53  ;;  %v5172_v43 = vadd.f32 %v5171_v41, %v5170_v39  ;;  %v5233_v47 = vadd.f32 %v5232_v44, %v5231_v60  ;;  %v5234_v48 = vpop.f32.mrb[70].mxu1  ;;  %5752 = vmatpush3.bf16.msra.mxu1 %v6275_v56 }
 0x182   :  { %4097 = vmatmul.mubr.bf16.gmra.mrb[176].mxu0 %v6235_v61  ;;  %v5235_v31 = vpop.f32.mrb[71].mxu1  ;;  %v6267_v61 = vld [vmem:[%s7986_s0 + $0x644] ss:$108 sps:$4 sm:$0xff]  }
 0x183   :  { %v3496_v50 = vadd.f32 %v5172_v43, %v7429_v5  ;;  %4104 = vmatprep.mubr.bf16.mxu0 %v6242_v40  ;;  %v7632_v51 = vadd.f32 %v5233_v47, %v3493_v42  ;;  %v5236_v53 = vadd.f32 %v5235_v31, %v5234_v48  ;;  %v6252_v5 = vld [vmem:[%s7986_s0 + $0x564] ss:$108 sps:$4 sm:$0xff]  }
 0x184   :  { %4194 = vmatmul.mubr.bf16.gmra.mrb[176].mxu1 %v6240_v45  ;;  %v6264_v43 = vld [vmem:[%s7986_s0 + $0x638] ss:$108 sps:$4 sm:$0xff]  }
 0x185   :  { %v5173_v15 = vpop.f32.mrb[72].mxu0  ;;  %v7634_v55 = vadd.f32 %v5236_v53, %v3496_v50  ;;  %4201 = vmatprep.mubr.bf16.mxu1 %v6247_v10  ;;  %v6270_v53 = vld [vmem:[%s7986_s0 + $0x640] ss:$108 sps:$4 sm:$0xff]  }
 0x186   :  { %v5174_v57 = vpop.f32.mrb[73].mxu0 }
 0x187   :  { %v5175_v20 = vadd.f32 %v5174_v57, %v5173_v15  ;;  %v5176_v36 = vpop.f32.mrb[74].mxu0  ;;  %v5237_v63 = vpop.f32.mrb[72].mxu1 }
 0x188   :  { %v5177_v33 = vpop.f32.mrb[75].mxu0  ;;  %v5238_v4 = vpop.f32.mrb[73].mxu1 }
 0x189   :  { %v3501_v1 = vadd.f32 %v5175_v20, %v7439_v46  ;;  %v5178_v3 = vadd.f32 %v5177_v33, %v5176_v36  ;;  %v5239_v8 = vadd.f32 %v5238_v4, %v5237_v63  ;;  %v5240_v9 = vpop.f32.mrb[74].mxu1 }
 0x18a   :  { %4105 = vmatmul.mubr.bf16.gmra.mrb[180].mxu0 %v6244_v23  ;;  %v5241_v13 = vpop.f32.mrb[75].mxu1  ;;  %v6276_v23 = vld [vmem:[%s7986_s0 + $0x68] ss:$108 sps:$4 sm:$0xff]  }
 0x18b   :  { %v3504_v12 = vadd.f32 %v5178_v3, %v7441_v49  ;;  %4112 = vmatprep.mubr.bf16.mxu0 %v6252_v5  ;;  %v7650_v14 = vadd.f32 %v5239_v8, %v3501_v1  ;;  %v5242_v46 = vadd.f32 %v5241_v13, %v5240_v9  ;;  %v6262_v49 = vld [vmem:[%s7986_s0 + $0x63c] ss:$108 sps:$4 sm:$0xff]   ;;  %v6272_v3 = vld [vmem:[%s7986_s0 + $0x60] ss:$108 sps:$4 sm:$0xff]  }
 0x18c   :  { %4202 = vmatmul.mubr.bf16.gmra.mrb[180].mxu1 %v6250_v6 }
 0x18d   :  { %v5179_v21 = vpop.f32.mrb[76].mxu0  ;;  %v7652_v38 = vadd.f32 %v5242_v46, %v3504_v12  ;;  %4209 = vmatprep.mubr.bf16.mxu1 %v6257_v32  ;;  %v6277_v46 = vld [vmem:[%s7986_s0 + $0x140] ss:$108 sps:$4 sm:$0xff]  }
 0x18e   :  { %v5180_v16 = vpop.f32.mrb[77].mxu0 }
 0x18f   :  { %v5181_v18 = vadd.f32 %v5180_v16, %v5179_v21  ;;  %v5182_v19 = vpop.f32.mrb[78].mxu0  ;;  %v5243_v22 = vpop.f32.mrb[76].mxu1 }
 0x190   :  { %v5183_v24 = vpop.f32.mrb[79].mxu0  ;;  %v5244_v56 = vpop.f32.mrb[77].mxu1 }
 0x191   :  { %v3509_v25 = vadd.f32 %v5181_v18, %v7457_v7  ;;  %v5184_v58 = vadd.f32 %v5183_v24, %v5182_v19  ;;  %v5245_v29 = vadd.f32 %v5244_v56, %v5243_v22  ;;  %v5246_v0 = vpop.f32.mrb[78].mxu1 }
 0x192   :  { %4113 = vmatmul.mubr.bf16.gmra.mrb[184].mxu0 %v6254_v17  ;;  %v5247_v39 = vpop.f32.mrb[79].mxu1  ;;  %v6284_v17 = vld [vmem:[%s7986_s0 + $0x218] ss:$108 sps:$4 sm:$0xff]  }
 0x193   :  { %v3512_v37 = vadd.f32 %v5184_v58, %v7459_v11  ;;  %4120 = vmatprep.mubr.bf16.mxu0 %v6262_v49  ;;  %v7668_v40 = vadd.f32 %v5245_v29, %v3509_v25  ;;  %v5248_v7 = vadd.f32 %v5247_v39, %v5246_v0  ;;  %v6274_v11 = vld [vmem:[%s7986_s0 + $0x64] ss:$108 sps:$4 sm:$0xff]  }
 0x194   :  { %4210 = vmatmul.mubr.bf16.gmra.mrb[184].mxu1 %v6260_v28  ;;  %v6280_v58 = vld [vmem:[%s7986_s0 + $0x138] ss:$108 sps:$4 sm:$0xff]  }
 0x195   :  { %v5185_v60 = vpop.f32.mrb[80].mxu0  ;;  %v7670_v41 = vadd.f32 %v5248_v7, %v3512_v37  ;;  %4217 = vmatprep.mubr.bf16.mxu1 %v6267_v61  ;;  %v6285_v7 = vld [vmem:[%s7986_s0 + $0x2f0] ss:$108 sps:$4 sm:$0xff]  }
 0x196   :  { %v5186_v42 = vpop.f32.mrb[81].mxu0 }
 0x197   :  { %v5187_v44 = vadd.f32 %v5186_v42, %v5185_v60  ;;  %v5188_v45 = vpop.f32.mrb[82].mxu0  ;;  %v5249_v47 = vpop.f32.mrb[80].mxu1 }
 0x198   :  { %v5189_v48 = vpop.f32.mrb[83].mxu0  ;;  %v5250_v31 = vpop.f32.mrb[81].mxu1 }
 0x199   :  { %v3517_v10 = vadd.f32 %v5187_v44, %v7475_v30  ;;  %v5190_v50 = vadd.f32 %v5189_v48, %v5188_v45  ;;  %v5251_v15 = vadd.f32 %v5250_v31, %v5249_v47  ;;  %v5252_v57 = vpop.f32.mrb[82].mxu1 }
 0x19a   :  { %4121 = vmatmul.mubr.bf16.gmra.mrb[188].mxu0 %v6264_v43  ;;  %v5253_v36 = vpop.f32.mrb[83].mxu1  ;;  %v6292_v43 = vld [vmem:[%s7986_s0 + $0x3c8] ss:$108 sps:$4 sm:$0xff]  }
 0x19b   :  { %v3520_v20 = vadd.f32 %v5190_v50, %v7477_v35  ;;  %4258 = vmatprep.mubr.bf16.mxu0 %v6274_v11  ;;  %v7686_v5 = vadd.f32 %v5251_v15, %v3517_v10  ;;  %v5254_v30 = vadd.f32 %v5253_v36, %v5252_v57  ;;  %v6278_v35 = vld [vmem:[%s7986_s0 + $0x13c] ss:$108 sps:$4 sm:$0xff]  }
 0x19c   :  { %4218 = vmatmul.mubr.bf16.gmra.mrb[188].mxu1 %v6270_v53  ;;  %v6283_v50 = vld [vmem:[%s7986_s0 + $0x210] ss:$108 sps:$4 sm:$0xff]  }
 0x19d   :  { %v5191_v63 = vpop.f32.mrb[84].mxu0  ;;  %v7688_v33 = vadd.f32 %v5254_v30, %v3520_v20  ;;  %5753 = vmatprep.mubr.bf16.mxu1 %v6276_v23  ;;  %v6293_v30 = vld [vmem:[%s7986_s0 + $0x4a0] ss:$108 sps:$4 sm:$0xff]  }
 0x19e   :  { %v5192_v1 = vpop.f32.mrb[85].mxu0 }
 0x19f   :  { %v5193_v4 = vadd.f32 %v5192_v1, %v5191_v63  ;;  %v5194_v6 = vpop.f32.mrb[86].mxu0  ;;  %v5255_v8 = vpop.f32.mrb[84].mxu1 }
 0x1a0   :  { %v5195_v9 = vpop.f32.mrb[87].mxu0  ;;  %v5256_v13 = vpop.f32.mrb[85].mxu1 }
 0x1a1   :  { %v3525_v32 = vadd.f32 %v5193_v4, %v7505_v62  ;;  %v5196_v12 = vadd.f32 %v5195_v9, %v5194_v6  ;;  %v5257_v21 = vadd.f32 %v5256_v13, %v5255_v8  ;;  %v5258_v16 = vpop.f32.mrb[86].mxu1 }
 0x1a2   :  { %4259 = vmatmul.mubr.bf16.vlgmr.msra.gmra.mrb[192].mxu0 %v6272_v3  ;;  %v5259_v19 = vpop.f32.mrb[87].mxu1  ;;  %v6300_v3 = vld [vmem:[%s7986_s0 + $0x578] ss:$108 sps:$4 sm:$0xff]  }
 0x1a3   :  { %v3528_v18 = vadd.f32 %v5196_v12, %v7513_v2  ;;  %4266 = vmatprep.mubr.bf16.mxu0 %v6278_v35  ;;  %v7704_v49 = vadd.f32 %v5257_v21, %v3525_v32  ;;  %v5260_v62 = vadd.f32 %v5259_v19, %v5258_v16  ;;  %v6281_v2 = vld [vmem:[%s7986_s0 + $0x214] ss:$108 sps:$4 sm:$0xff]  }
 0x1a4   :  { %5754 = vmatmul.mubr.bf16.vlgmr.msra.gmra.mrb[192].mxu1 %v6277_v46  ;;  %v6288_v12 = vld [vmem:[%s7986_s0 + $0x2e8] ss:$108 sps:$4 sm:$0xff]  }
 0x1a5   :  { %v5197_v22 = vpop.f32.mrb[88].mxu0  ;;  %v7706_v24 = vadd.f32 %v5260_v62, %v3528_v18  ;;  %5757 = vmatprep.mubr.bf16.mxu1 %v6284_v17  ;;  %v6301_v62 = vld [vmem:[%s7986_s0 + $0x650] ss:$108 sps:$4 sm:$0xff]  }
 0x1a6   :  { %v5198_v25 = vpop.f32.mrb[89].mxu0 }
 0x1a7   :  { %v5199_v56 = vadd.f32 %v5198_v25, %v5197_v22  ;;  %v5200_v28 = vpop.f32.mrb[90].mxu0  ;;  %v5261_v29 = vpop.f32.mrb[88].mxu1 }
 0x1a8   :  { %v5201_v0 = vpop.f32.mrb[91].mxu0  ;;  %v5262_v39 = vpop.f32.mrb[89].mxu1 }
 0x1a9   :  { %v3533_v61 = vadd.f32 %v5199_v56, %v7542_v27  ;;  %v5202_v37 = vadd.f32 %v5201_v0, %v5200_v28  ;;  %v5263_v60 = vadd.f32 %v5262_v39, %v5261_v29  ;;  %v5264_v42 = vpop.f32.mrb[90].mxu1 }
 0x1aa   :  { %4267 = vmatmul.mubr.bf16.gmra.mrb[196].mxu0 %v6280_v58  ;;  %v5265_v45 = vpop.f32.mrb[91].mxu1 }
 0x1ab   :  { %v3536_v44 = vadd.f32 %v5202_v37, %v7547_v34  ;;  %4274 = vmatprep.mubr.bf16.mxu0 %v6281_v2  ;;  %v7722_v11 = vadd.f32 %v5263_v60, %v3533_v61  ;;  %v5266_v27 = vadd.f32 %v5265_v45, %v5264_v42  ;;  %v6286_v34 = vld [vmem:[%s7986_s0 + $0x2ec] ss:$108 sps:$4 sm:$0xff]  }
 0x1ac   :  { %5758 = vmatmul.mubr.bf16.gmra.mrb[196].mxu1 %v6285_v7  ;;  %v6291_v61 = vld [vmem:[%s7986_s0 + $0x3c0] ss:$108 sps:$4 sm:$0xff]  }
 0x1ad   :  { %v5203_v47 = vpop.f32.mrb[92].mxu0  ;;  %v7724_v48 = vadd.f32 %v5266_v27, %v3536_v44  ;;  %5761 = vmatprep.mubr.bf16.mxu1 %v6292_v43 }
 0x1ae   :  { %v5204_v10 = vpop.f32.mrb[93].mxu0 }
 0x1af   :  { %v5205_v31 = vadd.f32 %v5204_v10, %v5203_v47  ;;  %v5206_v53 = vpop.f32.mrb[94].mxu0  ;;  %v5267_v15 = vpop.f32.mrb[92].mxu1 }
 0x1b0   :  { %v5207_v57 = vpop.f32.mrb[95].mxu0  ;;  %v5268_v36 = vpop.f32.mrb[93].mxu1 }
 0x1b1   :  { %v3541_v23 = vadd.f32 %v5205_v31, %v7578_v59  ;;  %v5208_v20 = vadd.f32 %v5207_v57, %v5206_v53  ;;  %v5269_v63 = vadd.f32 %v5268_v36, %v5267_v15  ;;  %v5270_v1 = vpop.f32.mrb[94].mxu1 }
 0x1b2   :  { %4275 = vmatmul.mubr.bf16.gmra.mrb[200].mxu0 %v6283_v50  ;;  %v5271_v6 = vpop.f32.mrb[95].mxu1 }
 0x1b3   :  { %v3544_v4 = vadd.f32 %v5208_v20, %v7583_v26  ;;  %4282 = vmatprep.mubr.bf16.mxu0 %v6286_v34  ;;  %v7740_v35 = vadd.f32 %v5269_v63, %v3541_v23  ;;  %v5272_v59 = vadd.f32 %v5271_v6, %v5270_v1  ;;  %v6289_v26 = vld [vmem:[%s7986_s0 + $0x3c4] ss:$108 sps:$4 sm:$0xff]   ;;  %v6297_v20 = vld [vmem:[%s7986_s0 + $0x574] ss:$108 sps:$4 sm:$0xff]  }
 0x1b4   :  { %5762 = vmatmul.mubr.bf16.gmra.mrb[200].mxu1 %v6293_v30 }
 0x1b5   :  { %v5289_v8 = vpop.f32.mrb[96].mxu0  ;;  %v7742_v9 = vadd.f32 %v5272_v59, %v3544_v4  ;;  %5765 = vmatprep.mubr.bf16.mxu1 %v6300_v3 }
 0x1b6   :  { %v5290_v32 = vpop.f32.mrb[97].mxu0 }
 0x1b7   :  { %v5291_v13 = vadd.f32 %v5290_v32, %v5289_v8  ;;  %v5292_v46 = vpop.f32.mrb[98].mxu0  ;;  %v5353_v21 = vpop.f32.mrb[96].mxu1 }
 0x1b8   :  { %v5293_v16 = vpop.f32.mrb[99].mxu0  ;;  %v5354_v19 = vpop.f32.mrb[97].mxu1 }
 0x1b9   :  { %v3679_v17 = vadd.f32 %v5291_v13, %v7614_v52  ;;  %v5294_v18 = vadd.f32 %v5293_v16, %v5292_v46  ;;  %v5355_v22 = vadd.f32 %v5354_v19, %v5353_v21  ;;  %v5356_v25 = vpop.f32.mrb[98].mxu1  ;;  %v6302_v16 = vld [vmem:[%s7986_s0 + $0x64c] ss:$108 sps:$4 sm:$0xff]  }
 0x1ba   :  { %4283 = vmatmul.mubr.bf16.gmra.mrb[204].mxu0 %v6288_v12  ;;  %v5357_v56 = vpop.f32.mrb[99].mxu1 }
 0x1bb   :  { %v3682_v58 = vadd.f32 %v5294_v18, %v7616_v54  ;;  %4290 = vmatprep.mubr.bf16.mxu0 %v6289_v26  ;;  %v7755_v28 = vadd.f32 %v5355_v22, %v3679_v17  ;;  %v5358_v2 = vadd.f32 %v5357_v56, %v5356_v25  ;;  %v6294_v54 = vld [vmem:[%s7986_s0 + $0x49c] ss:$108 sps:$4 sm:$0xff]  }
 0x1bc   :  { %5766 = vmatmul.mubr.bf16.gmra.mrb[204].mxu1 %v6301_v62 }
 0x1bd   :  { %v5295_v29 = vpop.f32.mrb[100].mxu0  ;;  %v7757_v0 = vadd.f32 %v5358_v2, %v3682_v58 }
 0x1be   :  { %v5296_v52 = vpop.f32.mrb[101].mxu0 }
 0x1bf   :  { %v5297_v37 = vadd.f32 %v5296_v52, %v5295_v29  ;;  %v5298_v39 = vpop.f32.mrb[102].mxu0  ;;  %v5359_v7 = vpop.f32.mrb[100].mxu1 }
 0x1c0   :  { %v5299_v60 = vpop.f32.mrb[103].mxu0  ;;  %v5360_v44 = vpop.f32.mrb[101].mxu1 }
 0x1c1   :  { %v3687_v42 = vadd.f32 %v5297_v37, %v7632_v51  ;;  %v5300_v43 = vadd.f32 %v5299_v60, %v5298_v39  ;;  %v5361_v45 = vadd.f32 %v5360_v44, %v5359_v7  ;;  %v5362_v27 = vpop.f32.mrb[102].mxu1  ;;  %v6296_v51 = vld [vmem:[%s7986_s0 + $0x498] ss:$108 sps:$4 sm:$0xff]  }
 0x1c2   :  { %4291 = vmatmul.mubr.bf16.gmra.mrb[208].mxu0 %v6291_v61  ;;  %v5363_v10 = vpop.f32.mrb[103].mxu1 }
 0x1c3   :  { %v3690_v47 = vadd.f32 %v5300_v43, %v7634_v55  ;;  %4298 = vmatprep.mubr.bf16.mxu0 %v6294_v54  ;;  %v7767_v50 = vadd.f32 %v5361_v45, %v3687_v42  ;;  %v5364_v31 = vadd.f32 %v5363_v10, %v5362_v27 }
 0x1c5   :  { %v5301_v53 = vpop.f32.mrb[104].mxu0  ;;  %v7769_v34 = vadd.f32 %v5364_v31, %v3690_v47 }
 0x1c6   :  { %v5302_v15 = vpop.f32.mrb[105].mxu0 }
 0x1c7   :  { %v5303_v57 = vadd.f32 %v5302_v15, %v5301_v53  ;;  %v5304_v23 = vpop.f32.mrb[106].mxu0  ;;  %v5365_v55 = vpop.f32.mrb[104].mxu1 }
 0x1c8   :  { %v5305_v36 = vpop.f32.mrb[107].mxu0  ;;  %v5366_v1 = vpop.f32.mrb[105].mxu1 }
 0x1c9   :  { %v3695_v30 = vadd.f32 %v5303_v57, %v7650_v14  ;;  %v5306_v63 = vadd.f32 %v5305_v36, %v5304_v23  ;;  %v5367_v3 = vadd.f32 %v5366_v1, %v5365_v55  ;;  %v5368_v4 = vpop.f32.mrb[106].mxu1  ;;  %v6299_v14 = vld [vmem:[%s7986_s0 + $0x570] ss:$108 sps:$4 sm:$0xff]  }
 0x1ca   :  { %4299 = vmatmul.mubr.bf16.gmra.mrb[212].mxu0 %v6296_v51  ;;  %v5369_v59 = vpop.f32.mrb[107].mxu1 }
 0x1cb   :  { %v3698_v6 = vadd.f32 %v5306_v63, %v7652_v38  ;;  %4306 = vmatprep.mubr.bf16.mxu0 %v6297_v20  ;;  %v7779_v8 = vadd.f32 %v5367_v3, %v3695_v30  ;;  %v5370_v32 = vadd.f32 %v5369_v59, %v5368_v4 }
 0x1cd   :  { %v5307_v12 = vpop.f32.mrb[108].mxu0  ;;  %v7781_v13 = vadd.f32 %v5370_v32, %v3698_v6 }
 0x1ce   :  { %v5308_v46 = vpop.f32.mrb[109].mxu0 }
 0x1cf   :  { %v5309_v26 = vadd.f32 %v5308_v46, %v5307_v12  ;;  %v5310_v21 = vpop.f32.mrb[110].mxu0  ;;  %v5371_v38 = vpop.f32.mrb[108].mxu1 }
 0x1d0   :  { %v5311_v17 = vpop.f32.mrb[111].mxu0  ;;  %v5372_v62 = vpop.f32.mrb[109].mxu1 }
 0x1d1   :  { %v3703_v18 = vadd.f32 %v5309_v26, %v7668_v40  ;;  %v5312_v19 = vadd.f32 %v5311_v17, %v5310_v21  ;;  %v5373_v22 = vadd.f32 %v5372_v62, %v5371_v38  ;;  %v5374_v25 = vpop.f32.mrb[110].mxu1  ;;  %v6304_v40 = vld [vmem:[%s7986_s0 + $0x648] ss:$108 sps:$4 sm:$0xff]  }
 0x1d2   :  { %4307 = vmatmul.mubr.bf16.gmra.mrb[216].mxu0 %v6299_v14  ;;  %v5375_v56 = vpop.f32.mrb[111].mxu1 }
 0x1d3   :  { %v3706_v58 = vadd.f32 %v5312_v19, %v7670_v41  ;;  %4314 = vmatprep.mubr.bf16.mxu0 %v6302_v16  ;;  %v7791_v2 = vadd.f32 %v5373_v22, %v3703_v18  ;;  %v5376_v29 = vadd.f32 %v5375_v56, %v5374_v25 }
 0x1d5   :  { %v5313_v52 = vpop.f32.mrb[112].mxu0  ;;  %v7793_v61 = vadd.f32 %v5376_v29, %v3706_v58 }
 0x1d6   :  { %v5314_v37 = vpop.f32.mrb[113].mxu0 }
 0x1d7   :  { %v5315_v39 = vadd.f32 %v5314_v37, %v5313_v52  ;;  %v5316_v54 = vpop.f32.mrb[114].mxu0  ;;  %v5377_v7 = vpop.f32.mrb[112].mxu1 }
 0x1d8   :  { %v5317_v60 = vpop.f32.mrb[115].mxu0  ;;  %v5378_v43 = vpop.f32.mrb[113].mxu1 }
 0x1d9   :  { %v3711_v42 = vadd.f32 %v5315_v39, %v7686_v5  ;;  %v5318_v41 = vadd.f32 %v5317_v60, %v5316_v54  ;;  %v5379_v44 = vadd.f32 %v5378_v43, %v5377_v7  ;;  %v5380_v45 = vpop.f32.mrb[114].mxu1 }
 0x1da   :  { %4315 = vmatmul.mubr.bf16.gmra.mrb[220].mxu0 %v6304_v40  ;;  %v5381_v47 = vpop.f32.mrb[115].mxu1 }
 0x1db   :  { %v3714_v27 = vadd.f32 %v5318_v41, %v7688_v33  ;;  %v7800_v10 = vadd.f32 %v5379_v44, %v3711_v42  ;;  %v5382_v31 = vadd.f32 %v5381_v47, %v5380_v45 }
 0x1dd   :  { %v5319_v53 = vpop.f32.mrb[116].mxu0  ;;  %v7802_v15 = vadd.f32 %v5382_v31, %v3714_v27 }
 0x1de   :  { %v5320_v51 = vpop.f32.mrb[117].mxu0 }
 0x1df   :  { %v5321_v57 = vadd.f32 %v5320_v51, %v5319_v53  ;;  %v5322_v23 = vpop.f32.mrb[118].mxu0  ;;  %v5383_v20 = vpop.f32.mrb[116].mxu1 }
 0x1e0   :  { %v5323_v55 = vpop.f32.mrb[119].mxu0  ;;  %v5384_v30 = vpop.f32.mrb[117].mxu1 }
 0x1e1   :  { %v3719_v5 = vadd.f32 %v5321_v57, %v7704_v49  ;;  %v5324_v36 = vadd.f32 %v5323_v55, %v5322_v23  ;;  %v5385_v63 = vadd.f32 %v5384_v30, %v5383_v20  ;;  %v5386_v1 = vpop.f32.mrb[118].mxu1 }
 0x1e2   :  { %v5387_v3 = vpop.f32.mrb[119].mxu1 }
 0x1e3   :  { %v3722_v33 = vadd.f32 %v5324_v36, %v7706_v24  ;;  %v7806_v4 = vadd.f32 %v5385_v63, %v3719_v5  ;;  %v5388_v6 = vadd.f32 %v5387_v3, %v5386_v1 }
 0x1e5   :  { %v5325_v59 = vpop.f32.mrb[120].mxu0  ;;  %v7808_v32 = vadd.f32 %v5388_v6, %v3722_v33 }
 0x1e6   :  { %v5326_v12 = vpop.f32.mrb[121].mxu0 }
 0x1e7   :  { %v5327_v46 = vadd.f32 %v5326_v12, %v5325_v59  ;;  %v5328_v14 = vpop.f32.mrb[122].mxu0  ;;  %v5389_v26 = vpop.f32.mrb[120].mxu1 }
 0x1e8   :  { %v5329_v21 = vpop.f32.mrb[123].mxu0  ;;  %v5390_v38 = vpop.f32.mrb[121].mxu1 }
 0x1e9   :  { %v3727_v49 = vadd.f32 %v5327_v46, %v7722_v11  ;;  %v5330_v16 = vadd.f32 %v5329_v21, %v5328_v14  ;;  %v5391_v17 = vadd.f32 %v5390_v38, %v5389_v26  ;;  %v5392_v18 = vpop.f32.mrb[122].mxu1 }
 0x1ea   :  { %v5393_v19 = vpop.f32.mrb[123].mxu1 }
 0x1eb   :  { %v3730_v24 = vadd.f32 %v5330_v16, %v7724_v48  ;;  %v7812_v62 = vadd.f32 %v5391_v17, %v3727_v49  ;;  %v5394_v22 = vadd.f32 %v5393_v19, %v5392_v18 }
 0x1ed   :  { %v5331_v25 = vpop.f32.mrb[124].mxu0  ;;  %v7814_v58 = vadd.f32 %v5394_v22, %v3730_v24 }
 0x1ee   :  { %v5332_v56 = vpop.f32.mrb[125].mxu0 }
 0x1ef   :  { %v5333_v29 = vadd.f32 %v5332_v56, %v5331_v25  ;;  %v5334_v52 = vpop.f32.mrb[126].mxu0  ;;  %v5395_v37 = vpop.f32.mrb[124].mxu1 }
 0x1f0   :  { %v5335_v40 = vpop.f32.mrb[127].mxu0  ;;  %v5396_v54 = vpop.f32.mrb[125].mxu1 }
 0x1f1   :  { %v3735_v11 = vadd.f32 %v5333_v29, %v7740_v35  ;;  %v5336_v39 = vadd.f32 %v5335_v40, %v5334_v52  ;;  %v5397_v7 = vadd.f32 %v5396_v54, %v5395_v37  ;;  %v5398_v60 = vpop.f32.mrb[126].mxu1 }
 0x1f2   :  { %v5399_v42 = vpop.f32.mrb[127].mxu1 }
 0x1f3   :  { %v3738_v48 = vadd.f32 %v5336_v39, %v7742_v9  ;;  %v7818_v41 = vadd.f32 %v5397_v7, %v3735_v11  ;;  %v5400_v43 = vadd.f32 %v5399_v42, %v5398_v60 }
 0x1f5   :  { %v5417_v44 = vpop.f32.mrb[128].mxu0  ;;  %v7820_v45 = vadd.f32 %v5400_v43, %v3738_v48 }
 0x1f6   :  { %v5418_v27 = vpop.f32.mrb[129].mxu0 }
 0x1f7   :  { %v5419_v47 = vadd.f32 %v5418_v27, %v5417_v44  ;;  %v5420_v31 = vpop.f32.mrb[130].mxu0  ;;  %v5481_v53 = vpop.f32.mrb[128].mxu1 }
 0x1f8   :  { %v5421_v51 = vpop.f32.mrb[131].mxu0  ;;  %v5482_v23 = vpop.f32.mrb[129].mxu1 }
 0x1f9   :  { %v3873_v35 = vadd.f32 %v5419_v47, %v7755_v28  ;;  %v5422_v57 = vadd.f32 %v5421_v51, %v5420_v31  ;;  %v5483_v20 = vadd.f32 %v5482_v23, %v5481_v53  ;;  %v5484_v55 = vpop.f32.mrb[130].mxu1 }
 0x1fa   :  { %v5485_v5 = vpop.f32.mrb[131].mxu1 }
 0x1fb   :  { %v3876_v9 = vadd.f32 %v5422_v57, %v7757_v0  ;;  %v7824_v36 = vadd.f32 %v5483_v20, %v3873_v35  ;;  %v5486_v30 = vadd.f32 %v5485_v5, %v5484_v55 }
 0x1fd   :  { %v5423_v63 = vpop.f32.mrb[132].mxu0  ;;  %v7826_v1 = vadd.f32 %v5486_v30, %v3876_v9 }
 0x1fe   :  { %v5424_v33 = vpop.f32.mrb[133].mxu0 }
 0x1ff   :  { %v5425_v3 = vadd.f32 %v5424_v33, %v5423_v63  ;;  %v5426_v6 = vpop.f32.mrb[134].mxu0  ;;  %v5487_v59 = vpop.f32.mrb[132].mxu1 }
 0x200   :  { %v5427_v12 = vpop.f32.mrb[135].mxu0  ;;  %v5488_v14 = vpop.f32.mrb[133].mxu1 }
 0x201   :  { %v3881_v28 = vadd.f32 %v5425_v3, %v7767_v50  ;;  %v5428_v46 = vadd.f32 %v5427_v12, %v5426_v6  ;;  %v5489_v26 = vadd.f32 %v5488_v14, %v5487_v59  ;;  %v5490_v21 = vpop.f32.mrb[134].mxu1 }
 0x202   :  { %v5491_v49 = vpop.f32.mrb[135].mxu1 }
 0x203   :  { %v3884_v0 = vadd.f32 %v5428_v46, %v7769_v34  ;;  %v7830_v16 = vadd.f32 %v5489_v26, %v3881_v28  ;;  %v5492_v38 = vadd.f32 %v5491_v49, %v5490_v21 }
 0x205   :  { %v5429_v17 = vpop.f32.mrb[136].mxu0  ;;  %v7832_v18 = vadd.f32 %v5492_v38, %v3884_v0 }
 0x206   :  { %v5430_v24 = vpop.f32.mrb[137].mxu0 }
 0x207   :  { %v5431_v19 = vadd.f32 %v5430_v24, %v5429_v17  ;;  %v5432_v22 = vpop.f32.mrb[138].mxu0  ;;  %v5493_v25 = vpop.f32.mrb[136].mxu1 }
 0x208   :  { %v5433_v56 = vpop.f32.mrb[139].mxu0  ;;  %v5494_v52 = vpop.f32.mrb[137].mxu1 }
 0x209   :  { %v3889_v50 = vadd.f32 %v5431_v19, %v7779_v8  ;;  %v5434_v29 = vadd.f32 %v5433_v56, %v5432_v22  ;;  %v5495_v37 = vadd.f32 %v5494_v52, %v5493_v25  ;;  %v5496_v40 = vpop.f32.mrb[138].mxu1 }
 0x20a   :  { %v5497_v11 = vpop.f32.mrb[139].mxu1 }
 0x20b   :  { %v3892_v34 = vadd.f32 %v5434_v29, %v7781_v13  ;;  %v7836_v39 = vadd.f32 %v5495_v37, %v3889_v50  ;;  %v5498_v54 = vadd.f32 %v5497_v11, %v5496_v40 }
 0x20d   :  { %v5435_v7 = vpop.f32.mrb[140].mxu0  ;;  %v7838_v60 = vadd.f32 %v5498_v54, %v3892_v34 }
 0x20e   :  { %v5436_v48 = vpop.f32.mrb[141].mxu0 }
 0x20f   :  { %v5437_v42 = vadd.f32 %v5436_v48, %v5435_v7  ;;  %v5438_v43 = vpop.f32.mrb[142].mxu0  ;;  %v5499_v44 = vpop.f32.mrb[140].mxu1 }
 0x210   :  { %v5439_v27 = vpop.f32.mrb[143].mxu0  ;;  %v5500_v31 = vpop.f32.mrb[141].mxu1 }
 0x211   :  { %v3897_v8 = vadd.f32 %v5437_v42, %v7791_v2  ;;  %v5440_v47 = vadd.f32 %v5439_v27, %v5438_v43  ;;  %v5501_v53 = vadd.f32 %v5500_v31, %v5499_v44  ;;  %v5502_v51 = vpop.f32.mrb[142].mxu1 }
 0x212   :  { %v5503_v35 = vpop.f32.mrb[143].mxu1 }
 0x213   :  { %v3900_v13 = vadd.f32 %v5440_v47, %v7793_v61  ;;  %v7842_v57 = vadd.f32 %v5501_v53, %v3897_v8  ;;  %v5504_v23 = vadd.f32 %v5503_v35, %v5502_v51 }
 0x215   :  { %v5441_v20 = vpop.f32.mrb[144].mxu0  ;;  %v7844_v55 = vadd.f32 %v5504_v23, %v3900_v13 }
 0x216   :  { %v5442_v9 = vpop.f32.mrb[145].mxu0 }
 0x217   :  { %v5443_v5 = vadd.f32 %v5442_v9, %v5441_v20  ;;  %v5444_v30 = vpop.f32.mrb[146].mxu0  ;;  %v5505_v63 = vpop.f32.mrb[144].mxu1 }
 0x218   :  { %v5445_v33 = vpop.f32.mrb[147].mxu0  ;;  %v5506_v6 = vpop.f32.mrb[145].mxu1 }
 0x219   :  { %v3905_v2 = vadd.f32 %v5443_v5, %v7800_v10  ;;  %v5446_v3 = vadd.f32 %v5445_v33, %v5444_v30  ;;  %v5507_v59 = vadd.f32 %v5506_v6, %v5505_v63  ;;  %v5508_v12 = vpop.f32.mrb[146].mxu1 }
 0x21a   :  { %v5509_v28 = vpop.f32.mrb[147].mxu1 }
 0x21b   :  { %v3908_v61 = vadd.f32 %v5446_v3, %v7802_v15  ;;  %v7848_v46 = vadd.f32 %v5507_v59, %v3905_v2  ;;  %v5510_v14 = vadd.f32 %v5509_v28, %v5508_v12 }
 0x21d   :  { %v5447_v26 = vpop.f32.mrb[148].mxu0  ;;  %v7850_v21 = vadd.f32 %v5510_v14, %v3908_v61 }
 0x21e   :  { %v5448_v0 = vpop.f32.mrb[149].mxu0 }
 0x21f   :  { %v5449_v49 = vadd.f32 %v5448_v0, %v5447_v26  ;;  %v5450_v38 = vpop.f32.mrb[150].mxu0  ;;  %v5511_v17 = vpop.f32.mrb[148].mxu1 }
 0x220   :  { %v5451_v24 = vpop.f32.mrb[151].mxu0  ;;  %v5512_v22 = vpop.f32.mrb[149].mxu1 }
 0x221   :  { %v3913_v10 = vadd.f32 %v5449_v49, %v7806_v4  ;;  %v5452_v19 = vadd.f32 %v5451_v24, %v5450_v38  ;;  %v5513_v25 = vadd.f32 %v5512_v22, %v5511_v17  ;;  %v5514_v56 = vpop.f32.mrb[150].mxu1 }
 0x222   :  { %v5515_v50 = vpop.f32.mrb[151].mxu1 }
 0x223   :  { %v3916_v15 = vadd.f32 %v5452_v19, %v7808_v32  ;;  %v7854_v29 = vadd.f32 %v5513_v25, %v3913_v10  ;;  %v5516_v52 = vadd.f32 %v5515_v50, %v5514_v56 }
 0x225   :  { %v5453_v37 = vpop.f32.mrb[152].mxu0  ;;  %v7856_v40 = vadd.f32 %v5516_v52, %v3916_v15 }
 0x226   :  { %v5454_v34 = vpop.f32.mrb[153].mxu0 }
 0x227   :  { %v5455_v11 = vadd.f32 %v5454_v34, %v5453_v37  ;;  %v5456_v54 = vpop.f32.mrb[154].mxu0  ;;  %v5517_v7 = vpop.f32.mrb[152].mxu1 }
 0x228   :  { %v5457_v48 = vpop.f32.mrb[155].mxu0  ;;  %v5518_v43 = vpop.f32.mrb[153].mxu1 }
 0x229   :  { %v3921_v4 = vadd.f32 %v5455_v11, %v7812_v62  ;;  %v5458_v42 = vadd.f32 %v5457_v48, %v5456_v54  ;;  %v5519_v44 = vadd.f32 %v5518_v43, %v5517_v7  ;;  %v5520_v27 = vpop.f32.mrb[154].mxu1 }
 0x22a   :  { %v5521_v8 = vpop.f32.mrb[155].mxu1 }
 0x22b   :  { %v3924_v32 = vadd.f32 %v5458_v42, %v7814_v58  ;;  %v7860_v47 = vadd.f32 %v5519_v44, %v3921_v4  ;;  %v5522_v31 = vadd.f32 %v5521_v8, %v5520_v27 }
 0x22d   :  { %v5459_v53 = vpop.f32.mrb[156].mxu0  ;;  %v7862_v51 = vadd.f32 %v5522_v31, %v3924_v32 }
 0x22e   :  { %v5460_v13 = vpop.f32.mrb[157].mxu0 }
 0x22f   :  { %v5461_v35 = vadd.f32 %v5460_v13, %v5459_v53  ;;  %v5462_v23 = vpop.f32.mrb[158].mxu0  ;;  %v5523_v20 = vpop.f32.mrb[156].mxu1 }
 0x230   :  { %v5463_v9 = vpop.f32.mrb[159].mxu0  ;;  %v5524_v30 = vpop.f32.mrb[157].mxu1 }
 0x231   :  { %v3929_v62 = vadd.f32 %v5461_v35, %v7818_v41  ;;  %v5464_v5 = vadd.f32 %v5463_v9, %v5462_v23  ;;  %v5525_v63 = vadd.f32 %v5524_v30, %v5523_v20  ;;  %v5526_v33 = vpop.f32.mrb[158].mxu1 }
 0x232   :  { %v5527_v2 = vpop.f32.mrb[159].mxu1 }
 0x233   :  { %v3932_v58 = vadd.f32 %v5464_v5, %v7820_v45  ;;  %v7866_v3 = vadd.f32 %v5525_v63, %v3929_v62  ;;  %v5528_v6 = vadd.f32 %v5527_v2, %v5526_v33 }
 0x235   :  { %v5545_v59 = vpop.f32.mrb[160].mxu0  ;;  %v7868_v12 = vadd.f32 %v5528_v6, %v3932_v58 }
 0x236   :  { %v5546_v61 = vpop.f32.mrb[161].mxu0 }
 0x237   :  { %v5547_v28 = vadd.f32 %v5546_v61, %v5545_v59  ;;  %v5548_v14 = vpop.f32.mrb[162].mxu0  ;;  %v5609_v26 = vpop.f32.mrb[160].mxu1 }
 0x238   :  { %v5549_v0 = vpop.f32.mrb[163].mxu0  ;;  %v5610_v38 = vpop.f32.mrb[161].mxu1 }
 0x239   :  { %v4067_v41 = vadd.f32 %v5547_v28, %v7824_v36  ;;  %v5550_v49 = vadd.f32 %v5549_v0, %v5548_v14  ;;  %v5611_v17 = vadd.f32 %v5610_v38, %v5609_v26  ;;  %v5612_v24 = vpop.f32.mrb[162].mxu1 }
 0x23a   :  { %v5613_v10 = vpop.f32.mrb[163].mxu1 }
 0x23b   :  { %v4070_v45 = vadd.f32 %v5550_v49, %v7826_v1  ;;  %v7872_v19 = vadd.f32 %v5611_v17, %v4067_v41  ;;  %v5614_v22 = vadd.f32 %v5613_v10, %v5612_v24 }
 0x23d   :  { %v5551_v25 = vpop.f32.mrb[164].mxu0  ;;  %v7874_v56 = vadd.f32 %v5614_v22, %v4070_v45 }
 0x23e   :  { %v5552_v15 = vpop.f32.mrb[165].mxu0 }
 0x23f   :  { %v5553_v50 = vadd.f32 %v5552_v15, %v5551_v25  ;;  %v5554_v52 = vpop.f32.mrb[166].mxu0  ;;  %v5615_v37 = vpop.f32.mrb[164].mxu1 }
 0x240   :  { %v5555_v34 = vpop.f32.mrb[167].mxu0  ;;  %v5616_v54 = vpop.f32.mrb[165].mxu1 }
 0x241   :  { %v4075_v36 = vadd.f32 %v5553_v50, %v7830_v16  ;;  %v5556_v11 = vadd.f32 %v5555_v34, %v5554_v52  ;;  %v5617_v7 = vadd.f32 %v5616_v54, %v5615_v37  ;;  %v5618_v48 = vpop.f32.mrb[166].mxu1 }
 0x242   :  { %v5619_v4 = vpop.f32.mrb[167].mxu1 }
 0x243   :  { %v4078_v1 = vadd.f32 %v5556_v11, %v7832_v18  ;;  %v7878_v42 = vadd.f32 %v5617_v7, %v4075_v36  ;;  %v5620_v43 = vadd.f32 %v5619_v4, %v5618_v48 }
 0x245   :  { %v5557_v44 = vpop.f32.mrb[168].mxu0  ;;  %v7880_v27 = vadd.f32 %v5620_v43, %v4078_v1 }
 0x246   :  { %v5558_v32 = vpop.f32.mrb[169].mxu0 }
 0x247   :  { %v5559_v8 = vadd.f32 %v5558_v32, %v5557_v44  ;;  %v5560_v31 = vpop.f32.mrb[170].mxu0  ;;  %v5621_v53 = vpop.f32.mrb[168].mxu1 }
 0x248   :  { %v5561_v13 = vpop.f32.mrb[171].mxu0  ;;  %v5622_v23 = vpop.f32.mrb[169].mxu1 }
 0x249   :  { %v4083_v16 = vadd.f32 %v5559_v8, %v7836_v39  ;;  %v5562_v35 = vadd.f32 %v5561_v13, %v5560_v31  ;;  %v5623_v20 = vadd.f32 %v5622_v23, %v5621_v53  ;;  %v5624_v9 = vpop.f32.mrb[170].mxu1 }
 0x24a   :  { %v5625_v62 = vpop.f32.mrb[171].mxu1 }
 0x24b   :  { %v4086_v18 = vadd.f32 %v5562_v35, %v7838_v60  ;;  %v7884_v5 = vadd.f32 %v5623_v20, %v4083_v16  ;;  %v5626_v30 = vadd.f32 %v5625_v62, %v5624_v9 }
 0x24d   :  { %v5563_v63 = vpop.f32.mrb[172].mxu0  ;;  %v7886_v33 = vadd.f32 %v5626_v30, %v4086_v18 }
 0x24e   :  { %v5564_v58 = vpop.f32.mrb[173].mxu0 }
 0x24f   :  { %v5565_v2 = vadd.f32 %v5564_v58, %v5563_v63  ;;  %v5566_v6 = vpop.f32.mrb[174].mxu0  ;;  %v5627_v59 = vpop.f32.mrb[172].mxu1 }
 0x250   :  { %v5567_v61 = vpop.f32.mrb[175].mxu0  ;;  %v5628_v14 = vpop.f32.mrb[173].mxu1 }
 0x251   :  { %v4091_v39 = vadd.f32 %v5565_v2, %v7842_v57  ;;  %v5568_v28 = vadd.f32 %v5567_v61, %v5566_v6  ;;  %v5629_v26 = vadd.f32 %v5628_v14, %v5627_v59  ;;  %v5630_v0 = vpop.f32.mrb[174].mxu1 }
 0x252   :  { %v5631_v41 = vpop.f32.mrb[175].mxu1 }
 0x253   :  { %v4094_v60 = vadd.f32 %v5568_v28, %v7844_v55  ;;  %v7890_v49 = vadd.f32 %v5629_v26, %v4091_v39  ;;  %v5632_v38 = vadd.f32 %v5631_v41, %v5630_v0 }
 0x255   :  { %v5569_v17 = vpop.f32.mrb[176].mxu0  ;;  %v7892_v24 = vadd.f32 %v5632_v38, %v4094_v60 }
 0x256   :  { %v5570_v45 = vpop.f32.mrb[177].mxu0 }
 0x257   :  { %v5571_v10 = vadd.f32 %v5570_v45, %v5569_v17  ;;  %v5572_v22 = vpop.f32.mrb[178].mxu0  ;;  %v5633_v25 = vpop.f32.mrb[176].mxu1 }
 0x258   :  { %v5573_v15 = vpop.f32.mrb[179].mxu0  ;;  %v5634_v52 = vpop.f32.mrb[177].mxu1 }
 0x259   :  { %v4099_v57 = vadd.f32 %v5571_v10, %v7848_v46  ;;  %v5574_v50 = vadd.f32 %v5573_v15, %v5572_v22  ;;  %v5635_v37 = vadd.f32 %v5634_v52, %v5633_v25  ;;  %v5636_v34 = vpop.f32.mrb[178].mxu1 }
 0x25a   :  { %v5637_v36 = vpop.f32.mrb[179].mxu1 }
 0x25b   :  { %v4102_v55 = vadd.f32 %v5574_v50, %v7850_v21  ;;  %v7896_v11 = vadd.f32 %v5635_v37, %v4099_v57  ;;  %v5638_v54 = vadd.f32 %v5637_v36, %v5636_v34 }
 0x25d   :  { %v5575_v7 = vpop.f32.mrb[180].mxu0  ;;  %v7898_v48 = vadd.f32 %v5638_v54, %v4102_v55 }
 0x25e   :  { %v5576_v1 = vpop.f32.mrb[181].mxu0 }
 0x25f   :  { %v5577_v4 = vadd.f32 %v5576_v1, %v5575_v7  ;;  %v5578_v43 = vpop.f32.mrb[182].mxu0  ;;  %v5639_v44 = vpop.f32.mrb[180].mxu1 }
 0x260   :  { %v5579_v32 = vpop.f32.mrb[183].mxu0  ;;  %v5640_v31 = vpop.f32.mrb[181].mxu1 }
 0x261   :  { %v4107_v46 = vadd.f32 %v5577_v4, %v7854_v29  ;;  %v5580_v8 = vadd.f32 %v5579_v32, %v5578_v43  ;;  %v5641_v53 = vadd.f32 %v5640_v31, %v5639_v44  ;;  %v5642_v13 = vpop.f32.mrb[182].mxu1 }
 0x262   :  { %v5643_v16 = vpop.f32.mrb[183].mxu1 }
 0x263   :  { %v4110_v21 = vadd.f32 %v5580_v8, %v7856_v40  ;;  %v7902_v35 = vadd.f32 %v5641_v53, %v4107_v46  ;;  %v5644_v23 = vadd.f32 %v5643_v16, %v5642_v13 }
 0x265   :  { %v5581_v20 = vpop.f32.mrb[184].mxu0  ;;  %v7904_v9 = vadd.f32 %v5644_v23, %v4110_v21 }
 0x266   :  { %v5582_v18 = vpop.f32.mrb[185].mxu0 }
 0x267   :  { %v5583_v62 = vadd.f32 %v5582_v18, %v5581_v20  ;;  %v5584_v30 = vpop.f32.mrb[186].mxu0  ;;  %v5645_v63 = vpop.f32.mrb[184].mxu1 }
 0x268   :  { %v5585_v58 = vpop.f32.mrb[187].mxu0  ;;  %v5646_v6 = vpop.f32.mrb[185].mxu1 }
 0x269   :  { %v4115_v29 = vadd.f32 %v5583_v62, %v7860_v47  ;;  %v5586_v2 = vadd.f32 %v5585_v58, %v5584_v30  ;;  %v5647_v59 = vadd.f32 %v5646_v6, %v5645_v63  ;;  %v5648_v61 = vpop.f32.mrb[186].mxu1 }
 0x26a   :  { %v5649_v39 = vpop.f32.mrb[187].mxu1 }
 0x26b   :  { %v4118_v40 = vadd.f32 %v5586_v2, %v7862_v51  ;;  %v7908_v28 = vadd.f32 %v5647_v59, %v4115_v29  ;;  %v5650_v14 = vadd.f32 %v5649_v39, %v5648_v61 }
 0x26d   :  { %v5587_v26 = vpop.f32.mrb[188].mxu0  ;;  %v7910_v0 = vadd.f32 %v5650_v14, %v4118_v40 }
 0x26e   :  { %v5588_v60 = vpop.f32.mrb[189].mxu0 }
 0x26f   :  { %v5589_v41 = vadd.f32 %v5588_v60, %v5587_v26  ;;  %v5590_v38 = vpop.f32.mrb[190].mxu0  ;;  %v5651_v17 = vpop.f32.mrb[188].mxu1 }
 0x270   :  { %v5591_v45 = vpop.f32.mrb[191].mxu0  ;;  %v5652_v22 = vpop.f32.mrb[189].mxu1 }
 0x271   :  { %v4123_v47 = vadd.f32 %v5589_v41, %v7866_v3  ;;  %v5592_v10 = vadd.f32 %v5591_v45, %v5590_v38  ;;  %v5653_v25 = vadd.f32 %v5652_v22, %v5651_v17  ;;  %v5654_v15 = vpop.f32.mrb[190].mxu1 }
 0x272   :  { %v5655_v57 = vpop.f32.mrb[191].mxu1 }
 0x273   :  { %v4126_v51 = vadd.f32 %v5592_v10, %v7868_v12  ;;  %v7914_v50 = vadd.f32 %v5653_v25, %v4123_v47  ;;  %v5656_v52 = vadd.f32 %v5655_v57, %v5654_v15 }
 0x275   :  { %v5673_v37 = vpop.f32.mrb[192].mxu0  ;;  %v7916_v34 = vadd.f32 %v5656_v52, %v4126_v51 }
 0x276   :  { %v5674_v55 = vpop.f32.mrb[193].mxu0 }
 0x277   :  { %v5675_v36 = vadd.f32 %v5674_v55, %v5673_v37  ;;  %v5676_v54 = vpop.f32.mrb[194].mxu0  ;;  %v5755_v1 = vpop.f32.mrb[192].mxu1 }
 0x278   :  { %v5677_v7 = vpop.f32.mrb[195].mxu0  ;;  %v4357_v43 = vpop.f32.mrb[193].mxu1 }
 0x279   :  { %v5678_v4 = vadd.f32 %v5677_v7, %v5676_v54  ;;  %v4261_v3 = vadd.f32 %v5675_v36, %v7872_v19  ;;  %v5756_v44 = vpop.f32.mrb[194].mxu1 }
 0x27a   :  { %v4360_v46 = vpop.f32.mrb[195].mxu1 }
 0x27b   :  { %v4358_v32 = vadd.f32 %v4357_v43, %v4261_v3  ;;  %v4264_v12 = vadd.f32 %v5678_v4, %v7874_v56 }
 0x27d   :  { %v4420_v8 = vmax.f32 %v4358_v32, 0.0  ;;  %v4361_v31 = vadd.f32 %v4360_v46, %v4264_v12  ;;  %v5679_v53 = vpop.f32.mrb[196].mxu0 }
 0x27e   :  { %v5680_v13 = vpop.f32.mrb[197].mxu0 }
 0x27f   :  { %4436 = vst [vmem:[%s7988_s3] sm:$0xff] %v4420_v8  ;;  %v4421_v21 = vmax.f32 %v4361_v31, 0.0  ;;  %v5681_v16 = vadd.f32 %v5680_v13, %v5679_v53  ;;  %v5682_v23 = vpop.f32.mrb[198].mxu0  ;;  %v5759_v18 = vpop.f32.mrb[196].mxu1 }
 0x280   :  { %v5683_v20 = vpop.f32.mrb[199].mxu0  ;;  %v4373_v62 = vpop.f32.mrb[197].mxu1 }
 0x281   :  { %4437 = vst [vmem:[%s7988_s3 + $0x8] sm:$0xff] %v4421_v21  ;;  %v4269_v19 = vadd.f32 %v5681_v16, %v7878_v42  ;;  %v5684_v56 = vadd.f32 %v5683_v20, %v5682_v23  ;;  %v5760_v30 = vpop.f32.mrb[198].mxu1 }
 0x282   :  { %v4376_v29 = vpop.f32.mrb[199].mxu1 }
 0x283   :  { %v4366_v63 = vadd.f32 %v5755_v1, %v4269_v19  ;;  %v4272_v58 = vadd.f32 %v5684_v56, %v7880_v27 }
 0x285   :  { %v4422_v2 = vmax.f32 %v4366_v63, 0.0  ;;  %v4369_v6 = vadd.f32 %v5756_v44, %v4272_v58  ;;  %v5685_v59 = vpop.f32.mrb[200].mxu0 }
 0x286   :  { %v5686_v61 = vpop.f32.mrb[201].mxu0 }
 0x287   :  { %4438 = vst [vmem:[%s7988_s3 + $0x10] sm:$0xff] %v4422_v2  ;;  %v4423_v40 = vmax.f32 %v4369_v6, 0.0  ;;  %v5687_v39 = vadd.f32 %v5686_v61, %v5685_v59  ;;  %v5688_v14 = vpop.f32.mrb[202].mxu0  ;;  %v5763_v42 = vpop.f32.mrb[200].mxu1 }
 0x288   :  { %v5689_v26 = vpop.f32.mrb[203].mxu0  ;;  %v4389_v41 = vpop.f32.mrb[201].mxu1 }
 0x289   :  { %4439 = vst [vmem:[%s7988_s3 + $0x18] sm:$0xff] %v4423_v40  ;;  %v5690_v60 = vadd.f32 %v5689_v26, %v5688_v14  ;;  %v4277_v27 = vadd.f32 %v5687_v39, %v7884_v5  ;;  %v5764_v38 = vpop.f32.mrb[202].mxu1 }
 0x28a   :  { %v4392_v47 = vpop.f32.mrb[203].mxu1 }
 0x28b   :  { %v4374_v17 = vadd.f32 %v4373_v62, %v4277_v27  ;;  %v4280_v45 = vadd.f32 %v5690_v60, %v7886_v33 }
 0x28d   :  { %v4424_v10 = vmax.f32 %v4374_v17, 0.0  ;;  %v4377_v22 = vadd.f32 %v4376_v29, %v4280_v45  ;;  %v5691_v25 = vpop.f32.mrb[204].mxu0 }
 0x28e   :  { %v5692_v15 = vpop.f32.mrb[205].mxu0 }
 0x28f   :  { %4440 = vst [vmem:[%s7988_s3 + $0x20] sm:$0xff] %v4424_v10  ;;  %v4425_v51 = vmax.f32 %v4377_v22, 0.0  ;;  %v5693_v57 = vadd.f32 %v5692_v15, %v5691_v25  ;;  %v5694_v52 = vpop.f32.mrb[206].mxu0  ;;  %v7939_v55 = vpop.f32.mrb[204].mxu1 }
 0x290   :  { %v5695_v37 = vpop.f32.mrb[207].mxu0  ;;  %v4405_v36 = vpop.f32.mrb[205].mxu1 }
 0x291   :  { %4441 = vst [vmem:[%s7988_s3 + $0x28] sm:$0xff] %v4425_v51  ;;  %v4285_v5 = vadd.f32 %v5693_v57, %v7890_v49  ;;  %v5696_v33 = vadd.f32 %v5695_v37, %v5694_v52  ;;  %v5768_v54 = vpop.f32.mrb[206].mxu1 }
 0x292   :  { %v4408_v4 = vpop.f32.mrb[207].mxu1 }
 0x293   :  { %v4382_v7 = vadd.f32 %v5759_v18, %v4285_v5  ;;  %v4288_v1 = vadd.f32 %v5696_v33, %v7892_v24 }
 0x295   :  { %v4426_v3 = vmax.f32 %v4382_v7, 0.0  ;;  %v4385_v43 = vadd.f32 %v5760_v30, %v4288_v1  ;;  %v5697_v44 = vpop.f32.mrb[208].mxu0 }
 0x296   :  { %v5698_v32 = vpop.f32.mrb[209].mxu0 }
 0x297   :  { %4442 = vst [vmem:[%s7988_s3 + $0x30] sm:$0xff] %v4426_v3  ;;  %v4427_v12 = vmax.f32 %v4385_v43, 0.0  ;;  %v5699_v46 = vadd.f32 %v5698_v32, %v5697_v44  ;;  %v5700_v8 = vpop.f32.mrb[210].mxu0 }
 0x298   :  { %v5701_v31 = vpop.f32.mrb[211].mxu0 }
 0x299   :  { %4443 = vst [vmem:[%s7988_s3 + $0x38] sm:$0xff] %v4427_v12  ;;  %v5702_v49 = vadd.f32 %v5701_v31, %v5700_v8  ;;  %v4293_v24 = vadd.f32 %v5699_v46, %v7896_v11 }
 0x29b   :  { %v4390_v53 = vadd.f32 %v4389_v41, %v4293_v24  ;;  %v4296_v13 = vadd.f32 %v5702_v49, %v7898_v48 }
 0x29d   :  { %v4428_v21 = vmax.f32 %v4390_v53, 0.0  ;;  %v4393_v16 = vadd.f32 %v4392_v47, %v4296_v13  ;;  %v5703_v23 = vpop.f32.mrb[212].mxu0 }
 0x29e   :  { %v5704_v20 = vpop.f32.mrb[213].mxu0 }
 0x29f   :  { %4444 = vst [vmem:[%s7988_s3 + $0x40] sm:$0xff] %v4428_v21  ;;  %v4429_v18 = vmax.f32 %v4393_v16, 0.0  ;;  %v5705_v19 = vadd.f32 %v5704_v20, %v5703_v23  ;;  %v5706_v56 = vpop.f32.mrb[214].mxu0 }
 0x2a0   :  { %v5707_v62 = vpop.f32.mrb[215].mxu0 }
 0x2a1   :  { %4445 = vst [vmem:[%s7988_s3 + $0x48] sm:$0xff] %v4429_v18  ;;  %v4301_v11 = vadd.f32 %v5705_v19, %v7902_v35  ;;  %v5708_v30 = vadd.f32 %v5707_v62, %v5706_v56 }
 0x2a3   :  { %v4398_v48 = vadd.f32 %v5763_v42, %v4301_v11  ;;  %v4304_v63 = vadd.f32 %v5708_v30, %v7904_v9 }
 0x2a5   :  { %v4430_v58 = vmax.f32 %v4398_v48, 0.0  ;;  %v4401_v29 = vadd.f32 %v5764_v38, %v4304_v63  ;;  %v5709_v2 = vpop.f32.mrb[216].mxu0 }
 0x2a6   :  { %v5710_v6 = vpop.f32.mrb[217].mxu0 }
 0x2a7   :  { %4446 = vst [vmem:[%s7988_s3 + $0x50] sm:$0xff] %v4430_v58  ;;  %v4431_v59 = vmax.f32 %v4401_v29, 0.0  ;;  %v5711_v61 = vadd.f32 %v5710_v6, %v5709_v2  ;;  %v5712_v40 = vpop.f32.mrb[218].mxu0 }
 0x2a8   :  { %v5713_v39 = vpop.f32.mrb[219].mxu0 }
 0x2a9   :  { %4447 = vst [vmem:[%s7988_s3 + $0x58] sm:$0xff] %v4431_v59  ;;  %v5714_v35 = vadd.f32 %v5713_v39, %v5712_v40  ;;  %v4309_v14 = vadd.f32 %v5711_v61, %v7908_v28 }
 0x2ab   :  { %v4406_v9 = vadd.f32 %v4405_v36, %v4309_v14  ;;  %v4312_v26 = vadd.f32 %v5714_v35, %v7910_v0 }
 0x2ad   :  { %v4432_v42 = vmax.f32 %v4406_v9, 0.0  ;;  %v4409_v60 = vadd.f32 %v4408_v4, %v4312_v26  ;;  %v5715_v27 = vpop.f32.mrb[220].mxu0 }
 0x2ae   :  { %v5716_v41 = vpop.f32.mrb[221].mxu0 }
 0x2af   :  { %4448 = vst [vmem:[%s7988_s3 + $0x60] sm:$0xff] %v4432_v42  ;;  %v4433_v38 = vmax.f32 %v4409_v60, 0.0  ;;  %v5717_v17 = vadd.f32 %v5716_v41, %v5715_v27  ;;  %v5718_v45 = vpop.f32.mrb[222].mxu0 }
 0x2b0   :  { %v5719_v47 = vpop.f32.mrb[223].mxu0 }
 0x2b1   :  { %4449 = vst [vmem:[%s7988_s3 + $0x68] sm:$0xff] %v4433_v38  ;;  %v4317_v28 = vadd.f32 %v5717_v17, %v7914_v50  ;;  %v5720_v10 = vadd.f32 %v5719_v47, %v5718_v45 }
 0x2b3   :  { %v4414_v0 = vadd.f32 %v7939_v55, %v4317_v28  ;;  %v4320_v22 = vadd.f32 %v5720_v10, %v7916_v34 }
 0x2b5   :  { %v4434_v25 = vmax.f32 %v4414_v0, 0.0  ;;  %v4417_v15 = vadd.f32 %v5768_v54, %v4320_v22 }
 0x2b7   :  { %4450 = vst [vmem:[%s7988_s3 + $0x70] sm:$0xff] %v4434_v25  ;;  %v4435_v51 = vmax.f32 %v4417_v15, 0.0 }
 0x2b9   :  { %4451 = vst [vmem:[%s7988_s3 + $0x78] sm:$0xff] %v4435_v51 }

// kernel: cnn_forward.11
= control target key start
LH: loop header
LB: loop body
LE: loop exit
PB: predicated region body
PF: predicated region fallthrough
CT: control target
= control target key end

     0   :  { %vm3328_vm0 = vmmov 0   ;;  %vm2502_vm1 = vcmask 1041409   ;;  %s4084_s1 = inlined_call_operand.vmem [shape: bf16[3456,128], index: 1, kind: input, shape index: {}]   ;;  %s4085_s0 = inlined_call_operand.vmem [shape: bf16[16,3456], index: 0, kind: input, shape index: {}]   ;;  %s4086_s2 = inlined_call_operand.vmem [shape: f32[1,128], index: 2, kind: input, shape index: {}]   ;;  %s4087_s3 = inlined_call_operand.vmem [shape: f32[2,128], index: 3, kind: output, shape index: {}]  }
   0x1   :  { %v3071_v0 = vld [vmem:[%s4084_s1 + $0x40] sm:$0xff]   ;;  %v3075_v4 = vld [vmem:[%s4084_s1 + $0x48] sm:$0xff]   ;;  %v3079_v8 = vld [vmem:[%s4084_s1 + $0x50] sm:$0xff]  }
   0x2   :  { %v3072_v1 = vld [vmem:[%s4084_s1] sm:$0xff]   ;;  %2754 = vmatprep.subr.bf16.mxu0 %v3071_v0  ;;  %v3076_v5 = vld [vmem:[%s4084_s1 + $0x8] sm:$0xff]   ;;  %v3080_v9 = vld [vmem:[%s4084_s1 + $0x10] sm:$0xff]  }
   0x3   :  { %v3073_v2 = vld [vmem:[%s4084_s1 + $0xc0] sm:$0xff]   ;;  %2755 = vmatpush3.bf16.msra.mxu0 %v3072_v1  ;;  %v3077_v6 = vld [vmem:[%s4084_s1 + $0xc8] sm:$0xff]   ;;  %v3081_v10 = vld [vmem:[%s4084_s1 + $0xd0] sm:$0xff]  }
   0x4   :  { %v3074_v3 = vld [vmem:[%s4084_s1 + $0x80] sm:$0xff]   ;;  %2776 = vmatprep.subr.bf16.mxu1 %v3073_v2  ;;  %2756 = vmatprep.subr.bf16.mxu0 %v3075_v4  ;;  %v3078_v7 = vld [vmem:[%s4084_s1 + $0x88] sm:$0xff]   ;;  %v3082_v11 = vld [vmem:[%s4084_s1 + $0x90] sm:$0xff]  }
   0x5   :  { %2777 = vmatpush3.bf16.msra.mxu1 %v3074_v3  ;;  %v3083_v12 = vld [vmem:[%s4084_s1 + $0x58] sm:$0xff]   ;;  %v3087_v16 = vld [vmem:[%s4084_s1 + $0x60] sm:$0xff]   ;;  %v3091_v20 = vld [vmem:[%s4084_s1 + $0x68] sm:$0xff]  }
   0x6   :  { %2778 = vmatprep.subr.bf16.mxu1 %v3077_v6  ;;  %v3084_v13 = vld [vmem:[%s4084_s1 + $0x18] sm:$0xff]   ;;  %v3088_v17 = vld [vmem:[%s4084_s1 + $0x20] sm:$0xff]   ;;  %v3092_v21 = vld [vmem:[%s4084_s1 + $0x28] sm:$0xff]  }
   0x7   :  { %2757 = vmatpush3.bf16.msra.mxu0 %v3076_v5  ;;  %v3085_v14 = vld [vmem:[%s4084_s1 + $0xd8] sm:$0xff]   ;;  %v3089_v18 = vld [vmem:[%s4084_s1 + $0xe0] sm:$0xff]   ;;  %v3093_v22 = vld [vmem:[%s4084_s1 + $0xe8] sm:$0xff]  }
   0x8   :  { %2758 = vmatprep.subr.bf16.mxu0 %v3079_v8  ;;  %v3086_v15 = vld [vmem:[%s4084_s1 + $0x98] sm:$0xff]   ;;  %v3090_v19 = vld [vmem:[%s4084_s1 + $0xa0] sm:$0xff]   ;;  %v3094_v23 = vld [vmem:[%s4084_s1 + $0xa8] sm:$0xff]  }
   0x9   :  { %2779 = vmatpush3.bf16.msra.mxu1 %v3078_v7  ;;  %v3095_v24 = vld [vmem:[%s4084_s1 + $0x70] sm:$0xff]   ;;  %v3099_v28 = vld [vmem:[%s4084_s1 + $0x78] sm:$0xff]   ;;  %v3102_v31 = vld [vmem:[%s4085_s0] ss:$108 sps:$4 sm:$0xff]  }
   0xa   :  { %2780 = vmatprep.subr.bf16.mxu1 %v3081_v10  ;;  %v3096_v25 = vld [vmem:[%s4084_s1 + $0x30] sm:$0xff]   ;;  %v3100_v29 = vld [vmem:[%s4084_s1 + $0x38] sm:$0xff]   ;;  %v3106_v34 = vld [vmem:[%s4084_s1 + $0x140] sm:$0xff]  }
   0xb   :  { %2759 = vmatpush3.bf16.msra.mxu0 %v3080_v9  ;;  %v3097_v26 = vld [vmem:[%s4084_s1 + $0xf0] sm:$0xff]   ;;  %v3101_v30 = vld [vmem:[%s4084_s1 + $0xf8] sm:$0xff]   ;;  %v3110_v37 = vld [vmem:[%s4084_s1 + $0x100] sm:$0xff]  }
   0xc   :  { %2760 = vmatprep.subr.bf16.mxu0 %v3083_v12  ;;  %v3098_v27 = vld [vmem:[%s4084_s1 + $0xb0] sm:$0xff]   ;;  %v3105_v33 = vld [vmem:[%s4084_s1 + $0xb8] sm:$0xff]   ;;  %v3111_v38 = vld [vmem:[%s4084_s1 + $0x1c0] sm:$0xff]  }
   0xd   :  { %2781 = vmatpush3.bf16.msra.mxu1 %v3082_v11  ;;  %v3104_v32 = vld [vmem:[%s4085_s0 + $0x4] ss:$108 sps:$4 sm:$0xff]   ;;  %v3107_v35 = vld [vmem:[%s4085_s0 + $0x8] ss:$108 sps:$4 sm:$0xff]   ;;  %v3109_v36 = vld [vmem:[%s4085_s0 + $0xc] ss:$108 sps:$4 sm:$0xff]  }
   0xe   :  { %2782 = vmatprep.subr.bf16.mxu1 %v3085_v14  ;;  %1946 = vmatprep.mubr.bf16.mxu0 %v3104_v32  ;;  %v3112_v39 = vld [vmem:[%s4084_s1 + $0x180] sm:$0xff]   ;;  %v3113_v40 = vld [vmem:[%s4084_s1 + $0x148] sm:$0xff]   ;;  %v3117_v44 = vld [vmem:[%s4084_s1 + $0x150] sm:$0xff]  }
   0xf   :  { %2761 = vmatpush3.bf16.msra.mxu0 %v3084_v13  ;;  %1987 = vmatprep.mubr.bf16.mxu1 %v3109_v36  ;;  %v3114_v41 = vld [vmem:[%s4084_s1 + $0x108] sm:$0xff]   ;;  %v3118_v45 = vld [vmem:[%s4084_s1 + $0x110] sm:$0xff]   ;;  %v3121_v48 = vld [vmem:[%s4084_s1 + $0x158] sm:$0xff]  }
  0x10   :  { %2762 = vmatprep.subr.bf16.mxu0 %v3087_v16  ;;  %v3115_v42 = vld [vmem:[%s4084_s1 + $0x1c8] sm:$0xff]   ;;  %v3119_v46 = vld [vmem:[%s4084_s1 + $0x1d0] sm:$0xff]   ;;  %v3122_v49 = vld [vmem:[%s4084_s1 + $0x118] sm:$0xff]  }
  0x11   :  { %2783 = vmatpush3.bf16.msra.mxu1 %v3086_v15  ;;  %v3116_v43 = vld [vmem:[%s4084_s1 + $0x188] sm:$0xff]   ;;  %v3120_v47 = vld [vmem:[%s4084_s1 + $0x190] sm:$0xff]   ;;  %v3123_v50 = vld [vmem:[%s4084_s1 + $0x1d8] sm:$0xff]  }
  0x12   :  { %2784 = vmatprep.subr.bf16.mxu1 %v3089_v18  ;;  %v3124_v51 = vld [vmem:[%s4084_s1 + $0x198] sm:$0xff]   ;;  %v3125_v52 = vld [vmem:[%s4084_s1 + $0x160] sm:$0xff]   ;;  %v3129_v56 = vld [vmem:[%s4084_s1 + $0x168] sm:$0xff]  }
  0x13   :  { %2763 = vmatpush3.bf16.msra.mxu0 %v3088_v17  ;;  %v3126_v53 = vld [vmem:[%s4084_s1 + $0x120] sm:$0xff]   ;;  %v3130_v57 = vld [vmem:[%s4084_s1 + $0x128] sm:$0xff]   ;;  %v3133_v60 = vld [vmem:[%s4084_s1 + $0x170] sm:$0xff]  }
  0x14   :  { %2764 = vmatprep.subr.bf16.mxu0 %v3091_v20  ;;  %v3127_v54 = vld [vmem:[%s4084_s1 + $0x1e0] sm:$0xff]   ;;  %v3131_v58 = vld [vmem:[%s4084_s1 + $0x1e8] sm:$0xff]   ;;  %v3134_v61 = vld [vmem:[%s4084_s1 + $0x130] sm:$0xff]  }
  0x15   :  { %2785 = vmatpush3.bf16.msra.mxu1 %v3090_v19  ;;  %v3128_v55 = vld [vmem:[%s4084_s1 + $0x1a0] sm:$0xff]   ;;  %v3132_v59 = vld [vmem:[%s4084_s1 + $0x1a8] sm:$0xff]   ;;  %v3135_v62 = vld [vmem:[%s4084_s1 + $0x1f0] sm:$0xff]  }
  0x16   :  { %2786 = vmatprep.subr.bf16.mxu1 %v3093_v22  ;;  %v3136_v63 = vld [vmem:[%s4084_s1 + $0x1b0] sm:$0xff]   ;;  %v3137_v0 = vld [vmem:[%s4084_s1 + $0x178] sm:$0xff]   ;;  %v3144_v6 = vld [vmem:[%s4084_s1 + $0x240] sm:$0xff]  }
  0x17   :  { %2765 = vmatpush3.bf16.msra.mxu0 %v3092_v21  ;;  %v3138_v1 = vld [vmem:[%s4084_s1 + $0x138] sm:$0xff]   ;;  %v3142_v4 = vld [vmem:[%s4085_s0 + $0x14] ss:$108 sps:$4 sm:$0xff]   ;;  %v3151_v12 = vld [vmem:[%s4084_s1 + $0x248] sm:$0xff]  }
  0x18   :  { %2766 = vmatprep.subr.bf16.mxu0 %v3095_v24  ;;  %v3139_v2 = vld [vmem:[%s4084_s1 + $0x1f8] sm:$0xff]   ;;  %v3148_v9 = vld [vmem:[%s4084_s1 + $0x200] sm:$0xff]   ;;  %v3152_v13 = vld [vmem:[%s4084_s1 + $0x208] sm:$0xff]  }
  0x19   :  { %2787 = vmatpush3.bf16.msra.mxu1 %v3094_v23  ;;  %v3140_v3 = vld [vmem:[%s4085_s0 + $0x10] ss:$108 sps:$4 sm:$0xff]   ;;  %v3145_v7 = vld [vmem:[%s4085_s0 + $0x18] ss:$108 sps:$4 sm:$0xff]   ;;  %v3153_v14 = vld [vmem:[%s4084_s1 + $0x2c8] sm:$0xff]  }
  0x1a   :  { %2788 = vmatprep.subr.bf16.mxu1 %v3097_v26  ;;  %v3143_v5 = vld [vmem:[%s4084_s1 + $0x1b8] sm:$0xff]   ;;  %v3149_v10 = vld [vmem:[%s4084_s1 + $0x2c0] sm:$0xff]   ;;  %v3154_v15 = vld [vmem:[%s4084_s1 + $0x288] sm:$0xff]  }
  0x1b   :  { %2767 = vmatpush3.bf16.msra.mxu0 %v3096_v25  ;;  %v3147_v8 = vld [vmem:[%s4085_s0 + $0x1c] ss:$108 sps:$4 sm:$0xff]   ;;  %v3150_v11 = vld [vmem:[%s4084_s1 + $0x280] sm:$0xff]   ;;  %v3155_v16 = vld [vmem:[%s4084_s1 + $0x250] sm:$0xff]  }
  0x1c   :  { %2768 = vmatprep.subr.bf16.mxu0 %v3099_v28  ;;  %v3156_v17 = vld [vmem:[%s4084_s1 + $0x210] sm:$0xff]   ;;  %v3159_v20 = vld [vmem:[%s4084_s1 + $0x258] sm:$0xff]   ;;  %v3163_v24 = vld [vmem:[%s4084_s1 + $0x260] sm:$0xff]  }
  0x1d   :  { %2789 = vmatpush3.bf16.msra.mxu1 %v3098_v27  ;;  %v3157_v18 = vld [vmem:[%s4084_s1 + $0x2d0] sm:$0xff]   ;;  %v3160_v21 = vld [vmem:[%s4084_s1 + $0x218] sm:$0xff]   ;;  %v3164_v25 = vld [vmem:[%s4084_s1 + $0x220] sm:$0xff]  }
  0x1e   :  { %2790 = vmatprep.subr.bf16.mxu1 %v3101_v30  ;;  %v3158_v19 = vld [vmem:[%s4084_s1 + $0x290] sm:$0xff]   ;;  %v3161_v22 = vld [vmem:[%s4084_s1 + $0x2d8] sm:$0xff]   ;;  %v3165_v26 = vld [vmem:[%s4084_s1 + $0x2e0] sm:$0xff]  }
  0x1f   :  { %2769 = vmatpush3.bf16.msra.mxu0 %v3100_v29  ;;  %v3162_v23 = vld [vmem:[%s4084_s1 + $0x298] sm:$0xff]   ;;  %v3166_v27 = vld [vmem:[%s4084_s1 + $0x2a0] sm:$0xff]   ;;  %v3167_v28 = vld [vmem:[%s4084_s1 + $0x268] sm:$0xff]  }
  0x20   :  { %2798 = vmatprep.subr.bf16.mxu0 %v3106_v34  ;;  %v3168_v29 = vld [vmem:[%s4084_s1 + $0x228] sm:$0xff]   ;;  %v3171_v32 = vld [vmem:[%s4084_s1 + $0x270] sm:$0xff]   ;;  %v3175_v36 = vld [vmem:[%s4084_s1 + $0x278] sm:$0xff]  }
  0x21   :  { %2791 = vmatpush3.bf16.msra.mxu1 %v3105_v33  ;;  %v3169_v30 = vld [vmem:[%s4084_s1 + $0x2e8] sm:$0xff]   ;;  %v3172_v33 = vld [vmem:[%s4084_s1 + $0x230] sm:$0xff]  }
  0x22   :  { %1947 = vmatmul.mubr.bf16.vlgmr.msra.gmra.mrb[0].mxu0 %v3102_v31  ;;  %2820 = vmatprep.subr.bf16.mxu1 %v3111_v38  ;;  %v3170_v31 = vld [vmem:[%s4084_s1 + $0x2a8] sm:$0xff]   ;;  %v3173_v34 = vld [vmem:[%s4084_s1 + $0x2f0] sm:$0xff]   ;;  %v3177_v38 = vld [vmem:[%s4084_s1 + $0x2f8] sm:$0xff]  }
  0x23   :  { %2799 = vmatpush3.bf16.msra.mxu0 %v3110_v37  ;;  %2028 = vmatprep.mubr.bf16.mxu0 %v3142_v4  ;;  %v3176_v37 = vld [vmem:[%s4084_s1 + $0x238] sm:$0xff]   ;;  %v3209_v4 = vld [vmem:[%s4084_s1 + $0x370] sm:$0xff]  }
  0x24   :  { %1988 = vmatmul.mubr.bf16.vlgmr.msra.gmra.mrb[0].mxu1 %v3107_v35  ;;  %2800 = vmatprep.subr.bf16.mxu0 %v3113_v40  ;;  %v3174_v35 = vld [vmem:[%s4084_s1 + $0x2b0] sm:$0xff]  }
  0x25   :  { %2821 = vmatpush3.bf16.msra.mxu1 %v3112_v39  ;;  %2069 = vmatprep.mubr.bf16.mxu1 %v3147_v8  ;;  %v3178_v39 = vld [vmem:[%s4085_s0 + $0x20] ss:$108 sps:$4 sm:$0xff]   ;;  %v3180_v40 = vld [vmem:[%s4085_s0 + $0x24] ss:$108 sps:$4 sm:$0xff]   ;;  %v3213_v8 = vld [vmem:[%s4084_s1 + $0x378] sm:$0xff]  }
  0x26   :  { %2822 = vmatprep.subr.bf16.mxu1 %v3115_v42  ;;  %v3182_v42 = vld [vmem:[%s4084_s1 + $0x340] sm:$0xff]  }
  0x27   :  { %2801 = vmatpush3.bf16.msra.mxu0 %v3114_v41  ;;  %v3181_v41 = vld [vmem:[%s4084_s1 + $0x2b8] sm:$0xff]  }
  0x28   :  { %2802 = vmatprep.subr.bf16.mxu0 %v3117_v44  ;;  %v3185_v44 = vld [vmem:[%s4085_s0 + $0x2c] ss:$108 sps:$4 sm:$0xff]  }
  0x29   :  { %2823 = vmatpush3.bf16.msra.mxu1 %v3116_v43  ;;  %v3183_v43 = vld [vmem:[%s4085_s0 + $0x28] ss:$108 sps:$4 sm:$0xff]  }
  0x2a   :  { %2824 = vmatprep.subr.bf16.mxu1 %v3119_v46  ;;  %v3187_v46 = vld [vmem:[%s4084_s1 + $0x3c0] sm:$0xff]  }
  0x2b   :  { %2803 = vmatpush3.bf16.msra.mxu0 %v3118_v45  ;;  %v3186_v45 = vld [vmem:[%s4084_s1 + $0x300] sm:$0xff]  }
  0x2c   :  { %2804 = vmatprep.subr.bf16.mxu0 %v3121_v48  ;;  %v3189_v48 = vld [vmem:[%s4084_s1 + $0x348] sm:$0xff]  }
  0x2d   :  { %2825 = vmatpush3.bf16.msra.mxu1 %v3120_v47  ;;  %v3188_v47 = vld [vmem:[%s4084_s1 + $0x380] sm:$0xff]  }
  0x2e   :  { %2826 = vmatprep.subr.bf16.mxu1 %v3123_v50  ;;  %v3191_v50 = vld [vmem:[%s4084_s1 + $0x3c8] sm:$0xff]  }
  0x2f   :  { %2805 = vmatpush3.bf16.msra.mxu0 %v3122_v49  ;;  %v3190_v49 = vld [vmem:[%s4084_s1 + $0x308] sm:$0xff]  }
  0x30   :  { %2806 = vmatprep.subr.bf16.mxu0 %v3125_v52  ;;  %v3193_v52 = vld [vmem:[%s4084_s1 + $0x350] sm:$0xff]  }
  0x31   :  { %2827 = vmatpush3.bf16.msra.mxu1 %v3124_v51  ;;  %v3192_v51 = vld [vmem:[%s4084_s1 + $0x388] sm:$0xff]  }
  0x32   :  { %2828 = vmatprep.subr.bf16.mxu1 %v3127_v54  ;;  %v3195_v54 = vld [vmem:[%s4084_s1 + $0x3d0] sm:$0xff]  }
  0x33   :  { %2807 = vmatpush3.bf16.msra.mxu0 %v3126_v53  ;;  %v3194_v53 = vld [vmem:[%s4084_s1 + $0x310] sm:$0xff]  }
  0x34   :  { %2808 = vmatprep.subr.bf16.mxu0 %v3129_v56  ;;  %v3197_v56 = vld [vmem:[%s4084_s1 + $0x358] sm:$0xff]  }
  0x35   :  { %2829 = vmatpush3.bf16.msra.mxu1 %v3128_v55  ;;  %v3196_v55 = vld [vmem:[%s4084_s1 + $0x390] sm:$0xff]  }
  0x36   :  { %2830 = vmatprep.subr.bf16.mxu1 %v3131_v58  ;;  %v3199_v58 = vld [vmem:[%s4084_s1 + $0x3d8] sm:$0xff]  }
  0x37   :  { %2809 = vmatpush3.bf16.msra.mxu0 %v3130_v57  ;;  %v3198_v57 = vld [vmem:[%s4084_s1 + $0x318] sm:$0xff]  }
  0x38   :  { %2810 = vmatprep.subr.bf16.mxu0 %v3133_v60  ;;  %v3201_v60 = vld [vmem:[%s4084_s1 + $0x360] sm:$0xff]  }
  0x39   :  { %2831 = vmatpush3.bf16.msra.mxu1 %v3132_v59  ;;  %v3200_v59 = vld [vmem:[%s4084_s1 + $0x398] sm:$0xff]  }
  0x3a   :  { %2832 = vmatprep.subr.bf16.mxu1 %v3135_v62  ;;  %v3203_v62 = vld [vmem:[%s4084_s1 + $0x3e0] sm:$0xff]  }
  0x3b   :  { %2811 = vmatpush3.bf16.msra.mxu0 %v3134_v61  ;;  %v3202_v61 = vld [vmem:[%s4084_s1 + $0x320] sm:$0xff]  }
  0x3c   :  { %2812 = vmatprep.subr.bf16.mxu0 %v3137_v0  ;;  %v3205_v0 = vld [vmem:[%s4084_s1 + $0x368] sm:$0xff]  }
  0x3d   :  { %2833 = vmatpush3.bf16.msra.mxu1 %v3136_v63  ;;  %v3204_v63 = vld [vmem:[%s4084_s1 + $0x3a0] sm:$0xff]  }
  0x3e   :  { %2834 = vmatprep.subr.bf16.mxu1 %v3139_v2  ;;  %v3207_v2 = vld [vmem:[%s4084_s1 + $0x3e8] sm:$0xff]  }
  0x3f   :  { %2813 = vmatpush3.bf16.msra.mxu0 %v3138_v1  ;;  %v3206_v1 = vld [vmem:[%s4084_s1 + $0x328] sm:$0xff]  }
  0x40   :  { %2842 = vmatprep.subr.bf16.mxu0 %v3144_v6  ;;  %v3211_v6 = vld [vmem:[%s4084_s1 + $0x3f0] sm:$0xff]  }
  0x41   :  { %2835 = vmatpush3.bf16.msra.mxu1 %v3143_v5  ;;  %v3210_v5 = vld [vmem:[%s4084_s1 + $0x330] sm:$0xff]  }
  0x42   :  { %2029 = vmatmul.mubr.bf16.vlgmr.msra.gmra.mrb[4].mxu0 %v3140_v3  ;;  %2864 = vmatprep.subr.bf16.mxu1 %v3149_v10  ;;  %v3208_v3 = vld [vmem:[%s4084_s1 + $0x3a8] sm:$0xff]   ;;  %v3215_v10 = vld [vmem:[%s4084_s1 + $0x3f8] sm:$0xff]  }
  0x43   :  { %2843 = vmatpush3.bf16.msra.mxu0 %v3148_v9  ;;  %2110 = vmatprep.mubr.bf16.mxu0 %v3180_v40  ;;  %v3214_v9 = vld [vmem:[%s4084_s1 + $0x338] sm:$0xff]   ;;  %v3247_v40 = vld [vmem:[%s4084_s1 + $0x470] sm:$0xff]  }
  0x44   :  { %2070 = vmatmul.mubr.bf16.vlgmr.msra.gmra.mrb[4].mxu1 %v3145_v7  ;;  %2844 = vmatprep.subr.bf16.mxu0 %v3151_v12  ;;  %v3212_v7 = vld [vmem:[%s4084_s1 + $0x3b0] sm:$0xff]  }
  0x45   :  { %2865 = vmatpush3.bf16.msra.mxu1 %v3150_v11  ;;  %2151 = vmatprep.mubr.bf16.mxu1 %v3185_v44  ;;  %v3216_v11 = vld [vmem:[%s4085_s0 + $0x30] ss:$108 sps:$4 sm:$0xff]   ;;  %v3218_v12 = vld [vmem:[%s4085_s0 + $0x34] ss:$108 sps:$4 sm:$0xff]  }
  0x46   :  { %2866 = vmatprep.subr.bf16.mxu1 %v3153_v14  ;;  %v3220_v14 = vld [vmem:[%s4084_s1 + $0x440] sm:$0xff]   ;;  %v3251_v44 = vld [vmem:[%s4084_s1 + $0x478] sm:$0xff]  }
  0x47   :  { %2845 = vmatpush3.bf16.msra.mxu0 %v3152_v13  ;;  %v3219_v13 = vld [vmem:[%s4084_s1 + $0x3b8] sm:$0xff]  }
  0x48   :  { %2846 = vmatprep.subr.bf16.mxu0 %v3155_v16  ;;  %v3223_v16 = vld [vmem:[%s4085_s0 + $0x3c] ss:$108 sps:$4 sm:$0xff]  }
  0x49   :  { %2867 = vmatpush3.bf16.msra.mxu1 %v3154_v15  ;;  %v3221_v15 = vld [vmem:[%s4085_s0 + $0x38] ss:$108 sps:$4 sm:$0xff]  }
  0x4a   :  { %2868 = vmatprep.subr.bf16.mxu1 %v3157_v18  ;;  %v3225_v18 = vld [vmem:[%s4084_s1 + $0x4c0] sm:$0xff]  }
  0x4b   :  { %2847 = vmatpush3.bf16.msra.mxu0 %v3156_v17  ;;  %v3224_v17 = vld [vmem:[%s4084_s1 + $0x400] sm:$0xff]  }
  0x4c   :  { %2848 = vmatprep.subr.bf16.mxu0 %v3159_v20  ;;  %v3227_v20 = vld [vmem:[%s4084_s1 + $0x448] sm:$0xff]  }
  0x4d   :  { %2869 = vmatpush3.bf16.msra.mxu1 %v3158_v19  ;;  %v3226_v19 = vld [vmem:[%s4084_s1 + $0x480] sm:$0xff]  }
  0x4e   :  { %2870 = vmatprep.subr.bf16.mxu1 %v3161_v22  ;;  %v3229_v22 = vld [vmem:[%s4084_s1 + $0x4c8] sm:$0xff]  }
  0x4f   :  { %2849 = vmatpush3.bf16.msra.mxu0 %v3160_v21  ;;  %v3228_v21 = vld [vmem:[%s4084_s1 + $0x408] sm:$0xff]  }
  0x50   :  { %2850 = vmatprep.subr.bf16.mxu0 %v3163_v24  ;;  %v3231_v24 = vld [vmem:[%s4084_s1 + $0x450] sm:$0xff]  }
  0x51   :  { %2871 = vmatpush3.bf16.msra.mxu1 %v3162_v23  ;;  %v3230_v23 = vld [vmem:[%s4084_s1 + $0x488] sm:$0xff]  }
  0x52   :  { %2872 = vmatprep.subr.bf16.mxu1 %v3165_v26  ;;  %v3233_v26 = vld [vmem:[%s4084_s1 + $0x4d0] sm:$0xff]  }
  0x53   :  { %2851 = vmatpush3.bf16.msra.mxu0 %v3164_v25  ;;  %v3232_v25 = vld [vmem:[%s4084_s1 + $0x410] sm:$0xff]  }
  0x54   :  { %2852 = vmatprep.subr.bf16.mxu0 %v3167_v28  ;;  %v3235_v28 = vld [vmem:[%s4084_s1 + $0x458] sm:$0xff]  }
  0x55   :  { %2873 = vmatpush3.bf16.msra.mxu1 %v3166_v27  ;;  %v3234_v27 = vld [vmem:[%s4084_s1 + $0x490] sm:$0xff]  }
  0x56   :  { %2874 = vmatprep.subr.bf16.mxu1 %v3169_v30  ;;  %v3237_v30 = vld [vmem:[%s4084_s1 + $0x4d8] sm:$0xff]  }
  0x57   :  { %2853 = vmatpush3.bf16.msra.mxu0 %v3168_v29  ;;  %v3236_v29 = vld [vmem:[%s4084_s1 + $0x418] sm:$0xff]  }
  0x58   :  { %2854 = vmatprep.subr.bf16.mxu0 %v3171_v32  ;;  %v3239_v32 = vld [vmem:[%s4084_s1 + $0x460] sm:$0xff]  }
  0x59   :  { %2875 = vmatpush3.bf16.msra.mxu1 %v3170_v31  ;;  %v3238_v31 = vld [vmem:[%s4084_s1 + $0x498] sm:$0xff]  }
  0x5a   :  { %2876 = vmatprep.subr.bf16.mxu1 %v3173_v34  ;;  %v3241_v34 = vld [vmem:[%s4084_s1 + $0x4e0] sm:$0xff]  }
  0x5b   :  { %2855 = vmatpush3.bf16.msra.mxu0 %v3172_v33  ;;  %v3240_v33 = vld [vmem:[%s4084_s1 + $0x420] sm:$0xff]  }
  0x5c   :  { %2856 = vmatprep.subr.bf16.mxu0 %v3175_v36  ;;  %v3243_v36 = vld [vmem:[%s4084_s1 + $0x468] sm:$0xff]  }
  0x5d   :  { %2877 = vmatpush3.bf16.msra.mxu1 %v3174_v35  ;;  %v3242_v35 = vld [vmem:[%s4084_s1 + $0x4a0] sm:$0xff]  }
  0x5e   :  { %2878 = vmatprep.subr.bf16.mxu1 %v3177_v38  ;;  %v3245_v38 = vld [vmem:[%s4084_s1 + $0x4e8] sm:$0xff]  }
  0x5f   :  { %2857 = vmatpush3.bf16.msra.mxu0 %v3176_v37  ;;  %v3244_v37 = vld [vmem:[%s4084_s1 + $0x428] sm:$0xff]  }
  0x60   :  { %2886 = vmatprep.subr.bf16.mxu0 %v3182_v42  ;;  %v3249_v42 = vld [vmem:[%s4084_s1 + $0x4f0] sm:$0xff]  }
  0x61   :  { %2879 = vmatpush3.bf16.msra.mxu1 %v3181_v41  ;;  %v3248_v41 = vld [vmem:[%s4084_s1 + $0x430] sm:$0xff]  }
  0x62   :  { %2111 = vmatmul.mubr.bf16.vlgmr.msra.gmra.mrb[8].mxu0 %v3178_v39  ;;  %2908 = vmatprep.subr.bf16.mxu1 %v3187_v46  ;;  %v3246_v39 = vld [vmem:[%s4084_s1 + $0x4a8] sm:$0xff]   ;;  %v3253_v46 = vld [vmem:[%s4084_s1 + $0x4f8] sm:$0xff]  }
  0x63   :  { %2887 = vmatpush3.bf16.msra.mxu0 %v3186_v45  ;;  %2192 = vmatprep.mubr.bf16.mxu0 %v3218_v12  ;;  %v3252_v45 = vld [vmem:[%s4084_s1 + $0x438] sm:$0xff]   ;;  %v3285_v12 = vld [vmem:[%s4084_s1 + $0x570] sm:$0xff]  }
  0x64   :  { %2152 = vmatmul.mubr.bf16.vlgmr.msra.gmra.mrb[8].mxu1 %v3183_v43  ;;  %2888 = vmatprep.subr.bf16.mxu0 %v3189_v48  ;;  %v3250_v43 = vld [vmem:[%s4084_s1 + $0x4b0] sm:$0xff]  }
  0x65   :  { %2909 = vmatpush3.bf16.msra.mxu1 %v3188_v47  ;;  %2233 = vmatprep.mubr.bf16.mxu1 %v3223_v16  ;;  %v3254_v47 = vld [vmem:[%s4085_s0 + $0x40] ss:$108 sps:$4 sm:$0xff]   ;;  %v3256_v48 = vld [vmem:[%s4085_s0 + $0x44] ss:$108 sps:$4 sm:$0xff]   ;;  %v3289_v16 = vld [vmem:[%s4084_s1 + $0x578] sm:$0xff]  }
  0x66   :  { %2910 = vmatprep.subr.bf16.mxu1 %v3191_v50  ;;  %v3258_v50 = vld [vmem:[%s4084_s1 + $0x540] sm:$0xff]  }
  0x67   :  { %2889 = vmatpush3.bf16.msra.mxu0 %v3190_v49  ;;  %v3257_v49 = vld [vmem:[%s4084_s1 + $0x4b8] sm:$0xff]  }
  0x68   :  { %2890 = vmatprep.subr.bf16.mxu0 %v3193_v52  ;;  %v3261_v52 = vld [vmem:[%s4085_s0 + $0x4c] ss:$108 sps:$4 sm:$0xff]  }
  0x69   :  { %2911 = vmatpush3.bf16.msra.mxu1 %v3192_v51  ;;  %v3259_v51 = vld [vmem:[%s4085_s0 + $0x48] ss:$108 sps:$4 sm:$0xff]  }
  0x6a   :  { %2912 = vmatprep.subr.bf16.mxu1 %v3195_v54  ;;  %v3263_v54 = vld [vmem:[%s4084_s1 + $0x5c0] sm:$0xff]  }
  0x6b   :  { %2891 = vmatpush3.bf16.msra.mxu0 %v3194_v53  ;;  %v3262_v53 = vld [vmem:[%s4084_s1 + $0x500] sm:$0xff]  }
  0x6c   :  { %2892 = vmatprep.subr.bf16.mxu0 %v3197_v56  ;;  %v3265_v56 = vld [vmem:[%s4084_s1 + $0x548] sm:$0xff]  }
  0x6d   :  { %2913 = vmatpush3.bf16.msra.mxu1 %v3196_v55  ;;  %v3264_v55 = vld [vmem:[%s4084_s1 + $0x580] sm:$0xff]  }
  0x6e   :  { %2914 = vmatprep.subr.bf16.mxu1 %v3199_v58  ;;  %v3267_v58 = vld [vmem:[%s4084_s1 + $0x5c8] sm:$0xff]  }
  0x6f   :  { %2893 = vmatpush3.bf16.msra.mxu0 %v3198_v57  ;;  %v3266_v57 = vld [vmem:[%s4084_s1 + $0x508] sm:$0xff]  }
  0x70   :  { %2894 = vmatprep.subr.bf16.mxu0 %v3201_v60  ;;  %v3269_v60 = vld [vmem:[%s4084_s1 + $0x550] sm:$0xff]  }
  0x71   :  { %2915 = vmatpush3.bf16.msra.mxu1 %v3200_v59  ;;  %v3268_v59 = vld [vmem:[%s4084_s1 + $0x588] sm:$0xff]  }
  0x72   :  { %2916 = vmatprep.subr.bf16.mxu1 %v3203_v62  ;;  %v3271_v62 = vld [vmem:[%s4084_s1 + $0x5d0] sm:$0xff]  }
  0x73   :  { %2895 = vmatpush3.bf16.msra.mxu0 %v3202_v61  ;;  %v3270_v61 = vld [vmem:[%s4084_s1 + $0x510] sm:$0xff]  }
  0x74   :  { %2896 = vmatprep.subr.bf16.mxu0 %v3205_v0  ;;  %v3273_v0 = vld [vmem:[%s4084_s1 + $0x558] sm:$0xff]  }
  0x75   :  { %2917 = vmatpush3.bf16.msra.mxu1 %v3204_v63  ;;  %v3272_v63 = vld [vmem:[%s4084_s1 + $0x590] sm:$0xff]  }
  0x76   :  { %2918 = vmatprep.subr.bf16.mxu1 %v3207_v2  ;;  %v3275_v2 = vld [vmem:[%s4084_s1 + $0x5d8] sm:$0xff]  }
  0x77   :  { %2897 = vmatpush3.bf16.msra.mxu0 %v3206_v1  ;;  %v3274_v1 = vld [vmem:[%s4084_s1 + $0x518] sm:$0xff]  }
  0x78   :  { %2898 = vmatprep.subr.bf16.mxu0 %v3209_v4  ;;  %v3277_v4 = vld [vmem:[%s4084_s1 + $0x560] sm:$0xff]  }
  0x79   :  { %2919 = vmatpush3.bf16.msra.mxu1 %v3208_v3  ;;  %v3276_v3 = vld [vmem:[%s4084_s1 + $0x598] sm:$0xff]  }
  0x7a   :  { %2920 = vmatprep.subr.bf16.mxu1 %v3211_v6  ;;  %v3279_v6 = vld [vmem:[%s4084_s1 + $0x5e0] sm:$0xff]  }
  0x7b   :  { %2899 = vmatpush3.bf16.msra.mxu0 %v3210_v5  ;;  %v3278_v5 = vld [vmem:[%s4084_s1 + $0x520] sm:$0xff]  }
  0x7c   :  { %2900 = vmatprep.subr.bf16.mxu0 %v3213_v8  ;;  %v3281_v8 = vld [vmem:[%s4084_s1 + $0x568] sm:$0xff]  }
  0x7d   :  { %2921 = vmatpush3.bf16.msra.mxu1 %v3212_v7  ;;  %v3280_v7 = vld [vmem:[%s4084_s1 + $0x5a0] sm:$0xff]  }
  0x7e   :  { %2922 = vmatprep.subr.bf16.mxu1 %v3215_v10  ;;  %v3283_v10 = vld [vmem:[%s4084_s1 + $0x5e8] sm:$0xff]  }
  0x7f   :  { %2901 = vmatpush3.bf16.msra.mxu0 %v3214_v9  ;;  %v3282_v9 = vld [vmem:[%s4084_s1 + $0x528] sm:$0xff]  }
  0x80   :  { %2930 = vmatprep.subr.bf16.mxu0 %v3220_v14  ;;  %v3287_v14 = vld [vmem:[%s4084_s1 + $0x5f0] sm:$0xff]  }
  0x81   :  { %2923 = vmatpush3.bf16.msra.mxu1 %v3219_v13  ;;  %v3286_v13 = vld [vmem:[%s4084_s1 + $0x530] sm:$0xff]  }
  0x82   :  { %2193 = vmatmul.mubr.bf16.vlgmr.msra.gmra.mrb[12].mxu0 %v3216_v11  ;;  %2952 = vmatprep.subr.bf16.mxu1 %v3225_v18  ;;  %v3284_v11 = vld [vmem:[%s4084_s1 + $0x5a8] sm:$0xff]   ;;  %v3291_v18 = vld [vmem:[%s4084_s1 + $0x5f8] sm:$0xff]  }
  0x83   :  { %2931 = vmatpush3.bf16.msra.mxu0 %v3224_v17  ;;  %2274 = vmatprep.mubr.bf16.mxu0 %v3256_v48  ;;  %v3290_v17 = vld [vmem:[%s4084_s1 + $0x538] sm:$0xff]  }
  0x84   :  { %2234 = vmatmul.mubr.bf16.vlgmr.msra.gmra.mrb[12].mxu1 %v3221_v15  ;;  %2932 = vmatprep.subr.bf16.mxu0 %v3227_v20  ;;  %v3288_v15 = vld [vmem:[%s4084_s1 + $0x5b0] sm:$0xff]   ;;  %v3321_v48 = vld [vmem:[%s4084_s1 + $0x638] sm:$0xff]  }
  0x85   :  { %2953 = vmatpush3.bf16.msra.mxu1 %v3226_v19  ;;  %2315 = vmatprep.mubr.bf16.mxu1 %v3261_v52  ;;  %v3292_v19 = vld [vmem:[%s4085_s0 + $0x50] ss:$108 sps:$4 sm:$0xff]   ;;  %v3294_v20 = vld [vmem:[%s4085_s0 + $0x54] ss:$108 sps:$4 sm:$0xff]  }
  0x86   :  { %2954 = vmatprep.subr.bf16.mxu1 %v3229_v22  ;;  %v3296_v22 = vld [vmem:[%s4084_s1 + $0x640] sm:$0xff]  }
  0x87   :  { %2933 = vmatpush3.bf16.msra.mxu0 %v3228_v21  ;;  %v3295_v21 = vld [vmem:[%s4084_s1 + $0x5b8] sm:$0xff]  }
  0x88   :  { %2934 = vmatprep.subr.bf16.mxu0 %v3231_v24  ;;  %v3299_v24 = vld [vmem:[%s4085_s0 + $0x5c] ss:$108 sps:$4 sm:$0xff]  }
  0x89   :  { %2955 = vmatpush3.bf16.msra.mxu1 %v3230_v23  ;;  %v3297_v23 = vld [vmem:[%s4085_s0 + $0x58] ss:$108 sps:$4 sm:$0xff]  }
  0x8a   :  { %2956 = vmatprep.subr.bf16.mxu1 %v3233_v26  ;;  %v3327_v26 = vmov 0.0  }
  0x8b   :  { %2935 = vmatpush3.bf16.msra.mxu0 %v3232_v25  ;;  %v3300_v25 = vld [vmem:[%s4084_s1 + $0x600] sm:$0xff]  }
  0x8c   :  { %2936 = vmatprep.subr.bf16.mxu0 %v3235_v28  ;;  %v3302_v28 = vld [vmem:[%s4084_s1 + $0x648] sm:$0xff]  }
  0x8d   :  { %2957 = vmatpush3.bf16.msra.mxu1 %v3234_v27  ;;  %v3301_v27 = vld [vmem:[%s4084_s1 + $0x680] sm:$0xff]  }
  0x8e   :  { %2958 = vmatprep.subr.bf16.mxu1 %v3237_v30  ;;  %v3304_v30 = vld [vmem:[%s4084_s1 + $0x688] sm:$0xff]  }
  0x8f   :  { %2937 = vmatpush3.bf16.msra.mxu0 %v3236_v29  ;;  %v3303_v29 = vld [vmem:[%s4084_s1 + $0x608] sm:$0xff]  }
  0x90   :  { %2938 = vmatprep.subr.bf16.mxu0 %v3239_v32  ;;  %v3306_v32 = vld [vmem:[%s4084_s1 + $0x610] sm:$0xff]  }
  0x91   :  { %2959 = vmatpush3.bf16.msra.mxu1 %v3238_v31  ;;  %v3305_v31 = vld [vmem:[%s4084_s1 + $0x650] sm:$0xff]  }
  0x92   :  { %2960 = vmatprep.subr.bf16.mxu1 %v3241_v34  ;;  %v3308_v34 = vld [vmem:[%s4084_s1 + $0x658] sm:$0xff]  }
  0x93   :  { %2939 = vmatpush3.bf16.msra.mxu0 %v3240_v33  ;;  %v3307_v33 = vld [vmem:[%s4084_s1 + $0x690] sm:$0xff]  }
  0x94   :  { %2940 = vmatprep.subr.bf16.mxu0 %v3243_v36  ;;  %v3310_v36 = vld [vmem:[%s4084_s1 + $0x698] sm:$0xff]  }
  0x95   :  { %2961 = vmatpush3.bf16.msra.mxu1 %v3242_v35  ;;  %v3309_v35 = vld [vmem:[%s4084_s1 + $0x618] sm:$0xff]  }
  0x96   :  { %2962 = vmatprep.subr.bf16.mxu1 %v3245_v38  ;;  %v3312_v38 = vld [vmem:[%s4084_s1 + $0x620] sm:$0xff]  }
  0x97   :  { %2941 = vmatpush3.bf16.msra.mxu0 %v3244_v37  ;;  %v3311_v37 = vld [vmem:[%s4084_s1 + $0x660] sm:$0xff]  }
  0x98   :  { %2942 = vmatprep.subr.bf16.mxu0 %v3247_v40  ;;  %v3314_v40 = vld [vmem:[%s4084_s1 + $0x668] sm:$0xff]  }
  0x99   :  { %2963 = vmatpush3.bf16.msra.mxu1 %v3246_v39  ;;  %v3313_v39 = vld [vmem:[%s4084_s1 + $0x6a0] sm:$0xff]  }
  0x9a   :  { %2964 = vmatprep.subr.bf16.mxu1 %v3249_v42  ;;  %v3316_v42 = vld [vmem:[%s4084_s1 + $0x6a8] sm:$0xff]  }
  0x9b   :  { %2943 = vmatpush3.bf16.msra.mxu0 %v3248_v41  ;;  %v3315_v41 = vld [vmem:[%s4084_s1 + $0x628] sm:$0xff]  }
  0x9c   :  { %2944 = vmatprep.subr.bf16.mxu0 %v3251_v44  ;;  %v3318_v44 = vld [vmem:[%s4084_s1 + $0x630] sm:$0xff]  }
  0x9d   :  { %2965 = vmatpush3.bf16.msra.mxu1 %v3250_v43  ;;  %v3317_v43 = vld [vmem:[%s4084_s1 + $0x670] sm:$0xff]  }
  0x9e   :  { %2966 = vmatprep.subr.bf16.mxu1 %v3253_v46  ;;  %v3320_v46 = vld [vmem:[%s4084_s1 + $0x678] sm:$0xff]  }
  0x9f   :  { %2945 = vmatpush3.bf16.msra.mxu0 %v3252_v45  ;;  %v3319_v45 = vld [vmem:[%s4084_s1 + $0x6b0] sm:$0xff]  }
  0xa0   :  { %2974 = vmatprep.subr.bf16.mxu0 %v3258_v50  ;;  %v3322_v50 = vld [vmem:[%s4085_s0 + $0x60] ss:$108 sps:$4 sm:$0xff]  }
  0xa1   :  { %2967 = vmatpush3.bf16.msra.mxu1 %v3257_v49  ;;  %v3325_v49 = vld [vmem:[%s4084_s1 + $0x6b8] sm:$0xff]  }
  0xa2   :  { %2275 = vmatmul.mubr.bf16.vlgmr.msra.gmra.mrb[16].mxu0 %v3254_v47  ;;  %2996 = vmatprep.subr.bf16.mxu1 %v3263_v54  ;;  %v3324_v47 = vld [vmem:[%s4085_s0 + $0x64] ss:$108 sps:$4 sm:$0xff]  }
  0xa3   :  { %2975 = vmatpush3.bf16.msra.mxu0 %v3262_v53  ;;  %2356 = vmatprep.mubr.bf16.mxu0 %v3294_v20  ;;  %v2510_v53 = vld [vmem:[%s4086_s2] ss:$0 sm:$0xff] }
  0xa4   :  { %2316 = vmatmul.mubr.bf16.vlgmr.msra.gmra.mrb[16].mxu1 %v3259_v51  ;;  %2976 = vmatprep.subr.bf16.mxu0 %v3265_v56  ;;  %v3326_v51 = vld [vmem:[%s4085_s0 + $0x68] ss:$108 sps:$4 sm:$0xff]  }
  0xa5   :  { %2997 = vmatpush3.bf16.msra.mxu1 %v3264_v55  ;;  %2397 = vmatprep.mubr.bf16.mxu1 %v3299_v24 }
  0xa6   :  { %2998 = vmatprep.subr.bf16.mxu1 %v3267_v58 }
  0xa7   :  { %2977 = vmatpush3.bf16.msra.mxu0 %v3266_v57 }
  0xa8   :  { %2978 = vmatprep.subr.bf16.mxu0 %v3269_v60 }
  0xa9   :  { %2999 = vmatpush3.bf16.msra.mxu1 %v3268_v59 }
  0xaa   :  { %3000 = vmatprep.subr.bf16.mxu1 %v3271_v62 }
  0xab   :  { %2979 = vmatpush3.bf16.msra.mxu0 %v3270_v61 }
  0xac   :  { %2980 = vmatprep.subr.bf16.mxu0 %v3273_v0 }
  0xad   :  { %3001 = vmatpush3.bf16.msra.mxu1 %v3272_v63 }
  0xae   :  { %3002 = vmatprep.subr.bf16.mxu1 %v3275_v2 }
  0xaf   :  { %2981 = vmatpush3.bf16.msra.mxu0 %v3274_v1 }
  0xb0   :  { %2982 = vmatprep.subr.bf16.mxu0 %v3277_v4 }
  0xb1   :  { %3003 = vmatpush3.bf16.msra.mxu1 %v3276_v3 }
  0xb2   :  { %3004 = vmatprep.subr.bf16.mxu1 %v3279_v6 }
  0xb3   :  { %2983 = vmatpush3.bf16.msra.mxu0 %v3278_v5 }
  0xb4   :  { %2984 = vmatprep.subr.bf16.mxu0 %v3281_v8 }
  0xb5   :  { %3005 = vmatpush3.bf16.msra.mxu1 %v3280_v7 }
  0xb6   :  { %3006 = vmatprep.subr.bf16.mxu1 %v3283_v10 }
  0xb7   :  { %2985 = vmatpush3.bf16.msra.mxu0 %v3282_v9 }
  0xb8   :  { %2986 = vmatprep.subr.bf16.mxu0 %v3285_v12 }
  0xb9   :  { %3007 = vmatpush3.bf16.msra.mxu1 %v3284_v11 }
  0xba   :  { %3008 = vmatprep.subr.bf16.mxu1 %v3287_v14 }
  0xbb   :  { %2987 = vmatpush3.bf16.msra.mxu0 %v3286_v13 }
  0xbc   :  { %2988 = vmatprep.subr.bf16.mxu0 %v3289_v16 }
  0xbd   :  { %3009 = vmatpush3.bf16.msra.mxu1 %v3288_v15 }
  0xbe   :  { %3010 = vmatprep.subr.bf16.mxu1 %v3291_v18 }
  0xbf   :  { %2989 = vmatpush3.bf16.msra.mxu0 %v3290_v17 }
  0xc0   :  { %3018 = vmatprep.subr.bf16.mxu0 %v3296_v22 }
  0xc1   :  { %3011 = vmatpush3.bf16.msra.mxu1 %v3295_v21 }
  0xc2   :  { %2357 = vmatmul.mubr.bf16.vlgmr.msra.gmra.mrb[20].mxu0 %v3292_v19  ;;  %3049 = vmatprep.subr.bf16.mxu1 %v3327_v26 }
  0xc3   :  { %3019 = vmatpush3.bf16.msra.mxu0 %v3300_v25  ;;  %2438 = vmatprep.mubr.bf16.mxu0 %v3324_v47 }
  0xc4   :  { %2398 = vmatmul.mubr.bf16.vlgmr.msra.gmra.mrb[20].mxu1 %v3297_v23  ;;  %3020 = vmatprep.subr.bf16.mxu0 %v3302_v28 }
  0xc5   :  { %3050 = vmatpush3.bf16.msra.mxu1 %v3301_v27  ;;  %3065 = vmatprep.mubr.msk.bf16.mxu1 %vm3328_vm0, %v3327_v26 }
  0xc6   :  { %3051 = vmatprep.subr.bf16.mxu1 %v3327_v26 }
  0xc7   :  { %3021 = vmatpush3.bf16.msra.mxu0 %v3303_v29 }
  0xc8   :  { %3022 = vmatprep.subr.bf16.mxu0 %v3305_v31 }
  0xc9   :  { %3052 = vmatpush3.bf16.msra.mxu1 %v3304_v30 }
  0xca   :  { %3053 = vmatprep.subr.bf16.mxu1 %v3327_v26 }
  0xcb   :  { %3023 = vmatpush3.bf16.msra.mxu0 %v3306_v32 }
  0xcc   :  { %3024 = vmatprep.subr.bf16.mxu0 %v3308_v34 }
  0xcd   :  { %3054 = vmatpush3.bf16.msra.mxu1 %v3307_v33 }
  0xce   :  { %3055 = vmatprep.subr.bf16.mxu1 %v3327_v26 }
  0xcf   :  { %3025 = vmatpush3.bf16.msra.mxu0 %v3309_v35 }
  0xd0   :  { %3026 = vmatprep.subr.bf16.mxu0 %v3311_v37 }
  0xd1   :  { %3056 = vmatpush3.bf16.msra.mxu1 %v3310_v36 }
  0xd2   :  { %3057 = vmatprep.subr.bf16.mxu1 %v3327_v26 }
  0xd3   :  { %3027 = vmatpush3.bf16.msra.mxu0 %v3312_v38 }
  0xd4   :  { %3028 = vmatprep.subr.bf16.mxu0 %v3314_v40 }
  0xd5   :  { %3058 = vmatpush3.bf16.msra.mxu1 %v3313_v39 }
  0xd6   :  { %3059 = vmatprep.subr.bf16.mxu1 %v3327_v26 }
  0xd7   :  { %3029 = vmatpush3.bf16.msra.mxu0 %v3315_v41 }
  0xd8   :  { %3030 = vmatprep.subr.bf16.mxu0 %v3317_v43 }
  0xd9   :  { %3060 = vmatpush3.bf16.msra.mxu1 %v3316_v42 }
  0xda   :  { %3061 = vmatprep.subr.bf16.mxu1 %v3327_v26 }
  0xdb   :  { %3031 = vmatpush3.bf16.msra.mxu0 %v3318_v44 }
  0xdc   :  { %3032 = vmatprep.subr.bf16.mxu0 %v3320_v46 }
  0xdd   :  { %3062 = vmatpush3.bf16.msra.mxu1 %v3319_v45 }
  0xde   :  { %3063 = vmatprep.subr.bf16.mxu1 %v3327_v26 }
  0xdf   :  { %3033 = vmatpush3.bf16.msra.mxu0 %v3321_v48 }
  0xe1   :  { %3064 = vmatpush3.bf16.msra.mxu1 %v3325_v49 }
  0xe2   :  { %2439 = vmatmul.mubr.bf16.vlgmr.msra.gmra.mrb[24].mxu0 %v3322_v50 }
  0xe4   :  { %3066 = vmatmul.mubr.bf16.vlgmr.msra.gmra.mrb[24].mxu1 %v3326_v51 }
  0xf5   :  { %v2770_v52 = vpop.f32.mrb[0].mxu0 }
  0xf6   :  { %v2771_v54 = vpop.f32.mrb[1].mxu0 }
  0xf7   :  { %v2772_v55 = vadd.f32 %v2771_v54, %v2770_v52  ;;  %v2773_v56 = vpop.f32.mrb[2].mxu0  ;;  %v2792_v57 = vpop.f32.mrb[0].mxu1 }
  0xf8   :  { %v2774_v58 = vpop.f32.mrb[3].mxu0  ;;  %v2793_v61 = vpop.f32.mrb[1].mxu1 }
  0xf9   :  { %v1949_v59 = vadd.f32 %v2772_v55, %v2510_v53  ;;  %v2775_v60 = vadd.f32 %v2774_v58, %v2773_v56  ;;  %v2794_v62 = vadd.f32 %v2793_v61, %v2792_v57  ;;  %v2795_v63 = vpop.f32.mrb[2].mxu1 }
  0xfa   :  { %v2796_v1 = vpop.f32.mrb[3].mxu1 }
  0xfb   :  { %v1952_v0 = vadd.f32 %v2775_v60, %v2510_v53  ;;  %v1990_v2 = vadd.f32 %v2794_v62, %v1949_v59  ;;  %v2797_v3 = vadd.f32 %v2796_v1, %v2795_v63 }
  0xfd   :  { %v1993_v4 = vadd.f32 %v2797_v3, %v1952_v0 }
 0x115   :  { %v2814_v5 = vpop.f32.mrb[4].mxu0 }
 0x116   :  { %v2815_v6 = vpop.f32.mrb[5].mxu0 }
 0x117   :  { %v2816_v7 = vadd.f32 %v2815_v6, %v2814_v5  ;;  %v2817_v8 = vpop.f32.mrb[6].mxu0  ;;  %v2836_v11 = vpop.f32.mrb[4].mxu1 }
 0x118   :  { %v2818_v9 = vpop.f32.mrb[7].mxu0  ;;  %v2837_v13 = vpop.f32.mrb[5].mxu1 }
 0x119   :  { %v2031_v10 = vadd.f32 %v2816_v7, %v1990_v2  ;;  %v2819_v12 = vadd.f32 %v2818_v9, %v2817_v8  ;;  %v2838_v15 = vadd.f32 %v2837_v13, %v2836_v11  ;;  %v2839_v16 = vpop.f32.mrb[6].mxu1 }
 0x11a   :  { %v2840_v17 = vpop.f32.mrb[7].mxu1 }
 0x11b   :  { %v2034_v14 = vadd.f32 %v2819_v12, %v1993_v4  ;;  %v2072_v18 = vadd.f32 %v2838_v15, %v2031_v10  ;;  %v2841_v19 = vadd.f32 %v2840_v17, %v2839_v16 }
 0x11d   :  { %v2075_v20 = vadd.f32 %v2841_v19, %v2034_v14 }
 0x135   :  { %v2858_v21 = vpop.f32.mrb[8].mxu0 }
 0x136   :  { %v2859_v22 = vpop.f32.mrb[9].mxu0 }
 0x137   :  { %v2860_v23 = vadd.f32 %v2859_v22, %v2858_v21  ;;  %v2861_v24 = vpop.f32.mrb[10].mxu0  ;;  %v2880_v25 = vpop.f32.mrb[8].mxu1 }
 0x138   :  { %v2862_v26 = vpop.f32.mrb[11].mxu0  ;;  %v2881_v29 = vpop.f32.mrb[9].mxu1 }
 0x139   :  { %v2113_v27 = vadd.f32 %v2860_v23, %v2072_v18  ;;  %v2863_v28 = vadd.f32 %v2862_v26, %v2861_v24  ;;  %v2882_v30 = vadd.f32 %v2881_v29, %v2880_v25  ;;  %v2883_v31 = vpop.f32.mrb[10].mxu1 }
 0x13a   :  { %v2884_v33 = vpop.f32.mrb[11].mxu1 }
 0x13b   :  { %v2116_v32 = vadd.f32 %v2863_v28, %v2075_v20  ;;  %v2154_v34 = vadd.f32 %v2882_v30, %v2113_v27  ;;  %v2885_v35 = vadd.f32 %v2884_v33, %v2883_v31 }
 0x13d   :  { %v2157_v36 = vadd.f32 %v2885_v35, %v2116_v32 }
 0x155   :  { %v2902_v37 = vpop.f32.mrb[12].mxu0 }
 0x156   :  { %v2903_v38 = vpop.f32.mrb[13].mxu0 }
 0x157   :  { %v2904_v39 = vadd.f32 %v2903_v38, %v2902_v37  ;;  %v2905_v40 = vpop.f32.mrb[14].mxu0  ;;  %v2924_v41 = vpop.f32.mrb[12].mxu1 }
 0x158   :  { %v2906_v42 = vpop.f32.mrb[15].mxu0  ;;  %v2925_v45 = vpop.f32.mrb[13].mxu1 }
 0x159   :  { %v2195_v43 = vadd.f32 %v2904_v39, %v2154_v34  ;;  %v2907_v44 = vadd.f32 %v2906_v42, %v2905_v40  ;;  %v2926_v46 = vadd.f32 %v2925_v45, %v2924_v41  ;;  %v2927_v47 = vpop.f32.mrb[14].mxu1 }
 0x15a   :  { %v2928_v49 = vpop.f32.mrb[15].mxu1 }
 0x15b   :  { %v2198_v48 = vadd.f32 %v2907_v44, %v2157_v36  ;;  %v2236_v50 = vadd.f32 %v2926_v46, %v2195_v43  ;;  %v2929_v51 = vadd.f32 %v2928_v49, %v2927_v47 }
 0x15d   :  { %v2239_v52 = vadd.f32 %v2929_v51, %v2198_v48 }
 0x175   :  { %v2946_v53 = vpop.f32.mrb[16].mxu0 }
 0x176   :  { %v2947_v54 = vpop.f32.mrb[17].mxu0 }
 0x177   :  { %v2948_v55 = vadd.f32 %v2947_v54, %v2946_v53  ;;  %v2949_v56 = vpop.f32.mrb[18].mxu0  ;;  %v2968_v59 = vpop.f32.mrb[16].mxu1 }
 0x178   :  { %v2950_v57 = vpop.f32.mrb[19].mxu0  ;;  %v2969_v61 = vpop.f32.mrb[17].mxu1 }
 0x179   :  { %v2277_v58 = vadd.f32 %v2948_v55, %v2236_v50  ;;  %v2951_v60 = vadd.f32 %v2950_v57, %v2949_v56  ;;  %v2970_v63 = vadd.f32 %v2969_v61, %v2968_v59  ;;  %v2971_v0 = vpop.f32.mrb[18].mxu1 }
 0x17a   :  { %v2972_v1 = vpop.f32.mrb[19].mxu1 }
 0x17b   :  { %v2280_v62 = vadd.f32 %v2951_v60, %v2239_v52  ;;  %v2318_v2 = vadd.f32 %v2970_v63, %v2277_v58  ;;  %v2973_v3 = vadd.f32 %v2972_v1, %v2971_v0 }
 0x17d   :  { %v2321_v4 = vadd.f32 %v2973_v3, %v2280_v62 }
 0x195   :  { %v2990_v5 = vpop.f32.mrb[20].mxu0 }
 0x196   :  { %v2991_v6 = vpop.f32.mrb[21].mxu0 }
 0x197   :  { %v2992_v7 = vadd.f32 %v2991_v6, %v2990_v5  ;;  %v2993_v8 = vpop.f32.mrb[22].mxu0  ;;  %v3012_v9 = vpop.f32.mrb[20].mxu1 }
 0x198   :  { %v2994_v10 = vpop.f32.mrb[23].mxu0  ;;  %v3013_v13 = vpop.f32.mrb[21].mxu1 }
 0x199   :  { %v2359_v11 = vadd.f32 %v2992_v7, %v2318_v2  ;;  %v2995_v12 = vadd.f32 %v2994_v10, %v2993_v8  ;;  %v3014_v14 = vadd.f32 %v3013_v13, %v3012_v9  ;;  %v3015_v15 = vpop.f32.mrb[22].mxu1 }
 0x19a   :  { %v3016_v17 = vpop.f32.mrb[23].mxu1 }
 0x19b   :  { %v2362_v16 = vadd.f32 %v2995_v12, %v2321_v4  ;;  %v2400_v18 = vadd.f32 %v3014_v14, %v2359_v11  ;;  %v3017_v19 = vadd.f32 %v3016_v17, %v3015_v15 }
 0x19d   :  { %v2403_v20 = vadd.f32 %v3017_v19, %v2362_v16 }
 0x1b5   :  { %v3034_v21 = vpop.f32.mrb[24].mxu0 }
 0x1b6   :  { %v3035_v22 = vpop.f32.mrb[25].mxu0 }
 0x1b7   :  { %v2481_v23 = vpop.f32.mrb[24].mxu1  ;;  %v3036_v24 = vadd.f32 %v3035_v22, %v3034_v21  ;;  %v3037_v25 = vpop.f32.mrb[26].mxu0 }
 0x1b8   :  { %v3067_v26 = vpop.f32.mrb[25].mxu1  ;;  %v3038_v27 = vpop.f32.mrb[27].mxu0 }
 0x1b9   :  { %v2484_v28 = vpop.f32.mrb[26].mxu1  ;;  %v2441_v29 = vadd.f32 %v3036_v24, %v2400_v18  ;;  %v3039_v30 = vadd.f32 %v3038_v27, %v3037_v25 }
 0x1ba   :  { %v3068_v31 = vpop.f32.mrb[27].mxu1 }
 0x1bb   :  { %v2482_v32 = vadd.f32 %v2481_v23, %v2441_v29  ;;  %v2444_v33 = vadd.f32 %v3039_v30, %v2403_v20 }
 0x1bd   :  { %v2488_v34 = vrot.slane %v2482_v32, 4  ;;  %v2485_v35 = vadd.f32 %v2484_v28, %v2444_v33 }
 0x1bf   :  { %v2489_v36 = vadd.f32 %v2488_v34, %v2482_v32  ;;  %v2494_v37 = vrot.slane %v2485_v35, 4 }
 0x1c1   :  { %v2490_v38 = vrot.slane %v2489_v36, 2  ;;  %v2495_v39 = vadd.f32 %v2494_v37, %v2485_v35 }
 0x1c3   :  { %v2491_v40 = vadd.f32 %v2490_v38, %v2489_v36  ;;  %v2496_v41 = vrot.slane %v2495_v39, 2 }
 0x1c5   :  { %v2492_v42 = vrot.slane %v2491_v40, 1  ;;  %v2497_v43 = vadd.f32 %v2496_v41, %v2495_v39 }
 0x1c7   :  { %v2498_v44 = vrot.slane %v2497_v43, 1  ;;  %v2493_v45 = vadd.f32 %v2492_v42, %v2491_v40 }
 0x1c9   :  { %v2499_v46 = vadd.f32 %v2498_v44, %v2497_v43 }
 0x1cb   :  { %v2503_v47 = vsel %vm2502_vm1, %v2499_v46, %v2493_v45 }
 0x1cc   :  { %2505 = vst [vmem:[%s4087_s3] sm:$0x3] %v2503_v47 }

</bundles_post_ra>
